<compile_context>
chip_gen: v7x
topology: tpu7x:2x2x1
jax: 0.10.0
libtpu: 0.0.40
codegen_flags: <defaults>
</compile_context>

<pallas_src>
import functools

import jax
import jax.numpy as jnp
from jax.experimental import pallas as pl
from jax.experimental.pallas import tpu as pltpu

D_PTS   = 8      # hidden layers in pts_blocks
W_PTS   = 256
W_RGB   = 128    # W // 2
IN_PTS  = 3
IN_VIEW = 3

# packed input/output lane layout
_XV_W   = 8      # [x(3) | v(3) | pad(2)]
_OUT_W  = 4      # [rgb(3) | sigma(1)]


# ----------------------------------------------------------------------------
# kernel
# ----------------------------------------------------------------------------
def nerf_kernel(xv_ref,
                w0_ref, b0_ref,
                wmid_ref, bmid_ref,
                w4h_ref, w4x_ref, b4_ref,
                wcomb_ref, wr0v_ref, bcomb_ref,
                wr1_ref, br1_ref,
                wr2_ref, br2_ref,
                out_ref, *, epi_dtype):
    f32 = jnp.float32
    bf16 = jnp.bfloat16

    def k3(col0, w):
        # (TN,3) @ (3,N) as VPU outer-product accumulation (no K=3 MXU pass).
        # Re-reads xv_ref at the use site so the narrow input never stays
        # live across the whole layer chain (avoids vreg spills).
        return (xv_ref[:, col0 + 0:col0 + 1] * w[0:1, :]
                + xv_ref[:, col0 + 1:col0 + 2] * w[1:2, :]
                + xv_ref[:, col0 + 2:col0 + 3] * w[2:3, :])

    # pts_blocks hidden layer 0 (K=3) -> VPU in f32, cast once for the MXU.
    h = jnp.maximum(k3(0, w0_ref[...]) + b0_ref[...], 0.0).astype(bf16)

    def hidden(h, w, b):
        # bf16 MXU matmul; epilogue (bias+relu) in epi_dtype (bf16 on v6e/v7x,
        # f32 on v5e); output cast to bf16 for the next MXU pass.
        acc = jnp.dot(h, w, preferred_element_type=epi_dtype)
        return jnp.maximum(acc + b.astype(epi_dtype), 0.0).astype(bf16)

    # hidden layers 1..3
    for i in range(3):
        h = hidden(h, wmid_ref[i], bmid_ref[i])

    # hidden layer 4 (skip): relu(concat([h, x]) @ W4 + b4)
    #   == relu(h@W4h + x@W4x + b4); the x part stays on the VPU.
    xc = (k3(0, w4x_ref[...]) + b4_ref[...]).astype(epi_dtype)
    h = jnp.maximum(
        jnp.dot(h, w4h_ref[...], preferred_element_type=epi_dtype) + xc,
        0.0).astype(bf16)

    # hidden layers 5..7
    for i in range(3, 6):
        h = hidden(h, wmid_ref[i], bmid_ref[i])

    # pts_blocks output layer (activation 'none') has been folded into wcomb
    # at param-prep time.  Fused matmul: cols [0:128) = rgb layer-0
    # (wout@wr0h), col 128 = sigma (wout@wsig), cols 129..255 = zero padding.
    # f32 epilogue here so sigma keeps full precision.
    comb = (jnp.dot(h, wcomb_ref[...], preferred_element_type=f32)
            + bcomb_ref[...])

    # sigma_layer: Linear(W, 1), activation 'none' -> packed output col 3
    out_ref[:, 3:4] = comb[:, W_RGB:W_RGB + 1]

    # rgb_blocks on concat([feat, v]) -> relu, relu, sigmoid
    r = jnp.maximum(comb[:, 0:W_RGB] + k3(3, wr0v_ref[...]), 0.0)
    r = jnp.maximum(
        jnp.dot(r.astype(bf16), wr1_ref[...], preferred_element_type=f32)
        + br1_ref[...], 0.0)
    out_ref[:, 0:3] = jax.nn.sigmoid(
        jnp.dot(r.astype(bf16), wr2_ref[...], preferred_element_type=f32)
        + br2_ref[...])


# ----------------------------------------------------------------------------
# params
# ----------------------------------------------------------------------------
def init_params(key):
    """Deterministic torch.nn.Linear-style init: U(-1/sqrt(fan_in), 1/sqrt(fan_in))."""
    def lin(k, fan_in, shape):
        bound = 1.0 / jnp.sqrt(jnp.float32(fan_in))
        return jax.random.uniform(k, shape, jnp.float32, -bound, bound)

    keys = jax.random.split(key, 32)
    ki = iter(range(32))
    nk = lambda: keys[next(ki)]

    w0   = lin(nk(), IN_PTS, (IN_PTS, W_PTS))
    b0   = lin(nk(), IN_PTS, (1, W_PTS))
    wmid = lin(nk(), W_PTS, (6, W_PTS, W_PTS))
    bmid = lin(nk(), W_PTS, (6, 1, W_PTS))
    # skip layer: fan_in = W + input_ch
    w4h  = lin(nk(), W_PTS + IN_PTS, (W_PTS, W_PTS))
    w4x  = lin(nk(), W_PTS + IN_PTS, (IN_PTS, W_PTS))
    b4   = lin(nk(), W_PTS + IN_PTS, (1, W_PTS))
    wout = lin(nk(), W_PTS, (W_PTS, W_PTS))
    bout = lin(nk(), W_PTS, (1, W_PTS))
    wsig = lin(nk(), W_PTS, (W_PTS, 1))
    bsig = lin(nk(), W_PTS, (1, 1))
    wr0h = lin(nk(), W_PTS + IN_VIEW, (W_PTS, W_RGB))
    wr0v = lin(nk(), W_PTS + IN_VIEW, (IN_VIEW, W_RGB))
    br0  = lin(nk(), W_PTS + IN_VIEW, (1, W_RGB))
    wr1  = lin(nk(), W_RGB, (W_RGB, W_RGB))
    br1  = lin(nk(), W_RGB, (1, W_RGB))
    wr2  = lin(nk(), W_RGB, (W_RGB, 3))
    br2  = lin(nk(), W_RGB, (1, 3))
    return (w0, b0, wmid, bmid, w4h, w4x, b4, wout, bout, wsig, bsig,
            wr0h, wr0v, br0, wr1, br1, wr2, br2)


def prepare_params(params):
    """Fold wout/bout into sigma & rgb0, pack the fused rgb0|sigma weight,
    cast the MXU weights to bf16 (biases stay f32).  Call ONCE, outside the
    per-forward path."""
    (w0, b0, wmid, bmid, w4h, w4x, b4, wout, bout, wsig, bsig,
     wr0h, wr0v, br0, wr1, br1, wr2, br2) = params
    bf16 = jnp.bfloat16

    # feat = h@wout + bout has no activation -> fold into consumers (f32 math).
    wsig_eff = wout @ wsig                 # (W_PTS, 1)
    bsig_eff = bout @ wsig + bsig          # (1, 1)
    wr0h_eff = wout @ wr0h                 # (W_PTS, W_RGB)
    br0_eff  = bout @ wr0h + br0           # (1, W_RGB)

    # Fused sigma-into-rgb0 weight: cols [0:128) rgb0, col 128 sigma, rest 0.
    wcomb = jnp.zeros((W_PTS, W_PTS), jnp.float32)
    wcomb = wcomb.at[:, :W_RGB].set(wr0h_eff)
    wcomb = wcomb.at[:, W_RGB:W_RGB + 1].set(wsig_eff)
    bcomb = jnp.zeros((1, W_PTS), jnp.float32)
    bcomb = bcomb.at[:, :W_RGB].set(br0_eff)
    bcomb = bcomb.at[:, W_RGB:W_RGB + 1].set(bsig_eff)

    return (w0, b0,
            wmid.astype(bf16), bmid,
            w4h.astype(bf16), w4x, b4,
            wcomb.astype(bf16), wr0v, bcomb,
            wr1.astype(bf16), br1,
            wr2.astype(bf16), br2)


# ----------------------------------------------------------------------------
# capability probes (call eagerly, outside jit)
# ----------------------------------------------------------------------------
_PROBE_CACHE = {}


def single_buffer_weights_supported():
    """One-time probe: does this jax build accept pipeline_mode=pl.Buffered(1)
    on a pallas_call BlockSpec (mixed with default specs)?"""
    if "buffered" not in _PROBE_CACHE:
        try:
            def _probe(a_ref, b_ref, o_ref):
                o_ref[...] = a_ref[...] + b_ref[...]
            out = pl.pallas_call(
                _probe,
                out_shape=jax.ShapeDtypeStruct((8, 128), jnp.float32),
                grid=(2,),
                in_specs=[pl.BlockSpec((8, 128), lambda i: (0, 0),
                                       pipeline_mode=pl.Buffered(1)),
                          pl.BlockSpec((8, 128), lambda i: (0, 0))],
                out_specs=pl.BlockSpec((8, 128), lambda i: (0, 0)),
            )(jnp.zeros((8, 128), jnp.float32), jnp.ones((8, 128), jnp.float32))
            jax.block_until_ready(out)
            _PROBE_CACHE["buffered"] = True
        except Exception:
            _PROBE_CACHE["buffered"] = False
    return _PROBE_CACHE["buffered"]


def device_supports_bf16_epilogue():
    """bf16 VPU arithmetic exists on v6e/v7x; keep the f32 epilogue on v5e."""
    try:
        kind = jax.devices()[0].device_kind.lower()
    except Exception:
        return False
    return any(tag in kind for tag in ("v6", "v7", "7x"))


# ----------------------------------------------------------------------------
# wrapper
# ----------------------------------------------------------------------------
def _choose_tn(n_rows):
    # Largest tile that still leaves >= 4 grid steps: amortizes the fixed
    # per-grid-step cost but keeps enough steps for v7x's 2 TensorCores
    # (dimension_semantics=("parallel",) is what shards the grid across them).
    for tn in (2048, 1024, 512, 256):
        if n_rows >= 4 * tn:
            return tn
    return 256


def _const_spec(shape, *, single_buffer):
    ndim = len(shape)
    idx = lambda i: (0,) * ndim
    if single_buffer:
        # Grid-invariant block: no point double-buffering it.
        return pl.BlockSpec(shape, idx, pipeline_mode=pl.Buffered(1))
    return pl.BlockSpec(shape, idx)


def nerf_forward(prepped, x, v, *, single_buffer_weights=False,
                 bf16_epilogue=False):
    """x, v: (..., 3). `prepped` = prepare_params(params).
    Returns dict(rgb=(..., 3), sigma=(...,))."""
    lead = x.shape[:-1]
    xf = x.reshape(-1, IN_PTS).astype(jnp.float32)
    vf = v.reshape(-1, IN_VIEW).astype(jnp.float32)
    n = xf.shape[0]

    tn = _choose_tn(n)
    n_p = ((n + tn - 1) // tn) * tn

    # Pack x|v|pad into one (N, 8) slab (one narrow input instead of two).
    xv = jnp.concatenate([xf, vf, jnp.zeros((n, 2), jnp.float32)], axis=-1)
    if n_p != n:
        xv = jnp.pad(xv, ((0, n_p - n), (0, 0)))

    ws = functools.partial(_const_spec, single_buffer=single_buffer_weights)
    in_specs = [
        pl.BlockSpec((tn, _XV_W), lambda i: (i, 0)),   # packed x|v
        ws((IN_PTS, W_PTS)),                           # w0      (f32)
        ws((1, W_PTS)),                                # b0      (f32)
        ws((6, W_PTS, W_PTS)),                         # wmid    (bf16)
        ws((6, 1, W_PTS)),                             # bmid    (f32)
        ws((W_PTS, W_PTS)),                            # w4h     (bf16)
        ws((IN_PTS, W_PTS)),                           # w4x     (f32)
        ws((1, W_PTS)),                                # b4      (f32)
        ws((W_PTS, W_PTS)),                            # wcomb   (bf16, rgb0|sigma)
        ws((IN_VIEW, W_RGB)),                          # wr0v    (f32)
        ws((1, W_PTS)),                                # bcomb   (f32)
        ws((W_RGB, W_RGB)),                            # wr1     (bf16)
        ws((1, W_RGB)),                                # br1     (f32)
        ws((W_RGB, 3)),                                # wr2     (bf16)
        ws((1, 3)),                                    # br2     (f32)
    ]
    out_specs = pl.BlockSpec((tn, _OUT_W), lambda i: (i, 0))   # rgb|sigma
    out_shape = jax.ShapeDtypeStruct((n_p, _OUT_W), jnp.float32)

    # Advisory cost estimate (helps XLA schedule around a compute-bound call).
    flops_per_row = 2 * (IN_PTS * W_PTS            # layer 0
                         + 6 * W_PTS * W_PTS       # hidden 1..3, 5..7
                         + (W_PTS + IN_PTS) * W_PTS  # skip layer 4
                         + W_PTS * W_PTS           # fused rgb0|sigma
                         + IN_VIEW * W_RGB         # view-dir contribution
                         + W_RGB * W_RGB + W_RGB * 3)
    w_bytes = sum(int(a.size) * a.dtype.itemsize for a in prepped)
    cost = pl.CostEstimate(
        flops=int(flops_per_row) * int(n_p),
        transcendentals=int(3 * n_p),
        bytes_accessed=int(w_bytes + n_p * (_XV_W + _OUT_W) * 4))

    # Big tiles need more scoped VMEM than the default; small tiles keep the
    # conservative limit (also safe on v7x's 64 MiB physical VMEM).
    vmem_limit = (48 if tn >= 1024 else 32) * 1024 * 1024

    kernel = functools.partial(
        nerf_kernel,
        epi_dtype=jnp.bfloat16 if bf16_epilogue else jnp.float32)

    out = pl.pallas_call(
        kernel,
        out_shape=out_shape,
        grid=(n_p // tn,),
        in_specs=in_specs,
        out_specs=out_specs,
        compiler_params=pltpu.CompilerParams(
            dimension_semantics=("parallel",),
            vmem_limit_bytes=vmem_limit),
        cost_estimate=cost,
    )(xv, *prepped)

    rgb = out[:n, 0:3].reshape(*lead, 3)
    sigma = out[:n, 3].reshape(*lead)
    return dict(rgb=rgb, sigma=sigma)


# ----------------------------------------------------------------------------
# pure-JAX reference
# ----------------------------------------------------------------------------
def nerf_ref(params, x, v):
    """Pure-JAX f32 reference of the same forward pass (unfolded, unfused)."""
    (w0, b0, wmid, bmid, w4h, w4x, b4, wout, bout, wsig, bsig,
     wr0h, wr0v, br0, wr1, br1, wr2, br2) = params
    lead = x.shape[:-1]
    xf = x.reshape(-1, IN_PTS).astype(jnp.float32)
    vf = v.reshape(-1, IN_VIEW).astype(jnp.float32)
    relu = lambda t: jnp.maximum(t, 0.0)
    h = relu(xf @ w0 + b0)
    for i in range(3):
        h = relu(h @ wmid[i] + bmid[i])
    h = relu(h @ w4h + xf @ w4x + b4)
    for i in range(3, 6):
        h = relu(h @ wmid[i] + bmid[i])
    feat = h @ wout + bout
    sigma = feat @ wsig + bsig
    r = relu(feat @ wr0h + vf @ wr0v + br0)
    r = relu(r @ wr1 + br1)
    rgb = jax.nn.sigmoid(r @ wr2 + br2)
    return dict(rgb=rgb.reshape(*lead, 3), sigma=sigma[:, 0].reshape(*lead))


# ----------------------------------------------------------------------------
# main
# ----------------------------------------------------------------------------
if __name__ == "__main__":
    key = jax.random.PRNGKey(0)
    kp, kx, kv = jax.random.split(key, 3)
    params = init_params(kp)
    # Hoisted out of the per-call path (review item): runs once.
    prepped = prepare_params(params)
    jax.block_until_ready(prepped)

    # small example: batch=2, 64 points each, 3-d positions and view dirs
    x = jax.random.uniform(kx, (2, 64, 3), jnp.float32, -1.0, 1.0)
    v = jax.random.normal(kv, (2, 64, 3), jnp.float32)
    v = v / jnp.linalg.norm(v, axis=-1, keepdims=True)

    # Eager capability probes BEFORE jitting (never run a probe under trace).
    single_buf = single_buffer_weights_supported()
    bf16_epi = device_supports_bf16_epilogue()

    fwd = jax.jit(nerf_forward,
                  static_argnames=("single_buffer_weights", "bf16_epilogue"))
    out = fwd(prepped, x, v,
              single_buffer_weights=single_buf, bf16_epilogue=bf16_epi)
    jax.block_until_ready(out)

    ref = nerf_ref(params, x, v)
    assert out["rgb"].shape == (2, 64, 3) and out["sigma"].shape == (2, 64)
    # bf16 MXU (f32 accumulation) + optional bf16 epilogue: loosened tolerances
    # vs. the f32 reference.
    assert jnp.allclose(out["rgb"], ref["rgb"], atol=3e-2, rtol=3e-2)
    assert jnp.allclose(out["sigma"], ref["sigma"], atol=3e-2, rtol=3e-2)

    print("KERNEL_OK")
</pallas_src>

<mosaic_0001>
module attributes {stable_mosaic.version = 11 : i64} {
  func.func @_probe(%arg0: i32, %arg1: memref<8x128xf32, #tpu.memory_space<vmem>>, %arg2: memref<8x128xf32, #tpu.memory_space<vmem>>, %arg3: memref<8x128xf32, #tpu.memory_space<vmem>>) attributes {dimension_semantics = [#tpu.dimension_semantics<arbitrary>], iteration_bounds = array<i64: 2>, scalar_prefetch = 0 : i64, scratch_operands = 0 : i64, tpu.core_type = #tpu.core_type<tc>, window_params = [{pipeline_mode = #tpu.pipeline_mode<synchronous>, transform_indices = @transform_0, window_bounds = array<i64: 8, 128>}, {pipeline_mode = #tpu.pipeline_mode<synchronous>, transform_indices = @transform_1, window_bounds = array<i64: 8, 128>}, {pipeline_mode = #tpu.pipeline_mode<synchronous>, transform_indices = @transform_2, window_bounds = array<i64: 8, 128>}]} {
    %c0 = arith.constant 0 : index
    %c0_0 = arith.constant 0 : index
    %0 = vector.load %arg1[%c0, %c0_0] : memref<8x128xf32, #tpu.memory_space<vmem>>, vector<8x128xf32>
    %c0_1 = arith.constant 0 : index
    %c0_2 = arith.constant 0 : index
    %1 = vector.load %arg2[%c0_1, %c0_2] : memref<8x128xf32, #tpu.memory_space<vmem>>, vector<8x128xf32>
    %2 = arith.addf %0, %1 : vector<8x128xf32>
    %c0_3 = arith.constant 0 : index
    %c0_4 = arith.constant 0 : index
    %3 = vector.load %arg3[%c0_3, %c0_4] : memref<8x128xf32, #tpu.memory_space<vmem>>, vector<8x128xf32>
    tpu.vector_store %arg3[%c0_3, %c0_4], %2 {strides = array<i32>} : memref<8x128xf32, #tpu.memory_space<vmem>>, vector<8x128xf32>,
    return
  }
  func.func @transform_0(%arg0: i32) -> (i32, i32) {
    %c0_i32 = arith.constant 0 : i32
    %c0_i32_0 = arith.constant 0 : i32
    %c0_i32_1 = arith.constant 0 : i32
    return %c0_i32, %c0_i32_0 : i32, i32
  }
  func.func @transform_1(%arg0: i32) -> (i32, i32) {
    %c0_i32 = arith.constant 0 : i32
    %c0_i32_0 = arith.constant 0 : i32
    %c0_i32_1 = arith.constant 0 : i32
    return %c0_i32, %c0_i32_0 : i32, i32
  }
  func.func @transform_2(%arg0: i32) -> (i32, i32) {
    %c0_i32 = arith.constant 0 : i32
    %c0_i32_0 = arith.constant 0 : i32
    %c0_i32_1 = arith.constant 0 : i32
    return %c0_i32, %c0_i32_0 : i32, i32
  }
}

module attributes {stable_mosaic.version = 11 : i64} {
  func.func @nerf_kernel(%arg0: i32, %arg1: memref<256x8xf32, #tpu.memory_space<vmem>>, %arg2: memref<3x256xf32, #tpu.memory_space<vmem>>, %arg3: memref<1x256xf32, #tpu.memory_space<vmem>>, %arg4: memref<6x256x256xbf16, #tpu.memory_space<vmem>>, %arg5: memref<6x1x256xf32, #tpu.memory_space<vmem>>, %arg6: memref<256x256xbf16, #tpu.memory_space<vmem>>, %arg7: memref<3x256xf32, #tpu.memory_space<vmem>>, %arg8: memref<1x256xf32, #tpu.memory_space<vmem>>, %arg9: memref<256x256xbf16, #tpu.memory_space<vmem>>, %arg10: memref<3x128xf32, #tpu.memory_space<vmem>>, %arg11: memref<1x256xf32, #tpu.memory_space<vmem>>, %arg12: memref<128x128xbf16, #tpu.memory_space<vmem>>, %arg13: memref<1x128xf32, #tpu.memory_space<vmem>>, %arg14: memref<128x3xbf16, #tpu.memory_space<vmem>>, %arg15: memref<1x3xf32, #tpu.memory_space<vmem>>, %arg16: memref<256x4xf32, #tpu.memory_space<vmem>>) attributes {dimension_semantics = [#tpu.dimension_semantics<parallel>], iteration_bounds = array<i64: 1>, scalar_prefetch = 0 : i64, scratch_operands = 0 : i64, tpu.core_type = #tpu.core_type<tc>, window_params = [{transform_indices = @transform_0, window_bounds = array<i64: 256, 8>}, {pipeline_mode = #tpu.pipeline_mode<synchronous>, transform_indices = @transform_1, window_bounds = array<i64: 3, 256>}, {pipeline_mode = #tpu.pipeline_mode<synchronous>, transform_indices = @transform_2, window_bounds = array<i64: 1, 256>}, {pipeline_mode = #tpu.pipeline_mode<synchronous>, transform_indices = @transform_3, window_bounds = array<i64: 6, 256, 256>}, {pipeline_mode = #tpu.pipeline_mode<synchronous>, transform_indices = @transform_4, window_bounds = array<i64: 6, 1, 256>}, {pipeline_mode = #tpu.pipeline_mode<synchronous>, transform_indices = @transform_5, window_bounds = array<i64: 256, 256>}, {pipeline_mode = #tpu.pipeline_mode<synchronous>, transform_indices = @transform_6, window_bounds = array<i64: 3, 256>}, {pipeline_mode = #tpu.pipeline_mode<synchronous>, transform_indices = @transform_7, window_bounds = array<i64: 1, 256>}, {pipeline_mode = #tpu.pipeline_mode<synchronous>, transform_indices = @transform_8, window_bounds = array<i64: 256, 256>}, {pipeline_mode = #tpu.pipeline_mode<synchronous>, transform_indices = @transform_9, window_bounds = array<i64: 3, 128>}, {pipeline_mode = #tpu.pipeline_mode<synchronous>, transform_indices = @transform_10, window_bounds = array<i64: 1, 256>}, {pipeline_mode = #tpu.pipeline_mode<synchronous>, transform_indices = @transform_11, window_bounds = array<i64: 128, 128>}, {pipeline_mode = #tpu.pipeline_mode<synchronous>, transform_indices = @transform_12, window_bounds = array<i64: 1, 128>}, {pipeline_mode = #tpu.pipeline_mode<synchronous>, transform_indices = @transform_13, window_bounds = array<i64: 128, 3>}, {pipeline_mode = #tpu.pipeline_mode<synchronous>, transform_indices = @transform_14, window_bounds = array<i64: 1, 3>}, {transform_indices = @transform_15, window_bounds = array<i64: 256, 4>}]} {
    %c0 = arith.constant 0 : index
    %c0_0 = arith.constant 0 : index
    %0 = vector.load %arg2[%c0, %c0_0] : memref<3x256xf32, #tpu.memory_space<vmem>>, vector<3x256xf32>
    %c0_1 = arith.constant 0 : index
    %c0_2 = arith.constant 0 : index
    %1 = vector.load %arg1[%c0_1, %c0_2] : memref<256x8xf32, #tpu.memory_space<vmem>>, vector<256x1xf32>
    %2 = vector.extract_strided_slice %0 {offsets = [0, 0], sizes = [1, 256], strides = [1, 1]} : vector<3x256xf32> to vector<1x256xf32>
    %3 = vector.broadcast %1 : vector<256x1xf32> to vector<256x256xf32>
    %4 = vector.broadcast %2 : vector<1x256xf32> to vector<256x256xf32>
    %5 = arith.mulf %3, %4 : vector<256x256xf32>
    %c0_3 = arith.constant 0 : index
    %c1 = arith.constant 1 : index
    %6 = vector.load %arg1[%c0_3, %c1] : memref<256x8xf32, #tpu.memory_space<vmem>>, vector<256x1xf32>
    %7 = vector.extract_strided_slice %0 {offsets = [1, 0], sizes = [1, 256], strides = [1, 1]} : vector<3x256xf32> to vector<1x256xf32>
    %8 = vector.broadcast %6 : vector<256x1xf32> to vector<256x256xf32>
    %9 = vector.broadcast %7 : vector<1x256xf32> to vector<256x256xf32>
    %10 = arith.mulf %8, %9 : vector<256x256xf32>
    %11 = arith.addf %5, %10 : vector<256x256xf32>
    %c0_4 = arith.constant 0 : index
    %c2 = arith.constant 2 : index
    %12 = vector.load %arg1[%c0_4, %c2] : memref<256x8xf32, #tpu.memory_space<vmem>>, vector<256x1xf32>
    %13 = vector.extract_strided_slice %0 {offsets = [2, 0], sizes = [1, 256], strides = [1, 1]} : vector<3x256xf32> to vector<1x256xf32>
    %14 = vector.broadcast %12 : vector<256x1xf32> to vector<256x256xf32>
    %15 = vector.broadcast %13 : vector<1x256xf32> to vector<256x256xf32>
    %16 = arith.mulf %14, %15 : vector<256x256xf32>
    %17 = arith.addf %11, %16 : vector<256x256xf32>
    %c0_5 = arith.constant 0 : index
    %c0_6 = arith.constant 0 : index
    %18 = vector.load %arg3[%c0_5, %c0_6] : memref<1x256xf32, #tpu.memory_space<vmem>>, vector<1x256xf32>
    %19 = vector.broadcast %18 : vector<1x256xf32> to vector<256x256xf32>
    %20 = arith.addf %17, %19 : vector<256x256xf32>
    %cst = arith.constant 0.000000e+00 : f32
    %21 = vector.broadcast %cst : f32 to vector<256x256xf32>
    %22 = arith.maximumf %20, %21 : vector<256x256xf32>
    %23 = arith.truncf %22 : vector<256x256xf32> to vector<256x256xbf16>
    %c0_7 = arith.constant 0 : index
    %c0_8 = arith.constant 0 : index
    %c0_9 = arith.constant 0 : index
    %24 = vector.load %arg4[%c0_7, %c0_8, %c0_9] : memref<6x256x256xbf16, #tpu.memory_space<vmem>>, vector<1x256x256xbf16>
    %25 = vector.shape_cast %24 : vector<1x256x256xbf16> to vector<256x256xbf16>
    %c0_10 = arith.constant 0 : index
    %c0_11 = arith.constant 0 : index
    %c0_12 = arith.constant 0 : index
    %26 = vector.load %arg5[%c0_10, %c0_11, %c0_12] : memref<6x1x256xf32, #tpu.memory_space<vmem>>, vector<1x1x256xf32>
    %27 = vector.shape_cast %26 : vector<1x1x256xf32> to vector<1x256xf32>
    %cst_13 = arith.constant dense<0.000000e+00> : vector<256x256xf32>
    %28 = tpu.matmul %23, %25, %cst_13 {dimension_numbers = #tpu.dot_dimension_numbers<[1], [0], [0], [1], [0, 0, 1, 1], [], []>} : vector<256x256xbf16>, vector<256x256xbf16>, vector<256x256xf32> -> vector<256x256xf32>
    %29 = vector.broadcast %27 : vector<1x256xf32> to vector<256x256xf32>
    %30 = arith.addf %28, %29 : vector<256x256xf32>
    %cst_14 = arith.constant 0.000000e+00 : f32
    %31 = vector.broadcast %cst_14 : f32 to vector<256x256xf32>
    %32 = arith.maximumf %30, %31 : vector<256x256xf32>
    %33 = arith.truncf %32 : vector<256x256xf32> to vector<256x256xbf16>
    %c1_15 = arith.constant 1 : index
    %c0_16 = arith.constant 0 : index
    %c0_17 = arith.constant 0 : index
    %34 = vector.load %arg4[%c1_15, %c0_16, %c0_17] : memref<6x256x256xbf16, #tpu.memory_space<vmem>>, vector<1x256x256xbf16>
    %35 = vector.shape_cast %34 : vector<1x256x256xbf16> to vector<256x256xbf16>
    %c1_18 = arith.constant 1 : index
    %c0_19 = arith.constant 0 : index
    %c0_20 = arith.constant 0 : index
    %36 = vector.load %arg5[%c1_18, %c0_19, %c0_20] : memref<6x1x256xf32, #tpu.memory_space<vmem>>, vector<1x1x256xf32>
    %37 = vector.shape_cast %36 : vector<1x1x256xf32> to vector<1x256xf32>
    %cst_21 = arith.constant dense<0.000000e+00> : vector<256x256xf32>
    %38 = tpu.matmul %33, %35, %cst_21 {dimension_numbers = #tpu.dot_dimension_numbers<[1], [0], [0], [1], [0, 0, 1, 1], [], []>} : vector<256x256xbf16>, vector<256x256xbf16>, vector<256x256xf32> -> vector<256x256xf32>
    %39 = vector.broadcast %37 : vector<1x256xf32> to vector<256x256xf32>
    %40 = arith.addf %38, %39 : vector<256x256xf32>
    %cst_22 = arith.constant 0.000000e+00 : f32
    %41 = vector.broadcast %cst_22 : f32 to vector<256x256xf32>
    %42 = arith.maximumf %40, %41 : vector<256x256xf32>
    %43 = arith.truncf %42 : vector<256x256xf32> to vector<256x256xbf16>
    %c2_23 = arith.constant 2 : index
    %c0_24 = arith.constant 0 : index
    %c0_25 = arith.constant 0 : index
    %44 = vector.load %arg4[%c2_23, %c0_24, %c0_25] : memref<6x256x256xbf16, #tpu.memory_space<vmem>>, vector<1x256x256xbf16>
    %45 = vector.shape_cast %44 : vector<1x256x256xbf16> to vector<256x256xbf16>
    %c2_26 = arith.constant 2 : index
    %c0_27 = arith.constant 0 : index
    %c0_28 = arith.constant 0 : index
    %46 = vector.load %arg5[%c2_26, %c0_27, %c0_28] : memref<6x1x256xf32, #tpu.memory_space<vmem>>, vector<1x1x256xf32>
    %47 = vector.shape_cast %46 : vector<1x1x256xf32> to vector<1x256xf32>
    %cst_29 = arith.constant dense<0.000000e+00> : vector<256x256xf32>
    %48 = tpu.matmul %43, %45, %cst_29 {dimension_numbers = #tpu.dot_dimension_numbers<[1], [0], [0], [1], [0, 0, 1, 1], [], []>} : vector<256x256xbf16>, vector<256x256xbf16>, vector<256x256xf32> -> vector<256x256xf32>
    %49 = vector.broadcast %47 : vector<1x256xf32> to vector<256x256xf32>
    %50 = arith.addf %48, %49 : vector<256x256xf32>
    %cst_30 = arith.constant 0.000000e+00 : f32
    %51 = vector.broadcast %cst_30 : f32 to vector<256x256xf32>
    %52 = arith.maximumf %50, %51 : vector<256x256xf32>
    %53 = arith.truncf %52 : vector<256x256xf32> to vector<256x256xbf16>
    %c0_31 = arith.constant 0 : index
    %c0_32 = arith.constant 0 : index
    %54 = vector.load %arg7[%c0_31, %c0_32] : memref<3x256xf32, #tpu.memory_space<vmem>>, vector<3x256xf32>
    %c0_33 = arith.constant 0 : index
    %c0_34 = arith.constant 0 : index
    %55 = vector.load %arg1[%c0_33, %c0_34] : memref<256x8xf32, #tpu.memory_space<vmem>>, vector<256x1xf32>
    %56 = vector.extract_strided_slice %54 {offsets = [0, 0], sizes = [1, 256], strides = [1, 1]} : vector<3x256xf32> to vector<1x256xf32>
    %57 = vector.broadcast %55 : vector<256x1xf32> to vector<256x256xf32>
    %58 = vector.broadcast %56 : vector<1x256xf32> to vector<256x256xf32>
    %59 = arith.mulf %57, %58 : vector<256x256xf32>
    %c0_35 = arith.constant 0 : index
    %c1_36 = arith.constant 1 : index
    %60 = vector.load %arg1[%c0_35, %c1_36] : memref<256x8xf32, #tpu.memory_space<vmem>>, vector<256x1xf32>
    %61 = vector.extract_strided_slice %54 {offsets = [1, 0], sizes = [1, 256], strides = [1, 1]} : vector<3x256xf32> to vector<1x256xf32>
    %62 = vector.broadcast %60 : vector<256x1xf32> to vector<256x256xf32>
    %63 = vector.broadcast %61 : vector<1x256xf32> to vector<256x256xf32>
    %64 = arith.mulf %62, %63 : vector<256x256xf32>
    %65 = arith.addf %59, %64 : vector<256x256xf32>
    %c0_37 = arith.constant 0 : index
    %c2_38 = arith.constant 2 : index
    %66 = vector.load %arg1[%c0_37, %c2_38] : memref<256x8xf32, #tpu.memory_space<vmem>>, vector<256x1xf32>
    %67 = vector.extract_strided_slice %54 {offsets = [2, 0], sizes = [1, 256], strides = [1, 1]} : vector<3x256xf32> to vector<1x256xf32>
    %68 = vector.broadcast %66 : vector<256x1xf32> to vector<256x256xf32>
    %69 = vector.broadcast %67 : vector<1x256xf32> to vector<256x256xf32>
    %70 = arith.mulf %68, %69 : vector<256x256xf32>
    %71 = arith.addf %65, %70 : vector<256x256xf32>
    %c0_39 = arith.constant 0 : index
    %c0_40 = arith.constant 0 : index
    %72 = vector.load %arg8[%c0_39, %c0_40] : memref<1x256xf32, #tpu.memory_space<vmem>>, vector<1x256xf32>
    %73 = vector.broadcast %72 : vector<1x256xf32> to vector<256x256xf32>
    %74 = arith.addf %71, %73 : vector<256x256xf32>
    %c0_41 = arith.constant 0 : index
    %c0_42 = arith.constant 0 : index
    %75 = vector.load %arg6[%c0_41, %c0_42] : memref<256x256xbf16, #tpu.memory_space<vmem>>, vector<256x256xbf16>
    %cst_43 = arith.constant dense<0.000000e+00> : vector<256x256xf32>
    %76 = tpu.matmul %53, %75, %cst_43 {dimension_numbers = #tpu.dot_dimension_numbers<[1], [0], [0], [1], [0, 0, 1, 1], [], []>} : vector<256x256xbf16>, vector<256x256xbf16>, vector<256x256xf32> -> vector<256x256xf32>
    %77 = arith.addf %76, %74 : vector<256x256xf32>
    %cst_44 = arith.constant 0.000000e+00 : f32
    %78 = vector.broadcast %cst_44 : f32 to vector<256x256xf32>
    %79 = arith.maximumf %77, %78 : vector<256x256xf32>
    %80 = arith.truncf %79 : vector<256x256xf32> to vector<256x256xbf16>
    %c3 = arith.constant 3 : index
    %c0_45 = arith.constant 0 : index
    %c0_46 = arith.constant 0 : index
    %81 = vector.load %arg4[%c3, %c0_45, %c0_46] : memref<6x256x256xbf16, #tpu.memory_space<vmem>>, vector<1x256x256xbf16>
    %82 = vector.shape_cast %81 : vector<1x256x256xbf16> to vector<256x256xbf16>
    %c3_47 = arith.constant 3 : index
    %c0_48 = arith.constant 0 : index
    %c0_49 = arith.constant 0 : index
    %83 = vector.load %arg5[%c3_47, %c0_48, %c0_49] : memref<6x1x256xf32, #tpu.memory_space<vmem>>, vector<1x1x256xf32>
    %84 = vector.shape_cast %83 : vector<1x1x256xf32> to vector<1x256xf32>
    %cst_50 = arith.constant dense<0.000000e+00> : vector<256x256xf32>
    %85 = tpu.matmul %80, %82, %cst_50 {dimension_numbers = #tpu.dot_dimension_numbers<[1], [0], [0], [1], [0, 0, 1, 1], [], []>} : vector<256x256xbf16>, vector<256x256xbf16>, vector<256x256xf32> -> vector<256x256xf32>
    %86 = vector.broadcast %84 : vector<1x256xf32> to vector<256x256xf32>
    %87 = arith.addf %85, %86 : vector<256x256xf32>
    %cst_51 = arith.constant 0.000000e+00 : f32
    %88 = vector.broadcast %cst_51 : f32 to vector<256x256xf32>
    %89 = arith.maximumf %87, %88 : vector<256x256xf32>
    %90 = arith.truncf %89 : vector<256x256xf32> to vector<256x256xbf16>
    %c4 = arith.constant 4 : index
    %c0_52 = arith.constant 0 : index
    %c0_53 = arith.constant 0 : index
    %91 = vector.load %arg4[%c4, %c0_52, %c0_53] : memref<6x256x256xbf16, #tpu.memory_space<vmem>>, vector<1x256x256xbf16>
    %92 = vector.shape_cast %91 : vector<1x256x256xbf16> to vector<256x256xbf16>
    %c4_54 = arith.constant 4 : index
    %c0_55 = arith.constant 0 : index
    %c0_56 = arith.constant 0 : index
    %93 = vector.load %arg5[%c4_54, %c0_55, %c0_56] : memref<6x1x256xf32, #tpu.memory_space<vmem>>, vector<1x1x256xf32>
    %94 = vector.shape_cast %93 : vector<1x1x256xf32> to vector<1x256xf32>
    %cst_57 = arith.constant dense<0.000000e+00> : vector<256x256xf32>
    %95 = tpu.matmul %90, %92, %cst_57 {dimension_numbers = #tpu.dot_dimension_numbers<[1], [0], [0], [1], [0, 0, 1, 1], [], []>} : vector<256x256xbf16>, vector<256x256xbf16>, vector<256x256xf32> -> vector<256x256xf32>
    %96 = vector.broadcast %94 : vector<1x256xf32> to vector<256x256xf32>
    %97 = arith.addf %95, %96 : vector<256x256xf32>
    %cst_58 = arith.constant 0.000000e+00 : f32
    %98 = vector.broadcast %cst_58 : f32 to vector<256x256xf32>
    %99 = arith.maximumf %97, %98 : vector<256x256xf32>
    %100 = arith.truncf %99 : vector<256x256xf32> to vector<256x256xbf16>
    %c5 = arith.constant 5 : index
    %c0_59 = arith.constant 0 : index
    %c0_60 = arith.constant 0 : index
    %101 = vector.load %arg4[%c5, %c0_59, %c0_60] : memref<6x256x256xbf16, #tpu.memory_space<vmem>>, vector<1x256x256xbf16>
    %102 = vector.shape_cast %101 : vector<1x256x256xbf16> to vector<256x256xbf16>
    %c5_61 = arith.constant 5 : index
    %c0_62 = arith.constant 0 : index
    %c0_63 = arith.constant 0 : index
    %103 = vector.load %arg5[%c5_61, %c0_62, %c0_63] : memref<6x1x256xf32, #tpu.memory_space<vmem>>, vector<1x1x256xf32>
    %104 = vector.shape_cast %103 : vector<1x1x256xf32> to vector<1x256xf32>
    %cst_64 = arith.constant dense<0.000000e+00> : vector<256x256xf32>
    %105 = tpu.matmul %100, %102, %cst_64 {dimension_numbers = #tpu.dot_dimension_numbers<[1], [0], [0], [1], [0, 0, 1, 1], [], []>} : vector<256x256xbf16>, vector<256x256xbf16>, vector<256x256xf32> -> vector<256x256xf32>
    %106 = vector.broadcast %104 : vector<1x256xf32> to vector<256x256xf32>
    %107 = arith.addf %105, %106 : vector<256x256xf32>
    %cst_65 = arith.constant 0.000000e+00 : f32
    %108 = vector.broadcast %cst_65 : f32 to vector<256x256xf32>
    %109 = arith.maximumf %107, %108 : vector<256x256xf32>
    %110 = arith.truncf %109 : vector<256x256xf32> to vector<256x256xbf16>
    %c0_66 = arith.constant 0 : index
    %c0_67 = arith.constant 0 : index
    %111 = vector.load %arg9[%c0_66, %c0_67] : memref<256x256xbf16, #tpu.memory_space<vmem>>, vector<256x256xbf16>
    %cst_68 = arith.constant dense<0.000000e+00> : vector<256x256xf32>
    %112 = tpu.matmul %110, %111, %cst_68 {dimension_numbers = #tpu.dot_dimension_numbers<[1], [0], [0], [1], [0, 0, 1, 1], [], []>} : vector<256x256xbf16>, vector<256x256xbf16>, vector<256x256xf32> -> vector<256x256xf32>
    %c0_69 = arith.constant 0 : index
    %c0_70 = arith.constant 0 : index
    %113 = vector.load %arg11[%c0_69, %c0_70] : memref<1x256xf32, #tpu.memory_space<vmem>>, vector<1x256xf32>
    %114 = vector.broadcast %113 : vector<1x256xf32> to vector<256x256xf32>
    %115 = arith.addf %112, %114 : vector<256x256xf32>
    %116 = vector.extract_strided_slice %115 {offsets = [0, 128], sizes = [256, 1], strides = [1, 1]} : vector<256x256xf32> to vector<256x1xf32>
    %c0_71 = arith.constant 0 : index
    %c3_72 = arith.constant 3 : index
    %117 = vector.load %arg16[%c0_71, %c3_72] : memref<256x4xf32, #tpu.memory_space<vmem>>, vector<256x1xf32>
    tpu.vector_store %arg16[%c0_71, %c3_72], %116 {strides = array<i32>} : memref<256x4xf32, #tpu.memory_space<vmem>>, vector<256x1xf32>,
    %118 = vector.extract_strided_slice %115 {offsets = [0, 0], sizes = [256, 128], strides = [1, 1]} : vector<256x256xf32> to vector<256x128xf32>
    %c0_73 = arith.constant 0 : index
    %c0_74 = arith.constant 0 : index
    %119 = vector.load %arg10[%c0_73, %c0_74] : memref<3x128xf32, #tpu.memory_space<vmem>>, vector<3x128xf32>
    %c0_75 = arith.constant 0 : index
    %c3_76 = arith.constant 3 : index
    %120 = vector.load %arg1[%c0_75, %c3_76] : memref<256x8xf32, #tpu.memory_space<vmem>>, vector<256x1xf32>
    %121 = vector.extract_strided_slice %119 {offsets = [0, 0], sizes = [1, 128], strides = [1, 1]} : vector<3x128xf32> to vector<1x128xf32>
    %122 = vector.broadcast %120 : vector<256x1xf32> to vector<256x128xf32>
    %123 = vector.broadcast %121 : vector<1x128xf32> to vector<256x128xf32>
    %124 = arith.mulf %122, %123 : vector<256x128xf32>
    %c0_77 = arith.constant 0 : index
    %c4_78 = arith.constant 4 : index
    %125 = vector.load %arg1[%c0_77, %c4_78] : memref<256x8xf32, #tpu.memory_space<vmem>>, vector<256x1xf32>
    %126 = vector.extract_strided_slice %119 {offsets = [1, 0], sizes = [1, 128], strides = [1, 1]} : vector<3x128xf32> to vector<1x128xf32>
    %127 = vector.broadcast %125 : vector<256x1xf32> to vector<256x128xf32>
    %128 = vector.broadcast %126 : vector<1x128xf32> to vector<256x128xf32>
    %129 = arith.mulf %127, %128 : vector<256x128xf32>
    %130 = arith.addf %124, %129 : vector<256x128xf32>
    %c0_79 = arith.constant 0 : index
    %c5_80 = arith.constant 5 : index
    %131 = vector.load %arg1[%c0_79, %c5_80] : memref<256x8xf32, #tpu.memory_space<vmem>>, vector<256x1xf32>
    %132 = vector.extract_strided_slice %119 {offsets = [2, 0], sizes = [1, 128], strides = [1, 1]} : vector<3x128xf32> to vector<1x128xf32>
    %133 = vector.broadcast %131 : vector<256x1xf32> to vector<256x128xf32>
    %134 = vector.broadcast %132 : vector<1x128xf32> to vector<256x128xf32>
    %135 = arith.mulf %133, %134 : vector<256x128xf32>
    %136 = arith.addf %130, %135 : vector<256x128xf32>
    %137 = arith.addf %118, %136 : vector<256x128xf32>
    %cst_81 = arith.constant 0.000000e+00 : f32
    %138 = vector.broadcast %cst_81 : f32 to vector<256x128xf32>
    %139 = arith.maximumf %137, %138 : vector<256x128xf32>
    %140 = arith.truncf %139 : vector<256x128xf32> to vector<256x128xbf16>
    %c0_82 = arith.constant 0 : index
    %c0_83 = arith.constant 0 : index
    %141 = vector.load %arg12[%c0_82, %c0_83] : memref<128x128xbf16, #tpu.memory_space<vmem>>, vector<128x128xbf16>
    %cst_84 = arith.constant dense<0.000000e+00> : vector<256x128xf32>
    %142 = tpu.matmul %140, %141, %cst_84 {dimension_numbers = #tpu.dot_dimension_numbers<[1], [0], [0], [1], [0, 0, 1, 1], [], []>} : vector<256x128xbf16>, vector<128x128xbf16>, vector<256x128xf32> -> vector<256x128xf32>
    %c0_85 = arith.constant 0 : index
    %c0_86 = arith.constant 0 : index
    %143 = vector.load %arg13[%c0_85, %c0_86] : memref<1x128xf32, #tpu.memory_space<vmem>>, vector<1x128xf32>
    %144 = vector.broadcast %143 : vector<1x128xf32> to vector<256x128xf32>
    %145 = arith.addf %142, %144 : vector<256x128xf32>
    %cst_87 = arith.constant 0.000000e+00 : f32
    %146 = vector.broadcast %cst_87 : f32 to vector<256x128xf32>
    %147 = arith.maximumf %145, %146 : vector<256x128xf32>
    %148 = arith.truncf %147 : vector<256x128xf32> to vector<256x128xbf16>
    %c0_88 = arith.constant 0 : index
    %c0_89 = arith.constant 0 : index
    %149 = vector.load %arg14[%c0_88, %c0_89] : memref<128x3xbf16, #tpu.memory_space<vmem>>, vector<128x3xbf16>
    %cst_90 = arith.constant dense<0.000000e+00> : vector<256x3xf32>
    %150 = tpu.matmul %148, %149, %cst_90 {dimension_numbers = #tpu.dot_dimension_numbers<[1], [0], [0], [1], [0, 0, 1, 1], [], []>} : vector<256x128xbf16>, vector<128x3xbf16>, vector<256x3xf32> -> vector<256x3xf32>
    %c0_91 = arith.constant 0 : index
    %c0_92 = arith.constant 0 : index
    %151 = vector.load %arg15[%c0_91, %c0_92] : memref<1x3xf32, #tpu.memory_space<vmem>>, vector<1x3xf32>
    %152 = vector.broadcast %151 : vector<1x3xf32> to vector<256x3xf32>
    %153 = arith.addf %150, %152 : vector<256x3xf32>
    %154 = arith.negf %153 : vector<256x3xf32>
    %155 = math.exp %154 : vector<256x3xf32>
    %cst_93 = arith.constant 1.000000e+00 : f32
    %156 = vector.broadcast %cst_93 : f32 to vector<256x3xf32>
    %157 = arith.addf %156, %155 : vector<256x3xf32>
    %158 = arith.divf %156, %157 : vector<256x3xf32>
    %c0_94 = arith.constant 0 : index
    %c0_95 = arith.constant 0 : index
    %159 = vector.load %arg16[%c0_94, %c0_95] : memref<256x4xf32, #tpu.memory_space<vmem>>, vector<256x3xf32>
    tpu.vector_store %arg16[%c0_94, %c0_95], %158 {strides = array<i32>} : memref<256x4xf32, #tpu.memory_space<vmem>>, vector<256x3xf32>,
    return
  }
  func.func @transform_0(%arg0: i32) -> (i32, i32) {
    %c0_i32 = arith.constant 0 : i32
    %c0_i32_0 = arith.constant 0 : i32
    return %arg0, %c0_i32 : i32, i32
  }
  func.func @transform_1(%arg0: i32) -> (i32, i32) {
    %c0_i32 = arith.constant 0 : i32
    %c0_i32_0 = arith.constant 0 : i32
    %c0_i32_1 = arith.constant 0 : i32
    return %c0_i32, %c0_i32_0 : i32, i32
  }
  func.func @transform_2(%arg0: i32) -> (i32, i32) {
    %c0_i32 = arith.constant 0 : i32
    %c0_i32_0 = arith.constant 0 : i32
    %c0_i32_1 = arith.constant 0 : i32
    return %c0_i32, %c0_i32_0 : i32, i32
  }
  func.func @transform_3(%arg0: i32) -> (i32, i32, i32) {
    %c0_i32 = arith.constant 0 : i32
    %c0_i32_0 = arith.constant 0 : i32
    %c0_i32_1 = arith.constant 0 : i32
    %c0_i32_2 = arith.constant 0 : i32
    return %c0_i32, %c0_i32_0, %c0_i32_1 : i32, i32, i32
  }
  func.func @transform_4(%arg0: i32) -> (i32, i32, i32) {
    %c0_i32 = arith.constant 0 : i32
    %c0_i32_0 = arith.constant 0 : i32
    %c0_i32_1 = arith.constant 0 : i32
    %c0_i32_2 = arith.constant 0 : i32
    return %c0_i32, %c0_i32_0, %c0_i32_1 : i32, i32, i32
  }
  func.func @transform_5(%arg0: i32) -> (i32, i32) {
    %c0_i32 = arith.constant 0 : i32
    %c0_i32_0 = arith.constant 0 : i32
    %c0_i32_1 = arith.constant 0 : i32
    return %c0_i32, %c0_i32_0 : i32, i32
  }
  func.func @transform_6(%arg0: i32) -> (i32, i32) {
    %c0_i32 = arith.constant 0 : i32
    %c0_i32_0 = arith.constant 0 : i32
    %c0_i32_1 = arith.constant 0 : i32
    return %c0_i32, %c0_i32_0 : i32, i32
  }
  func.func @transform_7(%arg0: i32) -> (i32, i32) {
    %c0_i32 = arith.constant 0 : i32
    %c0_i32_0 = arith.constant 0 : i32
    %c0_i32_1 = arith.constant 0 : i32
    return %c0_i32, %c0_i32_0 : i32, i32
  }
  func.func @transform_8(%arg0: i32) -> (i32, i32) {
    %c0_i32 = arith.constant 0 : i32
    %c0_i32_0 = arith.constant 0 : i32
    %c0_i32_1 = arith.constant 0 : i32
    return %c0_i32, %c0_i32_0 : i32, i32
  }
  func.func @transform_9(%arg0: i32) -> (i32, i32) {
    %c0_i32 = arith.constant 0 : i32
    %c0_i32_0 = arith.constant 0 : i32
    %c0_i32_1 = arith.constant 0 : i32
    return %c0_i32, %c0_i32_0 : i32, i32
  }
  func.func @transform_10(%arg0: i32) -> (i32, i32) {
    %c0_i32 = arith.constant 0 : i32
    %c0_i32_0 = arith.constant 0 : i32
    %c0_i32_1 = arith.constant 0 : i32
    return %c0_i32, %c0_i32_0 : i32, i32
  }
  func.func @transform_11(%arg0: i32) -> (i32, i32) {
    %c0_i32 = arith.constant 0 : i32
    %c0_i32_0 = arith.constant 0 : i32
    %c0_i32_1 = arith.constant 0 : i32
    return %c0_i32, %c0_i32_0 : i32, i32
  }
  func.func @transform_12(%arg0: i32) -> (i32, i32) {
    %c0_i32 = arith.constant 0 : i32
    %c0_i32_0 = arith.constant 0 : i32
    %c0_i32_1 = arith.constant 0 : i32
    return %c0_i32, %c0_i32_0 : i32, i32
  }
  func.func @transform_13(%arg0: i32) -> (i32, i32) {
    %c0_i32 = arith.constant 0 : i32
    %c0_i32_0 = arith.constant 0 : i32
    %c0_i32_1 = arith.constant 0 : i32
    return %c0_i32, %c0_i32_0 : i32, i32
  }
  func.func @transform_14(%arg0: i32) -> (i32, i32) {
    %c0_i32 = arith.constant 0 : i32
    %c0_i32_0 = arith.constant 0 : i32
    %c0_i32_1 = arith.constant 0 : i32
    return %c0_i32, %c0_i32_0 : i32, i32
  }
  func.func @transform_15(%arg0: i32) -> (i32, i32) {
    %c0_i32 = arith.constant 0 : i32
    %c0_i32_0 = arith.constant 0 : i32
    return %arg0, %c0_i32 : i32, i32
  }
}

</mosaic_0001>

<bundles_post_ra>
// kernel: tpu_custom_call.1
= control target key start
LH: loop header
LB: loop body
LE: loop exit
PB: predicated region body
PF: predicated region fallthrough
CT: control target
= control target key end

     0   :  { %7 = vsyncpa [#allocation3], 0  ;;  %s479_s0 = inlined_call_operand.hbm [shape: f32[8,128], index: 0, kind: input, shape index: {}]   ;;  %s480_s1 = inlined_call_operand.hbm [shape: f32[8,128], index: 1, kind: input, shape index: {}]   ;;  %s481_s2 = inlined_call_operand.hbm [shape: f32[8,128], index: 2, kind: output, shape index: {}]  }
   0x1   :  { %8 = vsyncpa [#allocation6], 0 }
   0x2   :  { %9 = vsyncpa [#allocation4], 0  ;;  %s363_s9 = smov 0  }
   0x3 LB: > { %s196_s10 = sadd.s32 4294967295, %s343_s9   ;;  %p197_p0 = scmp.ge.s32.totalorder %s343_s9, 1  ;;  %s343_s9 = sphi %s363_s9, %s15_s9  }
   0x4   : > { %p83_p1 = scmp.lt.s32.totalorder %s343_s9, 3  ;;  %p373_p2 = scmp.eq.s32.totalorder %s196_s10, 0 }
   0x5   : > { %s345_s13 = smov [#allocation2]   ;;  %s346_s15 = smov [#allocation5]  }
   0x6   : > { %s485_s11 = scalar_select %p373_p2, 1, 0 }
   0x7   : > { %p377_p3 = pnand %p197_p0, %p83_p1  ;;  %s96_s14 = sshll.u32 %s345_s13, 4  ;;  %s97_s14 = int_to_ptr.vmem [resolvable:$true] %s96_s14 }
   0x8   : > { %s107_s16 = sshll.u32 %s346_s15, 4  ;;  %s243_s20 = scalar_lea.hbm %s479_s0, 128  ;;  %s389_s16 = int_to_ptr.vmem [resolvable:$true] %s107_s16 }
   0x9   : > { %s486_s12 = scalar_select %p377_p3, 1, 0 }
   0xa   : > { %p219_p4 = pneg %p377_p3  ;;  %p244_p6 = scmp.ne.s32.totalorder %s479_s0, %s243_s20 }
   0xb   : > { %p250_p10 = scmp.lt.u32.totalorder %s243_s20, %s479_s0 }
   0xc   : > { %p385_p5 = pnand %p373_p2, %p219_p4 }
   0xe   : > { %p245_p7 = pneg %p385_p5 }
  0x10   : > { %p246_p8 = pnand %p245_p7, %p244_p6 }
  0x12   : > { %p247_p9 = pneg %p246_p8 }
  0x14   : > { %p252_p11 = pnand %p250_p10, %p247_p9 }
  0x16   : > { %255 = shalt.err (!%p252_p11)
}
  0x17   : > { %s256_s25 = scalar_lea.vmem %s97_s14, 128  ;;  %p264_p1 = scmp.lt.s32.totalorder %s97_s14, %s97_s14 }
  0x18   : > { %p257_p12 = scmp.ne.s32.totalorder %s97_s14, %s256_s25  ;;  %p265_p4 = scmp.lt.s32.totalorder %s256_s25, %s256_s25 }
  0x1a   : > { %p259_p13 = pnand %p257_p12, %p245_p7  ;;  %p266_p2 = por %p265_p4, %p264_p1 }
  0x1c   : > { %p260_p0 = pneg %p259_p13 }
  0x1e   : > { %p267_p3 = pnand %p266_p2, %p260_p0 }
  0x20   : > { %270 = shalt.err (!%p267_p3)
}
  0x21   : > { %222 = dma.hbm_to_vmem [thread:$0]  (!%p385_p5), %s479_s0, 128, %s97_s14, [#allocation3]  }
  0x22   : > { %s271_s30 = scalar_lea.hbm %s480_s1, 128 }
  0x23   : > { %p272_p6 = scmp.ne.s32.totalorder %s480_s1, %s271_s30  ;;  %p278_p3 = scmp.lt.u32.totalorder %s271_s30, %s480_s1 }
  0x25   : > { %p274_p8 = pnand %p272_p6, %p245_p7 }
  0x27   : > { %p275_p2 = pneg %p274_p8 }
  0x29   : > { %p280_p9 = pnand %p278_p3, %p275_p2 }
  0x2b   : > { %283 = shalt.err (!%p280_p9)
}
  0x2c   : > { %s284_s7 = scalar_lea.vmem %s389_s16, 128  ;;  %p292_p13 = scmp.lt.s32.totalorder %s389_s16, %s389_s16 }
  0x2d   : > { %p285_p10 = scmp.ne.s32.totalorder %s389_s16, %s284_s7  ;;  %p293_p0 = scmp.lt.s32.totalorder %s284_s7, %s284_s7 }
  0x2f   : > { %p287_p11 = pnand %p285_p10, %p245_p7  ;;  %p294_p1 = por %p293_p0, %p292_p13 }
  0x31   : > { %p288_p12 = pneg %p287_p11 }
  0x33   : > { %p295_p4 = pnand %p294_p1, %p288_p12 }
  0x35   : > { %298 = shalt.err (!%p295_p4)
}
  0x36   : > { %225 = dma.hbm_to_vmem [thread:$0]  (!%p385_p5), %s480_s1, 128, %s389_s16, [#allocation6]  }
  0x37   : > { %p488_p6 = scmp.ne.s32.totalorder %s486_s12, 0 }
  0x38   : > { %p489_p8 = scmp.ne.s32.totalorder (!%p488_p6), %s485_s11, 0 }
  0x39   : > { %120 = sbr.rel (%p488_p6) target bundleno = 92 (0x5c), region = 28 }
  0x40   : > { %330 = dma.done.wait (%p489_p8), [#allocation3], 128  }
  0x41   : > { %332 = vsyncadd (%p489_p8), [#allocation3], 4294967168 }
  0x42   : > { %334 = dma.done.wait (%p489_p8), [#allocation6], 128  }
  0x43   : > { %336 = vsyncadd (%p489_p8), [#allocation6], 4294967168  ;;  %s347_s14 = smov [#allocation7]   ;;  %v136_v0 = vld [vmem:[#allocation2] sm:$0xff]  ;;  %v137_v1 = vld [vmem:[#allocation5] sm:$0xff]  ;;  %p450_p5 = scmp.eq.s32.totalorder %s196_s10, 1 }
  0x44   : > { %s147_s15 = sshll.u32 %s347_s14, 4  ;;  %v138_v2 = vadd.f32 %v137_v1, %v136_v0  ;;  %s148_s15 = int_to_ptr.vmem [resolvable:$true] %s147_s15 }
  0x45   : > { %s299_s16 = scalar_lea.vmem %s148_s15, 128  ;;  %p306_p9 = scmp.lt.s32.totalorder %s148_s15, %s148_s15 }
  0x46   : > { %139 = vst [vmem:[#allocation7] sm:$0xff] %v138_v2  ;;  %p300_p7 = scmp.ne.s32.totalorder %s148_s15, %s299_s16  ;;  %p307_p10 = scmp.lt.s32.totalorder %s299_s16, %s299_s16 }
  0x48   : > { %p301_p2 = pnand %p300_p7, %p450_p5  ;;  %p308_p11 = por %p307_p10, %p306_p9 }
  0x4a   : > { %p302_p3 = pneg %p301_p2 }
  0x4c   : > { %p309_p12 = pnand %p308_p11, %p302_p3 }
  0x4e   : > { %312 = shalt.err (!%p309_p12)
}
  0x4f   : > { %s313_s10 = scalar_lea.hbm %s481_s2, 128 }
  0x50   : > { %p314_p13 = scmp.ne.s32.totalorder %s481_s2, %s313_s10  ;;  %p319_p4 = scmp.lt.u32.totalorder %s313_s10, %s481_s2 }
  0x52   : > { %p315_p0 = pnand %p314_p13, %p450_p5 }
  0x54   : > { %p316_p1 = pneg %p315_p0 }
  0x56   : > { %p321_p6 = pnand %p319_p4, %p316_p1 }
  0x58   : > { %324 = shalt.err (!%p321_p6)
}
  0x59   : > { %216 = dma.vmem_to_hbm [thread:$0]  (%p450_p5), %s148_s15, 128, %s481_s2, [#allocation4]  }
  0x5a   : > { %338 = dma.done.wait (%p450_p5), [#allocation4], 128  }
  0x5b   : > { %340 = vsyncadd (%p450_p5), [#allocation4], 4294967168 }
  0x5c PF: > { %s15_s9 = sadd.s32 1, %s343_s9  }
  0x5d   : > { %p12_p8 = scmp.ge.s32.totalorder %s15_s9, 4  }
  0x5f   :  { %14 = sbr.rel (!%p12_p8) target bundleno = 3 (0x3), region = 61 }
  0x66   :  { %160 = vsyncpa [#allocation3], 1 }
  0x67   :  { %162 = vsyncpa [#allocation3 + $0x1], 1 }
  0x68   :  { %163 = vsyncpa [#allocation6], 1 }
  0x69   :  { %164 = vsyncpa [#allocation4], 1 }
  0x6a   :  { %166 = vsyncpa [#allocation4 + $0x1], 1 }

// kernel: squeeze.1
= control target key start
LH: loop header
LB: loop body
LE: loop exit
PB: predicated region body
PF: predicated region fallthrough
CT: control target
= control target key end

     0   :  { %s85_s0 = inlined_call_operand.vmem [shape: f32[128], index: 0, kind: input, shape index: {}]   ;;  %s86_s1 = inlined_call_operand.hbm [shape: f32[2,64], index: 1, kind: output, shape index: {}]  }
   0x1   :  { %v5_v0 = vld [vmem:[%s85_s0] sm:$0x1] }
   0x2   :  { %2 = vsyncpa [#allocation1], 0  ;;  %6 = vst [vmem:[#allocation3] sm:$0x1] %v5_v0  ;;  %vm8_vm0 = vcmask 523264   ;;  %s58_s0 = smov 64  }
   0x3   :  { %s59_s8 = smov [#allocation0]  }
   0x4   :  { %s26_s9 = sshll.u32 %s59_s8, 4  ;;  %s27_s9 = int_to_ptr.vmem [resolvable:$true] %s26_s9 }
   0x5   :  { %s34_s10 = scalar_lea.vmem %s27_s9, 32  ;;  %p39_p1 = scmp.lt.s32.totalorder %s27_s9, %s27_s9 }
   0x6   :  { %p35_p0 = scmp.ne.s32.totalorder %s27_s9, %s34_s10  ;;  %p40_p2 = scmp.lt.s32.totalorder %s34_s10, %s34_s10 }
   0x8   :  { %p41_p3 = por %p40_p2, %p39_p1 }
   0x9   :  { %v10_v1 = vld [vmem:[#allocation3] sm:$0x1]  }
   0xa   :  { %v7_v2 = vld [vmem:[#allocation3] sm:$0x1]   ;;  %11 = vrot.lane.b32.xlu0 %v10_v1, %s58_s0  ;;  %p42_p4 = pnand %p41_p3, %p35_p0 }
   0xb   :  { %9 = vst.msk [vmem:[#allocation2] sm:$0x1] %vm8_vm0, %v7_v2  }
  0x7c   :  { %v12_v3 = vpop.permute.xlu0 %11  }
  0x7d   :  { %15 = vst.msk [vmem:[#allocation2 + $0x1] sm:$0x1] %vm8_vm0, %v12_v3  }
  0x84   :  { %v19_v4 = vld [vmem:[#allocation2] sm:$0x3] }
  0x85   :  { %21 = vst [vmem:[#allocation0] sm:$0x3] %v19_v4 }
  0x86   :  { %45 = shalt.err (!%p42_p4)
}
  0x87   :  { %s46_s13 = scalar_lea.hbm %s86_s1, 32 }
  0x88   :  { %p47_p5 = scmp.ne.s32.totalorder %s86_s1, %s46_s13  ;;  %p50_p6 = scmp.lt.u32.totalorder %s46_s13, %s86_s1 }
  0x8a   :  { %p52_p7 = pnand %p50_p6, %p47_p5 }
  0x8c   :  { %55 = shalt.err (!%p52_p7)
}
  0x8d   :  { %29 = dma.vmem_to_hbm [thread:$0]  %s27_s9, 32, %s86_s1, [#allocation1]  }
  0x8e   :  { %56 = dma.done.wait [#allocation1], 32  }
  0x8f   :  { %57 = vsyncadd [#allocation1], 4294967264 }
  0x90   :  { %31 = vsyncpa [#allocation1], 1 }

// kernel: nerf_forward.1
= control target key start
LH: loop header
LB: loop body
LE: loop exit
PB: predicated region body
PF: predicated region fallthrough
CT: control target
= control target key end

     0   :  { %20 = vsyncpa [#allocation3], 0  ;;  %s8079_s18 = smov [#allocation2]   ;;  %s11351_s0 = inlined_call_operand.vmem [shape: f32[256,8], index: 0, kind: input, shape index: {}]   ;;  %s11352_s1 = inlined_call_operand.vmem [shape: f32[3,256], index: 1, kind: input, shape index: {}]   ;;  %s11353_s2 = inlined_call_operand.vmem [shape: f32[1,256], index: 2, kind: input, shape index: {}]   ;;  %s11354_s3 = inlined_call_operand.hbm [shape: bf16[6,256,256], index: 3, kind: input, shape index: {}]   ;;  %s11355_s4 = inlined_call_operand.vmem [shape: f32[6,1,256], index: 4, kind: input, shape index: {}]   ;;  %s11356_s5 = inlined_call_operand.vmem [shape: bf16[256,256], index: 5, kind: input, shape index: {}]   ;;  %s11357_s6 = inlined_call_operand.vmem [shape: f32[3,256], index: 6, kind: input, shape index: {}]   ;;  %s11358_s7 = inlined_call_operand.vmem [shape: f32[1,256], index: 7, kind: input, shape index: {}]   ;;  %s11359_s8 = inlined_call_operand.vmem [shape: bf16[256,256], index: 8, kind: input, shape index: {}]   ;;  %s11360_s9 = inlined_call_operand.vmem [shape: f32[3,128], index: 9, kind: input, shape index: {}]   ;;  %s11361_s10 = inlined_call_operand.vmem [shape: f32[1,256], index: 10, kind: input, shape index: {}]   ;;  %s11362_s11 = inlined_call_operand.vmem [shape: bf16[128,128], index: 11, kind: input, shape index: {}]   ;;  %s11363_s12 = inlined_call_operand.vmem [shape: f32[1,128], index: 12, kind: input, shape index: {}]   ;;  %s11364_s13 = inlined_call_operand.vmem [shape: bf16[128,3], index: 13, kind: input, shape index: {}]   ;;  %s11365_s14 = inlined_call_operand.vmem [shape: f32[1,3], index: 14, kind: input, shape index: {}]   ;;  %s11366_s15 = inlined_call_operand.vmem [shape: f32[256,4], index: 15, kind: output, shape index: {}]  }
   0x1   :  { %s32_s19 = sshll.u32 %s8079_s18, 4  ;;  %s8055_s22 = scalar_lea.hbm %s11354_s3, 24576  ;;  %s33_s19 = int_to_ptr.vmem [resolvable:$true] %s32_s19 }
   0x2   :  { %p8056_p0 = scmp.ne.s32.totalorder %s11354_s3, %s8055_s22  ;;  %p8059_p1 = scmp.lt.u32.totalorder %s8055_s22, %s11354_s3 }
   0x4   :  { %p8061_p2 = pnand %p8059_p1, %p8056_p0 }
   0x6   :  { %8064 = shalt.err (!%p8061_p2)
}
   0x7   :  { %s8065_s27 = scalar_lea.vmem %s33_s19, 24576  ;;  %p8070_p4 = scmp.lt.s32.totalorder %s33_s19, %s33_s19 }
   0x8   :  { %p8066_p3 = scmp.ne.s32.totalorder %s33_s19, %s8065_s27  ;;  %p8071_p5 = scmp.lt.s32.totalorder %s8065_s27, %s8065_s27 }
   0xa   :  { %p8072_p6 = por %p8071_p5, %p8070_p4 }
   0xc   :  { %p8073_p7 = pnand %p8072_p6, %p8066_p3 }
   0xe   :  { %8076 = shalt.err (!%p8073_p7)
}
   0xf   :  { %s8080_s28 = smov 128   ;;  %s8081_s29 = smov 8  }
  0x10   :  { %38 = dma.hbm_to_vmem [thread:$0]  %s11354_s3, 24576, %s33_s19, [#allocation3], %s8080_s28, %s8080_s28, %s8081_s29  }
  0x11   :  { %8077 = dma.done.wait [#allocation3], 24576  }
  0x12   :  { %8078 = vsyncadd [#allocation3], 4294942720  ;;  %v11374_v0 = vmov 2   ;;  %v11370_v1 = vmov 1   ;;  %v66_v2 = vld [vmem:[%s11351_s0] sm:$0xff]  ;;  %v68_v3 = vld [vmem:[%s11351_s0 + $0x10] sm:$0xff]  ;;  %v259_v63 = vlaneseq }
  0x13   :  { %7429 = vset.pattern.permute.xlu0 %v11374_v0  ;;  %7428 = vset.pattern.permute.xlu1 %v11370_v1  ;;  %v67_v4 = vld [vmem:[%s11351_s0 + $0x8] sm:$0xff]  ;;  %v8195_v5 = vld [vmem:[%s11351_s0 + $0x20] sm:$0xff]  ;;  %v7530_v8 = vld [vmem:[#allocation2 + $0x14] ss:$8 sps:$4 sm:$0xff]   ;;  %v11372_v12 = vmov 0   ;;  %vm5487_vm0 = vcmask 31768  }
  0x14   :  { %616 = vperm.xlu0 %7429, %v66_v2   ;;  %342 = vperm.xlu1 %7428, %v66_v2   ;;  %v7527_v6 = vld [vmem:[#allocation2 + $0x4] ss:$8 sps:$4 sm:$0xff]   ;;  %v7529_v7 = vld [vmem:[#allocation2] ss:$8 sps:$4 sm:$0xff]   ;;  %v7532_v9 = vld [vmem:[#allocation2 + $0x10] ss:$8 sps:$4 sm:$0xff]  }
  0x15   :  { %1265 = vmatprep.subr.bf16.mxu0 %v7527_v6  ;;  %v7533_v10 = vld [vmem:[#allocation2 + $0x24] ss:$8 sps:$4 sm:$0xff]   ;;  %v7535_v11 = vld [vmem:[#allocation2 + $0x20] ss:$8 sps:$4 sm:$0xff]   ;;  %v7536_v13 = vld [vmem:[#allocation2 + $0x34] ss:$8 sps:$4 sm:$0xff]  }
  0x16   :  { %1266 = vmatpush1.bf16.msra.mxu0 %v7529_v7  ;;  %v7538_v14 = vld [vmem:[#allocation2 + $0x30] ss:$8 sps:$4 sm:$0xff]   ;;  %v7539_v15 = vld [vmem:[#allocation2 + $0x44] ss:$8 sps:$4 sm:$0xff]   ;;  %v7541_v17 = vld [vmem:[#allocation2 + $0x40] ss:$8 sps:$4 sm:$0xff]  }
  0x17   :  { %1267 = vmatprep.subr.bf16.mxu0 %v7530_v8  ;;  %v69_v16 = vld [vmem:[%s11351_s0 + $0x18] sm:$0xff]  ;;  %v71_v19 = vld [vmem:[%s11351_s0 + $0x28] sm:$0xff]  ;;  %v72_v38 = vld [vmem:[%s11351_s0 + $0x30] sm:$0xff]  ;;  %vm6925_vm1 = vcmask 23552  }
  0x18   :  { %624 = vperm.xlu0 %7429, %v68_v3   ;;  %346 = vperm.xlu1 %7428, %v67_v4   ;;  %v7542_v18 = vld [vmem:[#allocation2 + $0x54] ss:$8 sps:$4 sm:$0xff]   ;;  %v7544_v20 = vld [vmem:[#allocation2 + $0x50] ss:$8 sps:$4 sm:$0xff]   ;;  %v7545_v21 = vld [vmem:[#allocation2 + $0x64] ss:$8 sps:$4 sm:$0xff]  }
  0x19   :  { %v8211_v22 = vld [vmem:[%s11351_s0 + $0x38] sm:$0xff]  ;;  %v7547_v23 = vld [vmem:[#allocation2 + $0x60] ss:$8 sps:$4 sm:$0xff]   ;;  %v7551_v27 = vld [vmem:[#allocation2 + $0x84] ss:$8 sps:$4 sm:$0xff]  }
  0x1a   :  { %1268 = vmatpush1.bf16.msra.mxu0 %v7532_v9  ;;  %v7548_v24 = vld [vmem:[#allocation2 + $0x74] ss:$8 sps:$4 sm:$0xff]   ;;  %v8217_v25 = vld [vmem:[%s11351_s0 + $0x48] sm:$0xff]  ;;  %v7550_v26 = vld [vmem:[#allocation2 + $0x70] ss:$8 sps:$4 sm:$0xff]  }
  0x1b   :  { %1269 = vmatprep.subr.bf16.mxu0 %v7533_v10  ;;  %v8224_v28 = vld [vmem:[%s11351_s0 + $0x58] sm:$0xff]  ;;  %v7553_v29 = vld [vmem:[#allocation2 + $0x80] ss:$8 sps:$4 sm:$0xff]   ;;  %v7557_v33 = vld [vmem:[#allocation2 + $0xa4] ss:$8 sps:$4 sm:$0xff]  }
  0x1c   :  { %632 = vperm.xlu0 %7429, %v8195_v5   ;;  %7430 = vset.pattern.permute.xlu1 %v11374_v0  ;;  %v7554_v30 = vld [vmem:[#allocation2 + $0x94] ss:$8 sps:$4 sm:$0xff]   ;;  %v8231_v31 = vld [vmem:[%s11351_s0 + $0x68] sm:$0xff]  ;;  %v7556_v32 = vld [vmem:[#allocation2 + $0x90] ss:$8 sps:$4 sm:$0xff]  }
  0x1d   :  { %620 = vperm.xlu1 %7430, %v67_v4   ;;  %v8239_v34 = vld [vmem:[%s11351_s0 + $0x78] sm:$0xff]  ;;  %v7559_v35 = vld [vmem:[#allocation2 + $0xa0] ss:$8 sps:$4 sm:$0xff]   ;;  %v7563_v39 = vld [vmem:[#allocation2 + $0xc4] ss:$8 sps:$4 sm:$0xff]  }
  0x1e   :  { %1270 = vmatpush1.bf16.msra.mxu0 %v7535_v11  ;;  %v7560_v36 = vld [vmem:[#allocation2 + $0xb4] ss:$8 sps:$4 sm:$0xff]   ;;  %v7562_v37 = vld [vmem:[#allocation2 + $0xb0] ss:$8 sps:$4 sm:$0xff]   ;;  %v7565_v40 = vld [vmem:[#allocation2 + $0xc0] ss:$8 sps:$4 sm:$0xff]  }
  0x1f   :  { %1271 = vmatprep.subr.bf16.mxu0 %v7536_v13  ;;  %v7566_v41 = vld [vmem:[#allocation2 + $0xd4] ss:$8 sps:$4 sm:$0xff]   ;;  %v74_v42 = vld [vmem:[%s11351_s0 + $0x40] sm:$0xff]  ;;  %v7568_v43 = vld [vmem:[#allocation2 + $0xd0] ss:$8 sps:$4 sm:$0xff]  }
  0x20   :  { %7436 = vset.pattern.permute.xlu0 %v11372_v12  ;;  %v7569_v44 = vld [vmem:[#allocation2 + $0xe4] ss:$8 sps:$4 sm:$0xff]   ;;  %v76_v45 = vld [vmem:[%s11351_s0 + $0x50] sm:$0xff]  ;;  %v7571_v46 = vld [vmem:[#allocation2 + $0xe0] ss:$8 sps:$4 sm:$0xff]  }
  0x21   :  { %100 = vperm.xlu0 %7436, %v66_v2   ;;  %7431 = vset.pattern.permute.xlu1 %v11372_v12  ;;  %v7572_v47 = vld [vmem:[#allocation2 + $0xf4] ss:$8 sps:$4 sm:$0xff]   ;;  %v78_v48 = vld [vmem:[%s11351_s0 + $0x60] sm:$0xff]  ;;  %v7574_v49 = vld [vmem:[#allocation2 + $0xf0] ss:$8 sps:$4 sm:$0xff]   ;;  %v8357_v2 = vshrl.u32 %v259_v63, 7 }
  0x22   :  { %110 = vperm.xlu1 %7431, %v68_v3   ;;  %1272 = vmatpush1.bf16.msra.mxu0 %v7538_v14  ;;  %v8263_v50 = vld [vmem:[%s11351_s0 + $0x70] sm:$0xff]  ;;  %v8271_v51 = vld [vmem:[%s11351_s0 + $0x80] sm:$0xff]  ;;  %v8291_v54 = vld [vmem:[%s11351_s0 + $0x88] sm:$0xff] }
  0x23   :  { %1273 = vmatprep.subr.bf16.mxu0 %v7539_v15  ;;  %v8278_v52 = vld [vmem:[%s11351_s0 + $0x90] sm:$0xff]  ;;  %v8283_v53 = vld [vmem:[%s11351_s0 + $0xa0] sm:$0xff]  ;;  %v8298_v55 = vld [vmem:[%s11351_s0 + $0x98] sm:$0xff]  ;;  %v8372_v7 = vsub.s32 0, %v8357_v2  ;;  %v11369_v8 = vsub.s32 4, %v8357_v2  ;;  %v11368_v9 = vsub.s32 5, %v8357_v2 }
  0x24   :  { %v8306_v56 = vld [vmem:[%s11351_s0 + $0xa8] sm:$0xff]  ;;  %v8313_v57 = vld [vmem:[%s11351_s0 + $0xb8] sm:$0xff]  ;;  %v8336_v60 = vld [vmem:[%s11351_s0 + $0xb0] sm:$0xff]  ;;  %v11367_v11 = vsub.s32 6, %v8357_v2  ;;  %v8383_v15 = vsub.s32 2, %v8357_v2 }
  0x25   :  { %105 = vperm.xlu0 %7436, %v67_v4   ;;  %v8321_v58 = vld [vmem:[%s11351_s0 + $0xc8] sm:$0xff]  ;;  %v8326_v59 = vld [vmem:[%s11351_s0 + $0xd8] sm:$0xff]  ;;  %v8344_v61 = vld [vmem:[%s11351_s0 + $0xc0] sm:$0xff] }
  0x26   :  { %7432 = vset.pattern.permute.xlu1 %v11370_v1  ;;  %1274 = vmatpush1.bf16.msra.mxu0 %v7541_v17  ;;  %v8351_v62 = vld [vmem:[%s11351_s0 + $0xd0] sm:$0xff]  ;;  %v65_v6 = vld [vmem:[%s11352_s1] sm:$0x77]  ;;  %11511 = vst [vmem:[#allocation5_spill] sm:$0xff] %v8383_v15 }
  0x27   :  { %350 = vperm.xlu1 %7432, %v68_v3   ;;  %1275 = vmatprep.subr.bf16.mxu0 %v7542_v18  ;;  %v266_v17 = vrot.slane %v65_v6, %v11369_v8  ;;  %v476_v18 = vrot.slane %v65_v6, %v11368_v9 }
  0x29   :  { %115 = vperm.xlu0 %7436, %v69_v16  }
  0x2a   :  { %1276 = vmatpush1.bf16.msra.mxu0 %v7544_v20  ;;  %v750_v20 = vrot.slane %v65_v6, %v11367_v11 }
  0x2b   :  { %354 = vperm.xlu1 %7432, %v69_v16   ;;  %1277 = vmatprep.subr.bf16.mxu0 %v7545_v21 }
  0x2d   :  { %125 = vperm.xlu0 %7436, %v71_v19  }
  0x2e   :  { %1278 = vmatpush1.bf16.msra.mxu0 %v7547_v23  ;;  %v746_v23 = vrot.slane %v65_v6, %v8383_v15 }
  0x2f   :  { %7433 = vset.pattern.permute.xlu1 %v11374_v0  ;;  %1279 = vmatprep.subr.bf16.mxu0 %v7548_v24 }
  0x30   :  { %628 = vperm.xlu1 %7433, %v69_v16   ;;  %v262_v16 = vrot.slane %v65_v6, %v8372_v7 }
  0x31   :  { %135 = vperm.xlu0 %7436, %v8211_v22  }
  0x32   :  { %1280 = vmatpush1.bf16.msra.mxu0 %v7550_v26  ;;  %v8413_v26 = vrot.slane %v266_v17, %v8372_v7 }
  0x33   :  { %1281 = vmatprep.subr.bf16.mxu0 %v7551_v27 }
  0x34   :  { %7434 = vset.pattern.permute.xlu1 %v11372_v12 }
  0x35   :  { %120 = vperm.xlu1 %7434, %v8195_v5   ;;  %145 = vperm.xlu0 %7436, %v8217_v25  }
  0x36   :  { %1282 = vmatpush1.bf16.msra.mxu0 %v7553_v29 }
  0x37   :  { %1283 = vmatprep.subr.bf16.mxu0 %v7554_v30  ;;  %v8425_v30 = vrot.slane %v746_v23, %v8383_v15 }
  0x39   :  { %7435 = vset.pattern.permute.xlu1 %v11370_v1  ;;  %155 = vperm.xlu0 %7436, %v8224_v28  }
  0x3a   :  { %358 = vperm.xlu1 %7435, %v8195_v5   ;;  %1284 = vmatpush1.bf16.msra.mxu0 %v7556_v32  ;;  %v8365_v5 = vsub.s32 1, %v8357_v2 }
  0x3b   :  { %1285 = vmatprep.subr.bf16.mxu0 %v7557_v33 }
  0x3c   :  { %v472_v14 = vrot.slane %v65_v6, %v8365_v5  ;;  %v8416_v27 = vrot.slane %v476_v18, %v8365_v5 }
  0x3d   :  { %165 = vperm.xlu0 %7436, %v8231_v31  }
  0x3e   :  { %362 = vperm.xlu1 %7435, %v71_v19   ;;  %1286 = vmatpush1.bf16.msra.mxu0 %v7559_v35 }
  0x3f   :  { %1287 = vmatprep.subr.bf16.mxu0 %v7560_v36 }
  0x41   :  { %175 = vperm.xlu0 %7436, %v8239_v34  }
  0x42   :  { %7437 = vset.pattern.permute.xlu1 %v11374_v0  ;;  %1288 = vmatpush1.bf16.msra.mxu0 %v7562_v37 }
  0x43   :  { %636 = vperm.xlu1 %7437, %v71_v19   ;;  %1289 = vmatprep.subr.bf16.mxu0 %v7563_v39  ;;  %v8395_v19 = vld [vmem:[%s11351_s0 + $0xe0] sm:$0xff] }
  0x45   :  { %7451 = vset.pattern.permute.xlu0 %v11374_v0 }
  0x46   :  { %640 = vperm.xlu0 %7451, %v72_v38   ;;  %1290 = vmatpush1.bf16.msra.mxu0 %v7565_v40  ;;  %v8449_v40 = vld [vmem:[%s11351_s0 + $0xe8] sm:$0xff] }
  0x47   :  { %7438 = vset.pattern.permute.xlu1 %v11372_v12  ;;  %1291 = vmatprep.subr.bf16.mxu0 %v7566_v41 }
  0x48   :  { %130 = vperm.xlu1 %7438, %v72_v38  }
  0x4a   :  { %648 = vperm.xlu0 %7451, %v74_v42   ;;  %1292 = vmatpush1.bf16.msra.mxu0 %v7568_v43 }
  0x4b   :  { %1293 = vmatprep.subr.bf16.mxu0 %v7569_v44 }
  0x4c   :  { %7439 = vset.pattern.permute.xlu1 %v11370_v1 }
  0x4d   :  { %366 = vperm.xlu1 %7439, %v72_v38   ;;  %v889_v38 = vld [vmem:[%s11353_s2] sm:$0x3] }
  0x4e   :  { %656 = vperm.xlu0 %7451, %v76_v45   ;;  %1294 = vmatpush1.bf16.msra.mxu0 %v7571_v46  ;;  %v8455_v44 = vrot.slane %v889_v38, %v8365_v5 }
  0x4f   :  { %1295 = vmatprep.subr.bf16.mxu0 %v7572_v47 }
  0x51   :  { %370 = vperm.xlu1 %7439, %v8211_v22  }
  0x52   :  { %664 = vperm.xlu0 %7451, %v78_v48   ;;  %1296 = vmatpush1.bf16.msra.mxu0 %v7574_v49 }
  0x55   :  { %7440 = vset.pattern.permute.xlu1 %v11374_v0 }
  0x56   :  { %644 = vperm.xlu1 %7440, %v8211_v22   ;;  %672 = vperm.xlu0 %7451, %v8263_v50   ;;  %v8403_v22 = vrot.slane %v472_v14, %v8365_v5 }
  0x5a   :  { %7441 = vset.pattern.permute.xlu1 %v11372_v12  ;;  %680 = vperm.xlu0 %7451, %v8271_v51  }
  0x5b   :  { %140 = vperm.xlu1 %7441, %v74_v42  }
  0x5e   :  { %688 = vperm.xlu0 %7451, %v8278_v52  }
  0x5f   :  { %7442 = vset.pattern.permute.xlu1 %v11370_v1 }
  0x60   :  { %374 = vperm.xlu1 %7442, %v74_v42  }
  0x62   :  { %696 = vperm.xlu0 %7451, %v8283_v53  }
  0x64   :  { %378 = vperm.xlu1 %7442, %v8217_v25  }
  0x66   :  { %7462 = vset.pattern.permute.xlu0 %v11372_v12 }
  0x67   :  { %185 = vperm.xlu0 %7462, %v8291_v54  }
  0x68   :  { %7443 = vset.pattern.permute.xlu1 %v11374_v0 }
  0x69   :  { %652 = vperm.xlu1 %7443, %v8217_v25   ;;  %v8410_v25 = vrot.slane %v262_v16, %v8372_v7 }
  0x6b   :  { %195 = vperm.xlu0 %7462, %v8298_v55  }
  0x6d   :  { %7444 = vset.pattern.permute.xlu1 %v11372_v12 }
  0x6e   :  { %150 = vperm.xlu1 %7444, %v76_v45  }
  0x6f   :  { %205 = vperm.xlu0 %7462, %v8306_v56  }
  0x72   :  { %7445 = vset.pattern.permute.xlu1 %v11370_v1 }
  0x73   :  { %382 = vperm.xlu1 %7445, %v76_v45   ;;  %215 = vperm.xlu0 %7462, %v8313_v57  }
  0x77   :  { %386 = vperm.xlu1 %7445, %v8224_v28   ;;  %225 = vperm.xlu0 %7462, %v8321_v58  }
  0x7b   :  { %7446 = vset.pattern.permute.xlu1 %v11374_v0  ;;  %235 = vperm.xlu0 %7462, %v8326_v59  }
  0x7c   :  { %660 = vperm.xlu1 %7446, %v8224_v28   ;;  %v8420_v28 = vrot.slane %v750_v20, %v8383_v15 }
  0x7f   :  { %7471 = vset.pattern.permute.xlu0 %v11374_v0 }
  0x80   :  { %7447 = vset.pattern.permute.xlu1 %v11372_v12  ;;  %704 = vperm.xlu0 %7471, %v8336_v60  }
  0x81   :  { %160 = vperm.xlu1 %7447, %v78_v48  }
  0x84   :  { %712 = vperm.xlu0 %7471, %v8344_v61  }
  0x85   :  { %7448 = vset.pattern.permute.xlu1 %v11370_v1 }
  0x86   :  { %390 = vperm.xlu1 %7448, %v78_v48  }
  0x88   :  { %720 = vperm.xlu0 %7471, %v8351_v62  }
  0x8a   :  { %394 = vperm.xlu1 %7448, %v8231_v31  }
  0x8c   :  { %728 = vperm.xlu0 %7471, %v8395_v19  }
  0x8e   :  { %7449 = vset.pattern.permute.xlu1 %v11374_v0 }
  0x8f   :  { %668 = vperm.xlu1 %7449, %v8231_v31  }
  0x90   :  { %7476 = vset.pattern.permute.xlu0 %v11372_v12 }
  0x91   :  { %245 = vperm.xlu0 %7476, %v8449_v40  }
  0x93   :  { %7450 = vset.pattern.permute.xlu1 %v11372_v12  ;;  %v8360_v3 = vpop.permute.xlu1 %342  ;;  %v8362_v4 = vpop.permute.xlu0 %616 }
  0x94   :  { %170 = vperm.xlu1 %7450, %v8263_v50   ;;  %v487_v29 = vmul.f32 %v8403_v22, %v8360_v3  ;;  %v488_v36 = vmul.f32 %v8416_v27, %v8360_v3  ;;  %v762_v37 = vmul.f32 %v8420_v28, %v8362_v4  ;;  %v761_v39 = vmul.f32 %v8425_v30, %v8362_v4 }
  0x97   :  { %v8376_v10 = vpop.permute.xlu1 %346  ;;  %v8379_v13 = vpop.permute.xlu0 %624 }
  0x98   :  { %7452 = vset.pattern.permute.xlu1 %v11370_v1  ;;  %v490_v46 = vmul.f32 %v8416_v27, %v8376_v10  ;;  %v489_v48 = vmul.f32 %v8403_v22, %v8376_v10 }
  0x99   :  { %398 = vperm.xlu1 %7452, %v8263_v50   ;;  %v8469_v50 = vrot.slane %v889_v38, %v8372_v7 }
  0x9b   :  { %v8400_v21 = vpop.permute.xlu0 %632 }
  0x9c   :  { %11512 = vst [vmem:[#allocation6_spill] sm:$0xff] %v8400_v21  ;;  %v8406_v24 = vpop.permute.xlu1 %620 }
  0x9d   :  { %402 = vperm.xlu1 %7452, %v8239_v34   ;;  %v764_v17 = vmul.f32 %v8420_v28, %v8406_v24  ;;  %v763_v18 = vmul.f32 %v8425_v30, %v8406_v24 }
  0xa0   :  { %v8427_v31 = vpop.permute.xlu0 %100 }
  0xa1   :  { %v277_v32 = vmul.f32 %v8410_v25, %v8427_v31  ;;  %7453 = vset.pattern.permute.xlu1 %v11374_v0  ;;  %v8432_v33 = vpop.permute.xlu1 %110  ;;  %v278_v35 = vmul.f32 %v8413_v26, %v8427_v31 }
  0xa2   :  { %676 = vperm.xlu1 %7453, %v8239_v34   ;;  %v281_v20 = vmul.f32 %v8410_v25, %v8432_v33  ;;  %v282_v23 = vmul.f32 %v8413_v26, %v8432_v33 }
  0xa3   :  { %v552_v41 = vadd.f32 %v488_v36, %v278_v35  ;;  %v551_v42 = vadd.f32 %v487_v29, %v277_v32  ;;  %v765_v35 = vmul.f32 %v8425_v30, %v8379_v13  ;;  %v766_v36 = vmul.f32 %v8420_v28, %v8379_v13 }
  0xa4   :  { %v8452_v43 = vpop.permute.xlu0 %105 }
  0xa5   :  { %v279_v45 = vmul.f32 %v8410_v25, %v8452_v43  ;;  %v280_v34 = vmul.f32 %v8413_v26, %v8452_v43  ;;  %v826_v47 = vadd.f32 %v762_v37, %v552_v41  ;;  %v825_v63 = vadd.f32 %v761_v39, %v551_v42 }
  0xa6   :  { %7454 = vset.pattern.permute.xlu1 %v11372_v12  ;;  %v8466_v49 = vpop.permute.xlu1 %350 }
  0xa7   :  { %v491_v6 = vmul.f32 %v8403_v22, %v8466_v49  ;;  %v492_v14 = vmul.f32 %v8416_v27, %v8466_v49  ;;  %180 = vperm.xlu1 %7454, %v8271_v51   ;;  %v554_v16 = vadd.f32 %v490_v46, %v280_v34  ;;  %v553_v32 = vadd.f32 %v489_v48, %v279_v45 }
  0xa8   :  { %v8484_v29 = vpop.permute.xlu0 %115  ;;  %v902_v38 = vadd.f32 %v8455_v44, %v826_v47  ;;  %v901_v42 = vadd.f32 %v8469_v50, %v825_v63 }
  0xa9   :  { %v828_v37 = vadd.f32 %v764_v17, %v554_v16  ;;  %v827_v41 = vadd.f32 %v763_v18, %v553_v32  ;;  %v556_v34 = vadd.f32 %v492_v14, %v282_v23  ;;  %v555_v46 = vadd.f32 %v491_v6, %v281_v20  ;;  %v8511_v20 = vld [vmem:[%s11351_s0 + $0xf8] sm:$0xff] }
  0xaa   :  { %v8491_v39 = vpop.permute.xlu1 %354  ;;  %v284_v11 = vmul.f32 %v8413_v26, %v8484_v29  ;;  %v283_v47 = vmul.f32 %v8410_v25, %v8484_v29  ;;  %v966_v14 = vmax.f32 %v902_v38, 0.0  ;;  %v965_v23 = vmax.f32 %v901_v42, 0.0  ;;  %255 = vperm.xlu0 %7476, %v8511_v20  }
  0xab   :  { %v494_v45 = vmul.f32 %v8416_v27, %v8491_v39  ;;  %7455 = vset.pattern.permute.xlu1 %v11370_v1  ;;  %v904_v48 = vadd.f32 %v8455_v44, %v828_v37  ;;  %v493_v16 = vmul.f32 %v8403_v22, %v8491_v39  ;;  %v903_v63 = vadd.f32 %v8469_v50, %v827_v41 }
  0xac   :  { %406 = vperm.xlu1 %7455, %v8271_v51   ;;  %v8506_v6 = vpop.permute.xlu0 %125  ;;  %v830_v18 = vadd.f32 %v766_v36, %v556_v34  ;;  %v829_v37 = vadd.f32 %v765_v35, %v555_v46 }
  0xad   :  { %11513 = vst [vmem:[#allocation7_spill] sm:$0xff] %v8506_v6  ;;  %v968_v17 = vmax.f32 %v904_v48, 0.0  ;;  %v967_v32 = vmax.f32 %v903_v63, 0.0  ;;  %v558_v8 = vadd.f32 %v494_v45, %v284_v11  ;;  %v557_v42 = vadd.f32 %v493_v16, %v283_v47  ;;  %v8528_v45 = vld [vmem:[%s11351_s0 + $0xf0] sm:$0xff] }
  0xae   :  { %v906_v35 = vadd.f32 %v8455_v44, %v830_v18  ;;  %v905_v11 = vadd.f32 %v8469_v50, %v829_v37  ;;  %7480 = vset.pattern.permute.xlu0 %v11374_v0 }
  0xaf   :  { %v8514_v9 = vpop.permute.xlu1 %628  ;;  %v1030_v51 = vpack.c.bf16 %v968_v17, %v966_v14  ;;  %v1029_v38 = vpack.c.bf16 %v967_v32, %v965_v23  ;;  %736 = vperm.xlu0 %7480, %v8528_v45  }
  0xb0   :  { %v767_v41 = vmul.f32 %v8425_v30, %v8514_v9  ;;  %v768_v36 = vmul.f32 %v8420_v28, %v8514_v9  ;;  %410 = vperm.xlu1 %7455, %v8291_v54   ;;  %v8521_v34 = vpop.permute.xlu0 %135  ;;  %v970_v14 = vmax.f32 %v906_v35, 0.0  ;;  %v969_v18 = vmax.f32 %v905_v11, 0.0 }
  0xb1   :  { %11514 = vst [vmem:[#allocation8_spill] sm:$0xff] %v8521_v34  ;;  %1297 = vmatprep.mubr.bf16.mxu0 %v1030_v51  ;;  %v769_v35 = vmul.f32 %v8425_v30, %v8400_v21 }
  0xb2   :  { %1298 = vmatmul.mubr.bf16.vlgmr.msra.gmra.mrb[0].mxu0 %v1029_v38  ;;  %v832_v46 = vadd.f32 %v768_v36, %v558_v8  ;;  %v831_v48 = vadd.f32 %v767_v41, %v557_v42 }
  0xb4   :  { %7456 = vset.pattern.permute.xlu1 %v11374_v0  ;;  %v8533_v47 = vpop.permute.xlu1 %120  ;;  %v908_v16 = vadd.f32 %v8455_v44, %v832_v46  ;;  %v907_v8 = vadd.f32 %v8469_v50, %v831_v48  ;;  %v8538_v63 = vpop.permute.xlu0 %145  ;;  %v770_v46 = vmul.f32 %v8420_v28, %v8400_v21 }
  0xb5   :  { %684 = vperm.xlu1 %7456, %v8291_v54   ;;  %v285_v54 = vmul.f32 %v8410_v25, %v8533_v47  ;;  %v286_v38 = vmul.f32 %v8413_v26, %v8533_v47 }
  0xb6   :  { %v972_v17 = vmax.f32 %v908_v16, 0.0  ;;  %v971_v23 = vmax.f32 %v907_v8, 0.0  ;;  %v287_v8 = vmul.f32 %v8410_v25, %v8506_v6 }
  0xb8   :  { %v1032_v32 = vpack.c.bf16 %v972_v17, %v970_v14  ;;  %v1031_v37 = vpack.c.bf16 %v971_v23, %v969_v18  ;;  %v8552_v42 = vpop.permute.xlu0 %155  ;;  %v288_v14 = vmul.f32 %v8413_v26, %v8506_v6 }
  0xb9   :  { %7457 = vset.pattern.permute.xlu1 %v11372_v12  ;;  %v8541_v51 = vpop.permute.xlu1 %358  ;;  %11515 = vst [vmem:[#allocation9_spill] sm:$0xff] %v8552_v42 }
  0xba   :  { %v495_v41 = vmul.f32 %v8403_v22, %v8541_v51  ;;  %v496_v36 = vmul.f32 %v8416_v27, %v8541_v51  ;;  %190 = vperm.xlu1 %7457, %v8278_v52   ;;  %1307 = vmatprep.mubr.bf16.mxu0 %v1032_v32 }
  0xbb   :  { %1308 = vmatmul.mubr.bf16.gmra.mrb[4].mxu0 %v1031_v37 }
  0xbc   :  { %v560_v11 = vadd.f32 %v496_v36, %v286_v38  ;;  %v559_v16 = vadd.f32 %v495_v41, %v285_v54  ;;  %v8570_v23 = vpop.permute.xlu0 %165 }
  0xbd   :  { %v8558_v48 = vpop.permute.xlu1 %362  ;;  %11517 = vst [vmem:[#allocation11_spill] sm:$0xff] %v8570_v23 }
  0xbe   :  { %11516 = vst [vmem:[#allocation10_spill] sm:$0xff] %v8558_v48  ;;  %7458 = vset.pattern.permute.xlu1 %v11370_v1  ;;  %v497_v17 = vmul.f32 %v8403_v22, %v8558_v48  ;;  %v498_v18 = vmul.f32 %v8416_v27, %v8558_v48  ;;  %v834_v32 = vadd.f32 %v770_v46, %v560_v11  ;;  %v11519_v46 = vmov 2  }
  0xbf   :  { %414 = vperm.xlu1 %7458, %v8278_v52   ;;  %v833_v37 = vadd.f32 %v769_v35, %v559_v16 }
  0xc0   :  { %v562_v38 = vadd.f32 %v498_v18, %v288_v14  ;;  %v561_v1 = vadd.f32 %v497_v17, %v287_v8  ;;  %v910_v0 = vadd.f32 %v8455_v44, %v834_v32  ;;  %v8584_v11 = vpop.permute.xlu0 %175 }
  0xc1   :  { %v909_v48 = vadd.f32 %v8469_v50, %v833_v37  ;;  %11521 = vst [vmem:[#allocation14_spill] sm:$0xff] %v8584_v11 }
  0xc2   :  { %v8572_v41 = vpop.permute.xlu1 %636  ;;  %v974_v14 = vmax.f32 %v910_v0, 0.0  ;;  %v7575_v0 = vld [vmem:[#allocation2 + $0x104] ss:$8 sps:$4 sm:$0xff]  }
  0xc3   :  { %11518 = vst [vmem:[#allocation12_spill] sm:$0xff] %v8572_v41  ;;  %v771_v36 = vmul.f32 %v8425_v30, %v8572_v41  ;;  %v772_v54 = vmul.f32 %v8420_v28, %v8572_v41  ;;  %418 = vperm.xlu1 %7458, %v8298_v55   ;;  %v973_v17 = vmax.f32 %v909_v48, 0.0  ;;  %v7577_v48 = vld [vmem:[#allocation2 + $0x100] ss:$8 sps:$4 sm:$0xff]   ;;  %1760 = vmatprep.subr.bf16.mxu1 %v7575_v0 }
  0xc4   :  { %1761 = vmatpush1.bf16.msra.mxu1 %v7577_v48 }
  0xc5   :  { %v836_v12 = vadd.f32 %v772_v54, %v562_v38  ;;  %v835_v52 = vadd.f32 %v771_v36, %v561_v1  ;;  %v11522_v36 = vmov 0  }
  0xc7   :  { %7459 = vset.pattern.permute.xlu1 %v11519_v46  ;;  %v8582_v35 = vpop.permute.xlu1 %130  ;;  %v912_v16 = vadd.f32 %v8455_v44, %v836_v12  ;;  %v911_v41 = vadd.f32 %v8469_v50, %v835_v52 }
  0xc8   :  { %11520 = vst [vmem:[#allocation13_spill] sm:$0xff] %v8582_v35  ;;  %692 = vperm.xlu1 %7459, %v8298_v55   ;;  %v8597_v55 = vpop.permute.xlu0 %640  ;;  %v290_v38 = vmul.f32 %v8413_v26, %v8582_v35 }
  0xc9   :  { %v976_v8 = vmax.f32 %v912_v16, 0.0  ;;  %v975_v18 = vmax.f32 %v911_v41, 0.0  ;;  %11524 = vst [vmem:[#allocation16_spill] sm:$0xff] %v8597_v55  ;;  %v289_v41 = vmul.f32 %v8410_v25, %v8582_v35  ;;  %v773_v52 = vmul.f32 %v8425_v30, %v8597_v55 }
  0xca   :  { %v774_v16 = vmul.f32 %v8420_v28, %v8597_v55  ;;  %v7578_v55 = vld [vmem:[#allocation2 + $0x114] ss:$8 sps:$4 sm:$0xff]  }
  0xcb   :  { %v1034_v32 = vpack.c.bf16 %v976_v8, %v974_v14  ;;  %v1033_v1 = vpack.c.bf16 %v975_v18, %v973_v17  ;;  %v11526_v18 = vmov 1   ;;  %1762 = vmatprep.subr.bf16.mxu1 %v7578_v55 }
  0xcc   :  { %7460 = vset.pattern.permute.xlu1 %v11522_v36  ;;  %v8590_v37 = vpop.permute.xlu1 %366 }
  0xcd   :  { %11523 = vst [vmem:[#allocation15_spill] sm:$0xff] %v8590_v37  ;;  %v499_v54 = vmul.f32 %v8403_v22, %v8590_v37  ;;  %v500_v12 = vmul.f32 %v8416_v27, %v8590_v37  ;;  %200 = vperm.xlu1 %7460, %v8283_v53   ;;  %1317 = vmatprep.mubr.bf16.mxu0 %v1034_v32 }
  0xce   :  { %1318 = vmatmul.mubr.bf16.gmra.mrb[8].mxu0 %v1033_v1  ;;  %v291_v32 = vmul.f32 %v8410_v25, %v8521_v34  ;;  %v292_v1 = vmul.f32 %v8413_v26, %v8521_v34 }
  0xcf   :  { %v564_v8 = vadd.f32 %v500_v12, %v290_v38  ;;  %v563_v17 = vadd.f32 %v499_v54, %v289_v41  ;;  %v7580_v12 = vld [vmem:[#allocation2 + $0x110] ss:$8 sps:$4 sm:$0xff]  }
  0xd0   :  { %v8607_v14 = vpop.permute.xlu1 %370  ;;  %1763 = vmatpush1.bf16.msra.mxu1 %v7580_v12 }
  0xd1   :  { %11525 = vst [vmem:[#allocation17_spill] sm:$0xff] %v8607_v14  ;;  %7461 = vset.pattern.permute.xlu1 %v11526_v18  ;;  %v501_v0 = vmul.f32 %v8403_v22, %v8607_v14  ;;  %v502_v35 = vmul.f32 %v8416_v27, %v8607_v14  ;;  %v838_v54 = vadd.f32 %v774_v16, %v564_v8  ;;  %v7581_v14 = vld [vmem:[#allocation2 + $0x124] ss:$8 sps:$4 sm:$0xff]  }
  0xd2   :  { %422 = vperm.xlu1 %7461, %v8283_v53   ;;  %v837_v48 = vadd.f32 %v773_v52, %v563_v17  ;;  %v7583_v53 = vld [vmem:[#allocation2 + $0x120] ss:$8 sps:$4 sm:$0xff]   ;;  %1764 = vmatprep.subr.bf16.mxu1 %v7581_v14 }
  0xd3   :  { %v566_v37 = vadd.f32 %v502_v35, %v292_v1  ;;  %v565_v6 = vadd.f32 %v501_v0, %v291_v32  ;;  %v914_v16 = vadd.f32 %v8455_v44, %v838_v54  ;;  %v7584_v35 = vld [vmem:[#allocation2 + $0x134] ss:$8 sps:$4 sm:$0xff]   ;;  %v7586_v32 = vld [vmem:[#allocation2 + $0x130] ss:$8 sps:$4 sm:$0xff]   ;;  %v8642_v54 = vpop.permute.xlu0 %648 }
  0xd4   :  { %v913_v8 = vadd.f32 %v8469_v50, %v837_v48  ;;  %1765 = vmatpush1.bf16.msra.mxu1 %v7583_v53  ;;  %11528 = vst [vmem:[#allocation19_spill] sm:$0xff] %v8642_v54  ;;  %v7587_v48 = vld [vmem:[#allocation2 + $0x144] ss:$8 sps:$4 sm:$0xff]  }
  0xd5   :  { %v8619_v41 = vpop.permute.xlu1 %644  ;;  %1766 = vmatprep.subr.bf16.mxu1 %v7584_v35 }
  0xd6   :  { %11527 = vst [vmem:[#allocation18_spill] sm:$0xff] %v8619_v41  ;;  %v775_v38 = vmul.f32 %v8425_v30, %v8619_v41  ;;  %v776_v34 = vmul.f32 %v8420_v28, %v8619_v41  ;;  %426 = vperm.xlu1 %7461, %v8306_v56   ;;  %v977_v1 = vmax.f32 %v913_v8, 0.0  ;;  %v778_v8 = vmul.f32 %v8420_v28, %v8642_v54 }
  0xd8   :  { %v840_v21 = vadd.f32 %v776_v34, %v566_v37  ;;  %v839_v52 = vadd.f32 %v775_v38, %v565_v6  ;;  %v978_v34 = vmax.f32 %v914_v16, 0.0  ;;  %1767 = vmatpush1.bf16.msra.mxu1 %v7586_v32  ;;  %v7590_v16 = vld [vmem:[#allocation2 + $0x154] ss:$8 sps:$4 sm:$0xff]  }
  0xd9   :  { %1768 = vmatprep.subr.bf16.mxu1 %v7587_v48 }
  0xda   :  { %7463 = vset.pattern.permute.xlu1 %v11519_v46  ;;  %v8629_v55 = vpop.permute.xlu1 %140  ;;  %v916_v17 = vadd.f32 %v8455_v44, %v840_v21  ;;  %v915_v41 = vadd.f32 %v8469_v50, %v839_v52  ;;  %v777_v52 = vmul.f32 %v8425_v30, %v8642_v54 }
  0xdb   :  { %700 = vperm.xlu1 %7463, %v8306_v56   ;;  %v293_v38 = vmul.f32 %v8410_v25, %v8629_v55  ;;  %v294_v53 = vmul.f32 %v8413_v26, %v8629_v55 }
  0xdc   :  { %v980_v37 = vmax.f32 %v916_v17, 0.0  ;;  %v979_v6 = vmax.f32 %v915_v41, 0.0  ;;  %v7589_v41 = vld [vmem:[#allocation2 + $0x140] ss:$8 sps:$4 sm:$0xff]  }
  0xdd   :  { %1769 = vmatpush1.bf16.msra.mxu1 %v7589_v41 }
  0xde   :  { %v1036_v0 = vpack.c.bf16 %v980_v37, %v978_v34  ;;  %v1035_v14 = vpack.c.bf16 %v979_v6, %v977_v1  ;;  %v295_v34 = vmul.f32 %v8410_v25, %v8538_v63  ;;  %v296_v37 = vmul.f32 %v8413_v26, %v8538_v63  ;;  %1770 = vmatprep.subr.bf16.mxu1 %v7590_v16  ;;  %v7596_v16 = vld [vmem:[#allocation2 + $0x174] ss:$8 sps:$4 sm:$0xff]  }
  0xdf   :  { %7464 = vset.pattern.permute.xlu1 %v11522_v36  ;;  %v8635_v12 = vpop.permute.xlu1 %374 }
  0xe0   :  { %v503_v21 = vmul.f32 %v8403_v22, %v8635_v12  ;;  %v504_v56 = vmul.f32 %v8416_v27, %v8635_v12  ;;  %210 = vperm.xlu1 %7464, %v8336_v60   ;;  %1327 = vmatprep.mubr.bf16.mxu0 %v1036_v0  ;;  %v7592_v0 = vld [vmem:[#allocation2 + $0x150] ss:$8 sps:$4 sm:$0xff]  }
  0xe1   :  { %1328 = vmatmul.mubr.bf16.gmra.mrb[12].mxu0 %v1035_v14  ;;  %v7593_v14 = vld [vmem:[#allocation2 + $0x164] ss:$8 sps:$4 sm:$0xff]   ;;  %1771 = vmatpush1.bf16.msra.mxu1 %v7592_v0 }
  0xe2   :  { %v568_v35 = vadd.f32 %v504_v56, %v294_v53  ;;  %v567_v32 = vadd.f32 %v503_v21, %v293_v38  ;;  %1772 = vmatprep.subr.bf16.mxu1 %v7593_v14 }
  0xe3   :  { %v8652_v17 = vpop.permute.xlu1 %378 }
  0xe4   :  { %11529 = vst [vmem:[#allocation20_spill] sm:$0xff] %v8652_v17  ;;  %7465 = vset.pattern.permute.xlu1 %v11526_v18  ;;  %v505_v1 = vmul.f32 %v8403_v22, %v8652_v17  ;;  %v506_v6 = vmul.f32 %v8416_v27, %v8652_v17  ;;  %v842_v21 = vadd.f32 %v778_v8, %v568_v35 }
  0xe5   :  { %430 = vperm.xlu1 %7465, %v8336_v60   ;;  %v841_v56 = vadd.f32 %v777_v52, %v567_v32  ;;  %v7595_v60 = vld [vmem:[#allocation2 + $0x160] ss:$8 sps:$4 sm:$0xff]   ;;  %v7598_v32 = vld [vmem:[#allocation2 + $0x170] ss:$8 sps:$4 sm:$0xff]  }
  0xe6   :  { %v570_v53 = vadd.f32 %v506_v6, %v296_v37  ;;  %v569_v17 = vadd.f32 %v505_v1, %v295_v34  ;;  %v918_v8 = vadd.f32 %v8455_v44, %v842_v21  ;;  %1773 = vmatpush1.bf16.msra.mxu1 %v7595_v60  ;;  %v7599_v34 = vld [vmem:[#allocation2 + $0x184] ss:$8 sps:$4 sm:$0xff]   ;;  %v8687_v60 = vpop.permute.xlu0 %656 }
  0xe7   :  { %v917_v35 = vadd.f32 %v8469_v50, %v841_v56  ;;  %1774 = vmatprep.subr.bf16.mxu1 %v7596_v16  ;;  %v7601_v56 = vld [vmem:[#allocation2 + $0x180] ss:$8 sps:$4 sm:$0xff]   ;;  %11530 = vst [vmem:[#allocation21_spill] sm:$0xff] %v8687_v60  ;;  %v7602_v16 = vld [vmem:[#allocation2 + $0x194] ss:$8 sps:$4 sm:$0xff]  }
  0xe8   :  { %v8664_v48 = vpop.permute.xlu1 %652  ;;  %v982_v1 = vmax.f32 %v918_v8, 0.0 }
  0xe9   :  { %v779_v41 = vmul.f32 %v8425_v30, %v8664_v48  ;;  %v780_v38 = vmul.f32 %v8420_v28, %v8664_v48  ;;  %434 = vperm.xlu1 %7465, %v8313_v57   ;;  %v981_v21 = vmax.f32 %v917_v35, 0.0  ;;  %v7604_v35 = vld [vmem:[#allocation2 + $0x190] ss:$8 sps:$4 sm:$0xff]  }
  0xea   :  { %1775 = vmatpush1.bf16.msra.mxu1 %v7598_v32  ;;  %v781_v32 = vmul.f32 %v8425_v30, %v8687_v60 }
  0xeb   :  { %v844_v54 = vadd.f32 %v780_v38, %v570_v53  ;;  %v843_v52 = vadd.f32 %v779_v41, %v569_v17  ;;  %1776 = vmatprep.subr.bf16.mxu1 %v7599_v34 }
  0xed   :  { %7466 = vset.pattern.permute.xlu1 %v11519_v46  ;;  %v8674_v0 = vpop.permute.xlu1 %150  ;;  %v920_v14 = vadd.f32 %v8455_v44, %v844_v54  ;;  %v919_v37 = vadd.f32 %v8469_v50, %v843_v52 }
  0xee   :  { %708 = vperm.xlu1 %7466, %v8313_v57   ;;  %v297_v8 = vmul.f32 %v8410_v25, %v8674_v0  ;;  %v298_v52 = vmul.f32 %v8413_v26, %v8674_v0  ;;  %1777 = vmatpush1.bf16.msra.mxu1 %v7601_v56 }
  0xef   :  { %v984_v6 = vmax.f32 %v920_v14, 0.0  ;;  %v983_v17 = vmax.f32 %v919_v37, 0.0  ;;  %1778 = vmatprep.subr.bf16.mxu1 %v7602_v16  ;;  %v782_v14 = vmul.f32 %v8420_v28, %v8687_v60 }
  0xf1   :  { %v1038_v41 = vpack.c.bf16 %v984_v6, %v982_v1  ;;  %v1037_v38 = vpack.c.bf16 %v983_v17, %v981_v21  ;;  %v300_v6 = vmul.f32 %v8413_v26, %v8552_v42  ;;  %v299_v17 = vmul.f32 %v8410_v25, %v8552_v42 }
  0xf2   :  { %7467 = vset.pattern.permute.xlu1 %v11522_v36  ;;  %v8680_v53 = vpop.permute.xlu1 %382  ;;  %1779 = vmatpush1.bf16.msra.mxu1 %v7604_v35  ;;  %v7610_v35 = vld [vmem:[#allocation2 + $0x1b0] ss:$8 sps:$4 sm:$0xff]  }
  0xf3   :  { %v507_v54 = vmul.f32 %v8403_v22, %v8680_v53  ;;  %v508_v57 = vmul.f32 %v8416_v27, %v8680_v53  ;;  %220 = vperm.xlu1 %7467, %v8344_v61   ;;  %1337 = vmatprep.mubr.bf16.mxu0 %v1038_v41  ;;  %v7605_v41 = vld [vmem:[#allocation2 + $0x1a4] ss:$8 sps:$4 sm:$0xff]  }
  0xf4   :  { %1338 = vmatmul.mubr.bf16.gmra.mrb[16].mxu0 %v1037_v38  ;;  %v7607_v38 = vld [vmem:[#allocation2 + $0x1a0] ss:$8 sps:$4 sm:$0xff]   ;;  %1780 = vmatprep.subr.bf16.mxu1 %v7605_v41 }
  0xf5   :  { %v572_v34 = vadd.f32 %v508_v57, %v298_v52  ;;  %v571_v1 = vadd.f32 %v507_v54, %v297_v8 }
  0xf6   :  { %v8697_v37 = vpop.permute.xlu1 %386  ;;  %1781 = vmatpush1.bf16.msra.mxu1 %v7607_v38 }
  0xf7   :  { %11531 = vst [vmem:[#allocation22_spill] sm:$0xff] %v8697_v37  ;;  %v510_v21 = vmul.f32 %v8416_v27, %v8697_v37  ;;  %7468 = vset.pattern.permute.xlu1 %v11526_v18  ;;  %v509_v56 = vmul.f32 %v8403_v22, %v8697_v37  ;;  %v846_v54 = vadd.f32 %v782_v14, %v572_v34 }
  0xf8   :  { %438 = vperm.xlu1 %7468, %v8344_v61   ;;  %v845_v57 = vadd.f32 %v781_v32, %v571_v1  ;;  %v7608_v61 = vld [vmem:[#allocation2 + $0x1b4] ss:$8 sps:$4 sm:$0xff]   ;;  %v7611_v1 = vld [vmem:[#allocation2 + $0x1c4] ss:$8 sps:$4 sm:$0xff]  }
  0xf9   :  { %v574_v8 = vadd.f32 %v510_v21, %v300_v6  ;;  %v573_v37 = vadd.f32 %v509_v56, %v299_v17  ;;  %v922_v14 = vadd.f32 %v8455_v44, %v846_v54  ;;  %1782 = vmatprep.subr.bf16.mxu1 %v7608_v61  ;;  %v7613_v17 = vld [vmem:[#allocation2 + $0x1c0] ss:$8 sps:$4 sm:$0xff]   ;;  %v7614_v54 = vld [vmem:[#allocation2 + $0x1d4] ss:$8 sps:$4 sm:$0xff]  }
  0xfa   :  { %v921_v34 = vadd.f32 %v8469_v50, %v845_v57  ;;  %1783 = vmatpush1.bf16.msra.mxu1 %v7610_v35  ;;  %v8732_v35 = vpop.permute.xlu0 %664 }
  0xfb   :  { %v8709_v16 = vpop.permute.xlu1 %660  ;;  %1784 = vmatprep.subr.bf16.mxu1 %v7611_v1  ;;  %11532 = vst [vmem:[#allocation23_spill] sm:$0xff] %v8732_v35  ;;  %v785_v1 = vmul.f32 %v8425_v30, %v8732_v35 }
  0xfc   :  { %v783_v52 = vmul.f32 %v8425_v30, %v8709_v16  ;;  %v784_v42 = vmul.f32 %v8420_v28, %v8709_v16  ;;  %442 = vperm.xlu1 %7468, %v8321_v58   ;;  %v985_v38 = vmax.f32 %v921_v34, 0.0  ;;  %v7617_v34 = vld [vmem:[#allocation2 + $0x1e4] ss:$8 sps:$4 sm:$0xff]  }
  0xfe   :  { %v848_v60 = vadd.f32 %v784_v42, %v574_v8  ;;  %v847_v32 = vadd.f32 %v783_v52, %v573_v37  ;;  %v986_v42 = vmax.f32 %v922_v14, 0.0  ;;  %1785 = vmatpush1.bf16.msra.mxu1 %v7613_v17 }
  0xff   :  { %1786 = vmatprep.subr.bf16.mxu1 %v7614_v54 }
 0x100   :  { %7469 = vset.pattern.permute.xlu1 %v11519_v46  ;;  %v8719_v6 = vpop.permute.xlu1 %160  ;;  %v924_v21 = vadd.f32 %v8455_v44, %v848_v60  ;;  %v923_v41 = vadd.f32 %v8469_v50, %v847_v32  ;;  %v7616_v60 = vld [vmem:[#allocation2 + $0x1d0] ss:$8 sps:$4 sm:$0xff]  }
 0x101   :  { %716 = vperm.xlu1 %7469, %v8321_v58   ;;  %v301_v14 = vmul.f32 %v8410_v25, %v8719_v6  ;;  %v302_v32 = vmul.f32 %v8413_v26, %v8719_v6 }
 0x102   :  { %v988_v56 = vmax.f32 %v924_v21, 0.0  ;;  %v987_v37 = vmax.f32 %v923_v41, 0.0  ;;  %v786_v21 = vmul.f32 %v8420_v28, %v8732_v35  ;;  %1787 = vmatpush1.bf16.msra.mxu1 %v7616_v60 }
 0x103   :  { %1788 = vmatprep.subr.bf16.mxu1 %v7617_v34 }
 0x104   :  { %v1040_v57 = vpack.c.bf16 %v988_v56, %v986_v42  ;;  %v1039_v8 = vpack.c.bf16 %v987_v37, %v985_v38  ;;  %v7619_v56 = vld [vmem:[#allocation2 + $0x1e0] ss:$8 sps:$4 sm:$0xff]   ;;  %v303_v38 = vmul.f32 %v8410_v25, %v8570_v23  ;;  %v304_v37 = vmul.f32 %v8413_v26, %v8570_v23 }
 0x105   :  { %7470 = vset.pattern.permute.xlu1 %v11522_v36  ;;  %v8725_v52 = vpop.permute.xlu1 %390 }
 0x106   :  { %v511_v61 = vmul.f32 %v8403_v22, %v8725_v52  ;;  %v512_v58 = vmul.f32 %v8416_v27, %v8725_v52  ;;  %230 = vperm.xlu1 %7470, %v8351_v62   ;;  %1347 = vmatprep.mubr.bf16.mxu0 %v1040_v57 }
 0x107   :  { %1348 = vmatmul.mubr.bf16.gmra.mrb[20].mxu0 %v1039_v8  ;;  %v7620_v8 = vld [vmem:[#allocation2 + $0x1f4] ss:$8 sps:$4 sm:$0xff]   ;;  %1789 = vmatpush1.bf16.msra.mxu1 %v7619_v56 }
 0x108   :  { %v576_v17 = vadd.f32 %v512_v58, %v302_v32  ;;  %v575_v42 = vadd.f32 %v511_v61, %v301_v14  ;;  %v7622_v58 = vld [vmem:[#allocation2 + $0x1f0] ss:$8 sps:$4 sm:$0xff]   ;;  %1790 = vmatprep.subr.bf16.mxu1 %v7620_v8 }
 0x109   :  { %v8742_v41 = vpop.permute.xlu1 %394 }
 0x10a   :  { %11533 = vst [vmem:[#allocation24_spill] sm:$0xff] %v8742_v41  ;;  %7472 = vset.pattern.permute.xlu1 %v11526_v18  ;;  %v513_v54 = vmul.f32 %v8403_v22, %v8742_v41  ;;  %v514_v57 = vmul.f32 %v8416_v27, %v8742_v41  ;;  %v850_v60 = vadd.f32 %v786_v21, %v576_v17 }
 0x10b   :  { %446 = vperm.xlu1 %7472, %v8351_v62   ;;  %v849_v61 = vadd.f32 %v785_v1, %v575_v42  ;;  %1791 = vmatpush1.bf16.msra.mxu1 %v7622_v58 }
 0x10c   :  { %v578_v41 = vadd.f32 %v514_v57, %v304_v37  ;;  %v577_v35 = vadd.f32 %v513_v54, %v303_v38  ;;  %v926_v34 = vadd.f32 %v8455_v44, %v850_v60  ;;  %v8772_v57 = vpop.permute.xlu0 %672 }
 0x10d   :  { %v925_v1 = vadd.f32 %v8469_v50, %v849_v61  ;;  %11535 = vst [vmem:[#allocation26_spill] sm:$0xff] %v8772_v57 }
 0x10e   :  { %v8754_v14 = vpop.permute.xlu1 %668  ;;  %v990_v8 = vmax.f32 %v926_v34, 0.0 }
 0x10f   :  { %v787_v32 = vmul.f32 %v8425_v30, %v8754_v14  ;;  %v788_v23 = vmul.f32 %v8420_v28, %v8754_v14  ;;  %450 = vperm.xlu1 %7472, %v8326_v59   ;;  %v989_v38 = vmax.f32 %v925_v1, 0.0 }
 0x111   :  { %v852_v62 = vadd.f32 %v788_v23, %v578_v41  ;;  %v851_v21 = vadd.f32 %v787_v32, %v577_v35  ;;  %v789_v32 = vmul.f32 %v8425_v30, %v8772_v57 }
 0x113   :  { %7473 = vset.pattern.permute.xlu1 %v11519_v46  ;;  %v8764_v17 = vpop.permute.xlu1 %170  ;;  %v928_v42 = vadd.f32 %v8455_v44, %v852_v62  ;;  %v927_v56 = vadd.f32 %v8469_v50, %v851_v21  ;;  %v790_v62 = vmul.f32 %v8420_v28, %v8772_v57  ;;  %v8789_v21 = vpop.permute.xlu0 %680 }
 0x114   :  { %11534 = vst [vmem:[#allocation25_spill] sm:$0xff] %v8764_v17  ;;  %724 = vperm.xlu1 %7473, %v8326_v59   ;;  %v305_v59 = vmul.f32 %v8410_v25, %v8764_v17  ;;  %v306_v58 = vmul.f32 %v8413_v26, %v8764_v17  ;;  %11537 = vst [vmem:[#allocation28_spill] sm:$0xff] %v8789_v21 }
 0x115   :  { %v992_v37 = vmax.f32 %v928_v42, 0.0  ;;  %v991_v23 = vmax.f32 %v927_v56, 0.0  ;;  %v307_v56 = vmul.f32 %v8410_v25, %v8584_v11 }
 0x117   :  { %v1042_v41 = vpack.c.bf16 %v992_v37, %v990_v8  ;;  %v1041_v54 = vpack.c.bf16 %v991_v23, %v989_v38  ;;  %v308_v8 = vmul.f32 %v8413_v26, %v8584_v11 }
 0x118   :  { %7474 = vset.pattern.permute.xlu1 %v11522_v36  ;;  %v8770_v35 = vpop.permute.xlu1 %398 }
 0x119   :  { %v515_v60 = vmul.f32 %v8403_v22, %v8770_v35  ;;  %v516_v61 = vmul.f32 %v8416_v27, %v8770_v35  ;;  %240 = vperm.xlu1 %7474, %v8395_v19   ;;  %1357 = vmatprep.mubr.bf16.mxu0 %v1042_v41 }
 0x11a   :  { %1358 = vmatmul.mubr.bf16.gmra.mrb[24].mxu0 %v1041_v54 }
 0x11b   :  { %v580_v1 = vadd.f32 %v516_v61, %v306_v58  ;;  %v579_v42 = vadd.f32 %v515_v60, %v305_v59  ;;  %v8808_v59 = vpop.permute.xlu0 %688 }
 0x11c   :  { %v8787_v34 = vpop.permute.xlu1 %402  ;;  %11539 = vst [vmem:[#allocation30_spill] sm:$0xff] %v8808_v59 }
 0x11d   :  { %11536 = vst [vmem:[#allocation27_spill] sm:$0xff] %v8787_v34  ;;  %7475 = vset.pattern.permute.xlu1 %v11526_v18  ;;  %v517_v37 = vmul.f32 %v8403_v22, %v8787_v34  ;;  %v518_v38 = vmul.f32 %v8416_v27, %v8787_v34  ;;  %v854_v23 = vadd.f32 %v790_v62, %v580_v1 }
 0x11e   :  { %454 = vperm.xlu1 %7475, %v8395_v19   ;;  %v853_v41 = vadd.f32 %v789_v32, %v579_v42 }
 0x11f   :  { %v582_v58 = vadd.f32 %v518_v38, %v308_v8  ;;  %v581_v11 = vadd.f32 %v517_v37, %v307_v56  ;;  %v930_v34 = vadd.f32 %v8455_v44, %v854_v23 }
 0x120   :  { %v929_v32 = vadd.f32 %v8469_v50, %v853_v41 }
 0x121   :  { %v8801_v54 = vpop.permute.xlu1 %676  ;;  %v994_v8 = vmax.f32 %v930_v34, 0.0 }
 0x122   :  { %11538 = vst [vmem:[#allocation29_spill] sm:$0xff] %v8801_v54  ;;  %v791_v60 = vmul.f32 %v8425_v30, %v8801_v54  ;;  %v792_v61 = vmul.f32 %v8420_v28, %v8801_v54  ;;  %458 = vperm.xlu1 %7475, %v8449_v40   ;;  %v8818_v54 = vpop.permute.xlu0 %696  ;;  %v993_v37 = vmax.f32 %v929_v32, 0.0 }
 0x123   :  { %11541 = vst [vmem:[#allocation32_spill] sm:$0xff] %v8818_v54 }
 0x124   :  { %v856_v57 = vadd.f32 %v792_v61, %v582_v58  ;;  %v855_v19 = vadd.f32 %v791_v60, %v581_v11  ;;  %v794_v58 = vmul.f32 %v8420_v28, %v8789_v21 }
 0x126   :  { %7477 = vset.pattern.permute.xlu1 %v11519_v46  ;;  %v8813_v62 = vpop.permute.xlu1 %180  ;;  %v932_v1 = vadd.f32 %v8455_v44, %v856_v57  ;;  %v931_v42 = vadd.f32 %v8469_v50, %v855_v19  ;;  %v8832_v61 = vpop.permute.xlu0 %185 }
 0x127   :  { %11540 = vst [vmem:[#allocation31_spill] sm:$0xff] %v8813_v62  ;;  %732 = vperm.xlu1 %7477, %v8449_v40   ;;  %v309_v40 = vmul.f32 %v8410_v25, %v8813_v62  ;;  %v310_v34 = vmul.f32 %v8413_v26, %v8813_v62  ;;  %11543 = vst [vmem:[#allocation34_spill] sm:$0xff] %v8832_v61 }
 0x128   :  { %v996_v56 = vmax.f32 %v932_v1, 0.0  ;;  %v995_v38 = vmax.f32 %v931_v42, 0.0  ;;  %v311_v42 = vmul.f32 %v8410_v25, %v8832_v61 }
 0x12a   :  { %v1044_v23 = vpack.c.bf16 %v996_v56, %v994_v8  ;;  %v1043_v11 = vpack.c.bf16 %v995_v38, %v993_v37  ;;  %v312_v8 = vmul.f32 %v8413_v26, %v8832_v61 }
 0x12b   :  { %7478 = vset.pattern.permute.xlu1 %v11522_v36  ;;  %v8821_v41 = vpop.permute.xlu1 %406  ;;  %v793_v36 = vmul.f32 %v8425_v30, %v8789_v21 }
 0x12c   :  { %11542 = vst [vmem:[#allocation33_spill] sm:$0xff] %v8821_v41  ;;  %v519_v60 = vmul.f32 %v8403_v22, %v8821_v41  ;;  %v520_v57 = vmul.f32 %v8416_v27, %v8821_v41  ;;  %250 = vperm.xlu1 %7478, %v8528_v45   ;;  %1367 = vmatprep.mubr.bf16.mxu0 %v1044_v23 }
 0x12d   :  { %1368 = vmatmul.mubr.bf16.gmra.mrb[28].mxu0 %v1043_v11 }
 0x12e   :  { %v584_v32 = vadd.f32 %v520_v57, %v310_v34  ;;  %v583_v1 = vadd.f32 %v519_v60, %v309_v40 }
 0x12f   :  { %v8838_v19 = vpop.permute.xlu1 %410 }
 0x130   :  { %11544 = vst [vmem:[#allocation35_spill] sm:$0xff] %v8838_v19  ;;  %7479 = vset.pattern.permute.xlu1 %v11526_v18  ;;  %v521_v56 = vmul.f32 %v8403_v22, %v8838_v19  ;;  %v522_v37 = vmul.f32 %v8416_v27, %v8838_v19  ;;  %v858_v38 = vadd.f32 %v794_v58, %v584_v32 }
 0x131   :  { %462 = vperm.xlu1 %7479, %v8528_v45   ;;  %v857_v23 = vadd.f32 %v793_v36, %v583_v1 }
 0x132   :  { %v586_v57 = vadd.f32 %v522_v37, %v312_v8  ;;  %v585_v40 = vadd.f32 %v521_v56, %v311_v42  ;;  %v934_v61 = vadd.f32 %v8455_v44, %v858_v38 }
 0x133   :  { %v933_v45 = vadd.f32 %v8469_v50, %v857_v23 }
 0x134   :  { %v8850_v11 = vpop.permute.xlu1 %684  ;;  %v998_v1 = vmax.f32 %v934_v61, 0.0  ;;  %v8875_v61 = vpop.permute.xlu0 %195 }
 0x135   :  { %11545 = vst [vmem:[#allocation36_spill] sm:$0xff] %v8850_v11  ;;  %v795_v18 = vmul.f32 %v8425_v30, %v8850_v11  ;;  %v796_v60 = vmul.f32 %v8420_v28, %v8850_v11  ;;  %466 = vperm.xlu1 %7479, %v8511_v20   ;;  %v997_v8 = vmax.f32 %v933_v45, 0.0  ;;  %11548 = vst [vmem:[#allocation39_spill] sm:$0xff] %v8875_v61 }
 0x136   :  { %v316_v45 = vmul.f32 %v8413_v26, %v8875_v61 }
 0x137   :  { %v860_v34 = vadd.f32 %v796_v60, %v586_v57  ;;  %v859_v19 = vadd.f32 %v795_v18, %v585_v40  ;;  %v798_v18 = vmul.f32 %v8420_v28, %v8808_v59 }
 0x139   :  { %7481 = vset.pattern.permute.xlu1 %v11519_v46  ;;  %v8860_v36 = vpop.permute.xlu1 %190  ;;  %v936_v58 = vadd.f32 %v8455_v44, %v860_v34  ;;  %v935_v32 = vadd.f32 %v8469_v50, %v859_v19  ;;  %v315_v34 = vmul.f32 %v8410_v25, %v8875_v61 }
 0x13a   :  { %11546 = vst [vmem:[#allocation37_spill] sm:$0xff] %v8860_v36  ;;  %740 = vperm.xlu1 %7481, %v8511_v20   ;;  %v313_v19 = vmul.f32 %v8410_v25, %v8860_v36  ;;  %v314_v20 = vmul.f32 %v8413_v26, %v8860_v36 }
 0x13b   :  { %v1000_v11 = vmax.f32 %v936_v58, 0.0  ;;  %v999_v42 = vmax.f32 %v935_v32, 0.0 }
 0x13d   :  { %v1046_v56 = vpack.c.bf16 %v1000_v11, %v998_v1  ;;  %v1045_v37 = vpack.c.bf16 %v999_v42, %v997_v8  ;;  %v797_v11 = vmul.f32 %v8425_v30, %v8808_v59 }
 0x13e   :  { %v8865_v38 = vpop.permute.xlu1 %414 }
 0x13f   :  { %11547 = vst [vmem:[#allocation38_spill] sm:$0xff] %v8865_v38  ;;  %v523_v23 = vmul.f32 %v8403_v22, %v8865_v38  ;;  %v524_v46 = vmul.f32 %v8416_v27, %v8865_v38  ;;  %1377 = vmatprep.mubr.bf16.mxu0 %v1046_v56 }
 0x140   :  { %1378 = vmatmul.mubr.bf16.gmra.mrb[32].mxu0 %v1045_v37 }
 0x141   :  { %v588_v57 = vadd.f32 %v524_v46, %v314_v20  ;;  %v587_v40 = vadd.f32 %v523_v23, %v313_v19 }
 0x142   :  { %v8881_v60 = vpop.permute.xlu1 %418 }
 0x143   :  { %11549 = vst [vmem:[#allocation40_spill] sm:$0xff] %v8881_v60  ;;  %v525_v58 = vmul.f32 %v8403_v22, %v8881_v60  ;;  %v526_v32 = vmul.f32 %v8416_v27, %v8881_v60  ;;  %v862_v1 = vadd.f32 %v798_v18, %v588_v57  ;;  %v861_v8 = vadd.f32 %v797_v11, %v587_v40  ;;  %v8903_v57 = vpop.permute.xlu0 %205 }
 0x144   :  { %11552 = vst [vmem:[#allocation43_spill] sm:$0xff] %v8903_v57 }
 0x145   :  { %v590_v23 = vadd.f32 %v526_v32, %v316_v45  ;;  %v589_v46 = vadd.f32 %v525_v58, %v315_v34  ;;  %v938_v20 = vadd.f32 %v8455_v44, %v862_v1  ;;  %v937_v59 = vadd.f32 %v8469_v50, %v861_v8 }
 0x147   :  { %v8891_v42 = vpop.permute.xlu1 %692  ;;  %v1002_v40 = vmax.f32 %v938_v20, 0.0  ;;  %v1001_v38 = vmax.f32 %v937_v59, 0.0  ;;  %v8915_v59 = vpop.permute.xlu0 %215 }
 0x148   :  { %11550 = vst [vmem:[#allocation41_spill] sm:$0xff] %v8891_v42  ;;  %v799_v56 = vmul.f32 %v8425_v30, %v8891_v42  ;;  %v800_v37 = vmul.f32 %v8420_v28, %v8891_v42  ;;  %11554 = vst [vmem:[#allocation45_spill] sm:$0xff] %v8915_v59 }
 0x14a   :  { %v864_v19 = vadd.f32 %v800_v37, %v590_v23  ;;  %v863_v61 = vadd.f32 %v799_v56, %v589_v46  ;;  %v319_v23 = vmul.f32 %v8410_v25, %v8903_v57  ;;  %v320_v46 = vmul.f32 %v8413_v26, %v8903_v57 }
 0x14c   :  { %v8899_v36 = vpop.permute.xlu1 %200  ;;  %v940_v11 = vadd.f32 %v8455_v44, %v864_v19  ;;  %v939_v18 = vadd.f32 %v8469_v50, %v863_v61 }
 0x14d   :  { %11551 = vst [vmem:[#allocation42_spill] sm:$0xff] %v8899_v36  ;;  %v317_v61 = vmul.f32 %v8410_v25, %v8899_v36  ;;  %v318_v8 = vmul.f32 %v8413_v26, %v8899_v36 }
 0x14e   :  { %v1004_v60 = vmax.f32 %v940_v11, 0.0  ;;  %v1003_v42 = vmax.f32 %v939_v18, 0.0  ;;  %v8931_v11 = vpop.permute.xlu0 %225 }
 0x14f   :  { %11556 = vst [vmem:[#allocation47_spill] sm:$0xff] %v8931_v11 }
 0x150   :  { %v1048_v45 = vpack.c.bf16 %v1004_v60, %v1002_v40  ;;  %v1047_v34 = vpack.c.bf16 %v1003_v42, %v1001_v38  ;;  %v801_v38 = vmul.f32 %v8425_v30, %v8818_v54  ;;  %v802_v60 = vmul.f32 %v8420_v28, %v8818_v54 }
 0x151   :  { %v8905_v58 = vpop.permute.xlu1 %422 }
 0x152   :  { %11553 = vst [vmem:[#allocation44_spill] sm:$0xff] %v8905_v58  ;;  %v527_v32 = vmul.f32 %v8403_v22, %v8905_v58  ;;  %v528_v1 = vmul.f32 %v8416_v27, %v8905_v58  ;;  %1387 = vmatprep.mubr.bf16.mxu0 %v1048_v45 }
 0x153   :  { %1388 = vmatmul.mubr.bf16.gmra.mrb[36].mxu0 %v1047_v34 }
 0x154   :  { %v592_v56 = vadd.f32 %v528_v1, %v318_v8  ;;  %v591_v37 = vadd.f32 %v527_v32, %v317_v61 }
 0x155   :  { %v8921_v42 = vpop.permute.xlu1 %426 }
 0x156   :  { %11555 = vst [vmem:[#allocation46_spill] sm:$0xff] %v8921_v42  ;;  %v529_v19 = vmul.f32 %v8403_v22, %v8921_v42  ;;  %v530_v20 = vmul.f32 %v8416_v27, %v8921_v42  ;;  %v866_v18 = vadd.f32 %v802_v60, %v592_v56  ;;  %v865_v40 = vadd.f32 %v801_v38, %v591_v37  ;;  %v8943_v60 = vpop.permute.xlu0 %235 }
 0x157   :  { %11559 = vst [vmem:[#allocation50_spill] sm:$0xff] %v8943_v60 }
 0x158   :  { %v594_v1 = vadd.f32 %v530_v20, %v320_v46  ;;  %v593_v61 = vadd.f32 %v529_v19, %v319_v23  ;;  %v942_v57 = vadd.f32 %v8455_v44, %v866_v18  ;;  %v941_v42 = vadd.f32 %v8469_v50, %v865_v40 }
 0x15a   :  { %v8933_v45 = vpop.permute.xlu1 %700  ;;  %v1006_v37 = vmax.f32 %v942_v57, 0.0  ;;  %v1005_v21 = vmax.f32 %v941_v42, 0.0  ;;  %v8953_v40 = vpop.permute.xlu0 %704 }
 0x15b   :  { %11557 = vst [vmem:[#allocation48_spill] sm:$0xff] %v8933_v45  ;;  %v803_v34 = vmul.f32 %v8425_v30, %v8933_v45  ;;  %v804_v32 = vmul.f32 %v8420_v28, %v8933_v45  ;;  %11561 = vst [vmem:[#allocation52_spill] sm:$0xff] %v8953_v40 }
 0x15d   :  { %v868_v8 = vadd.f32 %v804_v32, %v594_v1  ;;  %v867_v54 = vadd.f32 %v803_v34, %v593_v61  ;;  %v323_v32 = vmul.f32 %v8410_v25, %v8915_v59  ;;  %v324_v1 = vmul.f32 %v8413_v26, %v8915_v59 }
 0x15f   :  { %v8941_v36 = vpop.permute.xlu1 %210  ;;  %v944_v38 = vadd.f32 %v8455_v44, %v868_v8  ;;  %v943_v56 = vadd.f32 %v8469_v50, %v867_v54 }
 0x160   :  { %11558 = vst [vmem:[#allocation49_spill] sm:$0xff] %v8941_v36  ;;  %v321_v54 = vmul.f32 %v8410_v25, %v8941_v36  ;;  %v322_v57 = vmul.f32 %v8413_v26, %v8941_v36 }
 0x161   :  { %v1008_v58 = vmax.f32 %v944_v38, 0.0  ;;  %v1007_v45 = vmax.f32 %v943_v56, 0.0 }
 0x163   :  { %v1050_v46 = vpack.c.bf16 %v1008_v58, %v1006_v37  ;;  %v1049_v23 = vpack.c.bf16 %v1007_v45, %v1005_v21  ;;  %v805_v21 = vmul.f32 %v8425_v30, %v8953_v40  ;;  %v806_v58 = vmul.f32 %v8420_v28, %v8953_v40 }
 0x164   :  { %v8947_v19 = vpop.permute.xlu1 %430 }
 0x165   :  { %11560 = vst [vmem:[#allocation51_spill] sm:$0xff] %v8947_v19  ;;  %v531_v20 = vmul.f32 %v8403_v22, %v8947_v19  ;;  %v532_v18 = vmul.f32 %v8416_v27, %v8947_v19  ;;  %1397 = vmatprep.mubr.bf16.mxu0 %v1050_v46 }
 0x166   :  { %1398 = vmatmul.mubr.bf16.gmra.mrb[40].mxu0 %v1049_v23 }
 0x167   :  { %v596_v45 = vadd.f32 %v532_v18, %v322_v57  ;;  %v595_v34 = vadd.f32 %v531_v20, %v321_v54 }
 0x168   :  { %v8963_v42 = vpop.permute.xlu1 %434 }
 0x169   :  { %11562 = vst [vmem:[#allocation53_spill] sm:$0xff] %v8963_v42  ;;  %v533_v61 = vmul.f32 %v8403_v22, %v8963_v42  ;;  %v534_v8 = vmul.f32 %v8416_v27, %v8963_v42  ;;  %v870_v38 = vadd.f32 %v806_v58, %v596_v45  ;;  %v869_v56 = vadd.f32 %v805_v21, %v595_v34 }
 0x16b   :  { %v598_v20 = vadd.f32 %v534_v8, %v324_v1  ;;  %v597_v18 = vadd.f32 %v533_v61, %v323_v32  ;;  %v946_v57 = vadd.f32 %v8455_v44, %v870_v38  ;;  %v945_v40 = vadd.f32 %v8469_v50, %v869_v56  ;;  %v8987_v32 = vpop.permute.xlu0 %712 }
 0x16c   :  { %11566 = vst [vmem:[#allocation57_spill] sm:$0xff] %v8987_v32 }
 0x16d   :  { %v8973_v37 = vpop.permute.xlu1 %708  ;;  %v1010_v45 = vmax.f32 %v946_v57, 0.0  ;;  %v1009_v42 = vmax.f32 %v945_v40, 0.0 }
 0x16e   :  { %11563 = vst [vmem:[#allocation54_spill] sm:$0xff] %v8973_v37  ;;  %v807_v46 = vmul.f32 %v8425_v30, %v8973_v37  ;;  %v808_v23 = vmul.f32 %v8420_v28, %v8973_v37 }
 0x170   :  { %v872_v54 = vadd.f32 %v808_v23, %v598_v20  ;;  %v871_v59 = vadd.f32 %v807_v46, %v597_v18  ;;  %v327_v23 = vmul.f32 %v8410_v25, %v8931_v11 }
 0x172   :  { %v8981_v36 = vpop.permute.xlu1 %220  ;;  %v948_v21 = vadd.f32 %v8455_v44, %v872_v54  ;;  %v947_v58 = vadd.f32 %v8469_v50, %v871_v59  ;;  %v1093_v54 = vld [vmem:[%s11355_s4] sm:$0x3] }
 0x173   :  { %11564 = vst [vmem:[#allocation55_spill] sm:$0xff] %v8981_v36  ;;  %v326_v61 = vmul.f32 %v8413_v26, %v8981_v36  ;;  %v325_v59 = vmul.f32 %v8410_v25, %v8981_v36 }
 0x174   :  { %v1012_v34 = vmax.f32 %v948_v21, 0.0  ;;  %v1011_v19 = vmax.f32 %v947_v58, 0.0 }
 0x176   :  { %v1052_v62 = vpack.c.bf16 %v1012_v34, %v1010_v45  ;;  %v1051_v37 = vpack.c.bf16 %v1011_v19, %v1009_v42  ;;  %v810_v19 = vmul.f32 %v8420_v28, %v8987_v32  ;;  %v809_v42 = vmul.f32 %v8425_v30, %v8987_v32 }
 0x177   :  { %v8985_v1 = vpop.permute.xlu1 %438 }
 0x178   :  { %11565 = vst [vmem:[#allocation56_spill] sm:$0xff] %v8985_v1  ;;  %v535_v8 = vmul.f32 %v8403_v22, %v8985_v1  ;;  %v536_v38 = vmul.f32 %v8416_v27, %v8985_v1  ;;  %1407 = vmatprep.mubr.bf16.mxu0 %v1052_v62  ;;  %v328_v62 = vmul.f32 %v8413_v26, %v8931_v11 }
 0x179   :  { %1408 = vmatmul.mubr.bf16.gmra.mrb[44].mxu0 %v1051_v37 }
 0x17a   :  { %v600_v40 = vadd.f32 %v536_v38, %v326_v61  ;;  %v599_v46 = vadd.f32 %v535_v8, %v325_v59  ;;  %v9021_v8 = vrot.slane %v1093_v54, %v8372_v7 }
 0x17b   :  { %v9001_v56 = vpop.permute.xlu1 %442 }
 0x17c   :  { %11567 = vst [vmem:[#allocation58_spill] sm:$0xff] %v9001_v56  ;;  %v537_v20 = vmul.f32 %v8403_v22, %v9001_v56  ;;  %v538_v37 = vmul.f32 %v8416_v27, %v9001_v56  ;;  %v874_v18 = vadd.f32 %v810_v19, %v600_v40  ;;  %v873_v57 = vadd.f32 %v809_v42, %v599_v46 }
 0x17d   :  { %v9026_v42 = vrot.slane %v1093_v54, %v8365_v5 }
 0x17e   :  { %v602_v34 = vadd.f32 %v538_v37, %v328_v62  ;;  %v601_v61 = vadd.f32 %v537_v20, %v327_v23  ;;  %v950_v38 = vadd.f32 %v8455_v44, %v874_v18  ;;  %v949_v40 = vadd.f32 %v8469_v50, %v873_v57 }
 0x180   :  { %v9014_v21 = vpop.permute.xlu1 %716  ;;  %v1014_v37 = vmax.f32 %v950_v38, 0.0  ;;  %v9040_v38 = vpop.permute.xlu0 %720 }
 0x181   :  { %11568 = vst [vmem:[#allocation59_spill] sm:$0xff] %v9014_v21  ;;  %v811_v58 = vmul.f32 %v8425_v30, %v9014_v21  ;;  %v812_v45 = vmul.f32 %v8420_v28, %v9014_v21  ;;  %11571 = vst [vmem:[#allocation62_spill] sm:$0xff] %v9040_v38 }
 0x183   :  { %v876_v59 = vadd.f32 %v812_v45, %v602_v34  ;;  %v875_v19 = vadd.f32 %v811_v58, %v601_v61  ;;  %v1013_v45 = vmax.f32 %v949_v40, 0.0 }
 0x185   :  { %v9028_v46 = vpop.permute.xlu1 %230  ;;  %v1299_v56 = vpop.f32.mrb[0].mxu0  ;;  %v952_v11 = vadd.f32 %v8455_v44, %v876_v59  ;;  %v951_v62 = vadd.f32 %v8469_v50, %v875_v19 }
 0x186   :  { %11569 = vst [vmem:[#allocation60_spill] sm:$0xff] %v9028_v46  ;;  %v1300_v23 = vadd.f32 %v1299_v56, %v9021_v8  ;;  %v1301_v20 = vpop.f32.mrb[1].mxu0  ;;  %v330_v59 = vmul.f32 %v8413_v26, %v9028_v46 }
 0x187   :  { %v1303_v21 = vpop.f32.mrb[2].mxu0  ;;  %v1016_v18 = vmax.f32 %v952_v11, 0.0  ;;  %v1015_v58 = vmax.f32 %v951_v62, 0.0  ;;  %v1302_v57 = vadd.f32 %v1301_v20, %v9026_v42  ;;  %v329_v20 = vmul.f32 %v8410_v25, %v9028_v46 }
 0x188   :  { %v1304_v54 = vadd.f32 %v1303_v21, %v9021_v8  ;;  %v1305_v34 = vpop.f32.mrb[3].mxu0  ;;  %v1458_v19 = vmax.f32 %v1300_v23, 0.0  ;;  %v814_v23 = vmul.f32 %v8420_v28, %v9040_v38 }
 0x189   :  { %v1054_v61 = vpack.c.bf16 %v1016_v18, %v1014_v37  ;;  %v1053_v32 = vpack.c.bf16 %v1015_v58, %v1013_v45  ;;  %v1306_v36 = vadd.f32 %v1305_v34, %v9026_v42  ;;  %v1459_v40 = vmax.f32 %v1302_v57, 0.0 }
 0x18a   :  { %v1460_v56 = vmax.f32 %v1304_v54, 0.0  ;;  %v9038_v1 = vpop.permute.xlu1 %446  ;;  %v813_v58 = vmul.f32 %v8425_v30, %v9040_v38 }
 0x18b   :  { %11570 = vst [vmem:[#allocation61_spill] sm:$0xff] %v9038_v1  ;;  %v539_v11 = vmul.f32 %v8403_v22, %v9038_v1  ;;  %v540_v21 = vmul.f32 %v8416_v27, %v9038_v1  ;;  %1417 = vmatprep.mubr.bf16.mxu0 %v1054_v61  ;;  %v1461_v62 = vmax.f32 %v1306_v36, 0.0 }
 0x18c   :  { %1418 = vmatmul.mubr.bf16.gmra.mrb[48].mxu0 %v1053_v32  ;;  %v1522_v37 = vpack.c.bf16 %v1460_v56, %v1458_v19  ;;  %v332_v56 = vmul.f32 %v8413_v26, %v8943_v60 }
 0x18d   :  { %v1523_v18 = vpack.c.bf16 %v1461_v62, %v1459_v40  ;;  %v604_v45 = vadd.f32 %v540_v21, %v330_v59  ;;  %v603_v1 = vadd.f32 %v539_v11, %v329_v20  ;;  %v331_v62 = vmul.f32 %v8410_v25, %v8943_v60 }
 0x18e   :  { %v9052_v54 = vpop.permute.xlu1 %450  ;;  %v1309_v34 = vpop.f32.mrb[4].mxu0 }
 0x18f   :  { %11572 = vst [vmem:[#allocation63_spill] sm:$0xff] %v9052_v54  ;;  %v542_v36 = vmul.f32 %v8416_v27, %v9052_v54  ;;  %v1310_v57 = vadd.f32 %v1309_v34, %v9021_v8  ;;  %v1311_v61 = vpop.f32.mrb[5].mxu0  ;;  %1792 = vmatprep.mubr.bf16.mxu1 %v1523_v18  ;;  %v541_v32 = vmul.f32 %v8403_v22, %v9052_v54 }
 0x190   :  { %v1312_v19 = vadd.f32 %v1311_v61, %v9026_v42  ;;  %v1313_v59 = vpop.f32.mrb[6].mxu0  ;;  %1793 = vmatmul.mubr.bf16.vlgmr.msra.gmra.mrb[0].mxu1 %v1522_v37  ;;  %v878_v40 = vadd.f32 %v814_v23, %v604_v45  ;;  %v877_v18 = vadd.f32 %v813_v58, %v603_v1 }
 0x191   :  { %v1314_v21 = vadd.f32 %v1313_v59, %v9021_v8  ;;  %v1315_v11 = vpop.f32.mrb[7].mxu0  ;;  %v1462_v34 = vmax.f32 %v1310_v57, 0.0  ;;  %v606_v61 = vadd.f32 %v542_v36, %v332_v56  ;;  %v605_v23 = vadd.f32 %v541_v32, %v331_v62 }
 0x192   :  { %v1316_v20 = vadd.f32 %v1315_v11, %v9026_v42  ;;  %v1463_v38 = vmax.f32 %v1312_v19, 0.0  ;;  %v954_v60 = vadd.f32 %v8455_v44, %v878_v40  ;;  %v953_v58 = vadd.f32 %v8469_v50, %v877_v18 }
 0x193   :  { %v1464_v54 = vmax.f32 %v1314_v21, 0.0  ;;  %v9066_v46 = vpop.permute.xlu1 %724 }
 0x194   :  { %11573 = vst [vmem:[#allocation64_spill] sm:$0xff] %v9066_v46  ;;  %v1465_v37 = vmax.f32 %v1316_v20, 0.0  ;;  %v815_v41 = vmul.f32 %v8425_v30, %v9066_v46  ;;  %v816_v59 = vmul.f32 %v8420_v28, %v9066_v46  ;;  %v1018_v56 = vmax.f32 %v954_v60, 0.0 }
 0x195   :  { %v1524_v45 = vpack.c.bf16 %v1464_v54, %v1462_v34  ;;  %v1017_v20 = vmax.f32 %v953_v58, 0.0  ;;  %v9078_v54 = vpop.permute.xlu0 %728 }
 0x196   :  { %v1525_v17 = vpack.c.bf16 %v1465_v37, %v1463_v38  ;;  %v880_v11 = vadd.f32 %v816_v59, %v606_v61  ;;  %v879_v1 = vadd.f32 %v815_v41, %v605_v23  ;;  %11575 = vst [vmem:[#allocation66_spill] sm:$0xff] %v9078_v54 }
 0x198   :  { %v9074_v57 = vpop.permute.xlu1 %240  ;;  %1802 = vmatprep.mubr.bf16.mxu1 %v1525_v17  ;;  %v956_v36 = vadd.f32 %v8455_v44, %v880_v11  ;;  %v955_v19 = vadd.f32 %v8469_v50, %v879_v1 }
 0x199   :  { %11574 = vst [vmem:[#allocation65_spill] sm:$0xff] %v9074_v57  ;;  %1803 = vmatmul.mubr.bf16.gmra.mrb[4].mxu1 %v1524_v45  ;;  %v334_v41 = vmul.f32 %v8413_v26, %v9074_v57  ;;  %v333_v60 = vmul.f32 %v8410_v25, %v9074_v57  ;;  %v9090_v34 = vpop.permute.xlu0 %245  ;;  %v818_v45 = vmul.f32 %v8420_v28, %v9078_v54 }
 0x19a   :  { %v1020_v21 = vmax.f32 %v956_v36, 0.0  ;;  %v1019_v32 = vmax.f32 %v955_v19, 0.0  ;;  %11577 = vst [vmem:[#allocation68_spill] sm:$0xff] %v9090_v34  ;;  %v336_v11 = vmul.f32 %v8413_v26, %v9090_v34  ;;  %v817_v19 = vmul.f32 %v8425_v30, %v9078_v54 }
 0x19c   :  { %v1056_v40 = vpack.c.bf16 %v1020_v21, %v1018_v56  ;;  %v1055_v38 = vpack.c.bf16 %v1019_v32, %v1017_v20  ;;  %v335_v56 = vmul.f32 %v8410_v25, %v9090_v34 }
 0x19d   :  { %v9080_v62 = vpop.permute.xlu1 %454 }
 0x19e   :  { %11576 = vst [vmem:[#allocation67_spill] sm:$0xff] %v9080_v62  ;;  %v543_v17 = vmul.f32 %v8403_v22, %v9080_v62  ;;  %v544_v18 = vmul.f32 %v8416_v27, %v9080_v62  ;;  %1427 = vmatprep.mubr.bf16.mxu0 %v1056_v40 }
 0x19f   :  { %1428 = vmatmul.mubr.bf16.gmra.mrb[52].mxu0 %v1055_v38 }
 0x1a0   :  { %v608_v61 = vadd.f32 %v544_v18, %v334_v41  ;;  %v607_v23 = vadd.f32 %v543_v17, %v333_v60 }
 0x1a1   :  { %v9092_v37 = vpop.permute.xlu1 %458  ;;  %v1319_v59 = vpop.f32.mrb[8].mxu0 }
 0x1a2   :  { %11578 = vst [vmem:[#allocation69_spill] sm:$0xff] %v9092_v37  ;;  %v546_v1 = vmul.f32 %v8416_v27, %v9092_v37  ;;  %v1320_v58 = vadd.f32 %v1319_v59, %v9021_v8  ;;  %v1321_v36 = vpop.f32.mrb[9].mxu0  ;;  %v545_v21 = vmul.f32 %v8403_v22, %v9092_v37  ;;  %v882_v41 = vadd.f32 %v818_v45, %v608_v61 }
 0x1a3   :  { %v1322_v20 = vadd.f32 %v1321_v36, %v9026_v42  ;;  %v1323_v32 = vpop.f32.mrb[10].mxu0  ;;  %v881_v18 = vadd.f32 %v817_v19, %v607_v23  ;;  %v9118_v19 = vpop.permute.xlu0 %255 }
 0x1a4   :  { %v1324_v40 = vadd.f32 %v1323_v32, %v9021_v8  ;;  %v1325_v38 = vpop.f32.mrb[11].mxu0  ;;  %v1466_v60 = vmax.f32 %v1320_v58, 0.0  ;;  %v610_v62 = vadd.f32 %v546_v1, %v336_v11  ;;  %v609_v46 = vadd.f32 %v545_v21, %v335_v56 }
 0x1a5   :  { %v1326_v17 = vadd.f32 %v1325_v38, %v9026_v42  ;;  %v1467_v59 = vmax.f32 %v1322_v20, 0.0  ;;  %v958_v61 = vadd.f32 %v8455_v44, %v882_v41  ;;  %v957_v58 = vadd.f32 %v8469_v50, %v881_v18  ;;  %v7623_v41 = vld [vmem:[#allocation2 + $0x200] ss:$8 sps:$4 sm:$0xff]  }
 0x1a6   :  { %v1468_v57 = vmax.f32 %v1324_v40, 0.0  ;;  %v9110_v54 = vpop.permute.xlu1 %732 }
 0x1a7   :  { %v1469_v34 = vmax.f32 %v1326_v17, 0.0  ;;  %v819_v37 = vmul.f32 %v8425_v30, %v9110_v54  ;;  %v820_v36 = vmul.f32 %v8420_v28, %v9110_v54  ;;  %v1022_v40 = vmax.f32 %v958_v61, 0.0  ;;  %v9126_v17 = vpop.permute.xlu0 %736 }
 0x1a8   :  { %v1526_v32 = vpack.c.bf16 %v1468_v57, %v1466_v60  ;;  %v1021_v57 = vmax.f32 %v957_v58, 0.0  ;;  %11579 = vst [vmem:[#allocation70_spill] sm:$0xff] %v9126_v17  ;;  %v821_v58 = vmul.f32 %v8425_v30, %v9126_v17 }
 0x1a9   :  { %v1527_v45 = vpack.c.bf16 %v1469_v34, %v1467_v59  ;;  %v884_v38 = vadd.f32 %v820_v36, %v610_v62  ;;  %v883_v23 = vadd.f32 %v819_v37, %v609_v46  ;;  %v7625_v34 = vld [vmem:[#allocation2 + $0x204] ss:$8 sps:$4 sm:$0xff]   ;;  %v7626_v36 = vld [vmem:[#allocation2 + $0x210] ss:$8 sps:$4 sm:$0xff]  }
 0x1aa   :  { %2255 = vmatprep.subr.bf16.mxu0 %v7625_v34 }
 0x1ab   :  { %v9120_v20 = vpop.permute.xlu1 %250  ;;  %1812 = vmatprep.mubr.bf16.mxu1 %v1527_v45  ;;  %v960_v11 = vadd.f32 %v8455_v44, %v884_v38  ;;  %v959_v1 = vadd.f32 %v8469_v50, %v883_v23  ;;  %2256 = vmatpush1.bf16.msra.mxu0 %v7623_v41  ;;  %v7631_v45 = vld [vmem:[#allocation2 + $0x224] ss:$8 sps:$4 sm:$0xff]   ;;  %v822_v38 = vmul.f32 %v8420_v28, %v9126_v17  ;;  %v7629_v41 = vld [vmem:[#allocation2 + $0x220] ss:$8 sps:$4 sm:$0xff]  }
 0x1ac   :  { %1813 = vmatmul.mubr.bf16.gmra.mrb[8].mxu1 %v1526_v32  ;;  %v338_v18 = vmul.f32 %v8413_v26, %v9120_v20  ;;  %v7628_v32 = vld [vmem:[#allocation2 + $0x214] ss:$8 sps:$4 sm:$0xff]   ;;  %v337_v61 = vmul.f32 %v8410_v25, %v9120_v20 }
 0x1ad   :  { %v1024_v56 = vmax.f32 %v960_v11, 0.0  ;;  %v1023_v21 = vmax.f32 %v959_v1, 0.0  ;;  %2257 = vmatprep.subr.bf16.mxu0 %v7628_v32 }
 0x1af   :  { %v1058_v62 = vpack.c.bf16 %v1024_v56, %v1022_v40  ;;  %v1057_v46 = vpack.c.bf16 %v1023_v21, %v1021_v57  ;;  %2258 = vmatpush1.bf16.msra.mxu0 %v7626_v36 }
 0x1b0   :  { %v9124_v37 = vpop.permute.xlu1 %462  ;;  %2259 = vmatprep.subr.bf16.mxu0 %v7631_v45 }
 0x1b1   :  { %v547_v60 = vmul.f32 %v8403_v22, %v9124_v37  ;;  %v548_v59 = vmul.f32 %v8416_v27, %v9124_v37  ;;  %1437 = vmatprep.mubr.bf16.mxu0 %v1058_v62 }
 0x1b2   :  { %1438 = vmatmul.mubr.bf16.gmra.mrb[56].mxu0 %v1057_v46 }
 0x1b3   :  { %v612_v23 = vadd.f32 %v548_v59, %v338_v18  ;;  %v611_v40 = vadd.f32 %v547_v60, %v337_v61  ;;  %v340_v18 = vmul.f32 %v8413_v26, %v9118_v19  ;;  %2260 = vmatpush1.bf16.msra.mxu0 %v7629_v41  ;;  %v7637_v41 = vld [vmem:[#allocation2 + $0x244] ss:$8 sps:$4 sm:$0xff]  }
 0x1b4   :  { %v9140_v11 = vpop.permute.xlu1 %466  ;;  %v1329_v1 = vpop.f32.mrb[12].mxu0 }
 0x1b5   :  { %11580 = vst [vmem:[#allocation71_spill] sm:$0xff] %v9140_v11  ;;  %v550_v56 = vmul.f32 %v8416_v27, %v9140_v11  ;;  %v1330_v57 = vadd.f32 %v1329_v1, %v9021_v8  ;;  %v1331_v21 = vpop.f32.mrb[13].mxu0  ;;  %v549_v34 = vmul.f32 %v8403_v22, %v9140_v11  ;;  %v886_v32 = vadd.f32 %v822_v38, %v612_v23 }
 0x1b6   :  { %v1332_v62 = vadd.f32 %v1331_v21, %v9026_v42  ;;  %v1333_v46 = vpop.f32.mrb[14].mxu0  ;;  %v339_v27 = vmul.f32 %v8410_v25, %v9118_v19  ;;  %v885_v61 = vadd.f32 %v821_v58, %v611_v40  ;;  %v7632_v58 = vld [vmem:[#allocation2 + $0x230] ss:$8 sps:$4 sm:$0xff]  }
 0x1b7   :  { %v1334_v60 = vadd.f32 %v1333_v46, %v9021_v8  ;;  %v1335_v59 = vpop.f32.mrb[15].mxu0  ;;  %v1470_v1 = vmax.f32 %v1330_v57, 0.0  ;;  %v614_v21 = vadd.f32 %v550_v56, %v340_v18  ;;  %v7634_v46 = vld [vmem:[#allocation2 + $0x234] ss:$8 sps:$4 sm:$0xff]  }
 0x1b8   :  { %v1336_v36 = vadd.f32 %v1335_v59, %v9026_v42  ;;  %v1471_v17 = vmax.f32 %v1332_v62, 0.0  ;;  %v613_v23 = vadd.f32 %v549_v34, %v339_v27  ;;  %v962_v59 = vadd.f32 %v8455_v44, %v886_v32  ;;  %2261 = vmatprep.subr.bf16.mxu0 %v7634_v46 }
 0x1b9   :  { %v1472_v22 = vmax.f32 %v1334_v60, 0.0  ;;  %v9154_v11 = vpop.permute.xlu1 %740  ;;  %v961_v60 = vadd.f32 %v8469_v50, %v885_v61  ;;  %2262 = vmatpush1.bf16.msra.mxu0 %v7632_v58  ;;  %v7638_v61 = vld [vmem:[#allocation2 + $0x250] ss:$8 sps:$4 sm:$0xff]  }
 0x1ba   :  { %11581 = vst [vmem:[#allocation72_spill] sm:$0xff] %v9154_v11  ;;  %v1473_v45 = vmax.f32 %v1336_v36, 0.0  ;;  %v823_v26 = vmul.f32 %v8425_v30, %v9154_v11  ;;  %v824_v38 = vmul.f32 %v8420_v28, %v9154_v11  ;;  %v7635_v28 = vld [vmem:[#allocation2 + $0x240] ss:$8 sps:$4 sm:$0xff]   ;;  %v1026_v34 = vmax.f32 %v962_v59, 0.0  ;;  %2263 = vmatprep.subr.bf16.mxu0 %v7637_v41 }
 0x1bb   :  { %v1528_v25 = vpack.c.bf16 %v1472_v22, %v1470_v1  ;;  %v1025_v27 = vmax.f32 %v961_v60, 0.0  ;;  %v7643_v22 = vld [vmem:[#allocation2 + $0x264] ss:$8 sps:$4 sm:$0xff]   ;;  %v7644_v59 = vld [vmem:[#allocation2 + $0x270] ss:$8 sps:$4 sm:$0xff]  }
 0x1bc   :  { %v1529_v40 = vpack.c.bf16 %v1473_v45, %v1471_v17  ;;  %v888_v57 = vadd.f32 %v824_v38, %v614_v21  ;;  %v887_v62 = vadd.f32 %v823_v26, %v613_v23  ;;  %v7640_v17 = vld [vmem:[#allocation2 + $0x254] ss:$8 sps:$4 sm:$0xff]  }
 0x1bd   :  { %2264 = vmatpush1.bf16.msra.mxu0 %v7635_v28  ;;  %v7646_v21 = vld [vmem:[#allocation2 + $0x274] ss:$8 sps:$4 sm:$0xff]   ;;  %v7647_v28 = vld [vmem:[#allocation2 + $0x280] ss:$8 sps:$4 sm:$0xff]  }
 0x1be   :  { %1822 = vmatprep.mubr.bf16.mxu1 %v1529_v40  ;;  %v964_v56 = vadd.f32 %v8455_v44, %v888_v57  ;;  %v963_v30 = vadd.f32 %v8469_v50, %v887_v62  ;;  %2265 = vmatprep.subr.bf16.mxu0 %v7640_v17  ;;  %v7641_v44 = vld [vmem:[#allocation2 + $0x260] ss:$8 sps:$4 sm:$0xff]   ;;  %v7658_v17 = vld [vmem:[#allocation2 + $0x2b4] ss:$8 sps:$4 sm:$0xff]  }
 0x1bf   :  { %1823 = vmatmul.mubr.bf16.gmra.mrb[12].mxu1 %v1528_v25 }
 0x1c0   :  { %v1028_v18 = vmax.f32 %v964_v56, 0.0  ;;  %v1027_v32 = vmax.f32 %v963_v30, 0.0  ;;  %v7649_v30 = vld [vmem:[#allocation2 + $0x284] ss:$8 sps:$4 sm:$0xff]  }
 0x1c1   :  { %2266 = vmatpush1.bf16.msra.mxu0 %v7638_v61 }
 0x1c2   :  { %v1060_v36 = vpack.c.bf16 %v1028_v18, %v1026_v34  ;;  %v1059_v1 = vpack.c.bf16 %v1027_v32, %v1025_v27  ;;  %2267 = vmatprep.subr.bf16.mxu0 %v7643_v22  ;;  %v7652_v34 = vld [vmem:[#allocation2 + $0x294] ss:$8 sps:$4 sm:$0xff]   ;;  %v7650_v18 = vld [vmem:[#allocation2 + $0x290] ss:$8 sps:$4 sm:$0xff]   ;;  %v7653_v27 = vld [vmem:[#allocation2 + $0x2a0] ss:$8 sps:$4 sm:$0xff]  }
 0x1c3   :  { %v7655_v32 = vld [vmem:[#allocation2 + $0x2a4] ss:$8 sps:$4 sm:$0xff]  }
 0x1c4   :  { %1447 = vmatprep.mubr.bf16.mxu0 %v1060_v36 }
 0x1c5   :  { %1448 = vmatmul.mubr.bf16.gmra.mrb[60].mxu0 %v1059_v1  ;;  %v7656_v1 = vld [vmem:[#allocation2 + $0x2b0] ss:$8 sps:$4 sm:$0xff]  }
 0x1c6   :  { %2268 = vmatpush1.bf16.msra.mxu0 %v7641_v44  ;;  %v7661_v44 = vld [vmem:[#allocation2 + $0x2c4] ss:$8 sps:$4 sm:$0xff]  }
 0x1c7   :  { %v1339_v50 = vpop.f32.mrb[16].mxu0  ;;  %2269 = vmatprep.subr.bf16.mxu0 %v7646_v21 }
 0x1c8   :  { %v1340_v45 = vadd.f32 %v1339_v50, %v9021_v8  ;;  %v1341_v26 = vpop.f32.mrb[17].mxu0 }
 0x1c9   :  { %v1342_v38 = vadd.f32 %v1341_v26, %v9026_v42  ;;  %v1343_v23 = vpop.f32.mrb[18].mxu0 }
 0x1ca   :  { %v1344_v46 = vadd.f32 %v1343_v23, %v9021_v8  ;;  %v1345_v25 = vpop.f32.mrb[19].mxu0  ;;  %v1474_v40 = vmax.f32 %v1340_v45, 0.0  ;;  %2270 = vmatpush1.bf16.msra.mxu0 %v7644_v59  ;;  %v7659_v23 = vld [vmem:[#allocation2 + $0x2c0] ss:$8 sps:$4 sm:$0xff]  }
 0x1cb   :  { %v1346_v58 = vadd.f32 %v1345_v25, %v9026_v42  ;;  %v1475_v62 = vmax.f32 %v1342_v38, 0.0  ;;  %2271 = vmatprep.subr.bf16.mxu0 %v7649_v30  ;;  %v7665_v30 = vld [vmem:[#allocation2 + $0x2e0] ss:$8 sps:$4 sm:$0xff]  }
 0x1cc   :  { %v1476_v57 = vmax.f32 %v1344_v46, 0.0 }
 0x1cd   :  { %v1477_v60 = vmax.f32 %v1346_v58, 0.0 }
 0x1ce   :  { %v1530_v56 = vpack.c.bf16 %v1476_v57, %v1474_v40  ;;  %2272 = vmatpush1.bf16.msra.mxu0 %v7647_v28  ;;  %v7670_v28 = vld [vmem:[#allocation2 + $0x2f4] ss:$8 sps:$4 sm:$0xff]  }
 0x1cf   :  { %v1531_v41 = vpack.c.bf16 %v1477_v60, %v1475_v62  ;;  %2273 = vmatprep.subr.bf16.mxu0 %v7652_v34  ;;  %v7664_v62 = vld [vmem:[#allocation2 + $0x2d4] ss:$8 sps:$4 sm:$0xff]   ;;  %v7662_v60 = vld [vmem:[#allocation2 + $0x2d0] ss:$8 sps:$4 sm:$0xff]  }
 0x1d1   :  { %1832 = vmatprep.mubr.bf16.mxu1 %v1531_v41  ;;  %v7668_v41 = vld [vmem:[#allocation2 + $0x2f0] ss:$8 sps:$4 sm:$0xff]  }
 0x1d2   :  { %1833 = vmatmul.mubr.bf16.gmra.mrb[16].mxu1 %v1530_v56  ;;  %2274 = vmatpush1.bf16.msra.mxu0 %v7650_v18  ;;  %v7667_v56 = vld [vmem:[#allocation2 + $0x2e4] ss:$8 sps:$4 sm:$0xff]  }
 0x1d3   :  { %2275 = vmatprep.subr.bf16.mxu0 %v7655_v32 }
 0x1d6   :  { %2276 = vmatpush1.bf16.msra.mxu0 %v7653_v27 }
 0x1d7   :  { %2277 = vmatprep.subr.bf16.mxu0 %v7658_v17 }
 0x1da   :  { %v1349_v36 = vpop.f32.mrb[20].mxu0  ;;  %2278 = vmatpush1.bf16.msra.mxu0 %v7656_v1 }
 0x1db   :  { %v1350_v61 = vadd.f32 %v1349_v36, %v9021_v8  ;;  %v1351_v22 = vpop.f32.mrb[21].mxu0  ;;  %2279 = vmatprep.subr.bf16.mxu0 %v7661_v44 }
 0x1dc   :  { %v1352_v50 = vadd.f32 %v1351_v22, %v9026_v42  ;;  %v1353_v21 = vpop.f32.mrb[22].mxu0 }
 0x1dd   :  { %v1354_v45 = vadd.f32 %v1353_v21, %v9021_v8  ;;  %v1355_v26 = vpop.f32.mrb[23].mxu0  ;;  %v1478_v46 = vmax.f32 %v1350_v61, 0.0 }
 0x1de   :  { %v1356_v38 = vadd.f32 %v1355_v26, %v9026_v42  ;;  %v1479_v59 = vmax.f32 %v1352_v50, 0.0  ;;  %2280 = vmatpush1.bf16.msra.mxu0 %v7659_v23 }
 0x1df   :  { %v1480_v25 = vmax.f32 %v1354_v45, 0.0  ;;  %2281 = vmatprep.subr.bf16.mxu0 %v7664_v62 }
 0x1e0   :  { %v1481_v58 = vmax.f32 %v1356_v38, 0.0 }
 0x1e1   :  { %v1532_v40 = vpack.c.bf16 %v1480_v25, %v1478_v46 }
 0x1e2   :  { %v1533_v57 = vpack.c.bf16 %v1481_v58, %v1479_v59  ;;  %2282 = vmatpush1.bf16.msra.mxu0 %v7662_v60 }
 0x1e3   :  { %2283 = vmatprep.subr.bf16.mxu0 %v7667_v56 }
 0x1e4   :  { %1842 = vmatprep.mubr.bf16.mxu1 %v1533_v57 }
 0x1e5   :  { %1843 = vmatmul.mubr.bf16.gmra.mrb[20].mxu1 %v1532_v40 }
 0x1e6   :  { %2284 = vmatpush1.bf16.msra.mxu0 %v7665_v30 }
 0x1e7   :  { %2285 = vmatprep.subr.bf16.mxu0 %v7670_v28 }
 0x1ea   :  { %2286 = vmatpush1.bf16.msra.mxu0 %v7668_v41 }
 0x1ed   :  { %v1359_v34 = vpop.f32.mrb[24].mxu0 }
 0x1ee   :  { %v1360_v18 = vadd.f32 %v1359_v34, %v9021_v8  ;;  %v1361_v27 = vpop.f32.mrb[25].mxu0 }
 0x1ef   :  { %v1362_v32 = vadd.f32 %v1361_v27, %v9026_v42  ;;  %v1363_v17 = vpop.f32.mrb[26].mxu0 }
 0x1f0   :  { %v1364_v36 = vadd.f32 %v1363_v17, %v9021_v8  ;;  %v1365_v1 = vpop.f32.mrb[27].mxu0  ;;  %v1482_v22 = vmax.f32 %v1360_v18, 0.0 }
 0x1f1   :  { %v1366_v61 = vadd.f32 %v1365_v1, %v9026_v42  ;;  %v1483_v50 = vmax.f32 %v1362_v32, 0.0 }
 0x1f2   :  { %v1484_v44 = vmax.f32 %v1364_v36, 0.0 }
 0x1f3   :  { %v1485_v21 = vmax.f32 %v1366_v61, 0.0 }
 0x1f4   :  { %v1534_v45 = vpack.c.bf16 %v1484_v44, %v1482_v22 }
 0x1f5   :  { %v1535_v26 = vpack.c.bf16 %v1485_v21, %v1483_v50 }
 0x1f7   :  { %1852 = vmatprep.mubr.bf16.mxu1 %v1535_v26 }
 0x1f8   :  { %1853 = vmatmul.mubr.bf16.gmra.mrb[24].mxu1 %v1534_v45 }
 0x200   :  { %v1369_v38 = vpop.f32.mrb[28].mxu0 }
 0x201   :  { %v1370_v23 = vadd.f32 %v1369_v38, %v9021_v8  ;;  %v1371_v46 = vpop.f32.mrb[29].mxu0 }
 0x202   :  { %v1372_v25 = vadd.f32 %v1371_v46, %v9026_v42  ;;  %v1373_v59 = vpop.f32.mrb[30].mxu0 }
 0x203   :  { %v1374_v58 = vadd.f32 %v1373_v59, %v9021_v8  ;;  %v1375_v40 = vpop.f32.mrb[31].mxu0  ;;  %v1486_v62 = vmax.f32 %v1370_v23, 0.0 }
 0x204   :  { %v1376_v57 = vadd.f32 %v1375_v40, %v9026_v42  ;;  %v1487_v56 = vmax.f32 %v1372_v25, 0.0 }
 0x205   :  { %v1488_v60 = vmax.f32 %v1374_v58, 0.0 }
 0x206   :  { %v1489_v30 = vmax.f32 %v1376_v57, 0.0 }
 0x207   :  { %v1536_v41 = vpack.c.bf16 %v1488_v60, %v1486_v62 }
 0x208   :  { %v1537_v28 = vpack.c.bf16 %v1489_v30, %v1487_v56 }
 0x20a   :  { %1862 = vmatprep.mubr.bf16.mxu1 %v1537_v28 }
 0x20b   :  { %1863 = vmatmul.mubr.bf16.gmra.mrb[28].mxu1 %v1536_v41 }
 0x213   :  { %v1379_v34 = vpop.f32.mrb[32].mxu0 }
 0x214   :  { %v1380_v18 = vadd.f32 %v1379_v34, %v9021_v8  ;;  %v1381_v27 = vpop.f32.mrb[33].mxu0 }
 0x215   :  { %v1382_v32 = vadd.f32 %v1381_v27, %v9026_v42  ;;  %v1383_v17 = vpop.f32.mrb[34].mxu0 }
 0x216   :  { %v1384_v36 = vadd.f32 %v1383_v17, %v9021_v8  ;;  %v1385_v1 = vpop.f32.mrb[35].mxu0  ;;  %v1490_v22 = vmax.f32 %v1380_v18, 0.0 }
 0x217   :  { %v1386_v61 = vadd.f32 %v1385_v1, %v9026_v42  ;;  %v1491_v50 = vmax.f32 %v1382_v32, 0.0 }
 0x218   :  { %v1492_v44 = vmax.f32 %v1384_v36, 0.0 }
 0x219   :  { %v1493_v21 = vmax.f32 %v1386_v61, 0.0 }
 0x21a   :  { %v1538_v45 = vpack.c.bf16 %v1492_v44, %v1490_v22 }
 0x21b   :  { %v1539_v26 = vpack.c.bf16 %v1493_v21, %v1491_v50 }
 0x21d   :  { %1872 = vmatprep.mubr.bf16.mxu1 %v1539_v26 }
 0x21e   :  { %1873 = vmatmul.mubr.bf16.gmra.mrb[32].mxu1 %v1538_v45 }
 0x226   :  { %v1389_v38 = vpop.f32.mrb[36].mxu0 }
 0x227   :  { %v1390_v23 = vadd.f32 %v1389_v38, %v9021_v8  ;;  %v1391_v46 = vpop.f32.mrb[37].mxu0 }
 0x228   :  { %v1392_v25 = vadd.f32 %v1391_v46, %v9026_v42  ;;  %v1393_v59 = vpop.f32.mrb[38].mxu0 }
 0x229   :  { %v1394_v58 = vadd.f32 %v1393_v59, %v9021_v8  ;;  %v1395_v40 = vpop.f32.mrb[39].mxu0  ;;  %v1494_v62 = vmax.f32 %v1390_v23, 0.0 }
 0x22a   :  { %v1396_v57 = vadd.f32 %v1395_v40, %v9026_v42  ;;  %v1495_v56 = vmax.f32 %v1392_v25, 0.0 }
 0x22b   :  { %v1496_v60 = vmax.f32 %v1394_v58, 0.0 }
 0x22c   :  { %v1497_v30 = vmax.f32 %v1396_v57, 0.0 }
 0x22d   :  { %v1540_v41 = vpack.c.bf16 %v1496_v60, %v1494_v62 }
 0x22e   :  { %v1541_v28 = vpack.c.bf16 %v1497_v30, %v1495_v56 }
 0x230   :  { %1882 = vmatprep.mubr.bf16.mxu1 %v1541_v28 }
 0x231   :  { %1883 = vmatmul.mubr.bf16.gmra.mrb[36].mxu1 %v1540_v41 }
 0x239   :  { %v1399_v34 = vpop.f32.mrb[40].mxu0 }
 0x23a   :  { %v1400_v18 = vadd.f32 %v1399_v34, %v9021_v8  ;;  %v1401_v27 = vpop.f32.mrb[41].mxu0  ;;  %v6995_v34 = vld [vmem:[%s11355_s4 + $0x2] sm:$0x3] }
 0x23b   :  { %v1402_v32 = vadd.f32 %v1401_v27, %v9026_v42  ;;  %v1403_v17 = vpop.f32.mrb[42].mxu0 }
 0x23c   :  { %v1404_v36 = vadd.f32 %v1403_v17, %v9021_v8  ;;  %v1405_v1 = vpop.f32.mrb[43].mxu0  ;;  %v1498_v22 = vmax.f32 %v1400_v18, 0.0  ;;  %v9201_v17 = vrot.slane %v6995_v34, %v8372_v7 }
 0x23d   :  { %v1406_v61 = vadd.f32 %v1405_v1, %v9026_v42  ;;  %v1499_v50 = vmax.f32 %v1402_v32, 0.0 }
 0x23e   :  { %v1500_v44 = vmax.f32 %v1404_v36, 0.0 }
 0x23f   :  { %v1501_v21 = vmax.f32 %v1406_v61, 0.0  ;;  %v9205_v61 = vrot.slane %v6995_v34, %v8365_v5 }
 0x240   :  { %v1542_v45 = vpack.c.bf16 %v1500_v44, %v1498_v22 }
 0x241   :  { %v1543_v26 = vpack.c.bf16 %v1501_v21, %v1499_v50 }
 0x243   :  { %1892 = vmatprep.mubr.bf16.mxu1 %v1543_v26 }
 0x244   :  { %1893 = vmatmul.mubr.bf16.gmra.mrb[40].mxu1 %v1542_v45 }
 0x24c   :  { %v1409_v38 = vpop.f32.mrb[44].mxu0 }
 0x24d   :  { %v1410_v23 = vadd.f32 %v1409_v38, %v9021_v8  ;;  %v1411_v46 = vpop.f32.mrb[45].mxu0 }
 0x24e   :  { %v1412_v25 = vadd.f32 %v1411_v46, %v9026_v42  ;;  %v1413_v59 = vpop.f32.mrb[46].mxu0 }
 0x24f   :  { %v1414_v58 = vadd.f32 %v1413_v59, %v9021_v8  ;;  %v1415_v40 = vpop.f32.mrb[47].mxu0  ;;  %v1502_v62 = vmax.f32 %v1410_v23, 0.0 }
 0x250   :  { %v1416_v57 = vadd.f32 %v1415_v40, %v9026_v42  ;;  %v1503_v56 = vmax.f32 %v1412_v25, 0.0 }
 0x251   :  { %v1504_v60 = vmax.f32 %v1414_v58, 0.0 }
 0x252   :  { %v1505_v30 = vmax.f32 %v1416_v57, 0.0 }
 0x253   :  { %v1544_v41 = vpack.c.bf16 %v1504_v60, %v1502_v62 }
 0x254   :  { %v1545_v28 = vpack.c.bf16 %v1505_v30, %v1503_v56 }
 0x256   :  { %1902 = vmatprep.mubr.bf16.mxu1 %v1545_v28 }
 0x257   :  { %1903 = vmatmul.mubr.bf16.gmra.mrb[44].mxu1 %v1544_v41 }
 0x25f   :  { %v1419_v18 = vpop.f32.mrb[48].mxu0 }
 0x260   :  { %v1420_v27 = vadd.f32 %v1419_v18, %v9021_v8  ;;  %v1421_v32 = vpop.f32.mrb[49].mxu0 }
 0x261   :  { %v1422_v36 = vadd.f32 %v1421_v32, %v9026_v42  ;;  %v1423_v1 = vpop.f32.mrb[50].mxu0 }
 0x262   :  { %v1424_v22 = vadd.f32 %v1423_v1, %v9021_v8  ;;  %v1425_v44 = vpop.f32.mrb[51].mxu0  ;;  %v1506_v45 = vmax.f32 %v1420_v27, 0.0 }
 0x263   :  { %v1426_v50 = vadd.f32 %v1425_v44, %v9026_v42  ;;  %v1794_v21 = vpop.f32.mrb[0].mxu1  ;;  %v1507_v46 = vmax.f32 %v1422_v36, 0.0 }
 0x264   :  { %v1508_v26 = vmax.f32 %v1424_v22, 0.0  ;;  %v1795_v38 = vadd.f32 %v1794_v21, %v9201_v17  ;;  %v1796_v23 = vpop.f32.mrb[1].mxu1 }
 0x265   :  { %v1509_v25 = vmax.f32 %v1426_v50, 0.0  ;;  %v1797_v59 = vadd.f32 %v1796_v23, %v9205_v61  ;;  %v1798_v58 = vpop.f32.mrb[2].mxu1 }
 0x266   :  { %v1546_v40 = vpack.c.bf16 %v1508_v26, %v1506_v45  ;;  %v1799_v57 = vadd.f32 %v1798_v58, %v9201_v17  ;;  %v1800_v62 = vpop.f32.mrb[3].mxu1  ;;  %v1953_v30 = vmax.f32 %v1795_v38, 0.0 }
 0x267   :  { %v1547_v60 = vpack.c.bf16 %v1509_v25, %v1507_v46  ;;  %v1801_v56 = vadd.f32 %v1800_v62, %v9205_v61  ;;  %v1954_v28 = vmax.f32 %v1797_v59, 0.0 }
 0x268   :  { %v1955_v41 = vmax.f32 %v1799_v57, 0.0 }
 0x269   :  { %v1956_v34 = vmax.f32 %v1801_v56, 0.0  ;;  %1912 = vmatprep.mubr.bf16.mxu1 %v1547_v60 }
 0x26a   :  { %v2017_v18 = vpack.c.bf16 %v1955_v41, %v1953_v30  ;;  %1913 = vmatmul.mubr.bf16.gmra.mrb[48].mxu1 %v1546_v40 }
 0x26b   :  { %v2018_v27 = vpack.c.bf16 %v1956_v34, %v1954_v28 }
 0x26c   :  { %v1804_v32 = vpop.f32.mrb[4].mxu1 }
 0x26d   :  { %v1805_v36 = vadd.f32 %v1804_v32, %v9201_v17  ;;  %v1806_v1 = vpop.f32.mrb[5].mxu1  ;;  %2287 = vmatprep.mubr.bf16.mxu0 %v2018_v27 }
 0x26e   :  { %v1807_v22 = vadd.f32 %v1806_v1, %v9205_v61  ;;  %v1808_v44 = vpop.f32.mrb[6].mxu1  ;;  %2288 = vmatmul.mubr.bf16.vlgmr.msra.gmra.mrb[64].mxu0 %v2017_v18 }
 0x26f   :  { %v1809_v50 = vadd.f32 %v1808_v44, %v9201_v17  ;;  %v1810_v21 = vpop.f32.mrb[7].mxu1  ;;  %v1957_v26 = vmax.f32 %v1805_v36, 0.0 }
 0x270   :  { %v1811_v45 = vadd.f32 %v1810_v21, %v9205_v61  ;;  %v1958_v23 = vmax.f32 %v1807_v22, 0.0 }
 0x271   :  { %v1959_v38 = vmax.f32 %v1809_v50, 0.0 }
 0x272   :  { %v1960_v46 = vmax.f32 %v1811_v45, 0.0  ;;  %v1429_v25 = vpop.f32.mrb[52].mxu0 }
 0x273   :  { %v1430_v59 = vadd.f32 %v1429_v25, %v9021_v8  ;;  %v1431_v58 = vpop.f32.mrb[53].mxu0  ;;  %v2019_v40 = vpack.c.bf16 %v1959_v38, %v1957_v26 }
 0x274   :  { %v1432_v57 = vadd.f32 %v1431_v58, %v9026_v42  ;;  %v1433_v62 = vpop.f32.mrb[54].mxu0  ;;  %v2020_v60 = vpack.c.bf16 %v1960_v46, %v1958_v23 }
 0x275   :  { %v1434_v56 = vadd.f32 %v1433_v62, %v9021_v8  ;;  %v1435_v30 = vpop.f32.mrb[55].mxu0  ;;  %v1510_v28 = vmax.f32 %v1430_v59, 0.0 }
 0x276   :  { %v1436_v41 = vadd.f32 %v1435_v30, %v9026_v42  ;;  %2297 = vmatprep.mubr.bf16.mxu0 %v2020_v60  ;;  %v1511_v18 = vmax.f32 %v1432_v57, 0.0 }
 0x277   :  { %v1512_v34 = vmax.f32 %v1434_v56, 0.0  ;;  %2298 = vmatmul.mubr.bf16.gmra.mrb[68].mxu0 %v2019_v40 }
 0x278   :  { %v1513_v27 = vmax.f32 %v1436_v41, 0.0 }
 0x279   :  { %v1548_v32 = vpack.c.bf16 %v1512_v34, %v1510_v28 }
 0x27a   :  { %v1549_v36 = vpack.c.bf16 %v1513_v27, %v1511_v18 }
 0x27c   :  { %1922 = vmatprep.mubr.bf16.mxu1 %v1549_v36 }
 0x27d   :  { %1923 = vmatmul.mubr.bf16.gmra.mrb[52].mxu1 %v1548_v32 }
 0x27f   :  { %v1814_v1 = vpop.f32.mrb[8].mxu1 }
 0x280   :  { %v1815_v22 = vadd.f32 %v1814_v1, %v9201_v17  ;;  %v1816_v44 = vpop.f32.mrb[9].mxu1 }
 0x281   :  { %v1817_v50 = vadd.f32 %v1816_v44, %v9205_v61  ;;  %v1818_v21 = vpop.f32.mrb[10].mxu1  ;;  %v7673_v44 = vld [vmem:[%s11356_s5 + $0x4] ss:$8 sps:$4 sm:$0xff]  }
 0x282   :  { %v1819_v45 = vadd.f32 %v1818_v21, %v9201_v17  ;;  %v1820_v26 = vpop.f32.mrb[11].mxu1  ;;  %v1961_v23 = vmax.f32 %v1815_v22, 0.0  ;;  %v7671_v22 = vld [vmem:[%s11356_s5] ss:$8 sps:$4 sm:$0xff]   ;;  %3188 = vmatprep.subr.bf16.mxu1 %v7673_v44  ;;  %v7674_v21 = vld [vmem:[%s11356_s5 + $0x10] ss:$8 sps:$4 sm:$0xff]  }
 0x283   :  { %v1821_v38 = vadd.f32 %v1820_v26, %v9205_v61  ;;  %v1962_v25 = vmax.f32 %v1817_v50, 0.0  ;;  %3189 = vmatpush1.bf16.msra.mxu1 %v7671_v22  ;;  %v7679_v26 = vld [vmem:[%s11356_s5 + $0x24] ss:$8 sps:$4 sm:$0xff]  }
 0x284   :  { %v1963_v46 = vmax.f32 %v1819_v45, 0.0  ;;  %v7676_v45 = vld [vmem:[%s11356_s5 + $0x14] ss:$8 sps:$4 sm:$0xff]  }
 0x285   :  { %v1964_v59 = vmax.f32 %v1821_v38, 0.0  ;;  %v1439_v58 = vpop.f32.mrb[56].mxu0  ;;  %3190 = vmatprep.subr.bf16.mxu1 %v7676_v45 }
 0x286   :  { %v1440_v40 = vadd.f32 %v1439_v58, %v9021_v8  ;;  %v1441_v57 = vpop.f32.mrb[57].mxu0  ;;  %v2021_v62 = vpack.c.bf16 %v1963_v46, %v1961_v23 }
 0x287   :  { %v1442_v60 = vadd.f32 %v1441_v57, %v9026_v42  ;;  %v1443_v56 = vpop.f32.mrb[58].mxu0  ;;  %v2022_v30 = vpack.c.bf16 %v1964_v59, %v1962_v25  ;;  %3191 = vmatpush1.bf16.msra.mxu1 %v7674_v21  ;;  %v7677_v25 = vld [vmem:[%s11356_s5 + $0x20] ss:$8 sps:$4 sm:$0xff]  }
 0x288   :  { %v1444_v41 = vadd.f32 %v1443_v56, %v9021_v8  ;;  %v1445_v28 = vpop.f32.mrb[59].mxu0  ;;  %v1514_v18 = vmax.f32 %v1440_v40, 0.0  ;;  %3192 = vmatprep.subr.bf16.mxu1 %v7679_v26  ;;  %v7685_v26 = vld [vmem:[%s11356_s5 + $0x44] ss:$8 sps:$4 sm:$0xff]  }
 0x289   :  { %v1446_v34 = vadd.f32 %v1445_v28, %v9026_v42  ;;  %2307 = vmatprep.mubr.bf16.mxu0 %v2022_v30  ;;  %v1515_v32 = vmax.f32 %v1442_v60, 0.0 }
 0x28a   :  { %v1516_v27 = vmax.f32 %v1444_v41, 0.0  ;;  %2308 = vmatmul.mubr.bf16.gmra.mrb[72].mxu0 %v2021_v62 }
 0x28b   :  { %v1517_v36 = vmax.f32 %v1446_v34, 0.0  ;;  %3193 = vmatpush1.bf16.msra.mxu1 %v7677_v25  ;;  %v7682_v34 = vld [vmem:[%s11356_s5 + $0x34] ss:$8 sps:$4 sm:$0xff]  }
 0x28c   :  { %v1550_v1 = vpack.c.bf16 %v1516_v27, %v1514_v18  ;;  %3194 = vmatprep.subr.bf16.mxu1 %v7682_v34 }
 0x28d   :  { %v1551_v50 = vpack.c.bf16 %v1517_v36, %v1515_v32  ;;  %v7680_v36 = vld [vmem:[%s11356_s5 + $0x30] ss:$8 sps:$4 sm:$0xff]  }
 0x28f   :  { %1932 = vmatprep.mubr.bf16.mxu1 %v1551_v50  ;;  %3195 = vmatpush1.bf16.msra.mxu1 %v7680_v36 }
 0x290   :  { %1933 = vmatmul.mubr.bf16.gmra.mrb[56].mxu1 %v1550_v1  ;;  %3196 = vmatprep.subr.bf16.mxu1 %v7685_v26 }
 0x292   :  { %v1824_v38 = vpop.f32.mrb[12].mxu1 }
 0x293   :  { %v1825_v23 = vadd.f32 %v1824_v38, %v9201_v17  ;;  %v1826_v46 = vpop.f32.mrb[13].mxu1 }
 0x294   :  { %v1827_v59 = vadd.f32 %v1826_v46, %v9205_v61  ;;  %v1828_v58 = vpop.f32.mrb[14].mxu1  ;;  %v7683_v46 = vld [vmem:[%s11356_s5 + $0x40] ss:$8 sps:$4 sm:$0xff]  }
 0x295   :  { %v1829_v40 = vadd.f32 %v1828_v58, %v9201_v17  ;;  %v1830_v57 = vpop.f32.mrb[15].mxu1  ;;  %v1965_v60 = vmax.f32 %v1825_v23, 0.0  ;;  %3197 = vmatpush1.bf16.msra.mxu1 %v7683_v46  ;;  %v7698_v46 = vld [vmem:[%s11356_s5 + $0x90] ss:$8 sps:$4 sm:$0xff]  }
 0x296   :  { %v1831_v62 = vadd.f32 %v1830_v57, %v9205_v61  ;;  %v1966_v30 = vmax.f32 %v1827_v59, 0.0  ;;  %v7691_v57 = vld [vmem:[%s11356_s5 + $0x64] ss:$8 sps:$4 sm:$0xff]  }
 0x297   :  { %v1967_v56 = vmax.f32 %v1829_v40, 0.0  ;;  %v7686_v40 = vld [vmem:[%s11356_s5 + $0x50] ss:$8 sps:$4 sm:$0xff]  }
 0x298   :  { %v1968_v41 = vmax.f32 %v1831_v62, 0.0  ;;  %v1449_v28 = vpop.f32.mrb[60].mxu0  ;;  %v7689_v62 = vld [vmem:[%s11356_s5 + $0x60] ss:$8 sps:$4 sm:$0xff]  }
 0x299   :  { %v1450_v18 = vadd.f32 %v1449_v28, %v9021_v8  ;;  %v1451_v27 = vpop.f32.mrb[61].mxu0  ;;  %v2023_v32 = vpack.c.bf16 %v1967_v56, %v1965_v60  ;;  %v7694_v56 = vld [vmem:[%s11356_s5 + $0x74] ss:$8 sps:$4 sm:$0xff]  }
 0x29a   :  { %v1452_v1 = vadd.f32 %v1451_v27, %v9026_v42  ;;  %v1453_v22 = vpop.f32.mrb[62].mxu0  ;;  %v2024_v44 = vpack.c.bf16 %v1968_v41, %v1966_v30 }
 0x29b   :  { %v1454_v50 = vadd.f32 %v1453_v22, %v9021_v8  ;;  %v1455_v21 = vpop.f32.mrb[63].mxu0  ;;  %v1518_v38 = vmax.f32 %v1450_v18, 0.0 }
 0x29c   :  { %v1456_v45 = vadd.f32 %v1455_v21, %v9026_v42  ;;  %2317 = vmatprep.mubr.bf16.mxu0 %v2024_v44  ;;  %v1519_v25 = vmax.f32 %v1452_v1, 0.0  ;;  %v7688_v42 = vld [vmem:[%s11356_s5 + $0x54] ss:$8 sps:$4 sm:$0xff]  }
 0x29d   :  { %v1520_v23 = vmax.f32 %v1454_v50, 0.0  ;;  %2318 = vmatmul.mubr.bf16.gmra.mrb[76].mxu0 %v2023_v32  ;;  %3198 = vmatprep.subr.bf16.mxu1 %v7688_v42  ;;  %v7692_v32 = vld [vmem:[%s11356_s5 + $0x70] ss:$8 sps:$4 sm:$0xff]  }
 0x29e   :  { %v1521_v59 = vmax.f32 %v1456_v45, 0.0  ;;  %3199 = vmatpush1.bf16.msra.mxu1 %v7686_v40  ;;  %v7697_v45 = vld [vmem:[%s11356_s5 + $0x84] ss:$8 sps:$4 sm:$0xff]  }
 0x29f   :  { %v1552_v8 = vpack.c.bf16 %v1520_v23, %v1518_v38  ;;  %3200 = vmatprep.subr.bf16.mxu1 %v7691_v57  ;;  %v7695_v38 = vld [vmem:[%s11356_s5 + $0x80] ss:$8 sps:$4 sm:$0xff]   ;;  %v7700_v23 = vld [vmem:[%s11356_s5 + $0x94] ss:$8 sps:$4 sm:$0xff]  }
 0x2a0   :  { %v1553_v58 = vpack.c.bf16 %v1521_v59, %v1519_v25  ;;  %v7701_v25 = vld [vmem:[%s11356_s5 + $0xa0] ss:$8 sps:$4 sm:$0xff]   ;;  %v7703_v59 = vld [vmem:[%s11356_s5 + $0xa4] ss:$8 sps:$4 sm:$0xff]  }
 0x2a2   :  { %1942 = vmatprep.mubr.bf16.mxu1 %v1553_v58  ;;  %3201 = vmatpush1.bf16.msra.mxu1 %v7689_v62  ;;  %v7704_v58 = vld [vmem:[%s11356_s5 + $0xb0] ss:$8 sps:$4 sm:$0xff]   ;;  %v7709_v62 = vld [vmem:[%s11356_s5 + $0xc4] ss:$8 sps:$4 sm:$0xff]  }
 0x2a3   :  { %1943 = vmatmul.mubr.bf16.gmra.mrb[60].mxu1 %v1552_v8  ;;  %3202 = vmatprep.subr.bf16.mxu1 %v7694_v56  ;;  %v7706_v8 = vld [vmem:[%s11356_s5 + $0xb4] ss:$8 sps:$4 sm:$0xff]  }
 0x2a5   :  { %v1834_v60 = vpop.f32.mrb[16].mxu1 }
 0x2a6   :  { %v1835_v30 = vadd.f32 %v1834_v60, %v9201_v17  ;;  %v1836_v41 = vpop.f32.mrb[17].mxu1  ;;  %3203 = vmatpush1.bf16.msra.mxu1 %v7692_v32 }
 0x2a7   :  { %v1837_v28 = vadd.f32 %v1836_v41, %v9205_v61  ;;  %v1838_v34 = vpop.f32.mrb[18].mxu1  ;;  %3204 = vmatprep.subr.bf16.mxu1 %v7697_v45  ;;  %v7713_v45 = vld [vmem:[%s11356_s5 + $0xe0] ss:$8 sps:$4 sm:$0xff]  }
 0x2a8   :  { %v1839_v18 = vadd.f32 %v1838_v34, %v9201_v17  ;;  %v1840_v27 = vpop.f32.mrb[19].mxu1  ;;  %v1969_v1 = vmax.f32 %v1835_v30, 0.0  ;;  %v7707_v34 = vld [vmem:[%s11356_s5 + $0xc0] ss:$8 sps:$4 sm:$0xff]  }
 0x2a9   :  { %v1841_v36 = vadd.f32 %v1840_v27, %v9205_v61  ;;  %v1970_v44 = vmax.f32 %v1837_v28, 0.0 }
 0x2aa   :  { %v1971_v22 = vmax.f32 %v1839_v18, 0.0  ;;  %3205 = vmatpush1.bf16.msra.mxu1 %v7695_v38  ;;  %v7716_v38 = vld [vmem:[%s11356_s5 + $0xf0] ss:$8 sps:$4 sm:$0xff]  }
 0x2ab   :  { %v1972_v50 = vmax.f32 %v1841_v36, 0.0  ;;  %3206 = vmatprep.subr.bf16.mxu1 %v7700_v23 }
 0x2ac   :  { %v2025_v21 = vpack.c.bf16 %v1971_v22, %v1969_v1 }
 0x2ad   :  { %v2026_v26 = vpack.c.bf16 %v1972_v50, %v1970_v44  ;;  %v7712_v44 = vld [vmem:[%s11356_s5 + $0xd4] ss:$8 sps:$4 sm:$0xff]   ;;  %v7710_v50 = vld [vmem:[%s11356_s5 + $0xd0] ss:$8 sps:$4 sm:$0xff]  }
 0x2ae   :  { %3207 = vmatpush1.bf16.msra.mxu1 %v7698_v46 }
 0x2af   :  { %2327 = vmatprep.mubr.bf16.mxu0 %v2026_v26  ;;  %3208 = vmatprep.subr.bf16.mxu1 %v7703_v59  ;;  %v7718_v26 = vld [vmem:[%s11356_s5 + $0xf4] ss:$8 sps:$4 sm:$0xff]  }
 0x2b0   :  { %2328 = vmatmul.mubr.bf16.gmra.mrb[80].mxu0 %v2025_v21  ;;  %v7715_v21 = vld [vmem:[%s11356_s5 + $0xe4] ss:$8 sps:$4 sm:$0xff]  }
 0x2b2   :  { %3209 = vmatpush1.bf16.msra.mxu1 %v7701_v25 }
 0x2b3   :  { %3210 = vmatprep.subr.bf16.mxu1 %v7706_v8 }
 0x2b6   :  { %3211 = vmatpush1.bf16.msra.mxu1 %v7704_v58 }
 0x2b7   :  { %3212 = vmatprep.subr.bf16.mxu1 %v7709_v62 }
 0x2b8   :  { %v1844_v42 = vpop.f32.mrb[20].mxu1 }
 0x2b9   :  { %v1845_v40 = vadd.f32 %v1844_v42, %v9201_v17  ;;  %v1846_v57 = vpop.f32.mrb[21].mxu1 }
 0x2ba   :  { %v1847_v60 = vadd.f32 %v1846_v57, %v9205_v61  ;;  %v1848_v56 = vpop.f32.mrb[22].mxu1  ;;  %3213 = vmatpush1.bf16.msra.mxu1 %v7707_v34 }
 0x2bb   :  { %v1849_v30 = vadd.f32 %v1848_v56, %v9201_v17  ;;  %v1850_v41 = vpop.f32.mrb[23].mxu1  ;;  %v1973_v18 = vmax.f32 %v1845_v40, 0.0  ;;  %3214 = vmatprep.subr.bf16.mxu1 %v7712_v44 }
 0x2bc   :  { %v1851_v28 = vadd.f32 %v1850_v41, %v9205_v61  ;;  %v1974_v32 = vmax.f32 %v1847_v60, 0.0 }
 0x2bd   :  { %v1975_v27 = vmax.f32 %v1849_v30, 0.0 }
 0x2be   :  { %v1976_v36 = vmax.f32 %v1851_v28, 0.0  ;;  %3215 = vmatpush1.bf16.msra.mxu1 %v7710_v50 }
 0x2bf   :  { %v2027_v1 = vpack.c.bf16 %v1975_v27, %v1973_v18  ;;  %3216 = vmatprep.subr.bf16.mxu1 %v7715_v21 }
 0x2c0   :  { %v2028_v22 = vpack.c.bf16 %v1976_v36, %v1974_v32 }
 0x2c2   :  { %2337 = vmatprep.mubr.bf16.mxu0 %v2028_v22  ;;  %3217 = vmatpush1.bf16.msra.mxu1 %v7713_v45 }
 0x2c3   :  { %2338 = vmatmul.mubr.bf16.gmra.mrb[84].mxu0 %v2027_v1  ;;  %3218 = vmatprep.subr.bf16.mxu1 %v7718_v26 }
 0x2c6   :  { %3219 = vmatpush1.bf16.msra.mxu1 %v7716_v38 }
 0x2cb   :  { %v1854_v23 = vpop.f32.mrb[24].mxu1 }
 0x2cc   :  { %v1855_v46 = vadd.f32 %v1854_v23, %v9201_v17  ;;  %v1856_v25 = vpop.f32.mrb[25].mxu1 }
 0x2cd   :  { %v1857_v59 = vadd.f32 %v1856_v25, %v9205_v61  ;;  %v1858_v8 = vpop.f32.mrb[26].mxu1 }
 0x2ce   :  { %v1859_v42 = vadd.f32 %v1858_v8, %v9201_v17  ;;  %v1860_v58 = vpop.f32.mrb[27].mxu1  ;;  %v1977_v57 = vmax.f32 %v1855_v46, 0.0 }
 0x2cf   :  { %v1861_v40 = vadd.f32 %v1860_v58, %v9205_v61  ;;  %v1978_v60 = vmax.f32 %v1857_v59, 0.0 }
 0x2d0   :  { %v1979_v62 = vmax.f32 %v1859_v42, 0.0 }
 0x2d1   :  { %v1980_v56 = vmax.f32 %v1861_v40, 0.0 }
 0x2d2   :  { %v2029_v30 = vpack.c.bf16 %v1979_v62, %v1977_v57 }
 0x2d3   :  { %v2030_v41 = vpack.c.bf16 %v1980_v56, %v1978_v60 }
 0x2d5   :  { %2347 = vmatprep.mubr.bf16.mxu0 %v2030_v41 }
 0x2d6   :  { %2348 = vmatmul.mubr.bf16.gmra.mrb[88].mxu0 %v2029_v30 }
 0x2de   :  { %v1864_v28 = vpop.f32.mrb[28].mxu1 }
 0x2df   :  { %v1865_v34 = vadd.f32 %v1864_v28, %v9201_v17  ;;  %v1866_v18 = vpop.f32.mrb[29].mxu1 }
 0x2e0   :  { %v1867_v27 = vadd.f32 %v1866_v18, %v9205_v61  ;;  %v1868_v32 = vpop.f32.mrb[30].mxu1 }
 0x2e1   :  { %v1869_v36 = vadd.f32 %v1868_v32, %v9201_v17  ;;  %v1870_v1 = vpop.f32.mrb[31].mxu1  ;;  %v1981_v44 = vmax.f32 %v1865_v34, 0.0 }
 0x2e2   :  { %v1871_v22 = vadd.f32 %v1870_v1, %v9205_v61  ;;  %v1982_v21 = vmax.f32 %v1867_v27, 0.0 }
 0x2e3   :  { %v1983_v50 = vmax.f32 %v1869_v36, 0.0 }
 0x2e4   :  { %v1984_v45 = vmax.f32 %v1871_v22, 0.0 }
 0x2e5   :  { %v2031_v26 = vpack.c.bf16 %v1983_v50, %v1981_v44 }
 0x2e6   :  { %v2032_v38 = vpack.c.bf16 %v1984_v45, %v1982_v21 }
 0x2e8   :  { %2357 = vmatprep.mubr.bf16.mxu0 %v2032_v38 }
 0x2e9   :  { %2358 = vmatmul.mubr.bf16.gmra.mrb[92].mxu0 %v2031_v26 }
 0x2f1   :  { %v1874_v23 = vpop.f32.mrb[32].mxu1 }
 0x2f2   :  { %v1875_v46 = vadd.f32 %v1874_v23, %v9201_v17  ;;  %v1876_v25 = vpop.f32.mrb[33].mxu1 }
 0x2f3   :  { %v1877_v59 = vadd.f32 %v1876_v25, %v9205_v61  ;;  %v1878_v8 = vpop.f32.mrb[34].mxu1 }
 0x2f4   :  { %v1879_v42 = vadd.f32 %v1878_v8, %v9201_v17  ;;  %v1880_v58 = vpop.f32.mrb[35].mxu1  ;;  %v1985_v57 = vmax.f32 %v1875_v46, 0.0 }
 0x2f5   :  { %v1881_v40 = vadd.f32 %v1880_v58, %v9205_v61  ;;  %v1986_v60 = vmax.f32 %v1877_v59, 0.0 }
 0x2f6   :  { %v1987_v62 = vmax.f32 %v1879_v42, 0.0 }
 0x2f7   :  { %v1988_v56 = vmax.f32 %v1881_v40, 0.0 }
 0x2f8   :  { %v2033_v30 = vpack.c.bf16 %v1987_v62, %v1985_v57 }
 0x2f9   :  { %v2034_v41 = vpack.c.bf16 %v1988_v56, %v1986_v60 }
 0x2fb   :  { %2367 = vmatprep.mubr.bf16.mxu0 %v2034_v41 }
 0x2fc   :  { %2368 = vmatmul.mubr.bf16.gmra.mrb[96].mxu0 %v2033_v30 }
 0x304   :  { %v1884_v28 = vpop.f32.mrb[36].mxu1 }
 0x305   :  { %v1885_v34 = vadd.f32 %v1884_v28, %v9201_v17  ;;  %v1886_v18 = vpop.f32.mrb[37].mxu1 }
 0x306   :  { %v1887_v27 = vadd.f32 %v1886_v18, %v9205_v61  ;;  %v1888_v32 = vpop.f32.mrb[38].mxu1 }
 0x307   :  { %v1889_v36 = vadd.f32 %v1888_v32, %v9201_v17  ;;  %v1890_v1 = vpop.f32.mrb[39].mxu1  ;;  %v1989_v44 = vmax.f32 %v1885_v34, 0.0 }
 0x308   :  { %v1891_v22 = vadd.f32 %v1890_v1, %v9205_v61  ;;  %v1990_v21 = vmax.f32 %v1887_v27, 0.0 }
 0x309   :  { %v1991_v50 = vmax.f32 %v1889_v36, 0.0 }
 0x30a   :  { %v1992_v45 = vmax.f32 %v1891_v22, 0.0 }
 0x30b   :  { %v2035_v26 = vpack.c.bf16 %v1991_v50, %v1989_v44 }
 0x30c   :  { %v2036_v38 = vpack.c.bf16 %v1992_v45, %v1990_v21 }
 0x30e   :  { %2377 = vmatprep.mubr.bf16.mxu0 %v2036_v38 }
 0x30f   :  { %2378 = vmatmul.mubr.bf16.gmra.mrb[100].mxu0 %v2035_v26 }
 0x317   :  { %v1894_v23 = vpop.f32.mrb[40].mxu1 }
 0x318   :  { %v1895_v46 = vadd.f32 %v1894_v23, %v9201_v17  ;;  %v1896_v25 = vpop.f32.mrb[41].mxu1  ;;  %v7028_v23 = vld [vmem:[%s11355_s4 + $0x4] sm:$0x3] }
 0x319   :  { %v1897_v59 = vadd.f32 %v1896_v25, %v9205_v61  ;;  %v1898_v8 = vpop.f32.mrb[42].mxu1 }
 0x31a   :  { %v1899_v42 = vadd.f32 %v1898_v8, %v9201_v17  ;;  %v1900_v58 = vpop.f32.mrb[43].mxu1  ;;  %v1993_v57 = vmax.f32 %v1895_v46, 0.0  ;;  %v9370_v8 = vrot.slane %v7028_v23, %v8372_v7 }
 0x31b   :  { %v1901_v40 = vadd.f32 %v1900_v58, %v9205_v61  ;;  %v1994_v60 = vmax.f32 %v1897_v59, 0.0 }
 0x31c   :  { %v1995_v62 = vmax.f32 %v1899_v42, 0.0 }
 0x31d   :  { %v1996_v56 = vmax.f32 %v1901_v40, 0.0  ;;  %v9374_v40 = vrot.slane %v7028_v23, %v8365_v5 }
 0x31e   :  { %v2037_v30 = vpack.c.bf16 %v1995_v62, %v1993_v57 }
 0x31f   :  { %v2038_v41 = vpack.c.bf16 %v1996_v56, %v1994_v60 }
 0x321   :  { %2387 = vmatprep.mubr.bf16.mxu0 %v2038_v41 }
 0x322   :  { %2388 = vmatmul.mubr.bf16.gmra.mrb[104].mxu0 %v2037_v30 }
 0x32a   :  { %v1904_v28 = vpop.f32.mrb[44].mxu1 }
 0x32b   :  { %v1905_v34 = vadd.f32 %v1904_v28, %v9201_v17  ;;  %v1906_v18 = vpop.f32.mrb[45].mxu1 }
 0x32c   :  { %v1907_v27 = vadd.f32 %v1906_v18, %v9205_v61  ;;  %v1908_v32 = vpop.f32.mrb[46].mxu1 }
 0x32d   :  { %v1909_v36 = vadd.f32 %v1908_v32, %v9201_v17  ;;  %v1910_v1 = vpop.f32.mrb[47].mxu1  ;;  %v1997_v44 = vmax.f32 %v1905_v34, 0.0 }
 0x32e   :  { %v1911_v22 = vadd.f32 %v1910_v1, %v9205_v61  ;;  %v1998_v21 = vmax.f32 %v1907_v27, 0.0 }
 0x32f   :  { %v1999_v50 = vmax.f32 %v1909_v36, 0.0 }
 0x330   :  { %v2000_v45 = vmax.f32 %v1911_v22, 0.0 }
 0x331   :  { %v2039_v26 = vpack.c.bf16 %v1999_v50, %v1997_v44 }
 0x332   :  { %v2040_v38 = vpack.c.bf16 %v2000_v45, %v1998_v21 }
 0x334   :  { %2397 = vmatprep.mubr.bf16.mxu0 %v2040_v38 }
 0x335   :  { %2398 = vmatmul.mubr.bf16.gmra.mrb[108].mxu0 %v2039_v26 }
 0x33d   :  { %v1914_v46 = vpop.f32.mrb[48].mxu1 }
 0x33e   :  { %v1915_v25 = vadd.f32 %v1914_v46, %v9201_v17  ;;  %v1916_v59 = vpop.f32.mrb[49].mxu1 }
 0x33f   :  { %v1917_v42 = vadd.f32 %v1916_v59, %v9205_v61  ;;  %v1918_v58 = vpop.f32.mrb[50].mxu1 }
 0x340   :  { %v1919_v57 = vadd.f32 %v1918_v58, %v9201_v17  ;;  %v1920_v62 = vpop.f32.mrb[51].mxu1  ;;  %v2001_v30 = vmax.f32 %v1915_v25, 0.0 }
 0x341   :  { %v1921_v60 = vadd.f32 %v1920_v62, %v9205_v61  ;;  %v2289_v56 = vpop.f32.mrb[64].mxu0  ;;  %v2002_v18 = vmax.f32 %v1917_v42, 0.0 }
 0x342   :  { %v2003_v41 = vmax.f32 %v1919_v57, 0.0  ;;  %v2290_v28 = vadd.f32 %v2289_v56, %v9370_v8  ;;  %v2291_v34 = vpop.f32.mrb[65].mxu0 }
 0x343   :  { %v2004_v27 = vmax.f32 %v1921_v60, 0.0  ;;  %v2292_v32 = vadd.f32 %v2291_v34, %v9374_v40  ;;  %v2293_v36 = vpop.f32.mrb[66].mxu0 }
 0x344   :  { %v2041_v1 = vpack.c.bf16 %v2003_v41, %v2001_v30  ;;  %v2294_v22 = vadd.f32 %v2293_v36, %v9370_v8  ;;  %v2295_v44 = vpop.f32.mrb[67].mxu0  ;;  %v2448_v45 = vmax.f32 %v2290_v28, 0.0 }
 0x345   :  { %v2042_v50 = vpack.c.bf16 %v2004_v27, %v2002_v18  ;;  %v2296_v21 = vadd.f32 %v2295_v44, %v9374_v40  ;;  %v2449_v38 = vmax.f32 %v2292_v32, 0.0 }
 0x346   :  { %v2450_v26 = vmax.f32 %v2294_v22, 0.0 }
 0x347   :  { %v2451_v23 = vmax.f32 %v2296_v21, 0.0  ;;  %2407 = vmatprep.mubr.bf16.mxu0 %v2042_v50 }
 0x348   :  { %v2512_v46 = vpack.c.bf16 %v2450_v26, %v2448_v45  ;;  %2408 = vmatmul.mubr.bf16.gmra.mrb[112].mxu0 %v2041_v1 }
 0x349   :  { %v2513_v25 = vpack.c.bf16 %v2451_v23, %v2449_v38 }
 0x34a   :  { %v2299_v59 = vpop.f32.mrb[68].mxu0 }
 0x34b   :  { %v2300_v42 = vadd.f32 %v2299_v59, %v9370_v8  ;;  %v2301_v58 = vpop.f32.mrb[69].mxu0  ;;  %3220 = vmatprep.mubr.bf16.mxu1 %v2513_v25 }
 0x34c   :  { %v2302_v57 = vadd.f32 %v2301_v58, %v9374_v40  ;;  %v2303_v62 = vpop.f32.mrb[70].mxu0  ;;  %3221 = vmatmul.mubr.bf16.vlgmr.msra.gmra.mrb[64].mxu1 %v2512_v46 }
 0x34d   :  { %v2304_v60 = vadd.f32 %v2303_v62, %v9370_v8  ;;  %v2305_v56 = vpop.f32.mrb[71].mxu0  ;;  %v2452_v41 = vmax.f32 %v2300_v42, 0.0 }
 0x34e   :  { %v2306_v30 = vadd.f32 %v2305_v56, %v9374_v40  ;;  %v2453_v34 = vmax.f32 %v2302_v57, 0.0 }
 0x34f   :  { %v2454_v28 = vmax.f32 %v2304_v60, 0.0 }
 0x350   :  { %v2455_v18 = vmax.f32 %v2306_v30, 0.0  ;;  %v1924_v27 = vpop.f32.mrb[52].mxu1 }
 0x351   :  { %v2514_v32 = vpack.c.bf16 %v2454_v28, %v2452_v41  ;;  %v1925_v36 = vadd.f32 %v1924_v27, %v9201_v17  ;;  %v1926_v1 = vpop.f32.mrb[53].mxu1 }
 0x352   :  { %v2515_v22 = vpack.c.bf16 %v2455_v18, %v2453_v34  ;;  %v1927_v44 = vadd.f32 %v1926_v1, %v9205_v61  ;;  %v1928_v50 = vpop.f32.mrb[54].mxu1 }
 0x353   :  { %v1929_v21 = vadd.f32 %v1928_v50, %v9201_v17  ;;  %v1930_v45 = vpop.f32.mrb[55].mxu1  ;;  %v2005_v38 = vmax.f32 %v1925_v36, 0.0 }
 0x354   :  { %v1931_v26 = vadd.f32 %v1930_v45, %v9205_v61  ;;  %3230 = vmatprep.mubr.bf16.mxu1 %v2515_v22  ;;  %v2006_v46 = vmax.f32 %v1927_v44, 0.0 }
 0x355   :  { %v2007_v23 = vmax.f32 %v1929_v21, 0.0  ;;  %3231 = vmatmul.mubr.bf16.gmra.mrb[68].mxu1 %v2514_v32 }
 0x356   :  { %v2008_v25 = vmax.f32 %v1931_v26, 0.0 }
 0x357   :  { %v2043_v59 = vpack.c.bf16 %v2007_v23, %v2005_v38 }
 0x358   :  { %v2044_v42 = vpack.c.bf16 %v2008_v25, %v2006_v46 }
 0x35a   :  { %2417 = vmatprep.mubr.bf16.mxu0 %v2044_v42 }
 0x35b   :  { %2418 = vmatmul.mubr.bf16.gmra.mrb[116].mxu0 %v2043_v59 }
 0x35d   :  { %v2309_v58 = vpop.f32.mrb[72].mxu0 }
 0x35e   :  { %v2310_v57 = vadd.f32 %v2309_v58, %v9370_v8  ;;  %v2311_v62 = vpop.f32.mrb[73].mxu0 }
 0x35f   :  { %v2312_v60 = vadd.f32 %v2311_v62, %v9374_v40  ;;  %v2313_v56 = vpop.f32.mrb[74].mxu0  ;;  %v7721_v62 = vld [vmem:[#allocation2 + $0x304] ss:$8 sps:$4 sm:$0xff]  }
 0x360   :  { %v2314_v30 = vadd.f32 %v2313_v56, %v9370_v8  ;;  %v2315_v41 = vpop.f32.mrb[75].mxu0  ;;  %v2456_v34 = vmax.f32 %v2310_v57, 0.0  ;;  %v7719_v57 = vld [vmem:[#allocation2 + $0x300] ss:$8 sps:$4 sm:$0xff]   ;;  %3683 = vmatprep.subr.bf16.mxu0 %v7721_v62  ;;  %v7722_v56 = vld [vmem:[#allocation2 + $0x310] ss:$8 sps:$4 sm:$0xff]  }
 0x361   :  { %v2316_v28 = vadd.f32 %v2315_v41, %v9374_v40  ;;  %v2457_v27 = vmax.f32 %v2312_v60, 0.0  ;;  %3684 = vmatpush1.bf16.msra.mxu0 %v7719_v57  ;;  %v7727_v41 = vld [vmem:[#allocation2 + $0x324] ss:$8 sps:$4 sm:$0xff]  }
 0x362   :  { %v2458_v18 = vmax.f32 %v2314_v30, 0.0  ;;  %v7724_v30 = vld [vmem:[#allocation2 + $0x314] ss:$8 sps:$4 sm:$0xff]  }
 0x363   :  { %v2459_v32 = vmax.f32 %v2316_v28, 0.0  ;;  %v1934_v36 = vpop.f32.mrb[56].mxu1  ;;  %3685 = vmatprep.subr.bf16.mxu0 %v7724_v30 }
 0x364   :  { %v2516_v1 = vpack.c.bf16 %v2458_v18, %v2456_v34  ;;  %v1935_v22 = vadd.f32 %v1934_v36, %v9201_v17  ;;  %v1936_v44 = vpop.f32.mrb[57].mxu1 }
 0x365   :  { %v2517_v50 = vpack.c.bf16 %v2459_v32, %v2457_v27  ;;  %v1937_v21 = vadd.f32 %v1936_v44, %v9205_v61  ;;  %v1938_v45 = vpop.f32.mrb[58].mxu1  ;;  %3686 = vmatpush1.bf16.msra.mxu0 %v7722_v56  ;;  %v7725_v27 = vld [vmem:[#allocation2 + $0x320] ss:$8 sps:$4 sm:$0xff]  }
 0x366   :  { %v1939_v26 = vadd.f32 %v1938_v45, %v9201_v17  ;;  %v1940_v38 = vpop.f32.mrb[59].mxu1  ;;  %v2009_v46 = vmax.f32 %v1935_v22, 0.0  ;;  %3687 = vmatprep.subr.bf16.mxu0 %v7727_v41  ;;  %v7733_v41 = vld [vmem:[#allocation2 + $0x344] ss:$8 sps:$4 sm:$0xff]  }
 0x367   :  { %v1941_v23 = vadd.f32 %v1940_v38, %v9205_v61  ;;  %3240 = vmatprep.mubr.bf16.mxu1 %v2517_v50  ;;  %v2010_v59 = vmax.f32 %v1937_v21, 0.0 }
 0x368   :  { %v2011_v25 = vmax.f32 %v1939_v26, 0.0  ;;  %3241 = vmatmul.mubr.bf16.gmra.mrb[72].mxu1 %v2516_v1 }
 0x369   :  { %v2012_v42 = vmax.f32 %v1941_v23, 0.0  ;;  %3688 = vmatpush1.bf16.msra.mxu0 %v7725_v27  ;;  %v7730_v23 = vld [vmem:[#allocation2 + $0x334] ss:$8 sps:$4 sm:$0xff]  }
 0x36a   :  { %v2045_v58 = vpack.c.bf16 %v2011_v25, %v2009_v46  ;;  %3689 = vmatprep.subr.bf16.mxu0 %v7730_v23 }
 0x36b   :  { %v2046_v60 = vpack.c.bf16 %v2012_v42, %v2010_v59  ;;  %v7728_v42 = vld [vmem:[#allocation2 + $0x330] ss:$8 sps:$4 sm:$0xff]  }
 0x36d   :  { %2427 = vmatprep.mubr.bf16.mxu0 %v2046_v60  ;;  %3690 = vmatpush1.bf16.msra.mxu0 %v7728_v42 }
 0x36e   :  { %2428 = vmatmul.mubr.bf16.gmra.mrb[120].mxu0 %v2045_v58  ;;  %3691 = vmatprep.subr.bf16.mxu0 %v7733_v41 }
 0x370   :  { %v2319_v28 = vpop.f32.mrb[76].mxu0 }
 0x371   :  { %v2320_v34 = vadd.f32 %v2319_v28, %v9370_v8  ;;  %v2321_v18 = vpop.f32.mrb[77].mxu0 }
 0x372   :  { %v2322_v32 = vadd.f32 %v2321_v18, %v9374_v40  ;;  %v2323_v36 = vpop.f32.mrb[78].mxu0  ;;  %v7731_v18 = vld [vmem:[#allocation2 + $0x340] ss:$8 sps:$4 sm:$0xff]  }
 0x373   :  { %v2324_v1 = vadd.f32 %v2323_v36, %v9370_v8  ;;  %v2325_v22 = vpop.f32.mrb[79].mxu0  ;;  %v2460_v50 = vmax.f32 %v2320_v34, 0.0  ;;  %3692 = vmatpush1.bf16.msra.mxu0 %v7731_v18  ;;  %v7746_v18 = vld [vmem:[#allocation2 + $0x390] ss:$8 sps:$4 sm:$0xff]  }
 0x374   :  { %v2326_v44 = vadd.f32 %v2325_v22, %v9374_v40  ;;  %v2461_v45 = vmax.f32 %v2322_v32, 0.0 }
 0x375   :  { %v2462_v21 = vmax.f32 %v2324_v1, 0.0  ;;  %v7736_v1 = vld [vmem:[#allocation2 + $0x354] ss:$8 sps:$4 sm:$0xff]  }
 0x376   :  { %v2463_v26 = vmax.f32 %v2326_v44, 0.0  ;;  %v1944_v38 = vpop.f32.mrb[60].mxu1  ;;  %v7734_v44 = vld [vmem:[#allocation2 + $0x350] ss:$8 sps:$4 sm:$0xff]   ;;  %3693 = vmatprep.subr.bf16.mxu0 %v7736_v1 }
 0x377   :  { %v2518_v46 = vpack.c.bf16 %v2462_v21, %v2460_v50  ;;  %v1945_v25 = vadd.f32 %v1944_v38, %v9201_v17  ;;  %v1946_v59 = vpop.f32.mrb[61].mxu1  ;;  %3694 = vmatpush1.bf16.msra.mxu0 %v7734_v44  ;;  %v7742_v21 = vld [vmem:[#allocation2 + $0x374] ss:$8 sps:$4 sm:$0xff]  }
 0x378   :  { %v2519_v58 = vpack.c.bf16 %v2463_v26, %v2461_v45  ;;  %v1947_v57 = vadd.f32 %v1946_v59, %v9205_v61  ;;  %v1948_v62 = vpop.f32.mrb[62].mxu1  ;;  %v7740_v59 = vld [vmem:[#allocation2 + $0x370] ss:$8 sps:$4 sm:$0xff]  }
 0x379   :  { %v1949_v60 = vadd.f32 %v1948_v62, %v9201_v17  ;;  %v1950_v56 = vpop.f32.mrb[63].mxu1  ;;  %v2013_v28 = vmax.f32 %v1945_v25, 0.0  ;;  %v7739_v17 = vld [vmem:[#allocation2 + $0x364] ss:$8 sps:$4 sm:$0xff]  }
 0x37a   :  { %v1951_v30 = vadd.f32 %v1950_v56, %v9205_v61  ;;  %3250 = vmatprep.mubr.bf16.mxu1 %v2519_v58  ;;  %v2014_v27 = vmax.f32 %v1947_v57, 0.0  ;;  %v7737_v61 = vld [vmem:[#allocation2 + $0x360] ss:$8 sps:$4 sm:$0xff]   ;;  %3695 = vmatprep.subr.bf16.mxu0 %v7739_v17 }
 0x37b   :  { %v2015_v34 = vmax.f32 %v1949_v60, 0.0  ;;  %3251 = vmatmul.mubr.bf16.gmra.mrb[76].mxu1 %v2518_v46  ;;  %3696 = vmatpush1.bf16.msra.mxu0 %v7737_v61  ;;  %v7757_v61 = vld [vmem:[#allocation2 + $0x3c4] ss:$8 sps:$4 sm:$0xff]  }
 0x37c   :  { %v2016_v32 = vmax.f32 %v1951_v30, 0.0  ;;  %3697 = vmatprep.subr.bf16.mxu0 %v7742_v21  ;;  %v7745_v30 = vld [vmem:[#allocation2 + $0x384] ss:$8 sps:$4 sm:$0xff]  }
 0x37d   :  { %v2047_v36 = vpack.c.bf16 %v2015_v34, %v2013_v28  ;;  %v7743_v28 = vld [vmem:[#allocation2 + $0x380] ss:$8 sps:$4 sm:$0xff]   ;;  %v7748_v34 = vld [vmem:[#allocation2 + $0x394] ss:$8 sps:$4 sm:$0xff]  }
 0x37e   :  { %v2048_v22 = vpack.c.bf16 %v2016_v32, %v2014_v27  ;;  %v7749_v27 = vld [vmem:[#allocation2 + $0x3a0] ss:$8 sps:$4 sm:$0xff]   ;;  %v7751_v32 = vld [vmem:[#allocation2 + $0x3a4] ss:$8 sps:$4 sm:$0xff]  }
 0x37f   :  { %3698 = vmatpush1.bf16.msra.mxu0 %v7740_v59 }
 0x380   :  { %2437 = vmatprep.mubr.bf16.mxu0 %v2048_v22  ;;  %3699 = vmatprep.subr.bf16.mxu0 %v7745_v30  ;;  %v7752_v22 = vld [vmem:[#allocation2 + $0x3b0] ss:$8 sps:$4 sm:$0xff]   ;;  %v7763_v30 = vld [vmem:[#allocation2 + $0x3e4] ss:$8 sps:$4 sm:$0xff]  }
 0x381   :  { %2438 = vmatmul.mubr.bf16.gmra.mrb[124].mxu0 %v2047_v36  ;;  %v7754_v36 = vld [vmem:[#allocation2 + $0x3b4] ss:$8 sps:$4 sm:$0xff]  }
 0x383   :  { %v2329_v50 = vpop.f32.mrb[80].mxu0  ;;  %3700 = vmatpush1.bf16.msra.mxu0 %v7743_v28 }
 0x384   :  { %v2330_v45 = vadd.f32 %v2329_v50, %v9370_v8  ;;  %v2331_v26 = vpop.f32.mrb[81].mxu0  ;;  %3701 = vmatprep.subr.bf16.mxu0 %v7748_v34 }
 0x385   :  { %v2332_v38 = vadd.f32 %v2331_v26, %v9374_v40  ;;  %v2333_v23 = vpop.f32.mrb[82].mxu0 }
 0x386   :  { %v2334_v46 = vadd.f32 %v2333_v23, %v9370_v8  ;;  %v2335_v25 = vpop.f32.mrb[83].mxu0  ;;  %v2464_v58 = vmax.f32 %v2330_v45, 0.0  ;;  %v7755_v23 = vld [vmem:[#allocation2 + $0x3c0] ss:$8 sps:$4 sm:$0xff]  }
 0x387   :  { %v2336_v42 = vadd.f32 %v2335_v25, %v9374_v40  ;;  %v2465_v62 = vmax.f32 %v2332_v38, 0.0  ;;  %3702 = vmatpush1.bf16.msra.mxu0 %v7746_v18 }
 0x388   :  { %v2466_v57 = vmax.f32 %v2334_v46, 0.0  ;;  %3703 = vmatprep.subr.bf16.mxu0 %v7751_v32 }
 0x389   :  { %v2467_v60 = vmax.f32 %v2336_v42, 0.0 }
 0x38a   :  { %v2520_v56 = vpack.c.bf16 %v2466_v57, %v2464_v58 }
 0x38b   :  { %v2521_v41 = vpack.c.bf16 %v2467_v60, %v2465_v62  ;;  %3704 = vmatpush1.bf16.msra.mxu0 %v7749_v27  ;;  %v7760_v62 = vld [vmem:[#allocation2 + $0x3d4] ss:$8 sps:$4 sm:$0xff]   ;;  %v7758_v60 = vld [vmem:[#allocation2 + $0x3d0] ss:$8 sps:$4 sm:$0xff]  }
 0x38c   :  { %3705 = vmatprep.subr.bf16.mxu0 %v7754_v36  ;;  %v7764_v27 = vld [vmem:[#allocation2 + $0x3f0] ss:$8 sps:$4 sm:$0xff]  }
 0x38d   :  { %3260 = vmatprep.mubr.bf16.mxu1 %v2521_v41  ;;  %v7766_v41 = vld [vmem:[#allocation2 + $0x3f4] ss:$8 sps:$4 sm:$0xff]  }
 0x38e   :  { %3261 = vmatmul.mubr.bf16.gmra.mrb[80].mxu1 %v2520_v56  ;;  %v7761_v56 = vld [vmem:[#allocation2 + $0x3e0] ss:$8 sps:$4 sm:$0xff]  }
 0x38f   :  { %3706 = vmatpush1.bf16.msra.mxu0 %v7752_v22 }
 0x390   :  { %3707 = vmatprep.subr.bf16.mxu0 %v7757_v61 }
 0x393   :  { %3708 = vmatpush1.bf16.msra.mxu0 %v7755_v23 }
 0x394   :  { %3709 = vmatprep.subr.bf16.mxu0 %v7760_v62 }
 0x396   :  { %v2339_v1 = vpop.f32.mrb[84].mxu0 }
 0x397   :  { %v2340_v44 = vadd.f32 %v2339_v1, %v9370_v8  ;;  %v2341_v17 = vpop.f32.mrb[85].mxu0  ;;  %3710 = vmatpush1.bf16.msra.mxu0 %v7758_v60 }
 0x398   :  { %v2342_v50 = vadd.f32 %v2341_v17, %v9374_v40  ;;  %v2343_v21 = vpop.f32.mrb[86].mxu0  ;;  %3711 = vmatprep.subr.bf16.mxu0 %v7763_v30 }
 0x399   :  { %v2344_v45 = vadd.f32 %v2343_v21, %v9370_v8  ;;  %v2345_v26 = vpop.f32.mrb[87].mxu0  ;;  %v2468_v46 = vmax.f32 %v2340_v44, 0.0 }
 0x39a   :  { %v2346_v38 = vadd.f32 %v2345_v26, %v9374_v40  ;;  %v2469_v59 = vmax.f32 %v2342_v50, 0.0 }
 0x39b   :  { %v2470_v25 = vmax.f32 %v2344_v45, 0.0  ;;  %3712 = vmatpush1.bf16.msra.mxu0 %v7761_v56 }
 0x39c   :  { %v2471_v42 = vmax.f32 %v2346_v38, 0.0  ;;  %3713 = vmatprep.subr.bf16.mxu0 %v7766_v41 }
 0x39d   :  { %v2522_v58 = vpack.c.bf16 %v2470_v25, %v2468_v46 }
 0x39e   :  { %v2523_v57 = vpack.c.bf16 %v2471_v42, %v2469_v59 }
 0x39f   :  { %3714 = vmatpush1.bf16.msra.mxu0 %v7764_v27 }
 0x3a0   :  { %3270 = vmatprep.mubr.bf16.mxu1 %v2523_v57 }
 0x3a1   :  { %3271 = vmatmul.mubr.bf16.gmra.mrb[84].mxu1 %v2522_v58 }
 0x3a9   :  { %v2349_v28 = vpop.f32.mrb[88].mxu0 }
 0x3aa   :  { %v2350_v34 = vadd.f32 %v2349_v28, %v9370_v8  ;;  %v2351_v18 = vpop.f32.mrb[89].mxu0 }
 0x3ab   :  { %v2352_v32 = vadd.f32 %v2351_v18, %v9374_v40  ;;  %v2353_v36 = vpop.f32.mrb[90].mxu0 }
 0x3ac   :  { %v2354_v1 = vadd.f32 %v2353_v36, %v9370_v8  ;;  %v2355_v22 = vpop.f32.mrb[91].mxu0  ;;  %v2472_v17 = vmax.f32 %v2350_v34, 0.0 }
 0x3ad   :  { %v2356_v44 = vadd.f32 %v2355_v22, %v9374_v40  ;;  %v2473_v50 = vmax.f32 %v2352_v32, 0.0 }
 0x3ae   :  { %v2474_v61 = vmax.f32 %v2354_v1, 0.0 }
 0x3af   :  { %v2475_v21 = vmax.f32 %v2356_v44, 0.0 }
 0x3b0   :  { %v2524_v45 = vpack.c.bf16 %v2474_v61, %v2472_v17 }
 0x3b1   :  { %v2525_v26 = vpack.c.bf16 %v2475_v21, %v2473_v50 }
 0x3b3   :  { %3280 = vmatprep.mubr.bf16.mxu1 %v2525_v26 }
 0x3b4   :  { %3281 = vmatmul.mubr.bf16.gmra.mrb[88].mxu1 %v2524_v45 }
 0x3bc   :  { %v2359_v38 = vpop.f32.mrb[92].mxu0 }
 0x3bd   :  { %v2360_v23 = vadd.f32 %v2359_v38, %v9370_v8  ;;  %v2361_v46 = vpop.f32.mrb[93].mxu0 }
 0x3be   :  { %v2362_v25 = vadd.f32 %v2361_v46, %v9374_v40  ;;  %v2363_v59 = vpop.f32.mrb[94].mxu0 }
 0x3bf   :  { %v2364_v42 = vadd.f32 %v2363_v59, %v9370_v8  ;;  %v2365_v58 = vpop.f32.mrb[95].mxu0  ;;  %v2476_v62 = vmax.f32 %v2360_v23, 0.0 }
 0x3c0   :  { %v2366_v57 = vadd.f32 %v2365_v58, %v9374_v40  ;;  %v2477_v56 = vmax.f32 %v2362_v25, 0.0 }
 0x3c1   :  { %v2478_v60 = vmax.f32 %v2364_v42, 0.0 }
 0x3c2   :  { %v2479_v30 = vmax.f32 %v2366_v57, 0.0 }
 0x3c3   :  { %v2526_v41 = vpack.c.bf16 %v2478_v60, %v2476_v62 }
 0x3c4   :  { %v2527_v28 = vpack.c.bf16 %v2479_v30, %v2477_v56 }
 0x3c6   :  { %3290 = vmatprep.mubr.bf16.mxu1 %v2527_v28 }
 0x3c7   :  { %3291 = vmatmul.mubr.bf16.gmra.mrb[92].mxu1 %v2526_v41 }
 0x3cf   :  { %v2369_v34 = vpop.f32.mrb[96].mxu0 }
 0x3d0   :  { %v2370_v18 = vadd.f32 %v2369_v34, %v9370_v8  ;;  %v2371_v27 = vpop.f32.mrb[97].mxu0 }
 0x3d1   :  { %v2372_v32 = vadd.f32 %v2371_v27, %v9374_v40  ;;  %v2373_v36 = vpop.f32.mrb[98].mxu0 }
 0x3d2   :  { %v2374_v1 = vadd.f32 %v2373_v36, %v9370_v8  ;;  %v2375_v22 = vpop.f32.mrb[99].mxu0  ;;  %v2480_v17 = vmax.f32 %v2370_v18, 0.0 }
 0x3d3   :  { %v2376_v44 = vadd.f32 %v2375_v22, %v9374_v40  ;;  %v2481_v50 = vmax.f32 %v2372_v32, 0.0 }
 0x3d4   :  { %v2482_v61 = vmax.f32 %v2374_v1, 0.0 }
 0x3d5   :  { %v2483_v21 = vmax.f32 %v2376_v44, 0.0 }
 0x3d6   :  { %v2528_v45 = vpack.c.bf16 %v2482_v61, %v2480_v17 }
 0x3d7   :  { %v2529_v26 = vpack.c.bf16 %v2483_v21, %v2481_v50 }
 0x3d9   :  { %3300 = vmatprep.mubr.bf16.mxu1 %v2529_v26 }
 0x3da   :  { %3301 = vmatmul.mubr.bf16.gmra.mrb[96].mxu1 %v2528_v45 }
 0x3e2   :  { %v2379_v38 = vpop.f32.mrb[100].mxu0 }
 0x3e3   :  { %v2380_v23 = vadd.f32 %v2379_v38, %v9370_v8  ;;  %v2381_v46 = vpop.f32.mrb[101].mxu0  ;;  %v2544_v38 = vld [vmem:[%s11357_s6] sm:$0x77] }
 0x3e4   :  { %v2382_v25 = vadd.f32 %v2381_v46, %v9374_v40  ;;  %v2383_v59 = vpop.f32.mrb[102].mxu0  ;;  %v11582_v46 = vsub.s32 4, %v8357_v2 }
 0x3e5   :  { %v2384_v42 = vadd.f32 %v2383_v59, %v9370_v8  ;;  %v2385_v58 = vpop.f32.mrb[103].mxu0  ;;  %v2484_v62 = vmax.f32 %v2380_v23, 0.0 }
 0x3e6   :  { %v2386_v57 = vadd.f32 %v2385_v58, %v9374_v40  ;;  %v2485_v56 = vmax.f32 %v2382_v25, 0.0  ;;  %v2553_v25 = vrot.slane %v2544_v38, %v11582_v46  ;;  %v2549_v58 = vrot.slane %v2544_v38, %v8372_v7 }
 0x3e7   :  { %v2486_v60 = vmax.f32 %v2384_v42, 0.0 }
 0x3e8   :  { %v2487_v30 = vmax.f32 %v2386_v57, 0.0 }
 0x3e9   :  { %v2530_v41 = vpack.c.bf16 %v2486_v60, %v2484_v62  ;;  %v11583_v60 = vsub.s32 5, %v8357_v2 }
 0x3ea   :  { %v2531_v28 = vpack.c.bf16 %v2487_v30, %v2485_v56 }
 0x3eb   :  { %v2635_v56 = vrot.slane %v2544_v38, %v11583_v60  ;;  %v2920_v60 = vld [vmem:[%s11358_s7] sm:$0x3] }
 0x3ec   :  { %3310 = vmatprep.mubr.bf16.mxu1 %v2531_v28  ;;  %v2631_v28 = vrot.slane %v2544_v38, %v8365_v5 }
 0x3ed   :  { %3311 = vmatmul.mubr.bf16.gmra.mrb[100].mxu1 %v2530_v41 }
 0x3f5   :  { %v2389_v34 = vpop.f32.mrb[104].mxu0 }
 0x3f6   :  { %v2390_v18 = vadd.f32 %v2389_v34, %v9370_v8  ;;  %v2391_v27 = vpop.f32.mrb[105].mxu0 }
 0x3f7   :  { %v2392_v32 = vadd.f32 %v2391_v27, %v9374_v40  ;;  %v2393_v36 = vpop.f32.mrb[106].mxu0 }
 0x3f8   :  { %v2394_v1 = vadd.f32 %v2393_v36, %v9370_v8  ;;  %v2395_v22 = vpop.f32.mrb[107].mxu0  ;;  %v2488_v17 = vmax.f32 %v2390_v18, 0.0  ;;  %v9451_v36 = vrot.slane %v2553_v25, %v8372_v7 }
 0x3f9   :  { %v2396_v44 = vadd.f32 %v2395_v22, %v9374_v40  ;;  %v2489_v50 = vmax.f32 %v2392_v32, 0.0  ;;  %v9448_v32 = vrot.slane %v2549_v58, %v8372_v7 }
 0x3fa   :  { %v2490_v61 = vmax.f32 %v2394_v1, 0.0  ;;  %v2565_v46 = vmul.f32 %v9451_v36, %v8427_v31 }
 0x3fb   :  { %v2491_v21 = vmax.f32 %v2396_v44, 0.0  ;;  %v2777_v44 = vrot.slane %v2544_v38, %v8383_v15  ;;  %v2566_v25 = vmul.f32 %v9448_v32, %v8452_v43 }
 0x3fc   :  { %v2532_v45 = vpack.c.bf16 %v2490_v61, %v2488_v17  ;;  %v11584_v17 = vsub.s32 6, %v8357_v2 }
 0x3fd   :  { %v2533_v26 = vpack.c.bf16 %v2491_v21, %v2489_v50  ;;  %v9457_v21 = vrot.slane %v2631_v28, %v8365_v5  ;;  %v9469_v2 = vrot.slane %v2777_v44, %v8383_v15 }
 0x3fe   :  { %v2781_v61 = vrot.slane %v2544_v38, %v11584_v17  ;;  %v2567_v38 = vmul.f32 %v9451_v36, %v8452_v43 }
 0x3ff   :  { %3320 = vmatprep.mubr.bf16.mxu1 %v2533_v26  ;;  %v2794_v28 = vmul.f32 %v9469_v2, %v8406_v24 }
 0x400   :  { %3321 = vmatmul.mubr.bf16.gmra.mrb[104].mxu1 %v2532_v45  ;;  %v9460_v45 = vrot.slane %v2635_v56, %v8365_v5  ;;  %v9478_v58 = vrot.slane %v2781_v61, %v8383_v15  ;;  %v2796_v61 = vmul.f32 %v9469_v2, %v8379_v13 }
 0x408   :  { %v2399_v23 = vpop.f32.mrb[108].mxu0 }
 0x409   :  { %v2400_v59 = vadd.f32 %v2399_v23, %v9370_v8  ;;  %v2401_v42 = vpop.f32.mrb[109].mxu0  ;;  %v2564_v23 = vmul.f32 %v9448_v32, %v8427_v31  ;;  %v2648_v31 = vmul.f32 %v9457_v21, %v8376_v10 }
 0x40a   :  { %v2402_v57 = vadd.f32 %v2401_v42, %v9374_v40  ;;  %v2403_v62 = vpop.f32.mrb[110].mxu0  ;;  %v2647_v42 = vmul.f32 %v9460_v45, %v8360_v3 }
 0x40b   :  { %v2404_v30 = vadd.f32 %v2403_v62, %v9370_v8  ;;  %v2405_v41 = vpop.f32.mrb[111].mxu0  ;;  %v2492_v18 = vmax.f32 %v2400_v59, 0.0  ;;  %v2646_v59 = vmul.f32 %v9457_v21, %v8360_v3  ;;  %v2649_v62 = vmul.f32 %v9460_v45, %v8376_v10 }
 0x40c   :  { %v2406_v34 = vadd.f32 %v2405_v41, %v9374_v40  ;;  %v2493_v1 = vmax.f32 %v2402_v57, 0.0  ;;  %v2792_v57 = vmul.f32 %v9469_v2, %v8362_v4  ;;  %v2711_v56 = vadd.f32 %v2647_v42, %v2565_v46 }
 0x40d   :  { %v2494_v27 = vmax.f32 %v2404_v30, 0.0  ;;  %v2710_v43 = vadd.f32 %v2646_v59, %v2564_v23  ;;  %v2793_v3 = vmul.f32 %v9478_v58, %v8362_v4  ;;  %v2712_v30 = vadd.f32 %v2648_v31, %v2566_v25 }
 0x40e   :  { %v2495_v22 = vmax.f32 %v2406_v34, 0.0  ;;  %v2713_v41 = vadd.f32 %v2649_v62, %v2567_v38  ;;  %v9494_v34 = vrot.slane %v2920_v60, %v8372_v7  ;;  %v2795_v10 = vmul.f32 %v9478_v58, %v8406_v24 }
 0x40f   :  { %v2534_v50 = vpack.c.bf16 %v2494_v27, %v2492_v18  ;;  %v2856_v18 = vadd.f32 %v2792_v57, %v2710_v43  ;;  %v2857_v27 = vadd.f32 %v2793_v3, %v2711_v56  ;;  %v2650_v4 = vmul.f32 %v9457_v21, %v8466_v49 }
 0x410   :  { %v2535_v26 = vpack.c.bf16 %v2495_v22, %v2493_v1  ;;  %v9499_v1 = vrot.slane %v2920_v60, %v8365_v5  ;;  %v2858_v22 = vadd.f32 %v2794_v28, %v2712_v30  ;;  %v2859_v44 = vadd.f32 %v2795_v10, %v2713_v41 }
 0x411   :  { %v2568_v23 = vmul.f32 %v9448_v32, %v8432_v33  ;;  %v2569_v46 = vmul.f32 %v9451_v36, %v8432_v33  ;;  %v2797_v25 = vmul.f32 %v9478_v58, %v8379_v13  ;;  %v2932_v42 = vadd.f32 %v9494_v34, %v2856_v18 }
 0x412   :  { %3330 = vmatprep.mubr.bf16.mxu1 %v2535_v26  ;;  %v2933_v31 = vadd.f32 %v9499_v1, %v2857_v27  ;;  %v2935_v43 = vadd.f32 %v9499_v1, %v2859_v44  ;;  %v2570_v33 = vmul.f32 %v9448_v32, %v8484_v29  ;;  %v2652_v30 = vmul.f32 %v9457_v21, %v8491_v39 }
 0x413   :  { %3331 = vmatmul.mubr.bf16.gmra.mrb[108].mxu1 %v2534_v50  ;;  %v2651_v50 = vmul.f32 %v9460_v45, %v8466_v49  ;;  %v2934_v49 = vadd.f32 %v9494_v34, %v2858_v22  ;;  %v2714_v60 = vadd.f32 %v2650_v4, %v2568_v23  ;;  %v2571_v41 = vmul.f32 %v9451_v36, %v8484_v29 }
 0x414   :  { %v2653_v22 = vmul.f32 %v9460_v45, %v8491_v39  ;;  %v2799_v29 = vmul.f32 %v9478_v58, %v8514_v9 }
 0x415   :  { %v2715_v3 = vadd.f32 %v2651_v50, %v2569_v46  ;;  %v2798_v50 = vmul.f32 %v9469_v2, %v8514_v9 }
 0x417   :  { %v2861_v39 = vadd.f32 %v2797_v25, %v2715_v3 }
 0x419   :  { %v2937_v9 = vadd.f32 %v9499_v1, %v2861_v39 }
 0x41b   :  { %v2409_v17 = vpop.f32.mrb[112].mxu0 }
 0x41c   :  { %v2410_v26 = vadd.f32 %v2409_v17, %v9370_v8  ;;  %v2411_v24 = vpop.f32.mrb[113].mxu0 }
 0x41d   :  { %v2412_v38 = vadd.f32 %v2411_v24, %v9374_v40  ;;  %v2413_v59 = vpop.f32.mrb[114].mxu0 }
 0x41e   :  { %v2414_v57 = vadd.f32 %v2413_v59, %v9370_v8  ;;  %v2415_v62 = vpop.f32.mrb[115].mxu0  ;;  %v2496_v28 = vmax.f32 %v2410_v26, 0.0 }
 0x41f   :  { %v2416_v13 = vadd.f32 %v2415_v62, %v9374_v40  ;;  %v3222_v56 = vpop.f32.mrb[64].mxu1  ;;  %v2497_v44 = vmax.f32 %v2412_v38, 0.0  ;;  %v2716_v62 = vadd.f32 %v2652_v30, %v2570_v33  ;;  %v2717_v38 = vadd.f32 %v2653_v22, %v2571_v41 }
 0x420   :  { %v2498_v10 = vmax.f32 %v2414_v57, 0.0  ;;  %v3223_v18 = vadd.f32 %v3222_v56, %v2932_v42  ;;  %v3224_v27 = vpop.f32.mrb[65].mxu1  ;;  %v2860_v42 = vadd.f32 %v2796_v61, %v2714_v60 }
 0x421   :  { %v2499_v4 = vmax.f32 %v2416_v13, 0.0  ;;  %v3225_v17 = vadd.f32 %v3224_v27, %v2933_v31  ;;  %v3226_v24 = vpop.f32.mrb[66].mxu1  ;;  %v2862_v27 = vadd.f32 %v2798_v50, %v2716_v62  ;;  %v2654_v50 = vmul.f32 %v9457_v21, %v8541_v51 }
 0x422   :  { %v2536_v23 = vpack.c.bf16 %v2498_v10, %v2496_v28  ;;  %v3227_v46 = vadd.f32 %v3226_v24, %v2934_v49  ;;  %v3228_v59 = vpop.f32.mrb[67].mxu1  ;;  %v3381_v56 = vmax.f32 %v3223_v18, 0.0  ;;  %v2863_v28 = vadd.f32 %v2799_v29, %v2717_v38  ;;  %v11585_v38 = vld [vmem:[#allocation6_spill] sm:$0xff] }
 0x423   :  { %v2537_v26 = vpack.c.bf16 %v2499_v4, %v2497_v44  ;;  %v3229_v57 = vadd.f32 %v3228_v59, %v2935_v43  ;;  %v3382_v13 = vmax.f32 %v3225_v17, 0.0  ;;  %v2936_v10 = vadd.f32 %v9494_v34, %v2860_v42 }
 0x424   :  { %v3383_v15 = vmax.f32 %v3227_v46, 0.0  ;;  %v2938_v60 = vadd.f32 %v9494_v34, %v2862_v27  ;;  %v2939_v3 = vadd.f32 %v9499_v1, %v2863_v28  ;;  %v2572_v42 = vmul.f32 %v9448_v32, %v8533_v47 }
 0x425   :  { %v3384_v31 = vmax.f32 %v3229_v57, 0.0  ;;  %3340 = vmatprep.mubr.bf16.mxu1 %v2537_v26  ;;  %v2573_v62 = vmul.f32 %v9451_v36, %v8533_v47 }
 0x426   :  { %v3445_v11 = vpack.c.bf16 %v3383_v15, %v3381_v56  ;;  %3341 = vmatmul.mubr.bf16.gmra.mrb[112].mxu1 %v2536_v23  ;;  %v2655_v23 = vmul.f32 %v9460_v45, %v8541_v51  ;;  %v2800_v51 = vmul.f32 %v9469_v2, %v11585_v38 }
 0x427   :  { %v3446_v49 = vpack.c.bf16 %v3384_v31, %v3382_v13  ;;  %v2801_v13 = vmul.f32 %v9478_v58, %v11585_v38  ;;  %v11586_v31 = vld [vmem:[#allocation7_spill] sm:$0xff] }
 0x428   :  { %v3232_v24 = vpop.f32.mrb[68].mxu1  ;;  %v2574_v27 = vmul.f32 %v9448_v32, %v11586_v31 }
 0x429   :  { %v3233_v43 = vadd.f32 %v3232_v24, %v2936_v10  ;;  %v3234_v61 = vpop.f32.mrb[69].mxu1  ;;  %3715 = vmatprep.mubr.bf16.mxu0 %v3446_v49  ;;  %v2718_v49 = vadd.f32 %v2654_v50, %v2572_v42  ;;  %v2719_v10 = vadd.f32 %v2655_v23, %v2573_v62  ;;  %v11587_v24 = vld [vmem:[#allocation10_spill] sm:$0xff] }
 0x42a   :  { %v3235_v25 = vadd.f32 %v3234_v61, %v2937_v9  ;;  %v3236_v33 = vpop.f32.mrb[70].mxu1  ;;  %3716 = vmatmul.mubr.bf16.vlgmr.msra.gmra.mrb[128].mxu0 %v3445_v11  ;;  %v2656_v47 = vmul.f32 %v9457_v21, %v11587_v24  ;;  %v2575_v61 = vmul.f32 %v9451_v36, %v11586_v31 }
 0x42b   :  { %v3237_v30 = vadd.f32 %v3236_v33, %v2938_v60  ;;  %v3238_v15 = vpop.f32.mrb[71].mxu1  ;;  %v3385_v18 = vmax.f32 %v3233_v43, 0.0  ;;  %v2657_v60 = vmul.f32 %v9460_v45, %v11587_v24 }
 0x42c   :  { %v3239_v41 = vadd.f32 %v3238_v15, %v2939_v3  ;;  %v3386_v44 = vmax.f32 %v3235_v25, 0.0  ;;  %v11588_v3 = vld [vmem:[#allocation12_spill] sm:$0xff] }
 0x42d   :  { %v3387_v22 = vmax.f32 %v3237_v30, 0.0  ;;  %v2802_v30 = vmul.f32 %v9469_v2, %v11588_v3 }
 0x42e   :  { %v3388_v4 = vmax.f32 %v3239_v41, 0.0  ;;  %v2419_v17 = vpop.f32.mrb[116].mxu0  ;;  %v2803_v41 = vmul.f32 %v9478_v58, %v11588_v3  ;;  %v11590_v3 = vld [vmem:[#allocation13_spill] sm:$0xff] }
 0x42f   :  { %v3447_v46 = vpack.c.bf16 %v3387_v22, %v3385_v18  ;;  %v2420_v59 = vadd.f32 %v2419_v17, %v9370_v8  ;;  %v2421_v11 = vpop.f32.mrb[117].mxu0  ;;  %v2864_v22 = vadd.f32 %v2800_v51, %v2718_v49  ;;  %v2721_v17 = vadd.f32 %v2657_v60, %v2575_v61 }
 0x430   :  { %v3448_v29 = vpack.c.bf16 %v3388_v4, %v3386_v44  ;;  %v2422_v26 = vadd.f32 %v2421_v11, %v9374_v40  ;;  %v2423_v57 = vpop.f32.mrb[118].mxu0  ;;  %v2720_v44 = vadd.f32 %v2656_v47, %v2574_v27  ;;  %v2865_v4 = vadd.f32 %v2801_v13, %v2719_v10  ;;  %v11589_v10 = vld [vmem:[#allocation15_spill] sm:$0xff] }
 0x431   :  { %v2424_v56 = vadd.f32 %v2423_v57, %v9370_v8  ;;  %v2425_v39 = vpop.f32.mrb[119].mxu0  ;;  %v2500_v9 = vmax.f32 %v2420_v59, 0.0  ;;  %v2867_v23 = vadd.f32 %v2803_v41, %v2721_v17  ;;  %v2658_v24 = vmul.f32 %v9457_v21, %v11589_v10 }
 0x432   :  { %v2426_v28 = vadd.f32 %v2425_v39, %v9374_v40  ;;  %3725 = vmatprep.mubr.bf16.mxu0 %v3448_v29  ;;  %v2501_v25 = vmax.f32 %v2422_v26, 0.0  ;;  %v2866_v50 = vadd.f32 %v2802_v30, %v2720_v44  ;;  %v2941_v11 = vadd.f32 %v9499_v1, %v2865_v4  ;;  %v11592_v44 = vld [vmem:[#allocation16_spill] sm:$0xff] }
 0x433   :  { %v2502_v43 = vmax.f32 %v2424_v56, 0.0  ;;  %3726 = vmatmul.mubr.bf16.gmra.mrb[132].mxu0 %v3447_v46  ;;  %v2940_v46 = vadd.f32 %v9494_v34, %v2864_v22  ;;  %v2943_v56 = vadd.f32 %v9499_v1, %v2867_v23  ;;  %v2659_v61 = vmul.f32 %v9460_v45, %v11589_v10 }
 0x434   :  { %v2503_v33 = vmax.f32 %v2426_v28, 0.0  ;;  %v2942_v57 = vadd.f32 %v9494_v34, %v2866_v50  ;;  %v2576_v30 = vmul.f32 %v9448_v32, %v11590_v3  ;;  %v2804_v4 = vmul.f32 %v9469_v2, %v11592_v44 }
 0x435   :  { %v2538_v15 = vpack.c.bf16 %v2502_v43, %v2500_v9  ;;  %v2577_v17 = vmul.f32 %v9451_v36, %v11590_v3 }
 0x436   :  { %v2539_v18 = vpack.c.bf16 %v2503_v33, %v2501_v25 }
 0x438   :  { %3350 = vmatprep.mubr.bf16.mxu1 %v2539_v18 }
 0x439   :  { %3351 = vmatmul.mubr.bf16.gmra.mrb[116].mxu1 %v2538_v15  ;;  %v11591_v15 = vld [vmem:[#allocation8_spill] sm:$0xff] }
 0x43a   :  { %v2578_v41 = vmul.f32 %v9448_v32, %v11591_v15  ;;  %v2579_v50 = vmul.f32 %v9451_v36, %v11591_v15 }
 0x43b   :  { %v3242_v59 = vpop.f32.mrb[72].mxu1 }
 0x43c   :  { %v3243_v29 = vadd.f32 %v3242_v59, %v2940_v46  ;;  %v3244_v26 = vpop.f32.mrb[73].mxu1  ;;  %v2722_v46 = vadd.f32 %v2658_v24, %v2576_v30  ;;  %v2805_v59 = vmul.f32 %v9478_v58, %v11592_v44  ;;  %v7773_v44 = vld [vmem:[#allocation2 + $0x420] ss:$8 sps:$4 sm:$0xff]  }
 0x43d   :  { %v3245_v42 = vadd.f32 %v3244_v26, %v2941_v11  ;;  %v3246_v62 = vpop.f32.mrb[74].mxu1  ;;  %v11593_v11 = vld [vmem:[#allocation17_spill] sm:$0xff] }
 0x43e   :  { %v3247_v39 = vadd.f32 %v3246_v62, %v2942_v57  ;;  %v3248_v38 = vpop.f32.mrb[75].mxu1  ;;  %v3389_v13 = vmax.f32 %v3243_v29, 0.0  ;;  %v2660_v29 = vmul.f32 %v9457_v21, %v11593_v11  ;;  %v2661_v62 = vmul.f32 %v9460_v45, %v11593_v11 }
 0x43f   :  { %v3249_v51 = vadd.f32 %v3248_v38, %v2943_v56  ;;  %v3390_v27 = vmax.f32 %v3245_v42, 0.0  ;;  %v2723_v42 = vadd.f32 %v2659_v61, %v2577_v17  ;;  %v11594_v38 = vld [vmem:[#allocation18_spill] sm:$0xff]  ;;  %v2868_v10 = vadd.f32 %v2804_v4, %v2722_v46  ;;  %v7770_v61 = vld [vmem:[#allocation2 + $0x410] ss:$8 sps:$4 sm:$0xff]  }
 0x440   :  { %v3391_v31 = vmax.f32 %v3247_v39, 0.0  ;;  %v2724_v24 = vadd.f32 %v2660_v29, %v2578_v41 }
 0x441   :  { %v3392_v28 = vmax.f32 %v3249_v51, 0.0  ;;  %v2429_v49 = vpop.f32.mrb[120].mxu0  ;;  %v2806_v51 = vmul.f32 %v9469_v2, %v11594_v38  ;;  %v2944_v3 = vadd.f32 %v9494_v34, %v2868_v10 }
 0x442   :  { %v3449_v47 = vpack.c.bf16 %v3391_v31, %v3389_v13  ;;  %v2430_v9 = vadd.f32 %v2429_v49, %v9370_v8  ;;  %v2431_v43 = vpop.f32.mrb[121].mxu0  ;;  %v2807_v31 = vmul.f32 %v9478_v58, %v11594_v38 }
 0x443   :  { %v3450_v60 = vpack.c.bf16 %v3392_v28, %v3390_v27  ;;  %v2432_v25 = vadd.f32 %v2431_v43, %v9374_v40  ;;  %v2433_v33 = vpop.f32.mrb[122].mxu0  ;;  %v7767_v27 = vld [vmem:[#allocation2 + $0x400] ss:$8 sps:$4 sm:$0xff]   ;;  %v7769_v28 = vld [vmem:[#allocation2 + $0x404] ss:$8 sps:$4 sm:$0xff]   ;;  %v2870_v43 = vadd.f32 %v2806_v51, %v2724_v24  ;;  %v2663_v51 = vmul.f32 %v9460_v45, %v8635_v12 }
 0x444   :  { %v2434_v18 = vadd.f32 %v2433_v33, %v9370_v8  ;;  %v2435_v22 = vpop.f32.mrb[123].mxu0  ;;  %v2504_v26 = vmax.f32 %v2430_v9, 0.0  ;;  %v2869_v9 = vadd.f32 %v2805_v59, %v2723_v42  ;;  %4178 = vmatprep.subr.bf16.mxu1 %v7769_v28  ;;  %v7775_v33 = vld [vmem:[#allocation2 + $0x424] ss:$8 sps:$4 sm:$0xff]   ;;  %v2580_v28 = vmul.f32 %v9448_v32, %v8629_v55 }
 0x445   :  { %v2436_v23 = vadd.f32 %v2435_v22, %v9374_v40  ;;  %3735 = vmatprep.mubr.bf16.mxu0 %v3450_v60  ;;  %v2505_v56 = vmax.f32 %v2432_v25, 0.0  ;;  %4179 = vmatpush1.bf16.msra.mxu1 %v7767_v27  ;;  %v7772_v60 = vld [vmem:[#allocation2 + $0x414] ss:$8 sps:$4 sm:$0xff]   ;;  %v2946_v41 = vadd.f32 %v9494_v34, %v2870_v43  ;;  %v2581_v43 = vmul.f32 %v9451_v36, %v8629_v55 }
 0x446   :  { %v2506_v57 = vmax.f32 %v2434_v18, 0.0  ;;  %3736 = vmatmul.mubr.bf16.gmra.mrb[136].mxu0 %v3449_v47  ;;  %v2725_v47 = vadd.f32 %v2661_v62, %v2579_v50  ;;  %4180 = vmatprep.subr.bf16.mxu1 %v7772_v60  ;;  %v2945_v15 = vadd.f32 %v9499_v1, %v2869_v9  ;;  %v2662_v62 = vmul.f32 %v9457_v21, %v8635_v12  ;;  %v11595_v9 = vld [vmem:[#allocation19_spill] sm:$0xff] }
 0x447   :  { %v2507_v39 = vmax.f32 %v2436_v23, 0.0  ;;  %v2583_v12 = vmul.f32 %v9451_v36, %v8538_v63  ;;  %v7778_v60 = vld [vmem:[#allocation2 + $0x434] ss:$8 sps:$4 sm:$0xff]  }
 0x448   :  { %v2540_v13 = vpack.c.bf16 %v2506_v57, %v2504_v26  ;;  %v2871_v25 = vadd.f32 %v2807_v31, %v2725_v47  ;;  %v2808_v47 = vmul.f32 %v9469_v2, %v11595_v9 }
 0x449   :  { %v2541_v49 = vpack.c.bf16 %v2507_v39, %v2505_v56  ;;  %4181 = vmatpush1.bf16.msra.mxu1 %v7770_v61  ;;  %v7776_v61 = vld [vmem:[#allocation2 + $0x430] ss:$8 sps:$4 sm:$0xff]  }
 0x44a   :  { %v2947_v50 = vadd.f32 %v9499_v1, %v2871_v25  ;;  %4182 = vmatprep.subr.bf16.mxu1 %v7775_v33  ;;  %v2726_v33 = vadd.f32 %v2662_v62, %v2580_v28 }
 0x44b   :  { %3360 = vmatprep.mubr.bf16.mxu1 %v2541_v49  ;;  %v2582_v49 = vmul.f32 %v9448_v32, %v8538_v63 }
 0x44c   :  { %3361 = vmatmul.mubr.bf16.gmra.mrb[120].mxu1 %v2540_v13 }
 0x44d   :  { %4183 = vmatpush1.bf16.msra.mxu1 %v7773_v44 }
 0x44e   :  { %v3252_v30 = vpop.f32.mrb[76].mxu1  ;;  %4184 = vmatprep.subr.bf16.mxu1 %v7778_v60  ;;  %v7788_v60 = vld [vmem:[#allocation2 + $0x470] ss:$8 sps:$4 sm:$0xff]  }
 0x44f   :  { %v3253_v18 = vadd.f32 %v3252_v30, %v2944_v3  ;;  %v3254_v22 = vpop.f32.mrb[77].mxu1  ;;  %v2809_v3 = vmul.f32 %v9478_v58, %v11595_v9 }
 0x450   :  { %v3255_v4 = vadd.f32 %v3254_v22, %v2945_v15  ;;  %v3256_v17 = vpop.f32.mrb[78].mxu1  ;;  %v2727_v22 = vadd.f32 %v2663_v51, %v2581_v43 }
 0x451   :  { %v3257_v23 = vadd.f32 %v3256_v17, %v2946_v41  ;;  %v3258_v46 = vpop.f32.mrb[79].mxu1  ;;  %v3393_v11 = vmax.f32 %v3253_v18, 0.0  ;;  %4185 = vmatpush1.bf16.msra.mxu1 %v7776_v61  ;;  %v7779_v17 = vld [vmem:[#allocation2 + $0x440] ss:$8 sps:$4 sm:$0xff]  }
 0x452   :  { %v3259_v59 = vadd.f32 %v3258_v46, %v2947_v50  ;;  %v3394_v26 = vmax.f32 %v3255_v4, 0.0  ;;  %v2811_v4 = vmul.f32 %v9478_v58, %v8664_v48  ;;  %v7781_v50 = vld [vmem:[#allocation2 + $0x444] ss:$8 sps:$4 sm:$0xff]   ;;  %v2872_v46 = vadd.f32 %v2808_v47, %v2726_v33 }
 0x453   :  { %v3395_v29 = vmax.f32 %v3257_v23, 0.0  ;;  %4186 = vmatprep.subr.bf16.mxu1 %v7781_v50 }
 0x454   :  { %v3396_v57 = vmax.f32 %v3259_v59, 0.0  ;;  %v2439_v42 = vpop.f32.mrb[124].mxu0 }
 0x455   :  { %v3451_v56 = vpack.c.bf16 %v3395_v29, %v3393_v11  ;;  %v2440_v39 = vadd.f32 %v2439_v42, %v9370_v8  ;;  %v2441_v38 = vpop.f32.mrb[125].mxu0  ;;  %v7784_v11 = vld [vmem:[#allocation2 + $0x454] ss:$8 sps:$4 sm:$0xff]   ;;  %v2873_v29 = vadd.f32 %v2809_v3, %v2727_v22  ;;  %4187 = vmatpush1.bf16.msra.mxu1 %v7779_v17  ;;  %v7782_v42 = vld [vmem:[#allocation2 + $0x450] ss:$8 sps:$4 sm:$0xff]   ;;  %v2666_v3 = vmul.f32 %v9457_v21, %v8680_v53 }
 0x456   :  { %v3452_v13 = vpack.c.bf16 %v3396_v57, %v3394_v26  ;;  %v2442_v31 = vadd.f32 %v2441_v38, %v9374_v40  ;;  %v2443_v27 = vpop.f32.mrb[126].mxu0  ;;  %4188 = vmatprep.subr.bf16.mxu1 %v7784_v11  ;;  %v2585_v22 = vmul.f32 %v9451_v36, %v8674_v0  ;;  %v7793_v11 = vld [vmem:[#allocation2 + $0x484] ss:$8 sps:$4 sm:$0xff]  }
 0x457   :  { %v2444_v10 = vadd.f32 %v2443_v27, %v9370_v8  ;;  %v2445_v24 = vpop.f32.mrb[127].mxu0  ;;  %v11596_v8 = vld [vmem:[#allocation20_spill] sm:$0xff]  ;;  %v2508_v15 = vmax.f32 %v2440_v39, 0.0  ;;  %v2948_v39 = vadd.f32 %v9494_v34, %v2872_v46  ;;  %v2949_v38 = vadd.f32 %v9499_v1, %v2873_v29  ;;  %v7785_v27 = vld [vmem:[#allocation2 + $0x460] ss:$8 sps:$4 sm:$0xff]  }
 0x458   :  { %v2446_v25 = vadd.f32 %v2445_v24, %v9374_v40  ;;  %3745 = vmatprep.mubr.bf16.mxu0 %v3452_v13  ;;  %v2664_v30 = vmul.f32 %v9457_v21, %v11596_v8  ;;  %v2665_v55 = vmul.f32 %v9460_v45, %v11596_v8  ;;  %v2509_v63 = vmax.f32 %v2442_v31, 0.0  ;;  %v7790_v24 = vld [vmem:[#allocation2 + $0x474] ss:$8 sps:$4 sm:$0xff]  }
 0x459   :  { %v2510_v18 = vmax.f32 %v2444_v10, 0.0  ;;  %3746 = vmatmul.mubr.bf16.gmra.mrb[140].mxu0 %v3451_v56  ;;  %v2810_v40 = vmul.f32 %v9469_v2, %v8664_v48  ;;  %v7787_v56 = vld [vmem:[#allocation2 + $0x464] ss:$8 sps:$4 sm:$0xff]   ;;  %4189 = vmatpush1.bf16.msra.mxu1 %v7782_v42  ;;  %v2814_v46 = vmul.f32 %v9469_v2, %v8709_v16  ;;  %v2815_v29 = vmul.f32 %v9478_v58, %v8709_v16 }
 0x45a   :  { %v2511_v41 = vmax.f32 %v2446_v25, 0.0  ;;  %v2728_v59 = vadd.f32 %v2664_v30, %v2582_v49  ;;  %v2729_v26 = vadd.f32 %v2665_v55, %v2583_v12  ;;  %4190 = vmatprep.subr.bf16.mxu1 %v7787_v56  ;;  %v2667_v30 = vmul.f32 %v9460_v45, %v8680_v53 }
 0x45b   :  { %v2542_v44 = vpack.c.bf16 %v2510_v18, %v2508_v15  ;;  %v2584_v18 = vmul.f32 %v9448_v32, %v8674_v0 }
 0x45c   :  { %v2543_v23 = vpack.c.bf16 %v2511_v41, %v2509_v63  ;;  %v2874_v57 = vadd.f32 %v2810_v40, %v2728_v59  ;;  %v2875_v62 = vadd.f32 %v2811_v4, %v2729_v26  ;;  %v11597_v63 = vld [vmem:[#allocation21_spill] sm:$0xff]  ;;  %v11599_v4 = vld [vmem:[#allocation22_spill] sm:$0xff]  ;;  %v2731_v53 = vadd.f32 %v2667_v30, %v2585_v22  ;;  %v7796_v26 = vld [vmem:[#allocation2 + $0x494] ss:$8 sps:$4 sm:$0xff]  }
 0x45d   :  { %4191 = vmatpush1.bf16.msra.mxu1 %v7785_v27  ;;  %v2730_v55 = vadd.f32 %v2666_v3, %v2584_v18  ;;  %v2812_v41 = vmul.f32 %v9469_v2, %v11597_v63  ;;  %v11598_v40 = vld [vmem:[#allocation9_spill] sm:$0xff]  ;;  %v2668_v17 = vmul.f32 %v9457_v21, %v11599_v4  ;;  %v2813_v50 = vmul.f32 %v9478_v58, %v11597_v63 }
 0x45e   :  { %3370 = vmatprep.mubr.bf16.mxu1 %v2543_v23  ;;  %v2950_v31 = vadd.f32 %v9494_v34, %v2874_v57  ;;  %v2951_v10 = vadd.f32 %v9499_v1, %v2875_v62  ;;  %4192 = vmatprep.subr.bf16.mxu1 %v7790_v24  ;;  %v2587_v0 = vmul.f32 %v9451_v36, %v11598_v40  ;;  %v7791_v59 = vld [vmem:[#allocation2 + $0x480] ss:$8 sps:$4 sm:$0xff]   ;;  %v7802_v24 = vld [vmem:[#allocation2 + $0x4b4] ss:$8 sps:$4 sm:$0xff]  }
 0x45f   :  { %3371 = vmatmul.mubr.bf16.gmra.mrb[124].mxu1 %v2542_v44  ;;  %v2586_v44 = vmul.f32 %v9448_v32, %v11598_v40  ;;  %v2669_v23 = vmul.f32 %v9460_v45, %v11599_v4  ;;  %v2876_v57 = vadd.f32 %v2812_v41, %v2730_v55  ;;  %v2877_v62 = vadd.f32 %v2813_v50, %v2731_v53  ;;  %v7803_v40 = vld [vmem:[#allocation2 + $0x4c0] ss:$8 sps:$4 sm:$0xff]   ;;  %v11601_v50 = vld [vmem:[#allocation11_spill] sm:$0xff] }
 0x460   :  { %v2670_v18 = vmul.f32 %v9457_v21, %v8725_v52  ;;  %v2671_v55 = vmul.f32 %v9460_v45, %v8725_v52  ;;  %v2588_v41 = vmul.f32 %v9448_v32, %v8719_v6 }
 0x461   :  { %v3262_v48 = vpop.f32.mrb[80].mxu1  ;;  %4193 = vmatpush1.bf16.msra.mxu1 %v7788_v60  ;;  %v2732_v42 = vadd.f32 %v2668_v17, %v2586_v44  ;;  %v2733_v56 = vadd.f32 %v2669_v23, %v2587_v0  ;;  %v2953_v27 = vadd.f32 %v9499_v1, %v2877_v62  ;;  %v2589_v44 = vmul.f32 %v9451_v36, %v8719_v6  ;;  %v11600_v17 = vld [vmem:[#allocation23_spill] sm:$0xff]  ;;  %v11602_v23 = vld [vmem:[#allocation24_spill] sm:$0xff] }
 0x462   :  { %v3263_v51 = vadd.f32 %v3262_v48, %v2948_v39  ;;  %v3264_v13 = vpop.f32.mrb[81].mxu1  ;;  %4194 = vmatprep.subr.bf16.mxu1 %v7793_v11  ;;  %v7794_v39 = vld [vmem:[#allocation2 + $0x490] ss:$8 sps:$4 sm:$0xff]   ;;  %v2734_v4 = vadd.f32 %v2670_v18, %v2588_v41  ;;  %v2816_v53 = vmul.f32 %v9469_v2, %v11600_v17  ;;  %v2590_v0 = vmul.f32 %v9448_v32, %v11601_v50 }
 0x463   :  { %v3265_v28 = vadd.f32 %v3264_v13, %v2949_v38  ;;  %v3266_v49 = vpop.f32.mrb[82].mxu1  ;;  %v2878_v48 = vadd.f32 %v2814_v46, %v2732_v42  ;;  %v7799_v38 = vld [vmem:[#allocation2 + $0x4a4] ss:$8 sps:$4 sm:$0xff]   ;;  %v2952_v13 = vadd.f32 %v9494_v34, %v2876_v57  ;;  %v2672_v52 = vmul.f32 %v9457_v21, %v11602_v23  ;;  %v7806_v57 = vld [vmem:[#allocation2 + $0x4d0] ss:$8 sps:$4 sm:$0xff]  }
 0x464   :  { %v3267_v9 = vadd.f32 %v3266_v49, %v2950_v31  ;;  %v3268_v47 = vpop.f32.mrb[83].mxu1  ;;  %v3397_v12 = vmax.f32 %v3263_v51, 0.0  ;;  %v2879_v51 = vadd.f32 %v2815_v29, %v2733_v56  ;;  %v2735_v46 = vadd.f32 %v2671_v55, %v2589_v44  ;;  %v7808_v42 = vld [vmem:[#allocation2 + $0x4d4] ss:$8 sps:$4 sm:$0xff]  }
 0x465   :  { %v3269_v43 = vadd.f32 %v3268_v47, %v2951_v10  ;;  %v3398_v25 = vmax.f32 %v3265_v28, 0.0  ;;  %4195 = vmatpush1.bf16.msra.mxu1 %v7791_v59  ;;  %v7797_v28 = vld [vmem:[#allocation2 + $0x4a0] ss:$8 sps:$4 sm:$0xff]   ;;  %v2954_v10 = vadd.f32 %v9494_v34, %v2878_v48  ;;  %v2817_v59 = vmul.f32 %v9478_v58, %v11600_v17 }
 0x466   :  { %v3399_v61 = vmax.f32 %v3267_v9, 0.0  ;;  %4196 = vmatprep.subr.bf16.mxu1 %v7796_v26  ;;  %v2591_v6 = vmul.f32 %v9451_v36, %v11601_v50  ;;  %v2673_v11 = vmul.f32 %v9460_v45, %v11602_v23  ;;  %v2818_v29 = vmul.f32 %v9469_v2, %v8754_v14 }
 0x467   :  { %v3400_v33 = vmax.f32 %v3269_v43, 0.0  ;;  %v2955_v43 = vadd.f32 %v9499_v1, %v2879_v51  ;;  %v2819_v26 = vmul.f32 %v9478_v58, %v8754_v14  ;;  %v2880_v62 = vadd.f32 %v2816_v53, %v2734_v4  ;;  %v11604_v4 = vld [vmem:[#allocation26_spill] sm:$0xff] }
 0x468   :  { %v3453_v8 = vpack.c.bf16 %v3399_v61, %v3397_v12  ;;  %v2736_v56 = vadd.f32 %v2672_v52, %v2590_v0  ;;  %v2737_v48 = vadd.f32 %v2673_v11, %v2591_v6  ;;  %v2820_v17 = vmul.f32 %v9469_v2, %v11604_v4  ;;  %v11605_v53 = vld [vmem:[#allocation14_spill] sm:$0xff]  ;;  %v11606_v0 = vld [vmem:[#allocation27_spill] sm:$0xff]  ;;  %v11607_v6 = vld [vmem:[#allocation29_spill] sm:$0xff] }
 0x469   :  { %v3454_v15 = vpack.c.bf16 %v3400_v33, %v3398_v25  ;;  %4197 = vmatpush1.bf16.msra.mxu1 %v7794_v39  ;;  %v7800_v25 = vld [vmem:[#allocation2 + $0x4b0] ss:$8 sps:$4 sm:$0xff]   ;;  %v2881_v39 = vadd.f32 %v2817_v59, %v2735_v46  ;;  %v2594_v50 = vmul.f32 %v9448_v32, %v11605_v53  ;;  %v2676_v23 = vmul.f32 %v9457_v21, %v11606_v0 }
 0x46a   :  { %4198 = vmatprep.subr.bf16.mxu1 %v7799_v38  ;;  %v2882_v38 = vadd.f32 %v2818_v29, %v2736_v56  ;;  %v2883_v51 = vadd.f32 %v2819_v26, %v2737_v48  ;;  %v2821_v52 = vmul.f32 %v9478_v58, %v11604_v4  ;;  %v2595_v46 = vmul.f32 %v9451_v36, %v11605_v53 }
 0x46b   :  { %3755 = vmatprep.mubr.bf16.mxu0 %v3454_v15  ;;  %v2677_v59 = vmul.f32 %v9460_v45, %v11606_v0  ;;  %v2822_v11 = vmul.f32 %v9469_v2, %v11607_v6  ;;  %v2823_v29 = vmul.f32 %v9478_v58, %v11607_v6  ;;  %v11613_v0 = vld [vmem:[#allocation36_spill] sm:$0xff] }
 0x46c   :  { %3756 = vmatmul.mubr.bf16.gmra.mrb[144].mxu0 %v3453_v8  ;;  %v7805_v8 = vld [vmem:[#allocation2 + $0x4c4] ss:$8 sps:$4 sm:$0xff]  }
 0x46d   :  { %4199 = vmatpush1.bf16.msra.mxu1 %v7797_v28  ;;  %v7814_v28 = vld [vmem:[#allocation2 + $0x4f4] ss:$8 sps:$4 sm:$0xff]  }
 0x46e   :  { %4200 = vmatprep.subr.bf16.mxu1 %v7802_v24  ;;  %v2958_v24 = vadd.f32 %v9494_v34, %v2882_v38 }
 0x471   :  { %4201 = vmatpush1.bf16.msra.mxu1 %v7800_v25 }
 0x472   :  { %4202 = vmatprep.subr.bf16.mxu1 %v7805_v8 }
 0x474   :  { %v3272_v31 = vpop.f32.mrb[84].mxu1 }
 0x475   :  { %v3273_v16 = vadd.f32 %v3272_v31, %v2952_v13  ;;  %v3274_v49 = vpop.f32.mrb[85].mxu1  ;;  %4203 = vmatpush1.bf16.msra.mxu1 %v7803_v40  ;;  %v7809_v13 = vld [vmem:[#allocation2 + $0x4e0] ss:$8 sps:$4 sm:$0xff]   ;;  %v7811_v31 = vld [vmem:[#allocation2 + $0x4e4] ss:$8 sps:$4 sm:$0xff]  }
 0x476   :  { %v3275_v9 = vadd.f32 %v3274_v49, %v2953_v27  ;;  %v3276_v47 = vpop.f32.mrb[86].mxu1  ;;  %4204 = vmatprep.subr.bf16.mxu1 %v7808_v42  ;;  %v2956_v27 = vadd.f32 %v9494_v34, %v2880_v62  ;;  %v2957_v49 = vadd.f32 %v9499_v1, %v2881_v39  ;;  %v2741_v62 = vadd.f32 %v2677_v59, %v2595_v46 }
 0x477   :  { %v3277_v12 = vadd.f32 %v3276_v47, %v2954_v10  ;;  %v3278_v61 = vpop.f32.mrb[87].mxu1  ;;  %v3401_v33 = vmax.f32 %v3273_v16, 0.0 }
 0x478   :  { %v3279_v60 = vadd.f32 %v3278_v61, %v2955_v43  ;;  %v3402_v30 = vmax.f32 %v3275_v9, 0.0  ;;  %v7812_v9 = vld [vmem:[#allocation2 + $0x4f0] ss:$8 sps:$4 sm:$0xff]   ;;  %v2887_v39 = vadd.f32 %v2823_v29, %v2741_v62 }
 0x479   :  { %v3403_v3 = vmax.f32 %v3277_v12, 0.0  ;;  %4205 = vmatpush1.bf16.msra.mxu1 %v7806_v57  ;;  %v2959_v12 = vadd.f32 %v9499_v1, %v2883_v51  ;;  %v2740_v57 = vadd.f32 %v2676_v23, %v2594_v50  ;;  %v2826_v23 = vmul.f32 %v9469_v2, %v11613_v0 }
 0x47a   :  { %v3404_v15 = vmax.f32 %v3279_v60, 0.0  ;;  %4206 = vmatprep.subr.bf16.mxu1 %v7811_v31 }
 0x47b   :  { %v3455_v22 = vpack.c.bf16 %v3403_v3, %v3401_v33  ;;  %v2886_v56 = vadd.f32 %v2822_v11, %v2740_v57 }
 0x47c   :  { %v3456_v63 = vpack.c.bf16 %v3404_v15, %v3402_v30  ;;  %v2674_v15 = vmul.f32 %v9457_v21, %v8770_v35 }
 0x47d   :  { %4207 = vmatpush1.bf16.msra.mxu1 %v7809_v13 }
 0x47e   :  { %3765 = vmatprep.mubr.bf16.mxu0 %v3456_v63  ;;  %4208 = vmatprep.subr.bf16.mxu1 %v7814_v28  ;;  %v11603_v63 = vld [vmem:[#allocation25_spill] sm:$0xff] }
 0x47f   :  { %3766 = vmatmul.mubr.bf16.gmra.mrb[148].mxu0 %v3455_v22  ;;  %v2675_v22 = vmul.f32 %v9460_v45, %v8770_v35  ;;  %v2592_v41 = vmul.f32 %v9448_v32, %v11603_v63  ;;  %v2593_v40 = vmul.f32 %v9451_v36, %v11603_v63  ;;  %v11611_v63 = vld [vmem:[#allocation34_spill] sm:$0xff] }
 0x480   :  { %v2599_v53 = vmul.f32 %v9451_v36, %v11611_v63 }
 0x481   :  { %4209 = vmatpush1.bf16.msra.mxu1 %v7812_v9  ;;  %v2738_v44 = vadd.f32 %v2674_v15, %v2592_v41  ;;  %v2739_v35 = vadd.f32 %v2675_v22, %v2593_v40  ;;  %v11610_v22 = vld [vmem:[#allocation28_spill] sm:$0xff]  ;;  %v2598_v41 = vmul.f32 %v9448_v32, %v11611_v63  ;;  %v11612_v40 = vld [vmem:[#allocation35_spill] sm:$0xff] }
 0x482   :  { %v2681_v50 = vmul.f32 %v9460_v45, %v11612_v40 }
 0x483   :  { %v2884_v26 = vadd.f32 %v2820_v17, %v2738_v44  ;;  %v2885_v42 = vadd.f32 %v2821_v52, %v2739_v35  ;;  %v2680_v44 = vmul.f32 %v9457_v21, %v11612_v40  ;;  %v2825_v17 = vmul.f32 %v9478_v58, %v11610_v22  ;;  %v11619_v40 = vld [vmem:[#allocation41_spill] sm:$0xff] }
 0x484   :  { %v2827_v35 = vmul.f32 %v9478_v58, %v11613_v0  ;;  %v2745_v6 = vadd.f32 %v2681_v50, %v2599_v53 }
 0x485   :  { %v2960_v48 = vadd.f32 %v9494_v34, %v2884_v26  ;;  %v2961_v51 = vadd.f32 %v9499_v1, %v2885_v42  ;;  %v2744_v46 = vadd.f32 %v2680_v44, %v2598_v41  ;;  %v2830_v44 = vmul.f32 %v9469_v2, %v11619_v40 }
 0x486   :  { %v2891_v29 = vadd.f32 %v2827_v35, %v2745_v6 }
 0x487   :  { %v3282_v16 = vpop.f32.mrb[88].mxu1  ;;  %v2890_v11 = vadd.f32 %v2826_v23, %v2744_v46 }
 0x488   :  { %v3283_v14 = vadd.f32 %v3282_v16, %v2956_v27  ;;  %v3284_v10 = vpop.f32.mrb[89].mxu1  ;;  %v2962_v27 = vadd.f32 %v9494_v34, %v2886_v56 }
 0x489   :  { %v3285_v47 = vadd.f32 %v3284_v10, %v2957_v49  ;;  %v3286_v43 = vpop.f32.mrb[90].mxu1  ;;  %v2963_v49 = vadd.f32 %v9499_v1, %v2887_v39  ;;  %v2966_v39 = vadd.f32 %v9494_v34, %v2890_v11 }
 0x48a   :  { %v3287_v61 = vadd.f32 %v3286_v43, %v2958_v24  ;;  %v3288_v60 = vpop.f32.mrb[91].mxu1  ;;  %v3405_v33 = vmax.f32 %v3283_v14, 0.0 }
 0x48b   :  { %v3289_v25 = vadd.f32 %v3288_v60, %v2959_v12  ;;  %v3406_v8 = vmax.f32 %v3285_v47, 0.0 }
 0x48c   :  { %v3407_v3 = vmax.f32 %v3287_v61, 0.0  ;;  %v11608_v61 = vld [vmem:[#allocation33_spill] sm:$0xff] }
 0x48d   :  { %v3408_v30 = vmax.f32 %v3289_v25, 0.0  ;;  %v2678_v60 = vmul.f32 %v9457_v21, %v11608_v61 }
 0x48e   :  { %v3457_v18 = vpack.c.bf16 %v3407_v3, %v3405_v33  ;;  %v2679_v33 = vmul.f32 %v9460_v45, %v11608_v61 }
 0x48f   :  { %v3458_v55 = vpack.c.bf16 %v3408_v30, %v3406_v8  ;;  %v11609_v8 = vld [vmem:[#allocation31_spill] sm:$0xff] }
 0x490   :  { %v2596_v30 = vmul.f32 %v9448_v32, %v11609_v8  ;;  %v2597_v15 = vmul.f32 %v9451_v36, %v11609_v8  ;;  %v11617_v8 = vld [vmem:[#allocation39_spill] sm:$0xff] }
 0x491   :  { %3775 = vmatprep.mubr.bf16.mxu0 %v3458_v55  ;;  %v2824_v55 = vmul.f32 %v9469_v2, %v11610_v22  ;;  %v2603_v63 = vmul.f32 %v9451_v36, %v11617_v8 }
 0x492   :  { %3776 = vmatmul.mubr.bf16.gmra.mrb[152].mxu0 %v3457_v18  ;;  %v2742_v18 = vadd.f32 %v2678_v60, %v2596_v30  ;;  %v2743_v4 = vadd.f32 %v2679_v33, %v2597_v15  ;;  %v11616_v33 = vld [vmem:[#allocation30_spill] sm:$0xff]  ;;  %v2602_v30 = vmul.f32 %v9448_v32, %v11617_v8  ;;  %v11618_v15 = vld [vmem:[#allocation40_spill] sm:$0xff] }
 0x493   :  { %v2685_v41 = vmul.f32 %v9460_v45, %v11618_v15 }
 0x494   :  { %v2888_v52 = vadd.f32 %v2824_v55, %v2742_v18  ;;  %v2889_v59 = vadd.f32 %v2825_v17, %v2743_v4  ;;  %v2684_v18 = vmul.f32 %v9457_v21, %v11618_v15  ;;  %v2829_v55 = vmul.f32 %v9478_v58, %v11616_v33  ;;  %v11625_v15 = vld [vmem:[#allocation48_spill] sm:$0xff] }
 0x495   :  { %v2831_v4 = vmul.f32 %v9478_v58, %v11619_v40  ;;  %v2749_v0 = vadd.f32 %v2685_v41, %v2603_v63 }
 0x496   :  { %v2964_v26 = vadd.f32 %v9494_v34, %v2888_v52  ;;  %v2965_v42 = vadd.f32 %v9499_v1, %v2889_v59  ;;  %v2748_v53 = vadd.f32 %v2684_v18, %v2602_v30  ;;  %v2834_v18 = vmul.f32 %v9469_v2, %v11625_v15 }
 0x497   :  { %v2895_v35 = vadd.f32 %v2831_v4, %v2749_v0 }
 0x498   :  { %v2894_v23 = vadd.f32 %v2830_v44, %v2748_v53 }
 0x49a   :  { %v3292_v38 = vpop.f32.mrb[92].mxu1 }
 0x49b   :  { %v3293_v13 = vadd.f32 %v3292_v38, %v2960_v48  ;;  %v3294_v31 = vpop.f32.mrb[93].mxu1 }
 0x49c   :  { %v3295_v28 = vadd.f32 %v3294_v31, %v2961_v51  ;;  %v3296_v16 = vpop.f32.mrb[94].mxu1  ;;  %v2967_v51 = vadd.f32 %v9499_v1, %v2891_v29  ;;  %v2970_v29 = vadd.f32 %v9494_v34, %v2894_v23 }
 0x49d   :  { %v3297_v14 = vadd.f32 %v3296_v16, %v2962_v27  ;;  %v3298_v10 = vpop.f32.mrb[95].mxu1  ;;  %v3409_v9 = vmax.f32 %v3293_v13, 0.0 }
 0x49e   :  { %v3299_v24 = vadd.f32 %v3298_v10, %v2963_v49  ;;  %v3410_v43 = vmax.f32 %v3295_v28, 0.0  ;;  %v11614_v10 = vld [vmem:[#allocation38_spill] sm:$0xff] }
 0x49f   :  { %v3411_v47 = vmax.f32 %v3297_v14, 0.0 }
 0x4a0   :  { %v3412_v12 = vmax.f32 %v3299_v24, 0.0  ;;  %v2682_v24 = vmul.f32 %v9457_v21, %v11614_v10 }
 0x4a1   :  { %v3459_v25 = vpack.c.bf16 %v3411_v47, %v3409_v9  ;;  %v2683_v47 = vmul.f32 %v9460_v45, %v11614_v10 }
 0x4a2   :  { %v3460_v3 = vpack.c.bf16 %v3412_v12, %v3410_v43  ;;  %v11615_v12 = vld [vmem:[#allocation37_spill] sm:$0xff] }
 0x4a3   :  { %v2600_v61 = vmul.f32 %v9448_v32, %v11615_v12  ;;  %v2601_v60 = vmul.f32 %v9451_v36, %v11615_v12  ;;  %v11623_v12 = vld [vmem:[#allocation43_spill] sm:$0xff] }
 0x4a4   :  { %3785 = vmatprep.mubr.bf16.mxu0 %v3460_v3  ;;  %v2828_v3 = vmul.f32 %v9469_v2, %v11616_v33  ;;  %v2607_v8 = vmul.f32 %v9451_v36, %v11623_v12 }
 0x4a5   :  { %3786 = vmatmul.mubr.bf16.gmra.mrb[156].mxu0 %v3459_v25  ;;  %v2746_v25 = vadd.f32 %v2682_v24, %v2600_v61  ;;  %v2747_v22 = vadd.f32 %v2683_v47, %v2601_v60  ;;  %v11622_v47 = vld [vmem:[#allocation32_spill] sm:$0xff]  ;;  %v2606_v61 = vmul.f32 %v9448_v32, %v11623_v12  ;;  %v11624_v60 = vld [vmem:[#allocation46_spill] sm:$0xff] }
 0x4a6   :  { %v2689_v30 = vmul.f32 %v9460_v45, %v11624_v60 }
 0x4a7   :  { %v2892_v17 = vadd.f32 %v2828_v3, %v2746_v25  ;;  %v2893_v50 = vadd.f32 %v2829_v55, %v2747_v22  ;;  %v2688_v25 = vmul.f32 %v9457_v21, %v11624_v60  ;;  %v2833_v3 = vmul.f32 %v9478_v58, %v11622_v47  ;;  %v11631_v60 = vld [vmem:[#allocation54_spill] sm:$0xff] }
 0x4a8   :  { %v2835_v22 = vmul.f32 %v9478_v58, %v11625_v15  ;;  %v2753_v40 = vadd.f32 %v2689_v30, %v2607_v8 }
 0x4a9   :  { %v2968_v52 = vadd.f32 %v9494_v34, %v2892_v17  ;;  %v2969_v59 = vadd.f32 %v9499_v1, %v2893_v50  ;;  %v2752_v63 = vadd.f32 %v2688_v25, %v2606_v61  ;;  %v2838_v25 = vmul.f32 %v9469_v2, %v11631_v60 }
 0x4aa   :  { %v2899_v4 = vadd.f32 %v2835_v22, %v2753_v40 }
 0x4ab   :  { %v2898_v44 = vadd.f32 %v2834_v18, %v2752_v63 }
 0x4ad   :  { %v3302_v57 = vpop.f32.mrb[96].mxu1 }
 0x4ae   :  { %v3303_v62 = vadd.f32 %v3302_v57, %v2964_v26  ;;  %v3304_v56 = vpop.f32.mrb[97].mxu1 }
 0x4af   :  { %v3305_v48 = vadd.f32 %v3304_v56, %v2965_v42  ;;  %v3306_v38 = vpop.f32.mrb[98].mxu1  ;;  %v2971_v42 = vadd.f32 %v9499_v1, %v2895_v35  ;;  %v2974_v35 = vadd.f32 %v9494_v34, %v2898_v44 }
 0x4b0   :  { %v3307_v13 = vadd.f32 %v3306_v38, %v2966_v39  ;;  %v3308_v31 = vpop.f32.mrb[99].mxu1  ;;  %v3413_v28 = vmax.f32 %v3303_v62, 0.0 }
 0x4b1   :  { %v3309_v27 = vadd.f32 %v3308_v31, %v2967_v51  ;;  %v3414_v49 = vmax.f32 %v3305_v48, 0.0  ;;  %v11620_v31 = vld [vmem:[#allocation44_spill] sm:$0xff] }
 0x4b2   :  { %v3415_v16 = vmax.f32 %v3307_v13, 0.0 }
 0x4b3   :  { %v3416_v14 = vmax.f32 %v3309_v27, 0.0  ;;  %v2686_v27 = vmul.f32 %v9457_v21, %v11620_v31 }
 0x4b4   :  { %v3461_v9 = vpack.c.bf16 %v3415_v16, %v3413_v28  ;;  %v2687_v16 = vmul.f32 %v9460_v45, %v11620_v31 }
 0x4b5   :  { %v3462_v43 = vpack.c.bf16 %v3416_v14, %v3414_v49  ;;  %v11621_v14 = vld [vmem:[#allocation42_spill] sm:$0xff] }
 0x4b6   :  { %v2604_v10 = vmul.f32 %v9448_v32, %v11621_v14  ;;  %v2605_v24 = vmul.f32 %v9451_v36, %v11621_v14  ;;  %v11629_v14 = vld [vmem:[#allocation45_spill] sm:$0xff] }
 0x4b7   :  { %3795 = vmatprep.mubr.bf16.mxu0 %v3462_v43  ;;  %v2832_v43 = vmul.f32 %v9469_v2, %v11622_v47  ;;  %v2611_v12 = vmul.f32 %v9451_v36, %v11629_v14 }
 0x4b8   :  { %3796 = vmatmul.mubr.bf16.gmra.mrb[160].mxu0 %v3461_v9  ;;  %v2750_v9 = vadd.f32 %v2686_v27, %v2604_v10  ;;  %v2751_v33 = vadd.f32 %v2687_v16, %v2605_v24  ;;  %v11628_v16 = vld [vmem:[#allocation52_spill] sm:$0xff]  ;;  %v2610_v10 = vmul.f32 %v9448_v32, %v11629_v14  ;;  %v11630_v24 = vld [vmem:[#allocation53_spill] sm:$0xff] }
 0x4b9   :  { %v2693_v61 = vmul.f32 %v9460_v45, %v11630_v24 }
 0x4ba   :  { %v2896_v55 = vadd.f32 %v2832_v43, %v2750_v9  ;;  %v2897_v41 = vadd.f32 %v2833_v3, %v2751_v33  ;;  %v2692_v9 = vmul.f32 %v9457_v21, %v11630_v24  ;;  %v2837_v43 = vmul.f32 %v9478_v58, %v11628_v16  ;;  %v11637_v24 = vld [vmem:[#allocation59_spill] sm:$0xff] }
 0x4bb   :  { %v2839_v33 = vmul.f32 %v9478_v58, %v11631_v60  ;;  %v2757_v15 = vadd.f32 %v2693_v61, %v2611_v12 }
 0x4bc   :  { %v2972_v17 = vadd.f32 %v9494_v34, %v2896_v55  ;;  %v2973_v50 = vadd.f32 %v9499_v1, %v2897_v41  ;;  %v2756_v8 = vadd.f32 %v2692_v9, %v2610_v10  ;;  %v2842_v9 = vmul.f32 %v9469_v2, %v11637_v24 }
 0x4bd   :  { %v2903_v22 = vadd.f32 %v2839_v33, %v2757_v15 }
 0x4be   :  { %v2902_v18 = vadd.f32 %v2838_v25, %v2756_v8 }
 0x4c0   :  { %v3312_v46 = vpop.f32.mrb[100].mxu1 }
 0x4c1   :  { %v3313_v6 = vadd.f32 %v3312_v46, %v2968_v52  ;;  %v3314_v11 = vpop.f32.mrb[101].mxu1 }
 0x4c2   :  { %v3315_v26 = vadd.f32 %v3314_v11, %v2969_v59  ;;  %v3316_v57 = vpop.f32.mrb[102].mxu1  ;;  %v2975_v59 = vadd.f32 %v9499_v1, %v2899_v4  ;;  %v2978_v4 = vadd.f32 %v9494_v34, %v2902_v18 }
 0x4c3   :  { %v3317_v62 = vadd.f32 %v3316_v57, %v2970_v29  ;;  %v3318_v56 = vpop.f32.mrb[103].mxu1  ;;  %v3417_v48 = vmax.f32 %v3313_v6, 0.0 }
 0x4c4   :  { %v3319_v39 = vadd.f32 %v3318_v56, %v2971_v42  ;;  %v3418_v51 = vmax.f32 %v3315_v26, 0.0  ;;  %v11626_v56 = vld [vmem:[#allocation51_spill] sm:$0xff] }
 0x4c5   :  { %v3419_v38 = vmax.f32 %v3317_v62, 0.0 }
 0x4c6   :  { %v3420_v13 = vmax.f32 %v3319_v39, 0.0  ;;  %v2690_v39 = vmul.f32 %v9457_v21, %v11626_v56 }
 0x4c7   :  { %v3463_v28 = vpack.c.bf16 %v3419_v38, %v3417_v48  ;;  %v2691_v38 = vmul.f32 %v9460_v45, %v11626_v56 }
 0x4c8   :  { %v3464_v49 = vpack.c.bf16 %v3420_v13, %v3418_v51  ;;  %v11627_v13 = vld [vmem:[#allocation49_spill] sm:$0xff] }
 0x4c9   :  { %v2608_v31 = vmul.f32 %v9448_v32, %v11627_v13  ;;  %v2609_v27 = vmul.f32 %v9451_v36, %v11627_v13  ;;  %v11635_v13 = vld [vmem:[#allocation47_spill] sm:$0xff] }
 0x4ca   :  { %3805 = vmatprep.mubr.bf16.mxu0 %v3464_v49  ;;  %v2836_v49 = vmul.f32 %v9469_v2, %v11628_v16  ;;  %v2615_v14 = vmul.f32 %v9451_v36, %v11635_v13 }
 0x4cb   :  { %3806 = vmatmul.mubr.bf16.gmra.mrb[164].mxu0 %v3463_v28  ;;  %v2754_v28 = vadd.f32 %v2690_v39, %v2608_v31  ;;  %v2755_v47 = vadd.f32 %v2691_v38, %v2609_v27  ;;  %v11634_v38 = vld [vmem:[#allocation57_spill] sm:$0xff]  ;;  %v2614_v31 = vmul.f32 %v9448_v32, %v11635_v13  ;;  %v11636_v27 = vld [vmem:[#allocation58_spill] sm:$0xff] }
 0x4cc   :  { %v2697_v10 = vmul.f32 %v9460_v45, %v11636_v27 }
 0x4cd   :  { %v2900_v3 = vadd.f32 %v2836_v49, %v2754_v28  ;;  %v2901_v30 = vadd.f32 %v2837_v43, %v2755_v47  ;;  %v2696_v28 = vmul.f32 %v9457_v21, %v11636_v27  ;;  %v2841_v49 = vmul.f32 %v9478_v58, %v11634_v38 }
 0x4ce   :  { %v2843_v47 = vmul.f32 %v9478_v58, %v11637_v24  ;;  %v2761_v60 = vadd.f32 %v2697_v10, %v2615_v14 }
 0x4cf   :  { %v2976_v55 = vadd.f32 %v9494_v34, %v2900_v3  ;;  %v2977_v41 = vadd.f32 %v9499_v1, %v2901_v30  ;;  %v2760_v12 = vadd.f32 %v2696_v28, %v2614_v31  ;;  %v7093_v3 = vld [vmem:[%s11355_s4 + $0x6] sm:$0x3]  ;;  %v11640_v28 = vld [vmem:[#allocation62_spill] sm:$0xff] }
 0x4d0   :  { %v2907_v33 = vadd.f32 %v2843_v47, %v2761_v60 }
 0x4d1   :  { %v2906_v25 = vadd.f32 %v2842_v9, %v2760_v12  ;;  %v11641_v9 = vld [vmem:[#allocation63_spill] sm:$0xff] }
 0x4d2   :  { %v2700_v47 = vmul.f32 %v9457_v21, %v11641_v9  ;;  %v2701_v60 = vmul.f32 %v9460_v45, %v11641_v9 }
 0x4d3   :  { %v3322_v53 = vpop.f32.mrb[104].mxu1 }
 0x4d4   :  { %v3323_v0 = vadd.f32 %v3322_v53, %v2972_v17  ;;  %v3324_v23 = vpop.f32.mrb[105].mxu1 }
 0x4d5   :  { %v3325_v52 = vadd.f32 %v3324_v23, %v2973_v50  ;;  %v3326_v46 = vpop.f32.mrb[106].mxu1  ;;  %v2979_v50 = vadd.f32 %v9499_v1, %v2903_v22 }
 0x4d6   :  { %v3327_v6 = vadd.f32 %v3326_v46, %v2974_v35  ;;  %v3328_v11 = vpop.f32.mrb[107].mxu1  ;;  %v3421_v26 = vmax.f32 %v3323_v0, 0.0 }
 0x4d7   :  { %v3329_v29 = vadd.f32 %v3328_v11, %v2975_v59  ;;  %v3422_v42 = vmax.f32 %v3325_v52, 0.0  ;;  %v11632_v11 = vld [vmem:[#allocation56_spill] sm:$0xff] }
 0x4d8   :  { %v3423_v57 = vmax.f32 %v3327_v6, 0.0 }
 0x4d9   :  { %v3424_v62 = vmax.f32 %v3329_v29, 0.0  ;;  %v2694_v29 = vmul.f32 %v9457_v21, %v11632_v11 }
 0x4da   :  { %v3465_v48 = vpack.c.bf16 %v3423_v57, %v3421_v26  ;;  %v2695_v57 = vmul.f32 %v9460_v45, %v11632_v11 }
 0x4db   :  { %v3466_v51 = vpack.c.bf16 %v3424_v62, %v3422_v42  ;;  %v11633_v62 = vld [vmem:[#allocation55_spill] sm:$0xff] }
 0x4dc   :  { %v2612_v56 = vmul.f32 %v9448_v32, %v11633_v62  ;;  %v2613_v39 = vmul.f32 %v9451_v36, %v11633_v62 }
 0x4dd   :  { %3815 = vmatprep.mubr.bf16.mxu0 %v3466_v51  ;;  %v2840_v51 = vmul.f32 %v9469_v2, %v11634_v38 }
 0x4de   :  { %3816 = vmatmul.mubr.bf16.gmra.mrb[168].mxu0 %v3465_v48  ;;  %v2758_v48 = vadd.f32 %v2694_v29, %v2612_v56  ;;  %v2759_v16 = vadd.f32 %v2695_v57, %v2613_v39 }
 0x4e0   :  { %v2904_v43 = vadd.f32 %v2840_v51, %v2758_v48  ;;  %v2905_v61 = vadd.f32 %v2841_v49, %v2759_v16  ;;  %v11639_v51 = vld [vmem:[#allocation60_spill] sm:$0xff]  ;;  %v2844_v16 = vmul.f32 %v9469_v2, %v11640_v28 }
 0x4e1   :  { %v2616_v13 = vmul.f32 %v9448_v32, %v11639_v51  ;;  %v2617_v49 = vmul.f32 %v9451_v36, %v11639_v51 }
 0x4e2   :  { %v2980_v8 = vadd.f32 %v9494_v34, %v2904_v43  ;;  %v2981_v15 = vadd.f32 %v9499_v1, %v2905_v61  ;;  %v2845_v61 = vmul.f32 %v9478_v58, %v11640_v28 }
 0x4e6   :  { %v3332_v63 = vpop.f32.mrb[108].mxu1 }
 0x4e7   :  { %v3333_v40 = vadd.f32 %v3332_v63, %v2976_v55  ;;  %v3334_v44 = vpop.f32.mrb[109].mxu1  ;;  %v2982_v55 = vadd.f32 %v9494_v34, %v2906_v25  ;;  %v9860_v63 = vrot.slane %v7093_v3, %v8372_v7 }
 0x4e8   :  { %v3335_v17 = vadd.f32 %v3334_v44, %v2977_v41  ;;  %v3336_v53 = vpop.f32.mrb[110].mxu1  ;;  %v2983_v44 = vadd.f32 %v9499_v1, %v2907_v33  ;;  %v11642_v33 = vld [vmem:[#allocation50_spill] sm:$0xff] }
 0x4e9   :  { %v3337_v0 = vadd.f32 %v3336_v53, %v2978_v4  ;;  %v3338_v23 = vpop.f32.mrb[111].mxu1  ;;  %v3425_v52 = vmax.f32 %v3333_v40, 0.0  ;;  %v9864_v4 = vrot.slane %v7093_v3, %v8365_v5  ;;  %v2618_v3 = vmul.f32 %v9448_v32, %v11642_v33 }
 0x4ea   :  { %v3339_v35 = vadd.f32 %v3338_v23, %v2979_v50  ;;  %v3426_v59 = vmax.f32 %v3335_v17, 0.0 }
 0x4eb   :  { %v3427_v46 = vmax.f32 %v3337_v0, 0.0 }
 0x4ec   :  { %v3428_v6 = vmax.f32 %v3339_v35, 0.0 }
 0x4ed   :  { %v3467_v26 = vpack.c.bf16 %v3427_v46, %v3425_v52 }
 0x4ee   :  { %v3468_v42 = vpack.c.bf16 %v3428_v6, %v3426_v59 }
 0x4f0   :  { %3825 = vmatprep.mubr.bf16.mxu0 %v3468_v42 }
 0x4f1   :  { %3826 = vmatmul.mubr.bf16.gmra.mrb[172].mxu0 %v3467_v26  ;;  %v11638_v26 = vld [vmem:[#allocation61_spill] sm:$0xff] }
 0x4f2   :  { %v2698_v57 = vmul.f32 %v9457_v21, %v11638_v26  ;;  %v2699_v39 = vmul.f32 %v9460_v45, %v11638_v26 }
 0x4f4   :  { %v2762_v24 = vadd.f32 %v2698_v57, %v2616_v13  ;;  %v2763_v12 = vadd.f32 %v2699_v39, %v2617_v49 }
 0x4f9   :  { %v3342_v30 = vpop.f32.mrb[112].mxu1 }
 0x4fa   :  { %v3343_v18 = vadd.f32 %v3342_v30, %v2980_v8  ;;  %v3344_v22 = vpop.f32.mrb[113].mxu1  ;;  %v11643_v8 = vld [vmem:[#allocation64_spill] sm:$0xff] }
 0x4fb   :  { %v3345_v41 = vadd.f32 %v3344_v22, %v2981_v15  ;;  %v3346_v40 = vpop.f32.mrb[114].mxu1  ;;  %v2846_v30 = vmul.f32 %v9469_v2, %v11643_v8  ;;  %v2847_v22 = vmul.f32 %v9478_v58, %v11643_v8 }
 0x4fc   :  { %v3347_v17 = vadd.f32 %v3346_v40, %v2982_v55  ;;  %v3348_v53 = vpop.f32.mrb[115].mxu1  ;;  %v3429_v23 = vmax.f32 %v3343_v18, 0.0  ;;  %v2619_v18 = vmul.f32 %v9451_v36, %v11642_v33  ;;  %v2908_v40 = vadd.f32 %v2844_v16, %v2762_v24 }
 0x4fd   :  { %v3349_v50 = vadd.f32 %v3348_v53, %v2983_v44  ;;  %v3717_v0 = vpop.f32.mrb[128].mxu0  ;;  %v3430_v59 = vmax.f32 %v3345_v41, 0.0  ;;  %v2764_v44 = vadd.f32 %v2700_v47, %v2618_v3  ;;  %v11644_v47 = vld [vmem:[#allocation67_spill] sm:$0xff] }
 0x4fe   :  { %v3431_v35 = vmax.f32 %v3347_v17, 0.0  ;;  %v3718_v52 = vadd.f32 %v3717_v0, %v9860_v63  ;;  %v3719_v46 = vpop.f32.mrb[129].mxu0  ;;  %v2765_v0 = vadd.f32 %v2701_v60, %v2619_v18  ;;  %v11647_v18 = vld [vmem:[#allocation69_spill] sm:$0xff] }
 0x4ff   :  { %v3432_v6 = vmax.f32 %v3349_v50, 0.0  ;;  %v3720_v11 = vadd.f32 %v3719_v46, %v9864_v4  ;;  %v3721_v29 = vpop.f32.mrb[130].mxu0  ;;  %v2909_v50 = vadd.f32 %v2845_v61, %v2763_v12  ;;  %v2703_v61 = vmul.f32 %v9460_v45, %v11644_v47 }
 0x500   :  { %v3469_v42 = vpack.c.bf16 %v3431_v35, %v3429_v23  ;;  %v3722_v62 = vadd.f32 %v3721_v29, %v9860_v63  ;;  %v3723_v56 = vpop.f32.mrb[131].mxu0  ;;  %v3876_v31 = vmax.f32 %v3718_v52, 0.0  ;;  %v2910_v52 = vadd.f32 %v2846_v30, %v2764_v44  ;;  %v11646_v30 = vld [vmem:[#allocation68_spill] sm:$0xff]  ;;  %v11648_v44 = vld [vmem:[#allocation66_spill] sm:$0xff] }
 0x501   :  { %v3470_v48 = vpack.c.bf16 %v3432_v6, %v3430_v59  ;;  %v3724_v38 = vadd.f32 %v3723_v56, %v9864_v4  ;;  %v3877_v14 = vmax.f32 %v3720_v11, 0.0  ;;  %v2911_v59 = vadd.f32 %v2847_v22, %v2765_v0 }
 0x502   :  { %v3878_v27 = vmax.f32 %v3722_v62, 0.0  ;;  %v2984_v29 = vadd.f32 %v9494_v34, %v2908_v40  ;;  %v2985_v62 = vadd.f32 %v9499_v1, %v2909_v50  ;;  %v2704_v22 = vmul.f32 %v9457_v21, %v11647_v18 }
 0x503   :  { %v3879_v10 = vmax.f32 %v3724_v38, 0.0  ;;  %3835 = vmatprep.mubr.bf16.mxu0 %v3470_v48  ;;  %v2986_v38 = vadd.f32 %v9494_v34, %v2910_v52  ;;  %v2705_v40 = vmul.f32 %v9460_v45, %v11647_v18  ;;  %v2849_v0 = vmul.f32 %v9478_v58, %v11648_v44  ;;  %v7815_v18 = vld [vmem:[#allocation2 + $0x500] ss:$8 sps:$4 sm:$0xff]  }
 0x504   :  { %v3940_v43 = vpack.c.bf16 %v3878_v27, %v3876_v31  ;;  %3836 = vmatmul.mubr.bf16.gmra.mrb[176].mxu0 %v3469_v42  ;;  %v2987_v27 = vadd.f32 %v9499_v1, %v2911_v59 }
 0x505   :  { %v3941_v25 = vpack.c.bf16 %v3879_v10, %v3877_v14 }
 0x506   :  { %v3727_v15 = vpop.f32.mrb[132].mxu0 }
 0x507   :  { %v3728_v55 = vadd.f32 %v3727_v15, %v9860_v63  ;;  %v3729_v41 = vpop.f32.mrb[133].mxu0  ;;  %4210 = vmatprep.mubr.bf16.mxu1 %v3941_v25  ;;  %v11645_v25 = vld [vmem:[#allocation65_spill] sm:$0xff]  ;;  %v2622_v15 = vmul.f32 %v9448_v32, %v11646_v30 }
 0x508   :  { %v3730_v17 = vadd.f32 %v3729_v41, %v9864_v4  ;;  %v3731_v53 = vpop.f32.mrb[134].mxu0  ;;  %4211 = vmatmul.mubr.bf16.vlgmr.msra.gmra.mrb[128].mxu1 %v3940_v43  ;;  %v2702_v43 = vmul.f32 %v9457_v21, %v11644_v47  ;;  %v2620_v33 = vmul.f32 %v9448_v32, %v11645_v25  ;;  %v2621_v3 = vmul.f32 %v9451_v36, %v11645_v25 }
 0x509   :  { %v3732_v23 = vadd.f32 %v3731_v53, %v9860_v63  ;;  %v3733_v35 = vpop.f32.mrb[135].mxu0  ;;  %v3880_v6 = vmax.f32 %v3728_v55, 0.0  ;;  %v2623_v41 = vmul.f32 %v9451_v36, %v11646_v30  ;;  %v2850_v53 = vmul.f32 %v9469_v2, %v9110_v54 }
 0x50a   :  { %v3734_v46 = vadd.f32 %v3733_v35, %v9864_v4  ;;  %v3881_v26 = vmax.f32 %v3730_v17, 0.0  ;;  %v2766_v8 = vadd.f32 %v2702_v43, %v2620_v33  ;;  %v2767_v55 = vadd.f32 %v2703_v61, %v2621_v3 }
 0x50b   :  { %v3882_v11 = vmax.f32 %v3732_v23, 0.0  ;;  %v2848_v17 = vmul.f32 %v9469_v2, %v11648_v44  ;;  %v2851_v23 = vmul.f32 %v9478_v58, %v9110_v54  ;;  %v2768_v59 = vadd.f32 %v2704_v22, %v2622_v15  ;;  %v7817_v22 = vld [vmem:[#allocation2 + $0x504] ss:$8 sps:$4 sm:$0xff]  }
 0x50c   :  { %v3883_v57 = vmax.f32 %v3734_v46, 0.0  ;;  %v3352_v42 = vpop.f32.mrb[116].mxu1  ;;  %v2707_v15 = vmul.f32 %v9460_v45, %v9124_v37  ;;  %4673 = vmatprep.subr.bf16.mxu0 %v7817_v22 }
 0x50d   :  { %v3942_v56 = vpack.c.bf16 %v3882_v11, %v3880_v6  ;;  %v3353_v39 = vadd.f32 %v3352_v42, %v2984_v29  ;;  %v3354_v48 = vpop.f32.mrb[117].mxu1  ;;  %v2912_v46 = vadd.f32 %v2848_v17, %v2766_v8  ;;  %v2913_v29 = vadd.f32 %v2849_v0, %v2767_v55  ;;  %v11649_v17 = vld [vmem:[#allocation70_spill] sm:$0xff]  ;;  %4674 = vmatpush1.bf16.msra.mxu0 %v7815_v18 }
 0x50e   :  { %v3943_v51 = vpack.c.bf16 %v3883_v57, %v3881_v26  ;;  %v3355_v13 = vadd.f32 %v3354_v48, %v2985_v62  ;;  %v3356_v31 = vpop.f32.mrb[118].mxu1  ;;  %v2769_v26 = vadd.f32 %v2705_v40, %v2623_v41  ;;  %v2914_v62 = vadd.f32 %v2850_v53, %v2768_v59 }
 0x50f   :  { %v3357_v28 = vadd.f32 %v3356_v31, %v2986_v38  ;;  %v3358_v16 = vpop.f32.mrb[119].mxu1  ;;  %v3433_v14 = vmax.f32 %v3353_v39, 0.0  ;;  %v2988_v54 = vadd.f32 %v9494_v34, %v2912_v46  ;;  %v2706_v8 = vmul.f32 %v9457_v21, %v9124_v37  ;;  %v7818_v37 = vld [vmem:[#allocation2 + $0x510] ss:$8 sps:$4 sm:$0xff]   ;;  %v7823_v46 = vld [vmem:[#allocation2 + $0x524] ss:$8 sps:$4 sm:$0xff]  }
 0x510   :  { %v3359_v49 = vadd.f32 %v3358_v16, %v2987_v27  ;;  %4220 = vmatprep.mubr.bf16.mxu1 %v3943_v51  ;;  %v3434_v24 = vmax.f32 %v3355_v13, 0.0  ;;  %v2915_v39 = vadd.f32 %v2851_v23, %v2769_v26  ;;  %v2989_v27 = vadd.f32 %v9499_v1, %v2913_v29  ;;  %v7820_v23 = vld [vmem:[#allocation2 + $0x514] ss:$8 sps:$4 sm:$0xff]  }
 0x511   :  { %v3435_v10 = vmax.f32 %v3357_v28, 0.0  ;;  %4221 = vmatmul.mubr.bf16.gmra.mrb[132].mxu1 %v3942_v56  ;;  %v2624_v41 = vmul.f32 %v9448_v32, %v9120_v20  ;;  %v2625_v40 = vmul.f32 %v9451_v36, %v9120_v20  ;;  %v2852_v53 = vmul.f32 %v9469_v2, %v11649_v17  ;;  %4675 = vmatprep.subr.bf16.mxu0 %v7820_v23 }
 0x512   :  { %v3436_v9 = vmax.f32 %v3359_v49, 0.0  ;;  %v2991_v47 = vadd.f32 %v9499_v1, %v2915_v39  ;;  %v2626_v59 = vmul.f32 %v9448_v32, %v9118_v19  ;;  %v2627_v29 = vmul.f32 %v9451_v36, %v9118_v19  ;;  %4676 = vmatpush1.bf16.msra.mxu0 %v7818_v37  ;;  %v7833_v37 = vld [vmem:[#allocation2 + $0x560] ss:$8 sps:$4 sm:$0xff]  }
 0x513   :  { %v3471_v12 = vpack.c.bf16 %v3435_v10, %v3433_v14  ;;  %v2990_v14 = vadd.f32 %v9494_v34, %v2914_v62  ;;  %v2770_v44 = vadd.f32 %v2706_v8, %v2624_v41  ;;  %4677 = vmatprep.subr.bf16.mxu0 %v7823_v46  ;;  %v7829_v41 = vld [vmem:[#allocation2 + $0x544] ss:$8 sps:$4 sm:$0xff]  }
 0x514   :  { %v3472_v60 = vpack.c.bf16 %v3436_v9, %v3434_v24 }
 0x515   :  { %v2916_v62 = vadd.f32 %v2852_v53, %v2770_v44  ;;  %v7832_v44 = vld [vmem:[#allocation2 + $0x554] ss:$8 sps:$4 sm:$0xff]  }
 0x516   :  { %3845 = vmatprep.mubr.bf16.mxu0 %v3472_v60 }
 0x517   :  { %3846 = vmatmul.mubr.bf16.gmra.mrb[180].mxu0 %v3471_v12 }
 0x519   :  { %v3737_v50 = vpop.f32.mrb[136].mxu0 }
 0x51a   :  { %v3738_v35 = vadd.f32 %v3737_v50, %v9860_v63  ;;  %v3739_v52 = vpop.f32.mrb[137].mxu0  ;;  %v11650_v50 = vld [vmem:[#allocation71_spill] sm:$0xff] }
 0x51b   :  { %v3740_v6 = vadd.f32 %v3739_v52, %v9864_v4  ;;  %v3741_v11 = vpop.f32.mrb[138].mxu0  ;;  %v2708_v0 = vmul.f32 %v9457_v21, %v11650_v50  ;;  %v2853_v52 = vmul.f32 %v9478_v58, %v11649_v17  ;;  %v2709_v20 = vmul.f32 %v9460_v45, %v11650_v50  ;;  %v7835_v17 = vld [vmem:[#allocation2 + $0x564] ss:$8 sps:$4 sm:$0xff]  }
 0x51c   :  { %v3742_v57 = vadd.f32 %v3741_v11, %v9860_v63  ;;  %v3743_v42 = vpop.f32.mrb[139].mxu0  ;;  %v3884_v48 = vmax.f32 %v3738_v35, 0.0  ;;  %v2771_v35 = vadd.f32 %v2707_v15, %v2625_v40 }
 0x51d   :  { %v3744_v56 = vadd.f32 %v3743_v42, %v9864_v4  ;;  %v3885_v51 = vmax.f32 %v3740_v6, 0.0  ;;  %v11651_v6 = vld [vmem:[#allocation72_spill] sm:$0xff]  ;;  %v2772_v45 = vadd.f32 %v2708_v0, %v2626_v59 }
 0x51e   :  { %v3886_v38 = vmax.f32 %v3742_v57, 0.0  ;;  %v2854_v11 = vmul.f32 %v9469_v2, %v11651_v6  ;;  %v2855_v26 = vmul.f32 %v9478_v58, %v11651_v6  ;;  %v2773_v2 = vadd.f32 %v2709_v20, %v2627_v29 }
 0x51f   :  { %v3887_v13 = vmax.f32 %v3744_v56, 0.0  ;;  %v3362_v31 = vpop.f32.mrb[120].mxu1  ;;  %v7821_v56 = vld [vmem:[#allocation2 + $0x520] ss:$8 sps:$4 sm:$0xff]  }
 0x520   :  { %v3944_v28 = vpack.c.bf16 %v3886_v38, %v3884_v48  ;;  %v3363_v16 = vadd.f32 %v3362_v31, %v2988_v54  ;;  %v3364_v49 = vpop.f32.mrb[121].mxu1  ;;  %v2917_v48 = vadd.f32 %v2853_v52, %v2771_v35  ;;  %v2918_v19 = vadd.f32 %v2854_v11, %v2772_v45  ;;  %4678 = vmatpush1.bf16.msra.mxu0 %v7821_v56  ;;  %v7838_v52 = vld [vmem:[#allocation2 + $0x574] ss:$8 sps:$4 sm:$0xff]   ;;  %v7841_v45 = vld [vmem:[#allocation2 + $0x584] ss:$8 sps:$4 sm:$0xff]  }
 0x521   :  { %v3945_v10 = vpack.c.bf16 %v3887_v13, %v3885_v51  ;;  %v3365_v24 = vadd.f32 %v3364_v49, %v2989_v27  ;;  %v3366_v9 = vpop.f32.mrb[122].mxu1  ;;  %v2919_v58 = vadd.f32 %v2855_v26, %v2773_v2  ;;  %v2992_v31 = vadd.f32 %v9494_v34, %v2916_v62  ;;  %v7839_v62 = vld [vmem:[#allocation2 + $0x580] ss:$8 sps:$4 sm:$0xff]   ;;  %v7844_v56 = vld [vmem:[#allocation2 + $0x594] ss:$8 sps:$4 sm:$0xff]  }
 0x522   :  { %v3367_v43 = vadd.f32 %v3366_v9, %v2990_v14  ;;  %v3368_v12 = vpop.f32.mrb[123].mxu1  ;;  %v3437_v60 = vmax.f32 %v3363_v16, 0.0  ;;  %v2993_v49 = vadd.f32 %v9499_v1, %v2917_v48  ;;  %v2994_v9 = vadd.f32 %v9494_v34, %v2918_v19  ;;  %v7827_v34 = vld [vmem:[#allocation2 + $0x540] ss:$8 sps:$4 sm:$0xff]   ;;  %v7850_v19 = vld [vmem:[#allocation2 + $0x5b4] ss:$8 sps:$4 sm:$0xff]  }
 0x523   :  { %v3369_v61 = vadd.f32 %v3368_v12, %v2991_v47  ;;  %4230 = vmatprep.mubr.bf16.mxu1 %v3945_v10  ;;  %v3438_v33 = vmax.f32 %v3365_v24, 0.0  ;;  %v7845_v2 = vld [vmem:[#allocation2 + $0x5a0] ss:$8 sps:$4 sm:$0xff]  }
 0x524   :  { %v3439_v25 = vmax.f32 %v3367_v43, 0.0  ;;  %4231 = vmatmul.mubr.bf16.gmra.mrb[136].mxu1 %v3944_v28 }
 0x525   :  { %v3440_v3 = vmax.f32 %v3369_v61, 0.0  ;;  %v2995_v61 = vadd.f32 %v9499_v1, %v2919_v58  ;;  %v7830_v1 = vld [vmem:[#allocation2 + $0x550] ss:$8 sps:$4 sm:$0xff]  }
 0x526   :  { %v3473_v30 = vpack.c.bf16 %v3439_v25, %v3437_v60 }
 0x527   :  { %v3474_v55 = vpack.c.bf16 %v3440_v3, %v3438_v33  ;;  %v7824_v33 = vld [vmem:[#allocation2 + $0x530] ss:$8 sps:$4 sm:$0xff]   ;;  %v7826_v3 = vld [vmem:[#allocation2 + $0x534] ss:$8 sps:$4 sm:$0xff]  }
 0x528   :  { %4679 = vmatprep.subr.bf16.mxu0 %v7826_v3 }
 0x529   :  { %3855 = vmatprep.mubr.bf16.mxu0 %v3474_v55  ;;  %4680 = vmatpush1.bf16.msra.mxu0 %v7824_v33 }
 0x52a   :  { %3856 = vmatmul.mubr.bf16.gmra.mrb[184].mxu0 %v3473_v30  ;;  %4681 = vmatprep.subr.bf16.mxu0 %v7829_v41 }
 0x52c   :  { %v3747_v21 = vpop.f32.mrb[140].mxu0 }
 0x52d   :  { %v3748_v57 = vadd.f32 %v3747_v21, %v9860_v63  ;;  %v3749_v42 = vpop.f32.mrb[141].mxu0  ;;  %4682 = vmatpush1.bf16.msra.mxu0 %v7827_v34  ;;  %v7836_v21 = vld [vmem:[#allocation2 + $0x570] ss:$8 sps:$4 sm:$0xff]  }
 0x52e   :  { %v3750_v32 = vadd.f32 %v3749_v42, %v9864_v4  ;;  %v3751_v39 = vpop.f32.mrb[142].mxu0  ;;  %4683 = vmatprep.subr.bf16.mxu0 %v7832_v44 }
 0x52f   :  { %v3752_v38 = vadd.f32 %v3751_v39, %v9860_v63  ;;  %v3753_v54 = vpop.f32.mrb[143].mxu0  ;;  %v3888_v51 = vmax.f32 %v3748_v57, 0.0  ;;  %v7847_v39 = vld [vmem:[#allocation2 + $0x5a4] ss:$8 sps:$4 sm:$0xff]  }
 0x530   :  { %v3754_v36 = vadd.f32 %v3753_v54, %v9864_v4  ;;  %v3889_v27 = vmax.f32 %v3750_v32, 0.0  ;;  %v7842_v32 = vld [vmem:[#allocation2 + $0x590] ss:$8 sps:$4 sm:$0xff]  }
 0x531   :  { %v3890_v13 = vmax.f32 %v3752_v38, 0.0  ;;  %4684 = vmatpush1.bf16.msra.mxu0 %v7830_v1 }
 0x532   :  { %v3891_v28 = vmax.f32 %v3754_v36, 0.0  ;;  %v3372_v16 = vpop.f32.mrb[124].mxu1  ;;  %4685 = vmatprep.subr.bf16.mxu0 %v7835_v17 }
 0x533   :  { %v3946_v14 = vpack.c.bf16 %v3890_v13, %v3888_v51  ;;  %v3373_v10 = vadd.f32 %v3372_v16, %v2992_v31  ;;  %v3374_v24 = vpop.f32.mrb[125].mxu1 }
 0x534   :  { %v3947_v47 = vpack.c.bf16 %v3891_v28, %v3889_v27  ;;  %v3375_v43 = vadd.f32 %v3374_v24, %v2993_v49  ;;  %v3376_v12 = vpop.f32.mrb[126].mxu1  ;;  %v7848_v27 = vld [vmem:[#allocation2 + $0x5b0] ss:$8 sps:$4 sm:$0xff]   ;;  %v7853_v49 = vld [vmem:[#allocation2 + $0x5c4] ss:$8 sps:$4 sm:$0xff]  }
 0x535   :  { %v3377_v60 = vadd.f32 %v3376_v12, %v2994_v9  ;;  %v3378_v25 = vpop.f32.mrb[127].mxu1  ;;  %v3441_v30 = vmax.f32 %v3373_v10, 0.0  ;;  %4686 = vmatpush1.bf16.msra.mxu0 %v7833_v37  ;;  %v7856_v12 = vld [vmem:[#allocation2 + $0x5d4] ss:$8 sps:$4 sm:$0xff]  }
 0x536   :  { %v3379_v8 = vadd.f32 %v3378_v25, %v2995_v61  ;;  %4240 = vmatprep.mubr.bf16.mxu1 %v3947_v47  ;;  %v3442_v18 = vmax.f32 %v3375_v43, 0.0  ;;  %4687 = vmatprep.subr.bf16.mxu0 %v7838_v52  ;;  %v7851_v47 = vld [vmem:[#allocation2 + $0x5c0] ss:$8 sps:$4 sm:$0xff]   ;;  %v7854_v43 = vld [vmem:[#allocation2 + $0x5d0] ss:$8 sps:$4 sm:$0xff]  }
 0x537   :  { %v3443_v15 = vmax.f32 %v3377_v60, 0.0  ;;  %4241 = vmatmul.mubr.bf16.gmra.mrb[140].mxu1 %v3946_v14  ;;  %v7857_v61 = vld [vmem:[#allocation2 + $0x5e0] ss:$8 sps:$4 sm:$0xff]   ;;  %v7859_v60 = vld [vmem:[#allocation2 + $0x5e4] ss:$8 sps:$4 sm:$0xff]  }
 0x538   :  { %v3444_v22 = vmax.f32 %v3379_v8, 0.0  ;;  %v7862_v25 = vld [vmem:[#allocation2 + $0x5f4] ss:$8 sps:$4 sm:$0xff]  }
 0x539   :  { %v3475_v55 = vpack.c.bf16 %v3443_v15, %v3441_v30  ;;  %4688 = vmatpush1.bf16.msra.mxu0 %v7836_v21  ;;  %v7860_v30 = vld [vmem:[#allocation2 + $0x5f0] ss:$8 sps:$4 sm:$0xff]  }
 0x53a   :  { %v3476_v40 = vpack.c.bf16 %v3444_v22, %v3442_v18  ;;  %4689 = vmatprep.subr.bf16.mxu0 %v7841_v45 }
 0x53c   :  { %3865 = vmatprep.mubr.bf16.mxu0 %v3476_v40 }
 0x53d   :  { %3866 = vmatmul.mubr.bf16.gmra.mrb[188].mxu0 %v3475_v55 }
 0x53e   :  { %4690 = vmatpush1.bf16.msra.mxu0 %v7839_v62 }
 0x53f   :  { %v3757_v53 = vpop.f32.mrb[144].mxu0  ;;  %4691 = vmatprep.subr.bf16.mxu0 %v7844_v56 }
 0x540   :  { %v3758_v50 = vadd.f32 %v3757_v53, %v9860_v63  ;;  %v3759_v0 = vpop.f32.mrb[145].mxu0 }
 0x541   :  { %v3760_v23 = vadd.f32 %v3759_v0, %v9864_v4  ;;  %v3761_v35 = vpop.f32.mrb[146].mxu0 }
 0x542   :  { %v3762_v20 = vadd.f32 %v3761_v35, %v9860_v63  ;;  %v3763_v46 = vpop.f32.mrb[147].mxu0  ;;  %v3892_v6 = vmax.f32 %v3758_v50, 0.0  ;;  %4692 = vmatpush1.bf16.msra.mxu0 %v7842_v32 }
 0x543   :  { %v3764_v59 = vadd.f32 %v3763_v46, %v9864_v4  ;;  %v3893_v29 = vmax.f32 %v3760_v23, 0.0  ;;  %4693 = vmatprep.subr.bf16.mxu0 %v7847_v39 }
 0x544   :  { %v3894_v11 = vmax.f32 %v3762_v20, 0.0 }
 0x545   :  { %v3895_v26 = vmax.f32 %v3764_v59, 0.0 }
 0x546   :  { %v3948_v57 = vpack.c.bf16 %v3894_v11, %v3892_v6  ;;  %4694 = vmatpush1.bf16.msra.mxu0 %v7845_v2 }
 0x547   :  { %v3949_v42 = vpack.c.bf16 %v3895_v26, %v3893_v29  ;;  %4695 = vmatprep.subr.bf16.mxu0 %v7850_v19 }
 0x549   :  { %4250 = vmatprep.mubr.bf16.mxu1 %v3949_v42 }
 0x54a   :  { %4251 = vmatmul.mubr.bf16.gmra.mrb[144].mxu1 %v3948_v57  ;;  %4696 = vmatpush1.bf16.msra.mxu0 %v7848_v27 }
 0x54b   :  { %4697 = vmatprep.subr.bf16.mxu0 %v7853_v49 }
 0x54e   :  { %4698 = vmatpush1.bf16.msra.mxu0 %v7851_v47 }
 0x54f   :  { %4699 = vmatprep.subr.bf16.mxu0 %v7856_v12 }
 0x552   :  { %v3767_v48 = vpop.f32.mrb[148].mxu0  ;;  %4700 = vmatpush1.bf16.msra.mxu0 %v7854_v43 }
 0x553   :  { %v3768_v38 = vadd.f32 %v3767_v48, %v9860_v63  ;;  %v3769_v54 = vpop.f32.mrb[149].mxu0  ;;  %4701 = vmatprep.subr.bf16.mxu0 %v7859_v60 }
 0x554   :  { %v3770_v36 = vadd.f32 %v3769_v54, %v9864_v4  ;;  %v3771_v58 = vpop.f32.mrb[150].mxu0 }
 0x555   :  { %v3772_v51 = vadd.f32 %v3771_v58, %v9860_v63  ;;  %v3773_v13 = vpop.f32.mrb[151].mxu0  ;;  %v3896_v28 = vmax.f32 %v3768_v38, 0.0 }
 0x556   :  { %v3774_v31 = vadd.f32 %v3773_v13, %v9864_v4  ;;  %v3897_v14 = vmax.f32 %v3770_v36, 0.0  ;;  %4702 = vmatpush1.bf16.msra.mxu0 %v7857_v61 }
 0x557   :  { %v3898_v16 = vmax.f32 %v3772_v51, 0.0  ;;  %4703 = vmatprep.subr.bf16.mxu0 %v7862_v25 }
 0x558   :  { %v3899_v10 = vmax.f32 %v3774_v31, 0.0 }
 0x559   :  { %v3950_v24 = vpack.c.bf16 %v3898_v16, %v3896_v28 }
 0x55a   :  { %v3951_v9 = vpack.c.bf16 %v3899_v10, %v3897_v14  ;;  %4704 = vmatpush1.bf16.msra.mxu0 %v7860_v30 }
 0x55c   :  { %4260 = vmatprep.mubr.bf16.mxu1 %v3951_v9 }
 0x55d   :  { %4261 = vmatmul.mubr.bf16.gmra.mrb[148].mxu1 %v3950_v24 }
 0x565   :  { %v3777_v33 = vpop.f32.mrb[152].mxu0 }
 0x566   :  { %v3778_v3 = vadd.f32 %v3777_v33, %v9860_v63  ;;  %v3779_v8 = vpop.f32.mrb[153].mxu0 }
 0x567   :  { %v3780_v15 = vadd.f32 %v3779_v8, %v9864_v4  ;;  %v3781_v18 = vpop.f32.mrb[154].mxu0 }
 0x568   :  { %v3782_v22 = vadd.f32 %v3781_v18, %v9860_v63  ;;  %v3783_v55 = vpop.f32.mrb[155].mxu0  ;;  %v3900_v41 = vmax.f32 %v3778_v3, 0.0 }
 0x569   :  { %v3784_v34 = vadd.f32 %v3783_v55, %v9864_v4  ;;  %v3901_v44 = vmax.f32 %v3780_v15, 0.0 }
 0x56a   :  { %v3902_v40 = vmax.f32 %v3782_v22, 0.0 }
 0x56b   :  { %v3903_v1 = vmax.f32 %v3784_v34, 0.0 }
 0x56c   :  { %v3952_v17 = vpack.c.bf16 %v3902_v40, %v3900_v41 }
 0x56d   :  { %v3953_v53 = vpack.c.bf16 %v3903_v1, %v3901_v44 }
 0x56f   :  { %4270 = vmatprep.mubr.bf16.mxu1 %v3953_v53 }
 0x570   :  { %4271 = vmatmul.mubr.bf16.gmra.mrb[152].mxu1 %v3952_v17 }
 0x578   :  { %v3787_v50 = vpop.f32.mrb[156].mxu0 }
 0x579   :  { %v3788_v0 = vadd.f32 %v3787_v50, %v9860_v63  ;;  %v3789_v37 = vpop.f32.mrb[157].mxu0 }
 0x57a   :  { %v3790_v23 = vadd.f32 %v3789_v37, %v9864_v4  ;;  %v3791_v35 = vpop.f32.mrb[158].mxu0 }
 0x57b   :  { %v3792_v52 = vadd.f32 %v3791_v35, %v9860_v63  ;;  %v3793_v20 = vpop.f32.mrb[159].mxu0  ;;  %v3904_v59 = vmax.f32 %v3788_v0, 0.0 }
 0x57c   :  { %v3794_v46 = vadd.f32 %v3793_v20, %v9864_v4  ;;  %v3905_v11 = vmax.f32 %v3790_v23, 0.0 }
 0x57d   :  { %v3906_v6 = vmax.f32 %v3792_v52, 0.0 }
 0x57e   :  { %v3907_v21 = vmax.f32 %v3794_v46, 0.0 }
 0x57f   :  { %v3954_v29 = vpack.c.bf16 %v3906_v6, %v3904_v59 }
 0x580   :  { %v3955_v26 = vpack.c.bf16 %v3907_v21, %v3905_v11  ;;  %v7126_v11 = vld [vmem:[%s11355_s4 + $0x8] sm:$0x3] }
 0x582   :  { %4280 = vmatprep.mubr.bf16.mxu1 %v3955_v26 }
 0x583   :  { %4281 = vmatmul.mubr.bf16.gmra.mrb[156].mxu1 %v3954_v29 }
 0x58b   :  { %v3797_v57 = vpop.f32.mrb[160].mxu0 }
 0x58c   :  { %v3798_v42 = vadd.f32 %v3797_v57, %v9860_v63  ;;  %v3799_v62 = vpop.f32.mrb[161].mxu0  ;;  %v10003_v57 = vrot.slane %v7126_v11, %v8372_v7 }
 0x58d   :  { %v3800_v45 = vadd.f32 %v3799_v62, %v9864_v4  ;;  %v3801_v56 = vpop.f32.mrb[162].mxu0 }
 0x58e   :  { %v3802_v32 = vadd.f32 %v3801_v56, %v9860_v63  ;;  %v3803_v39 = vpop.f32.mrb[163].mxu0  ;;  %v3908_v2 = vmax.f32 %v3798_v42, 0.0 }
 0x58f   :  { %v3804_v48 = vadd.f32 %v3803_v39, %v9864_v4  ;;  %v3909_v54 = vmax.f32 %v3800_v45, 0.0  ;;  %v10007_v45 = vrot.slane %v7126_v11, %v8365_v5  ;;  %v8085_v11 = vmov 3  }
 0x590   :  { %v3910_v38 = vmax.f32 %v3802_v32, 0.0  ;;  %7482 = vset.pattern.permute.xlu1 %v8085_v11 }
 0x591   :  { %v3911_v19 = vmax.f32 %v3804_v48, 0.0 }
 0x592   :  { %v3956_v36 = vpack.c.bf16 %v3910_v38, %v3908_v2 }
 0x593   :  { %v3957_v58 = vpack.c.bf16 %v3911_v19, %v3909_v54 }
 0x595   :  { %4290 = vmatprep.mubr.bf16.mxu1 %v3957_v58 }
 0x596   :  { %4291 = vmatmul.mubr.bf16.gmra.mrb[160].mxu1 %v3956_v36 }
 0x59e   :  { %v3807_v51 = vpop.f32.mrb[164].mxu0 }
 0x59f   :  { %v3808_v13 = vadd.f32 %v3807_v51, %v9860_v63  ;;  %v3809_v31 = vpop.f32.mrb[165].mxu0 }
 0x5a0   :  { %v3810_v27 = vadd.f32 %v3809_v31, %v9864_v4  ;;  %v3811_v28 = vpop.f32.mrb[166].mxu0 }
 0x5a1   :  { %v3812_v16 = vadd.f32 %v3811_v28, %v9860_v63  ;;  %v3813_v49 = vpop.f32.mrb[167].mxu0  ;;  %v3912_v10 = vmax.f32 %v3808_v13, 0.0 }
 0x5a2   :  { %v3814_v14 = vadd.f32 %v3813_v49, %v9864_v4  ;;  %v3913_v9 = vmax.f32 %v3810_v27, 0.0 }
 0x5a3   :  { %v3914_v24 = vmax.f32 %v3812_v16, 0.0 }
 0x5a4   :  { %v3915_v47 = vmax.f32 %v3814_v14, 0.0 }
 0x5a5   :  { %v3958_v43 = vpack.c.bf16 %v3914_v24, %v3912_v10 }
 0x5a6   :  { %v3959_v12 = vpack.c.bf16 %v3915_v47, %v3913_v9 }
 0x5a8   :  { %4300 = vmatprep.mubr.bf16.mxu1 %v3959_v12 }
 0x5a9   :  { %4301 = vmatmul.mubr.bf16.gmra.mrb[164].mxu1 %v3958_v43 }
 0x5b1   :  { %v3817_v61 = vpop.f32.mrb[168].mxu0 }
 0x5b2   :  { %v3818_v60 = vadd.f32 %v3817_v61, %v9860_v63  ;;  %v3819_v25 = vpop.f32.mrb[169].mxu0 }
 0x5b3   :  { %v3820_v33 = vadd.f32 %v3819_v25, %v9864_v4  ;;  %v3821_v3 = vpop.f32.mrb[170].mxu0 }
 0x5b4   :  { %v3822_v8 = vadd.f32 %v3821_v3, %v9860_v63  ;;  %v3823_v30 = vpop.f32.mrb[171].mxu0  ;;  %v3916_v18 = vmax.f32 %v3818_v60, 0.0 }
 0x5b5   :  { %v3824_v15 = vadd.f32 %v3823_v30, %v9864_v4  ;;  %v3917_v55 = vmax.f32 %v3820_v33, 0.0 }
 0x5b6   :  { %v3918_v22 = vmax.f32 %v3822_v8, 0.0 }
 0x5b7   :  { %v3919_v34 = vmax.f32 %v3824_v15, 0.0 }
 0x5b8   :  { %v3960_v41 = vpack.c.bf16 %v3918_v22, %v3916_v18 }
 0x5b9   :  { %v3961_v40 = vpack.c.bf16 %v3919_v34, %v3917_v55 }
 0x5bb   :  { %4310 = vmatprep.mubr.bf16.mxu1 %v3961_v40 }
 0x5bc   :  { %4311 = vmatmul.mubr.bf16.gmra.mrb[168].mxu1 %v3960_v41 }
 0x5c4   :  { %v3827_v44 = vpop.f32.mrb[172].mxu0 }
 0x5c5   :  { %v3828_v1 = vadd.f32 %v3827_v44, %v9860_v63  ;;  %v3829_v17 = vpop.f32.mrb[173].mxu0 }
 0x5c6   :  { %v3830_v53 = vadd.f32 %v3829_v17, %v9864_v4  ;;  %v3831_v50 = vpop.f32.mrb[174].mxu0 }
 0x5c7   :  { %v3832_v0 = vadd.f32 %v3831_v50, %v9860_v63  ;;  %v3833_v37 = vpop.f32.mrb[175].mxu0  ;;  %v3920_v35 = vmax.f32 %v3828_v1, 0.0 }
 0x5c8   :  { %v3834_v23 = vadd.f32 %v3833_v37, %v9864_v4  ;;  %v3921_v20 = vmax.f32 %v3830_v53, 0.0 }
 0x5c9   :  { %v3922_v52 = vmax.f32 %v3832_v0, 0.0 }
 0x5ca   :  { %v3923_v46 = vmax.f32 %v3834_v23, 0.0 }
 0x5cb   :  { %v3962_v59 = vpack.c.bf16 %v3922_v52, %v3920_v35 }
 0x5cc   :  { %v3963_v6 = vpack.c.bf16 %v3923_v46, %v3921_v20 }
 0x5ce   :  { %4320 = vmatprep.mubr.bf16.mxu1 %v3963_v6  ;;  %v10026_v6 = vld [vmem:[%s11351_s0] sm:$0xff] }
 0x5cf   :  { %4321 = vmatmul.mubr.bf16.gmra.mrb[172].mxu1 %v3962_v59  ;;  %5555 = vperm.xlu1 %7482, %v10026_v6  }
 0x5d7   :  { %v3837_v21 = vpop.f32.mrb[176].mxu0 }
 0x5d8   :  { %v3838_v29 = vadd.f32 %v3837_v21, %v9860_v63  ;;  %v3839_v26 = vpop.f32.mrb[177].mxu0  ;;  %v8086_v21 = vmov 4  }
 0x5d9   :  { %v3840_v42 = vadd.f32 %v3839_v26, %v9864_v4  ;;  %v3841_v62 = vpop.f32.mrb[178].mxu0  ;;  %7485 = vset.pattern.permute.xlu0 %v8086_v21  ;;  %7483 = vset.pattern.permute.xlu1 %v8086_v21 }
 0x5da   :  { %v3842_v56 = vadd.f32 %v3841_v62, %v9860_v63  ;;  %v3843_v32 = vpop.f32.mrb[179].mxu0  ;;  %v3924_v2 = vmax.f32 %v3838_v29, 0.0  ;;  %5750 = vperm.xlu1 %7483, %v10026_v6  }
 0x5db   :  { %v3844_v39 = vadd.f32 %v3843_v32, %v9864_v4  ;;  %v4212_v48 = vpop.f32.mrb[128].mxu1  ;;  %v3925_v36 = vmax.f32 %v3840_v42, 0.0 }
 0x5dc   :  { %v3926_v38 = vmax.f32 %v3842_v56, 0.0  ;;  %v4213_v54 = vadd.f32 %v4212_v48, %v10003_v57  ;;  %v4214_v19 = vpop.f32.mrb[129].mxu1 }
 0x5dd   :  { %v3927_v58 = vmax.f32 %v3844_v39, 0.0  ;;  %v4215_v51 = vadd.f32 %v4214_v19, %v10007_v45  ;;  %v4216_v13 = vpop.f32.mrb[130].mxu1 }
 0x5de   :  { %v3964_v31 = vpack.c.bf16 %v3926_v38, %v3924_v2  ;;  %v4217_v27 = vadd.f32 %v4216_v13, %v10003_v57  ;;  %v4218_v28 = vpop.f32.mrb[131].mxu1  ;;  %v4371_v14 = vmax.f32 %v4213_v54, 0.0 }
 0x5df   :  { %v3965_v16 = vpack.c.bf16 %v3927_v58, %v3925_v36  ;;  %v4219_v49 = vadd.f32 %v4218_v28, %v10007_v45  ;;  %v4372_v24 = vmax.f32 %v4215_v51, 0.0 }
 0x5e0   :  { %v4373_v10 = vmax.f32 %v4217_v27, 0.0 }
 0x5e1   :  { %v4374_v9 = vmax.f32 %v4219_v49, 0.0  ;;  %4330 = vmatprep.mubr.bf16.mxu1 %v3965_v16 }
 0x5e2   :  { %v4435_v47 = vpack.c.bf16 %v4373_v10, %v4371_v14  ;;  %4331 = vmatmul.mubr.bf16.gmra.mrb[176].mxu1 %v3964_v31 }
 0x5e3   :  { %v4436_v43 = vpack.c.bf16 %v4374_v9, %v4372_v24 }
 0x5e4   :  { %v4222_v12 = vpop.f32.mrb[132].mxu1 }
 0x5e5   :  { %v4223_v61 = vadd.f32 %v4222_v12, %v10003_v57  ;;  %v4224_v60 = vpop.f32.mrb[133].mxu1  ;;  %4705 = vmatprep.mubr.bf16.mxu0 %v4436_v43  ;;  %v10044_v12 = vld [vmem:[%s11351_s0 + $0x8] sm:$0xff] }
 0x5e6   :  { %v4225_v25 = vadd.f32 %v4224_v60, %v10007_v45  ;;  %v4226_v33 = vpop.f32.mrb[134].mxu1  ;;  %4706 = vmatmul.mubr.bf16.vlgmr.msra.gmra.mrb[192].mxu0 %v4435_v47  ;;  %v7865_v60 = vld [vmem:[%s11359_s8 + $0x4] ss:$8 sps:$4 sm:$0xff]   ;;  %5754 = vperm.xlu1 %7483, %v10044_v12  }
 0x5e7   :  { %v4227_v3 = vadd.f32 %v4226_v33, %v10003_v57  ;;  %v4228_v8 = vpop.f32.mrb[135].mxu1  ;;  %v4375_v15 = vmax.f32 %v4223_v61, 0.0  ;;  %v7863_v61 = vld [vmem:[%s11359_s8] ss:$8 sps:$4 sm:$0xff]   ;;  %5166 = vmatprep.subr.bf16.mxu1 %v7865_v60  ;;  %v10056_v33 = vld [vmem:[%s11351_s0 + $0x18] sm:$0xff] }
 0x5e8   :  { %v4229_v30 = vadd.f32 %v4228_v8, %v10007_v45  ;;  %v4376_v22 = vmax.f32 %v4225_v25, 0.0  ;;  %5167 = vmatpush1.bf16.msra.mxu1 %v7863_v61  ;;  %v7868_v8 = vld [vmem:[%s11359_s8 + $0x14] ss:$8 sps:$4 sm:$0xff]   ;;  %v7884_v60 = vld [vmem:[%s11359_s8 + $0x70] ss:$8 sps:$4 sm:$0xff]  }
 0x5e9   :  { %v4377_v18 = vmax.f32 %v4227_v3, 0.0  ;;  %v7866_v3 = vld [vmem:[%s11359_s8 + $0x10] ss:$8 sps:$4 sm:$0xff]   ;;  %5168 = vmatprep.subr.bf16.mxu1 %v7868_v8 }
 0x5ea   :  { %v4378_v55 = vmax.f32 %v4229_v30, 0.0  ;;  %v3847_v34 = vpop.f32.mrb[180].mxu0  ;;  %v7871_v30 = vld [vmem:[%s11359_s8 + $0x24] ss:$8 sps:$4 sm:$0xff]   ;;  %7484 = vset.pattern.permute.xlu1 %v8085_v11 }
 0x5eb   :  { %v4437_v41 = vpack.c.bf16 %v4377_v18, %v4375_v15  ;;  %v3848_v40 = vadd.f32 %v3847_v34, %v9860_v63  ;;  %v3849_v44 = vpop.f32.mrb[181].mxu0  ;;  %5570 = vperm.xlu1 %7484, %v10056_v33  }
 0x5ec   :  { %v4438_v1 = vpack.c.bf16 %v4378_v55, %v4376_v22  ;;  %v3850_v17 = vadd.f32 %v3849_v44, %v9864_v4  ;;  %v3851_v53 = vpop.f32.mrb[182].mxu0  ;;  %5169 = vmatpush1.bf16.msra.mxu1 %v7866_v3  ;;  %v7869_v55 = vld [vmem:[%s11359_s8 + $0x20] ss:$8 sps:$4 sm:$0xff]  }
 0x5ed   :  { %v3852_v50 = vadd.f32 %v3851_v53, %v9860_v63  ;;  %v3853_v0 = vpop.f32.mrb[183].mxu0  ;;  %v3928_v23 = vmax.f32 %v3848_v40, 0.0  ;;  %5170 = vmatprep.subr.bf16.mxu1 %v7871_v30  ;;  %v10137_v3 = vld [vmem:[%s11351_s0 + $0x20] sm:$0xff] }
 0x5ee   :  { %v3854_v37 = vadd.f32 %v3853_v0, %v9864_v4  ;;  %4715 = vmatprep.mubr.bf16.mxu0 %v4438_v1  ;;  %v3929_v52 = vmax.f32 %v3850_v17, 0.0 }
 0x5ef   :  { %v3930_v35 = vmax.f32 %v3852_v50, 0.0  ;;  %4716 = vmatmul.mubr.bf16.gmra.mrb[196].mxu0 %v4437_v41  ;;  %7486 = vset.pattern.permute.xlu1 %v8086_v21 }
 0x5f0   :  { %v3931_v20 = vmax.f32 %v3854_v37, 0.0  ;;  %5762 = vperm.xlu1 %7486, %v10056_v33   ;;  %5171 = vmatpush1.bf16.msra.mxu1 %v7869_v55  ;;  %v7892_v55 = vld [vmem:[%s11359_s8 + $0x94] ss:$8 sps:$4 sm:$0xff]  }
 0x5f1   :  { %v3966_v46 = vpack.c.bf16 %v3930_v35, %v3928_v23 }
 0x5f2   :  { %v3967_v59 = vpack.c.bf16 %v3931_v20, %v3929_v52 }
 0x5f4   :  { %4340 = vmatprep.mubr.bf16.mxu1 %v3967_v59 }
 0x5f5   :  { %4341 = vmatmul.mubr.bf16.gmra.mrb[180].mxu1 %v3966_v46 }
 0x5f7   :  { %v4232_v29 = vpop.f32.mrb[136].mxu1 }
 0x5f8   :  { %v4233_v26 = vadd.f32 %v4232_v29, %v10003_v57  ;;  %v4234_v42 = vpop.f32.mrb[137].mxu1 }
 0x5f9   :  { %v4235_v62 = vadd.f32 %v4234_v42, %v10007_v45  ;;  %v4236_v56 = vpop.f32.mrb[138].mxu1  ;;  %v8087_v42 = vmov 5  }
 0x5fa   :  { %v4237_v32 = vadd.f32 %v4236_v56, %v10003_v57  ;;  %v4238_v39 = vpop.f32.mrb[139].mxu1  ;;  %v4379_v2 = vmax.f32 %v4233_v26, 0.0  ;;  %7487 = vset.pattern.permute.xlu1 %v8087_v42  ;;  %v7874_v56 = vld [vmem:[%s11359_s8 + $0x34] ss:$8 sps:$4 sm:$0xff]  }
 0x5fb   :  { %v4239_v48 = vadd.f32 %v4238_v39, %v10007_v45  ;;  %v4380_v54 = vmax.f32 %v4235_v62, 0.0  ;;  %v7872_v62 = vld [vmem:[%s11359_s8 + $0x30] ss:$8 sps:$4 sm:$0xff]   ;;  %5946 = vperm.xlu1 %7487, %v10026_v6   ;;  %5172 = vmatprep.subr.bf16.mxu1 %v7874_v56  ;;  %v7877_v6 = vld [vmem:[%s11359_s8 + $0x44] ss:$8 sps:$4 sm:$0xff]  }
 0x5fc   :  { %v4381_v38 = vmax.f32 %v4237_v32, 0.0  ;;  %5173 = vmatpush1.bf16.msra.mxu1 %v7872_v62 }
 0x5fd   :  { %v4382_v19 = vmax.f32 %v4239_v48, 0.0  ;;  %v3857_v36 = vpop.f32.mrb[184].mxu0  ;;  %5174 = vmatprep.subr.bf16.mxu1 %v7877_v6  ;;  %v7910_v6 = vld [vmem:[%s11359_s8 + $0xf4] ss:$8 sps:$4 sm:$0xff]  }
 0x5fe   :  { %v4439_v58 = vpack.c.bf16 %v4381_v38, %v4379_v2  ;;  %v3858_v51 = vadd.f32 %v3857_v36, %v9860_v63  ;;  %v3859_v13 = vpop.f32.mrb[185].mxu0  ;;  %v7880_v36 = vld [vmem:[%s11359_s8 + $0x54] ss:$8 sps:$4 sm:$0xff]  }
 0x5ff   :  { %v4440_v31 = vpack.c.bf16 %v4382_v19, %v4380_v54  ;;  %v3860_v27 = vadd.f32 %v3859_v13, %v9864_v4  ;;  %v3861_v28 = vpop.f32.mrb[186].mxu0  ;;  %v10093_v54 = vld [vmem:[%s11351_s0 + $0x10] sm:$0xff]  ;;  %v7883_v13 = vld [vmem:[%s11359_s8 + $0x64] ss:$8 sps:$4 sm:$0xff]  }
 0x600   :  { %v3862_v16 = vadd.f32 %v3861_v28, %v9860_v63  ;;  %v3863_v49 = vpop.f32.mrb[187].mxu0  ;;  %v3932_v10 = vmax.f32 %v3858_v51, 0.0  ;;  %5954 = vperm.xlu1 %7487, %v10093_v54   ;;  %5758 = vperm.xlu0 %7485, %v10093_v54   ;;  %v10112_v51 = vld [vmem:[%s11351_s0 + $0x28] sm:$0xff] }
 0x601   :  { %v3864_v14 = vadd.f32 %v3863_v49, %v9864_v4  ;;  %4725 = vmatprep.mubr.bf16.mxu0 %v4440_v31  ;;  %v3933_v9 = vmax.f32 %v3860_v27, 0.0 }
 0x602   :  { %v3934_v24 = vmax.f32 %v3862_v16, 0.0  ;;  %4726 = vmatmul.mubr.bf16.gmra.mrb[200].mxu0 %v4439_v58  ;;  %v7878_v58 = vld [vmem:[%s11359_s8 + $0x50] ss:$8 sps:$4 sm:$0xff]   ;;  %v7881_v16 = vld [vmem:[%s11359_s8 + $0x60] ss:$8 sps:$4 sm:$0xff]  }
 0x603   :  { %v3935_v47 = vmax.f32 %v3864_v14, 0.0 }
 0x604   :  { %v3968_v43 = vpack.c.bf16 %v3934_v24, %v3932_v10  ;;  %5958 = vperm.xlu1 %7487, %v10056_v33   ;;  %5770 = vperm.xlu0 %7485, %v10112_v51   ;;  %v7886_v10 = vld [vmem:[%s11359_s8 + $0x74] ss:$8 sps:$4 sm:$0xff]  }
 0x605   :  { %v3969_v25 = vpack.c.bf16 %v3935_v47, %v3933_v9 }
 0x607   :  { %4350 = vmatprep.mubr.bf16.mxu1 %v3969_v25 }
 0x608   :  { %4351 = vmatmul.mubr.bf16.gmra.mrb[184].mxu1 %v3968_v43  ;;  %7488 = vset.pattern.permute.xlu1 %v8085_v11 }
 0x609   :  { %5580 = vperm.xlu1 %7488, %v10112_v51  }
 0x60a   :  { %v4242_v15 = vpop.f32.mrb[140].mxu1 }
 0x60b   :  { %v4243_v18 = vadd.f32 %v4242_v15, %v10003_v57  ;;  %v4244_v22 = vpop.f32.mrb[141].mxu1  ;;  %v7887_v15 = vld [vmem:[%s11359_s8 + $0x80] ss:$8 sps:$4 sm:$0xff]  }
 0x60c   :  { %v4245_v34 = vadd.f32 %v4244_v22, %v10007_v45  ;;  %v4246_v41 = vpop.f32.mrb[142].mxu1  ;;  %v5527_v22 = vld [vmem:[%s11351_s0 + $0x30] sm:$0xff] }
 0x60d   :  { %v4247_v40 = vadd.f32 %v4246_v41, %v10003_v57  ;;  %v4248_v44 = vpop.f32.mrb[143].mxu1  ;;  %v4383_v17 = vmax.f32 %v4243_v18, 0.0  ;;  %7489 = vset.pattern.permute.xlu1 %v8086_v21  ;;  %v7889_v18 = vld [vmem:[%s11359_s8 + $0x84] ss:$8 sps:$4 sm:$0xff]   ;;  %v5528_v41 = vld [vmem:[%s11351_s0 + $0x38] sm:$0xff]  ;;  %5774 = vperm.xlu0 %7485, %v5527_v22  }
 0x60e   :  { %v4249_v1 = vadd.f32 %v4248_v44, %v10007_v45  ;;  %v4384_v50 = vmax.f32 %v4245_v34, 0.0  ;;  %5766 = vperm.xlu1 %7489, %v10137_v3   ;;  %v7890_v34 = vld [vmem:[%s11359_s8 + $0x90] ss:$8 sps:$4 sm:$0xff]  }
 0x60f   :  { %v4385_v53 = vmax.f32 %v4247_v40, 0.0  ;;  %v7895_v40 = vld [vmem:[%s11359_s8 + $0xa4] ss:$8 sps:$4 sm:$0xff]  }
 0x610   :  { %v4386_v0 = vmax.f32 %v4249_v1, 0.0  ;;  %v3867_v37 = vpop.f32.mrb[188].mxu0  ;;  %v7893_v1 = vld [vmem:[%s11359_s8 + $0xa0] ss:$8 sps:$4 sm:$0xff]  }
 0x611   :  { %v4441_v23 = vpack.c.bf16 %v4385_v53, %v4383_v17  ;;  %v3868_v35 = vadd.f32 %v3867_v37, %v9860_v63  ;;  %v3869_v52 = vpop.f32.mrb[189].mxu0  ;;  %7491 = vset.pattern.permute.xlu0 %v8087_v42 }
 0x612   :  { %v4442_v20 = vpack.c.bf16 %v4386_v0, %v4384_v50  ;;  %v3870_v46 = vadd.f32 %v3869_v52, %v9864_v4  ;;  %v3871_v59 = vpop.f32.mrb[190].mxu0  ;;  %7490 = vset.pattern.permute.xlu1 %v8085_v11  ;;  %v7898_v50 = vld [vmem:[%s11359_s8 + $0xb4] ss:$8 sps:$4 sm:$0xff]   ;;  %5950 = vperm.xlu0 %7491, %v10044_v12  }
 0x613   :  { %v3872_v29 = vadd.f32 %v3871_v59, %v9860_v63  ;;  %v3873_v26 = vpop.f32.mrb[191].mxu0  ;;  %v3936_v39 = vmax.f32 %v3868_v35, 0.0  ;;  %5585 = vperm.xlu1 %7490, %v5527_v22  }
 0x614   :  { %v3874_v32 = vadd.f32 %v3873_v26, %v9864_v4  ;;  %4735 = vmatprep.mubr.bf16.mxu0 %v4442_v20  ;;  %v3937_v63 = vmax.f32 %v3870_v46, 0.0  ;;  %v7875_v4 = vld [vmem:[%s11359_s8 + $0x40] ss:$8 sps:$4 sm:$0xff]   ;;  %v7896_v20 = vld [vmem:[%s11359_s8 + $0xb0] ss:$8 sps:$4 sm:$0xff]  }
 0x615   :  { %v3938_v48 = vmax.f32 %v3872_v29, 0.0  ;;  %4736 = vmatmul.mubr.bf16.gmra.mrb[204].mxu0 %v4441_v23  ;;  %5175 = vmatpush1.bf16.msra.mxu1 %v7875_v4  ;;  %v7901_v29 = vld [vmem:[%s11359_s8 + $0xc4] ss:$8 sps:$4 sm:$0xff]  }
 0x616   :  { %v3939_v2 = vmax.f32 %v3874_v32, 0.0  ;;  %5176 = vmatprep.subr.bf16.mxu1 %v7880_v36  ;;  %5962 = vperm.xlu0 %7491, %v10137_v3   ;;  %v5529_v4 = vld [vmem:[%s11351_s0 + $0x40] sm:$0xff] }
 0x617   :  { %v3970_v38 = vpack.c.bf16 %v3938_v48, %v3936_v39  ;;  %5590 = vperm.xlu1 %7490, %v5528_v41   ;;  %v7899_v39 = vld [vmem:[%s11359_s8 + $0xc0] ss:$8 sps:$4 sm:$0xff]   ;;  %v7902_v48 = vld [vmem:[%s11359_s8 + $0xd0] ss:$8 sps:$4 sm:$0xff]  }
 0x618   :  { %v3971_v19 = vpack.c.bf16 %v3939_v2, %v3937_v63  ;;  %v7904_v63 = vld [vmem:[%s11359_s8 + $0xd4] ss:$8 sps:$4 sm:$0xff]   ;;  %v7905_v2 = vld [vmem:[%s11359_s8 + $0xe0] ss:$8 sps:$4 sm:$0xff]  }
 0x619   :  { %5177 = vmatpush1.bf16.msra.mxu1 %v7878_v58 }
 0x61a   :  { %4360 = vmatprep.mubr.bf16.mxu1 %v3971_v19  ;;  %5178 = vmatprep.subr.bf16.mxu1 %v7883_v13 }
 0x61b   :  { %4361 = vmatmul.mubr.bf16.gmra.mrb[188].mxu1 %v3970_v38  ;;  %7492 = vset.pattern.permute.xlu1 %v8086_v21  ;;  %v7907_v38 = vld [vmem:[%s11359_s8 + $0xe4] ss:$8 sps:$4 sm:$0xff]  }
 0x61c   :  { %5778 = vperm.xlu1 %7492, %v5528_v41   ;;  %5974 = vperm.xlu0 %7491, %v5528_v41  }
 0x61d   :  { %v4252_v31 = vpop.f32.mrb[144].mxu1  ;;  %5179 = vmatpush1.bf16.msra.mxu1 %v7881_v16 }
 0x61e   :  { %v4253_v27 = vadd.f32 %v4252_v31, %v10003_v57  ;;  %v4254_v28 = vpop.f32.mrb[145].mxu1  ;;  %5180 = vmatprep.subr.bf16.mxu1 %v7886_v10 }
 0x61f   :  { %v4255_v49 = vadd.f32 %v4254_v28, %v10007_v45  ;;  %v4256_v14 = vpop.f32.mrb[146].mxu1 }
 0x620   :  { %v4257_v24 = vadd.f32 %v4256_v14, %v10003_v57  ;;  %v4258_v9 = vpop.f32.mrb[147].mxu1  ;;  %v4387_v43 = vmax.f32 %v4253_v27, 0.0  ;;  %7493 = vset.pattern.permute.xlu1 %v8087_v42 }
 0x621   :  { %v4259_v47 = vadd.f32 %v4258_v9, %v10007_v45  ;;  %v4388_v25 = vmax.f32 %v4255_v49, 0.0  ;;  %5181 = vmatpush1.bf16.msra.mxu1 %v7884_v60  ;;  %5966 = vperm.xlu1 %7493, %v10112_v51   ;;  %v7908_v51 = vld [vmem:[%s11359_s8 + $0xf0] ss:$8 sps:$4 sm:$0xff]  }
 0x622   :  { %v4389_v61 = vmax.f32 %v4257_v24, 0.0  ;;  %5182 = vmatprep.subr.bf16.mxu1 %v7889_v18 }
 0x623   :  { %v4390_v33 = vmax.f32 %v4259_v47, 0.0  ;;  %v10218_v47 = vld [vmem:[%s11351_s0 + $0x48] sm:$0xff] }
 0x624   :  { %v4443_v8 = vpack.c.bf16 %v4389_v61, %v4387_v43  ;;  %5982 = vperm.xlu0 %7491, %v10218_v47   ;;  %v5532_v61 = vld [vmem:[%s11351_s0 + $0x58] sm:$0xff] }
 0x625   :  { %v4444_v30 = vpack.c.bf16 %v4390_v33, %v4388_v25  ;;  %5183 = vmatpush1.bf16.msra.mxu1 %v7887_v15  ;;  %5970 = vperm.xlu1 %7493, %v5527_v22  }
 0x626   :  { %5184 = vmatprep.subr.bf16.mxu1 %v7892_v55 }
 0x627   :  { %4745 = vmatprep.mubr.bf16.mxu0 %v4444_v30 }
 0x628   :  { %4746 = vmatmul.mubr.bf16.gmra.mrb[208].mxu0 %v4443_v8 }
 0x629   :  { %5185 = vmatpush1.bf16.msra.mxu1 %v7890_v34  ;;  %7494 = vset.pattern.permute.xlu1 %v8085_v11 }
 0x62a   :  { %5186 = vmatprep.subr.bf16.mxu1 %v7895_v40  ;;  %5595 = vperm.xlu1 %7494, %v5529_v4  }
 0x62d   :  { %5187 = vmatpush1.bf16.msra.mxu1 %v7893_v1  ;;  %v10235_v1 = vld [vmem:[%s11351_s0 + $0x50] sm:$0xff] }
 0x62e   :  { %5188 = vmatprep.subr.bf16.mxu1 %v7898_v50  ;;  %7495 = vset.pattern.permute.xlu1 %v8086_v21  ;;  %v10247_v50 = vld [vmem:[%s11351_s0 + $0x60] sm:$0xff] }
 0x62f   :  { %5782 = vperm.xlu1 %7495, %v5529_v4   ;;  %5994 = vperm.xlu0 %7491, %v10247_v50  }
 0x630   :  { %v4262_v44 = vpop.f32.mrb[148].mxu1 }
 0x631   :  { %v4263_v17 = vadd.f32 %v4262_v44, %v10003_v57  ;;  %v4264_v53 = vpop.f32.mrb[149].mxu1  ;;  %5189 = vmatpush1.bf16.msra.mxu1 %v7896_v20 }
 0x632   :  { %v4265_v0 = vadd.f32 %v4264_v53, %v10007_v45  ;;  %v4266_v37 = vpop.f32.mrb[150].mxu1  ;;  %5190 = vmatprep.subr.bf16.mxu1 %v7901_v29  ;;  %v10241_v53 = vld [vmem:[%s11351_s0 + $0x68] sm:$0xff] }
 0x633   :  { %v4267_v23 = vadd.f32 %v4266_v37, %v10003_v57  ;;  %v4268_v35 = vpop.f32.mrb[151].mxu1  ;;  %v4391_v46 = vmax.f32 %v4263_v17, 0.0  ;;  %5786 = vperm.xlu1 %7495, %v10218_v47  }
 0x634   :  { %v4269_v52 = vadd.f32 %v4268_v35, %v10007_v45  ;;  %v4392_v26 = vmax.f32 %v4265_v0, 0.0 }
 0x635   :  { %v4393_v59 = vmax.f32 %v4267_v23, 0.0  ;;  %5191 = vmatpush1.bf16.msra.mxu1 %v7899_v39  ;;  %v10261_v39 = vld [vmem:[%s11351_s0 + $0x70] sm:$0xff] }
 0x636   :  { %v4394_v62 = vmax.f32 %v4269_v52, 0.0  ;;  %5192 = vmatprep.subr.bf16.mxu1 %v7904_v63  ;;  %v5536_v63 = vld [vmem:[%s11351_s0 + $0x78] sm:$0xff] }
 0x637   :  { %v4445_v56 = vpack.c.bf16 %v4393_v59, %v4391_v46  ;;  %7496 = vset.pattern.permute.xlu1 %v8085_v11  ;;  %6006 = vperm.xlu0 %7491, %v5536_v63  }
 0x638   :  { %v4446_v32 = vpack.c.bf16 %v4394_v62, %v4392_v26  ;;  %5610 = vperm.xlu1 %7496, %v5532_v61  }
 0x639   :  { %5193 = vmatpush1.bf16.msra.mxu1 %v7902_v48 }
 0x63a   :  { %4755 = vmatprep.mubr.bf16.mxu0 %v4446_v32  ;;  %5194 = vmatprep.subr.bf16.mxu1 %v7907_v38 }
 0x63b   :  { %4756 = vmatmul.mubr.bf16.gmra.mrb[212].mxu0 %v4445_v56 }
 0x63c   :  { %7497 = vset.pattern.permute.xlu1 %v8086_v21 }
 0x63d   :  { %5195 = vmatpush1.bf16.msra.mxu1 %v7905_v2  ;;  %5794 = vperm.xlu1 %7497, %v5532_v61  }
 0x63e   :  { %5196 = vmatprep.subr.bf16.mxu1 %v7910_v6 }
 0x641   :  { %5197 = vmatpush1.bf16.msra.mxu1 %v7908_v51  ;;  %7498 = vset.pattern.permute.xlu1 %v8087_v42 }
 0x642   :  { %5978 = vperm.xlu1 %7498, %v5529_v4  }
 0x643   :  { %v4272_v19 = vpop.f32.mrb[152].mxu1 }
 0x644   :  { %v4273_v36 = vadd.f32 %v4272_v19, %v10003_v57  ;;  %v4274_v58 = vpop.f32.mrb[153].mxu1 }
 0x645   :  { %v4275_v13 = vadd.f32 %v4274_v58, %v10007_v45  ;;  %v4276_v31 = vpop.f32.mrb[154].mxu1 }
 0x646   :  { %v4277_v27 = vadd.f32 %v4276_v31, %v10003_v57  ;;  %v4278_v28 = vpop.f32.mrb[155].mxu1  ;;  %v4395_v49 = vmax.f32 %v4273_v36, 0.0  ;;  %5986 = vperm.xlu1 %7498, %v10235_v1  }
 0x647   :  { %v4279_v16 = vadd.f32 %v4278_v28, %v10007_v45  ;;  %v4396_v10 = vmax.f32 %v4275_v13, 0.0 }
 0x648   :  { %v4397_v14 = vmax.f32 %v4277_v27, 0.0 }
 0x649   :  { %v4398_v24 = vmax.f32 %v4279_v16, 0.0 }
 0x64a   :  { %v4447_v9 = vpack.c.bf16 %v4397_v14, %v4395_v49  ;;  %5990 = vperm.xlu1 %7498, %v5532_v61   ;;  %v10278_v49 = vld [vmem:[%s11351_s0 + $0x88] sm:$0xff] }
 0x64b   :  { %v4448_v43 = vpack.c.bf16 %v4398_v24, %v4396_v10  ;;  %6014 = vperm.xlu0 %7491, %v10278_v49   ;;  %v5537_v10 = vld [vmem:[%s11351_s0 + $0x80] sm:$0xff] }
 0x64c   :  { %v10287_v24 = vld [vmem:[%s11351_s0 + $0xa0] sm:$0xff] }
 0x64d   :  { %4765 = vmatprep.mubr.bf16.mxu0 %v4448_v43 }
 0x64e   :  { %4766 = vmatmul.mubr.bf16.gmra.mrb[216].mxu0 %v4447_v9  ;;  %7499 = vset.pattern.permute.xlu1 %v8085_v11  ;;  %v10294_v9 = vld [vmem:[%s11351_s0 + $0xb8] sm:$0xff] }
 0x64f   :  { %5620 = vperm.xlu1 %7499, %v10241_v53   ;;  %6026 = vperm.xlu0 %7491, %v10287_v24  }
 0x653   :  { %7500 = vset.pattern.permute.xlu1 %v8086_v21  ;;  %6038 = vperm.xlu0 %7491, %v10294_v9  }
 0x654   :  { %5798 = vperm.xlu1 %7500, %v10247_v50  }
 0x656   :  { %v4282_v60 = vpop.f32.mrb[156].mxu1 }
 0x657   :  { %v4283_v25 = vadd.f32 %v4282_v60, %v10003_v57  ;;  %v4284_v33 = vpop.f32.mrb[157].mxu1 }
 0x658   :  { %v4285_v8 = vadd.f32 %v4284_v33, %v10007_v45  ;;  %v4286_v30 = vpop.f32.mrb[158].mxu1  ;;  %7501 = vset.pattern.permute.xlu1 %v8085_v11 }
 0x659   :  { %v4287_v15 = vadd.f32 %v4286_v30, %v10003_v57  ;;  %v4288_v18 = vpop.f32.mrb[159].mxu1  ;;  %v4399_v55 = vmax.f32 %v4283_v25, 0.0  ;;  %5625 = vperm.xlu1 %7501, %v10261_v39  }
 0x65a   :  { %v4289_v22 = vadd.f32 %v4288_v18, %v10007_v45  ;;  %v4400_v41 = vmax.f32 %v4285_v8, 0.0 }
 0x65b   :  { %v4401_v34 = vmax.f32 %v4287_v15, 0.0 }
 0x65c   :  { %v4402_v40 = vmax.f32 %v4289_v22, 0.0 }
 0x65d   :  { %v4449_v44 = vpack.c.bf16 %v4401_v34, %v4399_v55  ;;  %5630 = vperm.xlu1 %7501, %v5536_v63  }
 0x65e   :  { %v4450_v17 = vpack.c.bf16 %v4402_v40, %v4400_v41  ;;  %v10307_v41 = vld [vmem:[%s11351_s0 + $0xc8] sm:$0xff]  ;;  %v5540_v40 = vld [vmem:[%s11351_s0 + $0x98] sm:$0xff] }
 0x65f   :  { %6046 = vperm.xlu0 %7491, %v10307_v41  }
 0x660   :  { %4775 = vmatprep.mubr.bf16.mxu0 %v4450_v17 }
 0x661   :  { %4776 = vmatmul.mubr.bf16.gmra.mrb[220].mxu0 %v4449_v44  ;;  %7502 = vset.pattern.permute.xlu1 %v8086_v21 }
 0x662   :  { %5810 = vperm.xlu1 %7502, %v5536_v63  }
 0x663   :  { %7519 = vset.pattern.permute.xlu0 %v8085_v11 }
 0x664   :  { %5560 = vperm.xlu0 %7519, %v10044_v12  }
 0x666   :  { %7503 = vset.pattern.permute.xlu1 %v8087_v42 }
 0x667   :  { %5998 = vperm.xlu1 %7503, %v10241_v53  }
 0x668   :  { %5565 = vperm.xlu0 %7519, %v10093_v54  }
 0x669   :  { %v4292_v0 = vpop.f32.mrb[160].mxu1 }
 0x66a   :  { %v4293_v37 = vadd.f32 %v4292_v0, %v10003_v57  ;;  %v4294_v23 = vpop.f32.mrb[161].mxu1  ;;  %v10316_v0 = vpop.permute.xlu1 %5555 }
 0x66b   :  { %v4295_v35 = vadd.f32 %v4294_v23, %v10007_v45  ;;  %v4296_v52 = vpop.f32.mrb[162].mxu1  ;;  %6002 = vperm.xlu1 %7503, %v10261_v39   ;;  %v10323_v23 = vld [vmem:[%s11351_s0 + $0x90] sm:$0xff] }
 0x66c   :  { %v4297_v20 = vadd.f32 %v4296_v52, %v10003_v57  ;;  %v4298_v46 = vpop.f32.mrb[163].mxu1  ;;  %v4403_v29 = vmax.f32 %v4293_v37, 0.0  ;;  %5575 = vperm.xlu0 %7519, %v10137_v3  }
 0x66d   :  { %v4299_v59 = vadd.f32 %v4298_v46, %v10007_v45  ;;  %v4404_v62 = vmax.f32 %v4295_v35, 0.0 }
 0x66e   :  { %v4405_v26 = vmax.f32 %v4297_v20, 0.0  ;;  %v10326_v20 = vpop.permute.xlu1 %5750 }
 0x66f   :  { %v4406_v56 = vmax.f32 %v4299_v59, 0.0  ;;  %7504 = vset.pattern.permute.xlu1 %v8085_v11 }
 0x670   :  { %v4451_v32 = vpack.c.bf16 %v4405_v26, %v4403_v29  ;;  %5635 = vperm.xlu1 %7504, %v5537_v10   ;;  %5600 = vperm.xlu0 %7519, %v10218_v47  }
 0x671   :  { %v4452_v48 = vpack.c.bf16 %v4406_v56, %v4404_v62 }
 0x672   :  { %v10334_v63 = vpop.permute.xlu1 %5754 }
 0x673   :  { %4785 = vmatprep.mubr.bf16.mxu0 %v4452_v48 }
 0x674   :  { %4786 = vmatmul.mubr.bf16.gmra.mrb[224].mxu0 %v4451_v32  ;;  %7505 = vset.pattern.permute.xlu1 %v8086_v21 }
 0x675   :  { %5814 = vperm.xlu1 %7505, %v5537_v10   ;;  %5605 = vperm.xlu0 %7519, %v10235_v1  }
 0x679   :  { %5818 = vperm.xlu1 %7505, %v10278_v49   ;;  %5615 = vperm.xlu0 %7519, %v10247_v50  }
 0x67c   :  { %v4302_v2 = vpop.f32.mrb[164].mxu1 }
 0x67d   :  { %v4303_v38 = vadd.f32 %v4302_v2, %v10003_v57  ;;  %v4304_v4 = vpop.f32.mrb[165].mxu1  ;;  %7506 = vset.pattern.permute.xlu1 %v8085_v11  ;;  %v10339_v2 = vld [vmem:[%s11351_s0 + $0xa8] sm:$0xff]  ;;  %5640 = vperm.xlu0 %7519, %v10278_v49  }
 0x67e   :  { %v4305_v6 = vadd.f32 %v4304_v4, %v10007_v45  ;;  %v4306_v19 = vpop.f32.mrb[166].mxu1  ;;  %5650 = vperm.xlu1 %7506, %v5540_v40   ;;  %v7159_v4 = vld [vmem:[%s11355_s4 + $0xa] sm:$0x3] }
 0x67f   :  { %v4307_v36 = vadd.f32 %v4306_v19, %v10003_v57  ;;  %v4308_v58 = vpop.f32.mrb[167].mxu1  ;;  %v4407_v13 = vmax.f32 %v4303_v38, 0.0  ;;  %v10343_v38 = vpop.permute.xlu1 %5570 }
 0x680   :  { %v4309_v51 = vadd.f32 %v4308_v58, %v10007_v45  ;;  %v4408_v27 = vmax.f32 %v4305_v6, 0.0 }
 0x681   :  { %v4409_v31 = vmax.f32 %v4307_v36, 0.0  ;;  %v10360_v36 = vld [vmem:[%s11351_s0 + $0xb0] sm:$0xff]  ;;  %5645 = vperm.xlu0 %7519, %v10323_v23  }
 0x682   :  { %v4410_v28 = vmax.f32 %v4309_v51, 0.0  ;;  %7507 = vset.pattern.permute.xlu1 %v8086_v21  ;;  %v10364_v51 = vrot.slane %v7159_v4, %v8372_v7 }
 0x683   :  { %v4453_v16 = vpack.c.bf16 %v4409_v31, %v4407_v13  ;;  %5826 = vperm.xlu1 %7507, %v5540_v40   ;;  %v10347_v47 = vpop.permute.xlu1 %5762 }
 0x684   :  { %v4454_v14 = vpack.c.bf16 %v4410_v28, %v4408_v27  ;;  %v10368_v27 = vrot.slane %v7159_v4, %v8365_v5 }
 0x685   :  { %5655 = vperm.xlu0 %7519, %v10287_v24  }
 0x686   :  { %4795 = vmatprep.mubr.bf16.mxu0 %v4454_v14 }
 0x687   :  { %4796 = vmatmul.mubr.bf16.gmra.mrb[228].mxu0 %v4453_v16  ;;  %7508 = vset.pattern.permute.xlu1 %v8087_v42  ;;  %v10355_v19 = vpop.permute.xlu1 %5946 }
 0x688   :  { %6010 = vperm.xlu1 %7508, %v5537_v10  }
 0x689   :  { %5680 = vperm.xlu0 %7519, %v10307_v41  }
 0x68b   :  { %v10375_v10 = vpop.permute.xlu1 %5954 }
 0x68c   :  { %6018 = vperm.xlu1 %7508, %v10323_v23  }
 0x68f   :  { %v4312_v43 = vpop.f32.mrb[168].mxu1 }
 0x690   :  { %v4313_v61 = vadd.f32 %v4312_v43, %v10003_v57  ;;  %v4314_v60 = vpop.f32.mrb[169].mxu1  ;;  %6022 = vperm.xlu1 %7508, %v5540_v40  }
 0x691   :  { %v4315_v25 = vadd.f32 %v4314_v60, %v10007_v45  ;;  %v4316_v33 = vpop.f32.mrb[170].mxu1 }
 0x692   :  { %v4317_v8 = vadd.f32 %v4316_v33, %v10003_v57  ;;  %v4318_v30 = vpop.f32.mrb[171].mxu1  ;;  %v4411_v18 = vmax.f32 %v4313_v61, 0.0 }
 0x693   :  { %v4319_v15 = vadd.f32 %v4318_v30, %v10007_v45  ;;  %v4412_v55 = vmax.f32 %v4315_v25, 0.0 }
 0x694   :  { %v4413_v22 = vmax.f32 %v4317_v8, 0.0  ;;  %7509 = vset.pattern.permute.xlu1 %v8085_v11 }
 0x695   :  { %v4414_v34 = vmax.f32 %v4319_v15, 0.0  ;;  %5660 = vperm.xlu1 %7509, %v10339_v2  }
 0x696   :  { %v4455_v44 = vpack.c.bf16 %v4413_v22, %v4411_v18 }
 0x697   :  { %v4456_v17 = vpack.c.bf16 %v4414_v34, %v4412_v55 }
 0x699   :  { %4805 = vmatprep.mubr.bf16.mxu0 %v4456_v17  ;;  %7510 = vset.pattern.permute.xlu1 %v8086_v21 }
 0x69a   :  { %4806 = vmatmul.mubr.bf16.gmra.mrb[232].mxu0 %v4455_v44  ;;  %5830 = vperm.xlu1 %7510, %v10287_v24   ;;  %v10383_v44 = vpop.permute.xlu1 %5958 }
 0x69e   :  { %7511 = vset.pattern.permute.xlu1 %v8085_v11 }
 0x69f   :  { %5665 = vperm.xlu1 %7511, %v10360_v36  }
 0x6a2   :  { %v4322_v37 = vpop.f32.mrb[172].mxu1 }
 0x6a3   :  { %v4323_v35 = vadd.f32 %v4322_v37, %v10003_v57  ;;  %v4324_v52 = vpop.f32.mrb[173].mxu1  ;;  %5670 = vperm.xlu1 %7511, %v10294_v9  }
 0x6a4   :  { %v4325_v12 = vadd.f32 %v4324_v52, %v10007_v45  ;;  %v4326_v46 = vpop.f32.mrb[174].mxu1 }
 0x6a5   :  { %v4327_v54 = vadd.f32 %v4326_v46, %v10003_v57  ;;  %v4328_v59 = vpop.f32.mrb[175].mxu1  ;;  %v4415_v26 = vmax.f32 %v4323_v35, 0.0  ;;  %v10388_v46 = vpop.permute.xlu1 %5580 }
 0x6a6   :  { %v4329_v29 = vadd.f32 %v4328_v59, %v10007_v45  ;;  %v4416_v56 = vmax.f32 %v4325_v12, 0.0 }
 0x6a7   :  { %v4417_v62 = vmax.f32 %v4327_v54, 0.0  ;;  %7512 = vset.pattern.permute.xlu1 %v8086_v21 }
 0x6a8   :  { %v4418_v32 = vmax.f32 %v4329_v29, 0.0  ;;  %5842 = vperm.xlu1 %7512, %v10294_v9  }
 0x6a9   :  { %v4457_v48 = vpack.c.bf16 %v4417_v62, %v4415_v26 }
 0x6aa   :  { %v4458_v3 = vpack.c.bf16 %v4418_v32, %v4416_v56 }
 0x6ac   :  { %4815 = vmatprep.mubr.bf16.mxu0 %v4458_v3  ;;  %7513 = vset.pattern.permute.xlu1 %v8087_v42 }
 0x6ad   :  { %4816 = vmatmul.mubr.bf16.gmra.mrb[236].mxu0 %v4457_v48  ;;  %v10394_v48 = vpop.permute.xlu1 %5766  ;;  %6030 = vperm.xlu1 %7513, %v10339_v2  }
 0x6b1   :  { %6034 = vperm.xlu1 %7513, %v10360_v36  }
 0x6b5   :  { %v4332_v6 = vpop.f32.mrb[176].mxu1  ;;  %7514 = vset.pattern.permute.xlu1 %v8085_v11 }
 0x6b6   :  { %v4333_v50 = vadd.f32 %v4332_v6, %v10003_v57  ;;  %v4334_v58 = vpop.f32.mrb[177].mxu1 }
 0x6b7   :  { %v4335_v13 = vadd.f32 %v4334_v58, %v10007_v45  ;;  %v4336_v31 = vpop.f32.mrb[178].mxu1 }
 0x6b8   :  { %v4337_v28 = vadd.f32 %v4336_v31, %v10003_v57  ;;  %v4338_v16 = vpop.f32.mrb[179].mxu1  ;;  %v4419_v43 = vmax.f32 %v4333_v50, 0.0 }
 0x6b9   :  { %v4339_v49 = vadd.f32 %v4338_v16, %v10007_v45  ;;  %v4707_v14 = vpop.f32.mrb[192].mxu0  ;;  %v4420_v33 = vmax.f32 %v4335_v13, 0.0  ;;  %v10399_v16 = vpop.permute.xlu1 %5585 }
 0x6ba   :  { %v4421_v61 = vmax.f32 %v4337_v28, 0.0  ;;  %v4708_v60 = vadd.f32 %v4707_v14, %v10364_v51  ;;  %v4709_v25 = vpop.f32.mrb[193].mxu0 }
 0x6bb   :  { %v4422_v8 = vmax.f32 %v4339_v49, 0.0  ;;  %v4710_v30 = vadd.f32 %v4709_v25, %v10368_v27  ;;  %v4711_v15 = vpop.f32.mrb[194].mxu0 }
 0x6bc   :  { %v4459_v18 = vpack.c.bf16 %v4421_v61, %v4419_v43  ;;  %v4712_v22 = vadd.f32 %v4711_v15, %v10364_v51  ;;  %v4713_v55 = vpop.f32.mrb[195].mxu0  ;;  %v4866_v17 = vmax.f32 %v4708_v60, 0.0 }
 0x6bd   :  { %v4460_v34 = vpack.c.bf16 %v4422_v8, %v4420_v33  ;;  %v4714_v40 = vadd.f32 %v4713_v55, %v10368_v27  ;;  %v4867_v35 = vmax.f32 %v4710_v30, 0.0  ;;  %v10408_v33 = vld [vmem:[%s11351_s0 + $0xc0] sm:$0xff]  ;;  %v10410_v15 = vpop.permute.xlu1 %5590 }
 0x6be   :  { %v4868_v37 = vmax.f32 %v4712_v22, 0.0  ;;  %11652 = vst [vmem:[#allocation6_spill] sm:$0xff] %v10410_v15  ;;  %5675 = vperm.xlu1 %7514, %v10408_v33  }
 0x6bf   :  { %v4869_v52 = vmax.f32 %v4714_v40, 0.0  ;;  %4825 = vmatprep.mubr.bf16.mxu0 %v4460_v34 }
 0x6c0   :  { %v4930_v12 = vpack.c.bf16 %v4868_v37, %v4866_v17  ;;  %4826 = vmatmul.mubr.bf16.gmra.mrb[240].mxu0 %v4459_v18  ;;  %v10419_v17 = vld [vmem:[%s11351_s0 + $0xd0] sm:$0xff] }
 0x6c1   :  { %v4931_v24 = vpack.c.bf16 %v4869_v52, %v4867_v35  ;;  %v10414_v40 = vpop.permute.xlu1 %5778  ;;  %5685 = vperm.xlu0 %7519, %v10419_v17  }
 0x6c2   :  { %v4717_v54 = vpop.f32.mrb[196].mxu0  ;;  %11653 = vst [vmem:[#allocation7_spill] sm:$0xff] %v10414_v40  ;;  %7515 = vset.pattern.permute.xlu1 %v8086_v21 }
 0x6c3   :  { %v4718_v59 = vadd.f32 %v4717_v54, %v10364_v51  ;;  %v4719_v29 = vpop.f32.mrb[197].mxu0  ;;  %5198 = vmatprep.mubr.bf16.mxu1 %v4931_v24  ;;  %5846 = vperm.xlu1 %7515, %v10408_v33  }
 0x6c4   :  { %v4720_v26 = vadd.f32 %v4719_v29, %v10368_v27  ;;  %v4721_v62 = vpop.f32.mrb[198].mxu0  ;;  %5199 = vmatmul.mubr.bf16.vlgmr.msra.gmra.mrb[192].mxu1 %v4930_v12 }
 0x6c5   :  { %v4722_v56 = vadd.f32 %v4721_v62, %v10364_v51  ;;  %v4723_v32 = vpop.f32.mrb[199].mxu0  ;;  %v4870_v3 = vmax.f32 %v4718_v59, 0.0  ;;  %v10424_v35 = vpop.permute.xlu1 %5966 }
 0x6c6   :  { %v4724_v9 = vadd.f32 %v4723_v32, %v10368_v27  ;;  %v4871_v6 = vmax.f32 %v4720_v26, 0.0 }
 0x6c7   :  { %v4872_v4 = vmax.f32 %v4722_v56, 0.0  ;;  %5850 = vperm.xlu1 %7515, %v10307_v41  }
 0x6c8   :  { %v4873_v50 = vmax.f32 %v4724_v9, 0.0  ;;  %v4342_v58 = vpop.f32.mrb[180].mxu1  ;;  %v5548_v9 = vld [vmem:[%s11351_s0 + $0xd8] sm:$0xff] }
 0x6c9   :  { %v4932_v13 = vpack.c.bf16 %v4872_v4, %v4870_v3  ;;  %v4343_v31 = vadd.f32 %v4342_v58, %v10003_v57  ;;  %v4344_v28 = vpop.f32.mrb[181].mxu1  ;;  %v10431_v62 = vpop.permute.xlu1 %5970 }
 0x6ca   :  { %v4933_v49 = vpack.c.bf16 %v4873_v50, %v4871_v6  ;;  %v4345_v14 = vadd.f32 %v4344_v28, %v10007_v45  ;;  %v4346_v43 = vpop.f32.mrb[182].mxu1  ;;  %11654 = vst [vmem:[#allocation10_spill] sm:$0xff] %v10431_v62 }
 0x6cb   :  { %v4347_v61 = vadd.f32 %v4346_v43, %v10003_v57  ;;  %v4348_v60 = vpop.f32.mrb[183].mxu1  ;;  %v4423_v8 = vmax.f32 %v4343_v31, 0.0  ;;  %7516 = vset.pattern.permute.xlu1 %v8085_v11 }
 0x6cc   :  { %v4349_v25 = vadd.f32 %v4348_v60, %v10007_v45  ;;  %5208 = vmatprep.mubr.bf16.mxu1 %v4933_v49  ;;  %v4424_v18 = vmax.f32 %v4345_v14, 0.0  ;;  %5690 = vperm.xlu1 %7516, %v5548_v9  }
 0x6cd   :  { %v4425_v30 = vmax.f32 %v4347_v61, 0.0  ;;  %5209 = vmatmul.mubr.bf16.gmra.mrb[196].mxu1 %v4932_v13  ;;  %v10439_v49 = vpop.permute.xlu1 %5595 }
 0x6ce   :  { %v4426_v22 = vmax.f32 %v4349_v25, 0.0  ;;  %11655 = vst [vmem:[#allocation12_spill] sm:$0xff] %v10439_v49 }
 0x6cf   :  { %v4461_v55 = vpack.c.bf16 %v4425_v30, %v4423_v8 }
 0x6d0   :  { %v4462_v34 = vpack.c.bf16 %v4426_v22, %v4424_v18  ;;  %7517 = vset.pattern.permute.xlu1 %v8086_v21 }
 0x6d1   :  { %v10444_v18 = vpop.permute.xlu1 %5782  ;;  %5858 = vperm.xlu1 %7517, %v5548_v9  }
 0x6d2   :  { %4835 = vmatprep.mubr.bf16.mxu0 %v4462_v34  ;;  %11656 = vst [vmem:[#allocation15_spill] sm:$0xff] %v10444_v18 }
 0x6d3   :  { %4836 = vmatmul.mubr.bf16.gmra.mrb[244].mxu0 %v4461_v55  ;;  %v10449_v55 = vld [vmem:[%s11351_s0 + $0xe0] sm:$0xff] }
 0x6d4   :  { %5695 = vperm.xlu0 %7519, %v10449_v55  }
 0x6d5   :  { %v4727_v37 = vpop.f32.mrb[200].mxu0  ;;  %7518 = vset.pattern.permute.xlu1 %v8087_v42 }
 0x6d6   :  { %v4728_v52 = vadd.f32 %v4727_v37, %v10364_v51  ;;  %v4729_v12 = vpop.f32.mrb[201].mxu0  ;;  %v10452_v37 = vpop.permute.xlu1 %5786  ;;  %6042 = vperm.xlu1 %7518, %v10408_v33  }
 0x6d7   :  { %v4730_v24 = vadd.f32 %v4729_v12, %v10368_v27  ;;  %v4731_v54 = vpop.f32.mrb[202].mxu0  ;;  %11657 = vst [vmem:[#allocation13_spill] sm:$0xff] %v10452_v37 }
 0x6d8   :  { %v4732_v59 = vadd.f32 %v4731_v54, %v10364_v51  ;;  %v4733_v29 = vpop.f32.mrb[203].mxu0  ;;  %v4874_v56 = vmax.f32 %v4728_v52, 0.0  ;;  %v10455_v52 = vpop.permute.xlu0 %5758  ;;  %7520 = vset.pattern.permute.xlu0 %v8086_v21 }
 0x6d9   :  { %v4734_v26 = vadd.f32 %v4733_v29, %v10368_v27  ;;  %v4875_v3 = vmax.f32 %v4730_v24, 0.0  ;;  %5790 = vperm.xlu0 %7520, %v10235_v1  }
 0x6da   :  { %v4876_v32 = vmax.f32 %v4732_v59, 0.0  ;;  %v10461_v59 = vpop.permute.xlu1 %5610  ;;  %6050 = vperm.xlu1 %7518, %v10419_v17  }
 0x6db   :  { %v4877_v4 = vmax.f32 %v4734_v26, 0.0  ;;  %v4352_v6 = vpop.f32.mrb[184].mxu1  ;;  %11658 = vst [vmem:[#allocation8_spill] sm:$0xff] %v10461_v59 }
 0x6dc   :  { %v4934_v50 = vpack.c.bf16 %v4876_v32, %v4874_v56  ;;  %v4353_v58 = vadd.f32 %v4352_v6, %v10003_v57  ;;  %v4354_v13 = vpop.f32.mrb[185].mxu1  ;;  %v10468_v1 = vpop.permute.xlu0 %5770 }
 0x6dd   :  { %v4935_v41 = vpack.c.bf16 %v4877_v4, %v4875_v3  ;;  %v4355_v31 = vadd.f32 %v4354_v13, %v10007_v45  ;;  %v4356_v28 = vpop.f32.mrb[186].mxu1  ;;  %5802 = vperm.xlu0 %7520, %v10241_v53  }
 0x6de   :  { %v4357_v14 = vadd.f32 %v4356_v28, %v10003_v57  ;;  %v4358_v43 = vpop.f32.mrb[187].mxu1  ;;  %v4427_v60 = vmax.f32 %v4353_v58, 0.0  ;;  %v10470_v6 = vpop.permute.xlu1 %5794  ;;  %6054 = vperm.xlu1 %7518, %v5548_v9  }
 0x6df   :  { %v4359_v61 = vadd.f32 %v4358_v43, %v10007_v45  ;;  %5218 = vmatprep.mubr.bf16.mxu1 %v4935_v41  ;;  %v4428_v8 = vmax.f32 %v4355_v31, 0.0  ;;  %11659 = vst [vmem:[#allocation16_spill] sm:$0xff] %v10470_v6 }
 0x6e0   :  { %v4429_v25 = vmax.f32 %v4357_v14, 0.0  ;;  %5219 = vmatmul.mubr.bf16.gmra.mrb[200].mxu1 %v4934_v50 }
 0x6e1   :  { %v4430_v30 = vmax.f32 %v4359_v61, 0.0  ;;  %5806 = vperm.xlu0 %7520, %v10261_v39  }
 0x6e2   :  { %v4463_v22 = vpack.c.bf16 %v4429_v25, %v4427_v60  ;;  %v10476_v25 = vpop.permute.xlu1 %5978  ;;  %7521 = vset.pattern.permute.xlu1 %v8085_v11 }
 0x6e3   :  { %v4464_v34 = vpack.c.bf16 %v4430_v30, %v4428_v8  ;;  %11660 = vst [vmem:[#allocation17_spill] sm:$0xff] %v10476_v25  ;;  %v5550_v8 = vld [vmem:[%s11351_s0 + $0xe8] sm:$0xff] }
 0x6e4   :  { %5700 = vperm.xlu1 %7521, %v5550_v8  }
 0x6e5   :  { %4845 = vmatprep.mubr.bf16.mxu0 %v4464_v34  ;;  %v10482_v34 = vpop.permute.xlu0 %5774  ;;  %5822 = vperm.xlu0 %7520, %v10323_v23  }
 0x6e6   :  { %4846 = vmatmul.mubr.bf16.gmra.mrb[248].mxu0 %v4463_v22  ;;  %11661 = vst [vmem:[#allocation18_spill] sm:$0xff] %v10482_v34 }
 0x6e8   :  { %v4737_v12 = vpop.f32.mrb[204].mxu0  ;;  %7522 = vset.pattern.permute.xlu1 %v8086_v21 }
 0x6e9   :  { %v4738_v24 = vadd.f32 %v4737_v12, %v10364_v51  ;;  %v4739_v54 = vpop.f32.mrb[205].mxu0  ;;  %5834 = vperm.xlu0 %7520, %v10339_v2   ;;  %5862 = vperm.xlu1 %7522, %v10449_v55  }
 0x6ea   :  { %v4740_v29 = vadd.f32 %v4739_v54, %v10368_v27  ;;  %v4741_v26 = vpop.f32.mrb[206].mxu0 }
 0x6eb   :  { %v4742_v56 = vadd.f32 %v4741_v26, %v10364_v51  ;;  %v4743_v32 = vpop.f32.mrb[207].mxu0  ;;  %v4878_v3 = vmax.f32 %v4738_v24, 0.0  ;;  %v10486_v24 = vpop.permute.xlu1 %5986 }
 0x6ec   :  { %v4744_v33 = vadd.f32 %v4743_v32, %v10368_v27  ;;  %v4879_v50 = vmax.f32 %v4740_v29, 0.0  ;;  %11662 = vst [vmem:[#allocation19_spill] sm:$0xff] %v10486_v24  ;;  %v5551_v32 = vld [vmem:[%s11351_s0 + $0xf0] sm:$0xff] }
 0x6ed   :  { %v4880_v4 = vmax.f32 %v4742_v56, 0.0  ;;  %5838 = vperm.xlu0 %7520, %v10360_v36   ;;  %7523 = vset.pattern.permute.xlu1 %v8085_v11 }
 0x6ee   :  { %v4881_v58 = vmax.f32 %v4744_v33, 0.0  ;;  %v4362_v13 = vpop.f32.mrb[188].mxu1  ;;  %5705 = vperm.xlu1 %7523, %v5551_v32  }
 0x6ef   :  { %v4936_v41 = vpack.c.bf16 %v4880_v4, %v4878_v3  ;;  %v4363_v31 = vadd.f32 %v4362_v13, %v10003_v57  ;;  %v4364_v28 = vpop.f32.mrb[189].mxu1  ;;  %v10492_v29 = vpop.permute.xlu1 %5990 }
 0x6f0   :  { %v4937_v14 = vpack.c.bf16 %v4881_v58, %v4879_v50  ;;  %v4365_v43 = vadd.f32 %v4364_v28, %v10007_v45  ;;  %v4366_v61 = vpop.f32.mrb[190].mxu1  ;;  %11663 = vst [vmem:[#allocation20_spill] sm:$0xff] %v10492_v29  ;;  %v5552_v28 = vld [vmem:[%s11351_s0 + $0xf8] sm:$0xff] }
 0x6f1   :  { %v4367_v53 = vadd.f32 %v4366_v61, %v10003_v57  ;;  %v4368_v60 = vpop.f32.mrb[191].mxu1  ;;  %v4431_v22 = vmax.f32 %v4363_v31, 0.0  ;;  %5854 = vperm.xlu0 %7520, %v10419_v17   ;;  %v7911_v17 = vld [vmem:[%s11362_s11] sm:$0xff]  }
 0x6f2   :  { %v4369_v30 = vadd.f32 %v4368_v60, %v10007_v45  ;;  %5228 = vmatprep.mubr.bf16.mxu1 %v4937_v14  ;;  %v4432_v39 = vmax.f32 %v4365_v43, 0.0  ;;  %v10489_v45 = vpop.permute.xlu0 %5950  ;;  %5710 = vperm.xlu1 %7523, %v5552_v28  }
 0x6f3   :  { %v4433_v9 = vmax.f32 %v4367_v53, 0.0  ;;  %5229 = vmatmul.mubr.bf16.gmra.mrb[204].mxu1 %v4936_v41  ;;  %v10503_v50 = vpop.permute.xlu1 %5620  ;;  %7322 = vmatprep.subr.bf16.mxu0 %v7911_v17 }
 0x6f4   :  { %v4434_v12 = vmax.f32 %v4369_v30, 0.0  ;;  %11664 = vst [vmem:[#allocation21_spill] sm:$0xff] %v10503_v50  ;;  %7323 = vmatpush3.bf16.msra.mxu0 %v7911_v17 }
 0x6f5   :  { %v4465_v57 = vpack.c.bf16 %v4433_v9, %v4431_v22  ;;  %5866 = vperm.xlu0 %7520, %v5550_v8   ;;  %v7912_v9 = vld [vmem:[%s11362_s11 + $0x8] sm:$0xff]  }
 0x6f6   :  { %v4466_v54 = vpack.c.bf16 %v4434_v12, %v4432_v39  ;;  %v10506_v13 = vpop.permute.xlu0 %5962  ;;  %7524 = vset.pattern.permute.xlu1 %v8086_v21  ;;  %7324 = vmatprep.subr.bf16.mxu0 %v7912_v9 }
 0x6f7   :  { %v10512_v61 = vpop.permute.xlu1 %5798  ;;  %5874 = vperm.xlu1 %7524, %v5552_v28  }
 0x6f8   :  { %4855 = vmatprep.mubr.bf16.mxu0 %v4466_v54  ;;  %11665 = vst [vmem:[#allocation9_spill] sm:$0xff] %v10512_v61  ;;  %7325 = vmatpush3.bf16.msra.mxu0 %v7912_v9 }
 0x6f9   :  { %4856 = vmatmul.mubr.bf16.gmra.mrb[252].mxu0 %v4465_v57  ;;  %5870 = vperm.xlu0 %7520, %v5551_v32  }
 0x6fa   :  { %v10514_v53 = vpop.permute.xlu0 %5974 }
 0x6fb   :  { %v4747_v26 = vpop.f32.mrb[208].mxu0  ;;  %11666 = vst [vmem:[#allocation22_spill] sm:$0xff] %v10514_v53  ;;  %v10516_v60 = vpop.permute.xlu1 %5625  ;;  %7526 = vset.pattern.permute.xlu1 %v8087_v42 }
 0x6fc   :  { %v4748_v56 = vadd.f32 %v4747_v26, %v10364_v51  ;;  %v4749_v23 = vpop.f32.mrb[209].mxu0  ;;  %11667 = vst [vmem:[#allocation23_spill] sm:$0xff] %v10516_v60  ;;  %6062 = vperm.xlu1 %7526, %v5550_v8  }
 0x6fd   :  { %v4750_v33 = vadd.f32 %v4749_v23, %v10368_v27  ;;  %v4751_v3 = vpop.f32.mrb[210].mxu0  ;;  %7525 = vset.pattern.permute.xlu0 %v8087_v42 }
 0x6fe   :  { %v4752_v4 = vadd.f32 %v4751_v3, %v10364_v51  ;;  %v4753_v2 = vpop.f32.mrb[211].mxu0  ;;  %v4882_v41 = vmax.f32 %v4748_v56, 0.0  ;;  %v10521_v22 = vpop.permute.xlu0 %5982  ;;  %6058 = vperm.xlu0 %7525, %v10449_v55  }
 0x6ff   :  { %v4754_v58 = vadd.f32 %v4753_v2, %v10368_v27  ;;  %v4883_v14 = vmax.f32 %v4750_v33, 0.0  ;;  %v10519_v30 = vpop.permute.xlu1 %5630  ;;  %11668 = vst [vmem:[#allocation11_spill] sm:$0xff] %v10521_v22 }
 0x700   :  { %v4884_v31 = vmax.f32 %v4752_v4, 0.0  ;;  %6066 = vperm.xlu1 %7526, %v5551_v32   ;;  %v5520_v32 = vld [vmem:[%s11360_s9] sm:$0x7] }
 0x701   :  { %v4885_v36 = vmax.f32 %v4754_v58, 0.0  ;;  %v10559_v17 = vrot.slane %v5520_v32, %v8365_v5 }
 0x702   :  { %v4938_v43 = vpack.c.bf16 %v4884_v31, %v4882_v41  ;;  %v10537_v8 = vpop.permute.xlu0 %5994  ;;  %6070 = vperm.xlu0 %7525, %v5552_v28  }
 0x703   :  { %v4939_v11 = vpack.c.bf16 %v4885_v36, %v4883_v14  ;;  %v10532_v39 = vpop.permute.xlu1 %5810  ;;  %11669 = vst [vmem:[#allocation24_spill] sm:$0xff] %v10537_v8  ;;  %v7913_v14 = vld [vmem:[%s11362_s11 + $0x10] sm:$0xff]  }
 0x704   :  { %7326 = vmatprep.subr.bf16.mxu0 %v7913_v14 }
 0x705   :  { %5238 = vmatprep.mubr.bf16.mxu1 %v4939_v11  ;;  %7327 = vmatpush3.bf16.msra.mxu0 %v7913_v14  ;;  %v7914_v11 = vld [vmem:[%s11362_s11 + $0x18] sm:$0xff]  }
 0x706   :  { %5239 = vmatmul.mubr.bf16.gmra.mrb[208].mxu1 %v4938_v43  ;;  %v10547_v36 = vpop.permute.xlu0 %6006  ;;  %v10553_v43 = vrot.slane %v5520_v32, %v8372_v7  ;;  %7328 = vmatprep.subr.bf16.mxu0 %v7914_v11 }
 0x707   :  { %v10540_v55 = vpop.permute.xlu1 %5998 }
 0x708   :  { %11670 = vst [vmem:[#allocation25_spill] sm:$0xff] %v10540_v55 }
 0x709   :  { %7329 = vmatpush3.bf16.msra.mxu0 %v7914_v11 }
 0x70a   :  { %v10561_v9 = vpop.permute.xlu0 %6014 }
 0x70b   :  { %v10542_v31 = vpop.permute.xlu1 %6002 }
 0x70c   :  { %11671 = vst [vmem:[#allocation26_spill] sm:$0xff] %v10542_v31 }
 0x70e   :  { %v4757_v21 = vpop.f32.mrb[212].mxu0 }
 0x70f   :  { %v4758_v12 = vadd.f32 %v4757_v21, %v10364_v51  ;;  %v4759_v57 = vpop.f32.mrb[213].mxu0  ;;  %v5636_v28 = vpop.permute.xlu1 %5635 }
 0x710   :  { %v4760_v54 = vadd.f32 %v4759_v57, %v10368_v27  ;;  %v4761_v26 = vpop.f32.mrb[214].mxu0  ;;  %v5733_v21 = vmul.f32 %v10553_v43, %v5636_v28  ;;  %v7915_v57 = vld [vmem:[%s11362_s11 + $0x20] sm:$0xff]  }
 0x711   :  { %v4762_v56 = vadd.f32 %v4761_v26, %v10364_v51  ;;  %v4763_v23 = vpop.f32.mrb[215].mxu0  ;;  %v4886_v33 = vmax.f32 %v4758_v12, 0.0  ;;  %7330 = vmatprep.subr.bf16.mxu0 %v7915_v57  ;;  %v7916_v26 = vld [vmem:[%s11362_s11 + $0x28] sm:$0xff]  }
 0x712   :  { %v4764_v42 = vadd.f32 %v4763_v23, %v10368_v27  ;;  %v4887_v4 = vmax.f32 %v4760_v54, 0.0  ;;  %7331 = vmatpush3.bf16.msra.mxu0 %v7915_v57  ;;  %v7917_v57 = vld [vmem:[%s11362_s11 + $0x30] sm:$0xff]  }
 0x713   :  { %v4888_v3 = vmax.f32 %v4762_v56, 0.0  ;;  %v5815_v12 = vpop.permute.xlu1 %5814  ;;  %7332 = vmatprep.subr.bf16.mxu0 %v7916_v26 }
 0x714   :  { %v4889_v2 = vmax.f32 %v4764_v42, 0.0  ;;  %v5897_v54 = vmul.f32 %v10559_v17, %v5815_v12 }
 0x715   :  { %v4940_v58 = vpack.c.bf16 %v4888_v3, %v4886_v33 }
 0x716   :  { %v4941_v41 = vpack.c.bf16 %v4889_v2, %v4887_v4  ;;  %v5929_v23 = vadd.f32 %v5897_v54, %v5733_v21  ;;  %7333 = vmatpush3.bf16.msra.mxu0 %v7916_v26  ;;  %v11672_v26 = vld [vmem:[#allocation5_spill] sm:$0xff] }
 0x717   :  { %v10572_v3 = vpop.permute.xlu1 %5818  ;;  %7334 = vmatprep.subr.bf16.mxu0 %v7917_v57 }
 0x718   :  { %5248 = vmatprep.mubr.bf16.mxu1 %v4941_v41 }
 0x719   :  { %5249 = vmatmul.mubr.bf16.gmra.mrb[212].mxu1 %v4940_v58  ;;  %v10575_v58 = vpop.permute.xlu0 %6026 }
 0x71a   :  { %7335 = vmatpush3.bf16.msra.mxu0 %v7917_v57 }
 0x71b   :  { %v5651_v21 = vpop.permute.xlu1 %5650 }
 0x71d   :  { %v10579_v55 = vpop.permute.xlu0 %6038 }
 0x721   :  { %v4767_v56 = vpop.f32.mrb[216].mxu0 }
 0x722   :  { %v4768_v42 = vadd.f32 %v4767_v56, %v10364_v51  ;;  %v4769_v33 = vpop.f32.mrb[217].mxu0 }
 0x723   :  { %v4770_v4 = vadd.f32 %v4769_v33, %v10368_v27  ;;  %v4771_v2 = vpop.f32.mrb[218].mxu0  ;;  %v5736_v33 = vmul.f32 %v10553_v43, %v5651_v21 }
 0x724   :  { %v4772_v41 = vadd.f32 %v4771_v2, %v10364_v51  ;;  %v4773_v14 = vpop.f32.mrb[219].mxu0  ;;  %v4890_v11 = vmax.f32 %v4768_v42, 0.0  ;;  %v5827_v2 = vpop.permute.xlu1 %5826  ;;  %v7918_v42 = vld [vmem:[%s11362_s11 + $0x38] sm:$0xff]  }
 0x725   :  { %v4774_v28 = vadd.f32 %v4773_v14, %v10368_v27  ;;  %v4891_v54 = vmax.f32 %v4770_v4, 0.0  ;;  %v5900_v4 = vmul.f32 %v10559_v17, %v5827_v2  ;;  %7336 = vmatprep.subr.bf16.mxu0 %v7918_v42 }
 0x726   :  { %v4892_v12 = vmax.f32 %v4772_v41, 0.0  ;;  %v10590_v41 = vrot.slane %v5520_v32, %v11672_v26  ;;  %7337 = vmatpush3.bf16.msra.mxu0 %v7918_v42 }
 0x727   :  { %v4893_v56 = vmax.f32 %v4774_v28, 0.0  ;;  %v5932_v14 = vadd.f32 %v5900_v4, %v5736_v33 }
 0x728   :  { %v4942_v31 = vpack.c.bf16 %v4892_v12, %v4890_v11  ;;  %v6011_v28 = vpop.permute.xlu1 %6010  ;;  %v10592_v11 = vpop.permute.xlu0 %6046 }
 0x729   :  { %v4943_v60 = vpack.c.bf16 %v4893_v56, %v4891_v54  ;;  %v6093_v12 = vmul.f32 %v10590_v41, %v6011_v28 }
 0x72b   :  { %5258 = vmatprep.mubr.bf16.mxu1 %v4943_v60  ;;  %v10595_v21 = vadd.f32 %v6093_v12, %v5929_v23 }
 0x72c   :  { %5259 = vmatmul.mubr.bf16.gmra.mrb[216].mxu1 %v4942_v31  ;;  %v10597_v54 = vpop.permute.xlu1 %6018  ;;  %v10600_v57 = vpop.permute.xlu0 %5560 }
 0x72d   :  { %11673 = vst [vmem:[#allocation14_spill] sm:$0xff] %v10595_v21 }
 0x730   :  { %v6023_v2 = vpop.permute.xlu1 %6022  ;;  %v10606_v21 = vpop.permute.xlu0 %5565 }
 0x731   :  { %v6096_v28 = vmul.f32 %v10590_v41, %v6023_v2 }
 0x733   :  { %v10608_v8 = vadd.f32 %v6096_v28, %v5932_v14 }
 0x734   :  { %v4777_v60 = vpop.f32.mrb[220].mxu0  ;;  %v10610_v61 = vpop.permute.xlu1 %5660 }
 0x735   :  { %v4778_v56 = vadd.f32 %v4777_v60, %v10364_v51  ;;  %v4779_v31 = vpop.f32.mrb[221].mxu0  ;;  %11674 = vst [vmem:[#allocation27_spill] sm:$0xff] %v10608_v8  ;;  %v10612_v24 = vpop.permute.xlu0 %5575 }
 0x736   :  { %v4780_v32 = vadd.f32 %v4779_v31, %v10368_v27  ;;  %v4781_v33 = vpop.f32.mrb[222].mxu0 }
 0x737   :  { %v4782_v4 = vadd.f32 %v4781_v33, %v10364_v51  ;;  %v4783_v26 = vpop.f32.mrb[223].mxu0  ;;  %v4894_v42 = vmax.f32 %v4778_v56, 0.0 }
 0x738   :  { %v4784_v23 = vadd.f32 %v4783_v26, %v10368_v27  ;;  %v4895_v60 = vmax.f32 %v4780_v32, 0.0  ;;  %v5831_v33 = vpop.permute.xlu1 %5830 }
 0x739   :  { %v4896_v12 = vmax.f32 %v4782_v4, 0.0  ;;  %v10614_v2 = vpop.permute.xlu0 %5600 }
 0x73a   :  { %v4897_v50 = vmax.f32 %v4784_v23, 0.0  ;;  %11675 = vst [vmem:[#allocation29_spill] sm:$0xff] %v10614_v2 }
 0x73b   :  { %v4944_v31 = vpack.c.bf16 %v4896_v12, %v4894_v42 }
 0x73c   :  { %v4945_v29 = vpack.c.bf16 %v4897_v50, %v4895_v60  ;;  %v10616_v26 = vpop.permute.xlu1 %5665 }
 0x73d   :  { %v10618_v56 = vpop.permute.xlu0 %5605 }
 0x73e   :  { %5268 = vmatprep.mubr.bf16.mxu1 %v4945_v29  ;;  %11676 = vst [vmem:[#allocation33_spill] sm:$0xff] %v10618_v56 }
 0x73f   :  { %5269 = vmatmul.mubr.bf16.gmra.mrb[220].mxu1 %v4944_v31 }
 0x740   :  { %v5671_v4 = vpop.permute.xlu1 %5670 }
 0x741   :  { %v5740_v50 = vmul.f32 %v10553_v43, %v5671_v4  ;;  %v10626_v6 = vpop.permute.xlu0 %5615  ;;  %v5898_v4 = vmul.f32 %v10559_v17, %v10572_v3 }
 0x742   :  { %11677 = vst [vmem:[#allocation31_spill] sm:$0xff] %v10626_v6 }
 0x744   :  { %v5843_v60 = vpop.permute.xlu1 %5842 }
 0x745   :  { %v5904_v8 = vmul.f32 %v10559_v17, %v5843_v60  ;;  %v5641_v37 = vpop.permute.xlu0 %5640 }
 0x747   :  { %v4787_v14 = vpop.f32.mrb[224].mxu0  ;;  %v10628_v25 = vadd.f32 %v5904_v8, %v5740_v50  ;;  %v5901_v8 = vmul.f32 %v10559_v17, %v5831_v33 }
 0x748   :  { %v4788_v32 = vadd.f32 %v4787_v14, %v10364_v51  ;;  %v4789_v28 = vpop.f32.mrb[225].mxu0 }
 0x749   :  { %v4790_v23 = vadd.f32 %v4789_v28, %v10368_v27  ;;  %v4791_v42 = vpop.f32.mrb[226].mxu0 }
 0x74a   :  { %v4792_v29 = vadd.f32 %v4791_v42, %v10364_v51  ;;  %v4793_v12 = vpop.f32.mrb[227].mxu0  ;;  %v4898_v59 = vmax.f32 %v4788_v32, 0.0  ;;  %v10632_v42 = vpop.permute.xlu1 %6030 }
 0x74b   :  { %v4794_v31 = vadd.f32 %v4793_v12, %v10368_v27  ;;  %v4899_v22 = vmax.f32 %v4790_v23, 0.0  ;;  %11678 = vst [vmem:[#allocation28_spill] sm:$0xff] %v10632_v42  ;;  %v5734_v12 = vmul.f32 %v10553_v43, %v5641_v37  ;;  %v5646_v23 = vpop.permute.xlu0 %5645 }
 0x74c   :  { %v4900_v56 = vmax.f32 %v4792_v29, 0.0 }
 0x74d   :  { %v4901_v14 = vmax.f32 %v4794_v31, 0.0  ;;  %v10635_v60 = vadd.f32 %v5898_v4, %v5734_v12 }
 0x74e   :  { %v4946_v28 = vpack.c.bf16 %v4900_v56, %v4898_v59  ;;  %v10637_v32 = vpop.permute.xlu1 %6034 }
 0x74f   :  { %v4947_v2 = vpack.c.bf16 %v4901_v14, %v4899_v22  ;;  %11679 = vst [vmem:[#allocation34_spill] sm:$0xff] %v10637_v32  ;;  %v5656_v59 = vpop.permute.xlu0 %5655 }
 0x750   :  { %v5737_v56 = vmul.f32 %v10553_v43, %v5656_v59 }
 0x751   :  { %5278 = vmatprep.mubr.bf16.mxu1 %v4947_v2 }
 0x752   :  { %5279 = vmatmul.mubr.bf16.gmra.mrb[224].mxu1 %v4946_v28  ;;  %v5676_v50 = vpop.permute.xlu1 %5675  ;;  %v10642_v29 = vadd.f32 %v5901_v8, %v5737_v56 }
 0x753   :  { %v5741_v22 = vmul.f32 %v10553_v43, %v5676_v50  ;;  %v5681_v12 = vpop.permute.xlu0 %5680 }
 0x754   :  { %v5742_v50 = vmul.f32 %v10553_v43, %v5681_v12 }
 0x756   :  { %v5847_v31 = vpop.permute.xlu1 %5846 }
 0x757   :  { %v5905_v4 = vmul.f32 %v10559_v17, %v5847_v31 }
 0x759   :  { %v5937_v32 = vadd.f32 %v5905_v4, %v5741_v22 }
 0x75a   :  { %v4797_v3 = vpop.f32.mrb[228].mxu0  ;;  %v5851_v18 = vpop.permute.xlu1 %5850 }
 0x75b   :  { %v4798_v37 = vadd.f32 %v4797_v3, %v10364_v51  ;;  %v4799_v2 = vpop.f32.mrb[229].mxu0  ;;  %v5906_v42 = vmul.f32 %v10559_v17, %v5851_v18 }
 0x75c   :  { %v4800_v14 = vadd.f32 %v4799_v2, %v10368_v27  ;;  %v4801_v28 = vpop.f32.mrb[230].mxu0  ;;  %v5686_v2 = vpop.permute.xlu0 %5685 }
 0x75d   :  { %v4802_v33 = vadd.f32 %v4801_v28, %v10364_v51  ;;  %v4803_v6 = vpop.f32.mrb[231].mxu0  ;;  %v4902_v8 = vmax.f32 %v4798_v37, 0.0  ;;  %v10651_v31 = vadd.f32 %v5906_v42, %v5742_v50 }
 0x75e   :  { %v4804_v59 = vadd.f32 %v4803_v6, %v10368_v27  ;;  %v4903_v3 = vmax.f32 %v4800_v14, 0.0  ;;  %v5691_v40 = vpop.permute.xlu1 %5690 }
 0x75f   :  { %v4904_v56 = vmax.f32 %v4802_v33, 0.0  ;;  %v5744_v6 = vmul.f32 %v10553_v43, %v5691_v40 }
 0x760   :  { %v4905_v49 = vmax.f32 %v4804_v59, 0.0  ;;  %v5696_v28 = vpop.permute.xlu0 %5695 }
 0x761   :  { %v4948_v53 = vpack.c.bf16 %v4904_v56, %v4902_v8 }
 0x762   :  { %v4949_v62 = vpack.c.bf16 %v4905_v49, %v4903_v3  ;;  %v5859_v22 = vpop.permute.xlu1 %5858 }
 0x763   :  { %v5908_v37 = vmul.f32 %v10559_v17, %v5859_v22 }
 0x764   :  { %5288 = vmatprep.mubr.bf16.mxu1 %v4949_v62  ;;  %v10655_v4 = vpop.permute.xlu0 %5790 }
 0x765   :  { %5289 = vmatmul.mubr.bf16.gmra.mrb[228].mxu1 %v4948_v53  ;;  %11680 = vst [vmem:[#allocation35_spill] sm:$0xff] %v10655_v4  ;;  %v5940_v14 = vadd.f32 %v5908_v37, %v5744_v6 }
 0x766   :  { %v6043_v12 = vpop.permute.xlu1 %6042 }
 0x767   :  { %v6101_v18 = vmul.f32 %v10590_v41, %v6043_v12 }
 0x768   :  { %v10658_v33 = vpop.permute.xlu0 %5802 }
 0x769   :  { %11681 = vst [vmem:[#allocation36_spill] sm:$0xff] %v10658_v33  ;;  %v10661_v62 = vadd.f32 %v6101_v18, %v5937_v32  ;;  %v5735_v32 = vmul.f32 %v10553_v43, %v5646_v23 }
 0x76a   :  { %v10664_v50 = vpop.permute.xlu1 %6050 }
 0x76b   :  { %11682 = vst [vmem:[#allocation38_spill] sm:$0xff] %v10661_v62  ;;  %11683 = vst [vmem:[#allocation37_spill] sm:$0xff] %v10664_v50 }
 0x76c   :  { %v10667_v3 = vpop.permute.xlu0 %5806 }
 0x76d   :  { %v4807_v49 = vpop.f32.mrb[232].mxu0  ;;  %11684 = vst [vmem:[#allocation30_spill] sm:$0xff] %v10667_v3 }
 0x76e   :  { %v4808_v42 = vadd.f32 %v4807_v49, %v10364_v51  ;;  %v4809_v59 = vpop.f32.mrb[233].mxu0  ;;  %v6055_v49 = vpop.permute.xlu1 %6054 }
 0x76f   :  { %v4810_v53 = vadd.f32 %v4809_v59, %v10368_v27  ;;  %v4811_v40 = vpop.f32.mrb[234].mxu0  ;;  %v6104_v18 = vmul.f32 %v10590_v41, %v6055_v49  ;;  %v5743_v49 = vmul.f32 %v10553_v43, %v5686_v2 }
 0x770   :  { %v4812_v8 = vadd.f32 %v4811_v40, %v10364_v51  ;;  %v4813_v56 = vpop.f32.mrb[235].mxu0  ;;  %v4906_v22 = vmax.f32 %v4808_v42, 0.0  ;;  %v5823_v62 = vpop.permute.xlu0 %5822  ;;  %v5738_v42 = vmul.f32 %v10553_v43, %v10610_v61 }
 0x771   :  { %v4814_v6 = vadd.f32 %v4813_v56, %v10368_v27  ;;  %v4907_v12 = vmax.f32 %v4810_v53, 0.0  ;;  %v10672_v50 = vadd.f32 %v6104_v18, %v5940_v14  ;;  %v5899_v40 = vmul.f32 %v10559_v17, %v5823_v62 }
 0x772   :  { %v4908_v37 = vmax.f32 %v4812_v8, 0.0  ;;  %v5701_v3 = vpop.permute.xlu1 %5700  ;;  %v5745_v56 = vmul.f32 %v10553_v43, %v5696_v28  ;;  %v5739_v14 = vmul.f32 %v10553_v43, %v10616_v26 }
 0x773   :  { %v4909_v33 = vmax.f32 %v4814_v6, 0.0  ;;  %11685 = vst [vmem:[#allocation39_spill] sm:$0xff] %v10672_v50  ;;  %v10677_v53 = vadd.f32 %v5899_v40, %v5735_v32 }
 0x774   :  { %v4950_v4 = vpack.c.bf16 %v4908_v37, %v4906_v22  ;;  %v5835_v8 = vpop.permute.xlu0 %5834 }
 0x775   :  { %v4951_v59 = vpack.c.bf16 %v4909_v33, %v4907_v12  ;;  %v5902_v23 = vmul.f32 %v10559_v17, %v5835_v8 }
 0x776   :  { %v5863_v6 = vpop.permute.xlu1 %5862 }
 0x777   :  { %5298 = vmatprep.mubr.bf16.mxu1 %v4951_v59  ;;  %v10683_v33 = vadd.f32 %v5902_v23, %v5738_v42  ;;  %v5909_v62 = vmul.f32 %v10559_v17, %v5863_v6 }
 0x778   :  { %5299 = vmatmul.mubr.bf16.gmra.mrb[232].mxu1 %v4950_v4  ;;  %v5839_v22 = vpop.permute.xlu0 %5838 }
 0x779   :  { %11686 = vst [vmem:[#allocation40_spill] sm:$0xff] %v10683_v33  ;;  %v5941_v4 = vadd.f32 %v5909_v62, %v5745_v56  ;;  %v5903_v37 = vmul.f32 %v10559_v17, %v5839_v22  ;;  %v5746_v62 = vmul.f32 %v10553_v43, %v5701_v3 }
 0x77a   :  { %v5706_v61 = vpop.permute.xlu1 %5705 }
 0x77b   :  { %v10688_v32 = vadd.f32 %v5903_v37, %v5739_v14  ;;  %v5747_v15 = vmul.f32 %v10553_v43, %v5706_v61  ;;  %v5881_v61 = vmul.f32 %v10559_v17, %v10326_v20  ;;  %v4994_v20 = vld [vmem:[%s11361_s10] sm:$0x3]  ;;  %s8088_s10 = smov 3  }
 0x77c   :  { %v5855_v59 = vpop.permute.xlu0 %5854 }
 0x77d   :  { %11687 = vst [vmem:[#allocation41_spill] sm:$0xff] %v10688_v32  ;;  %v5907_v42 = vmul.f32 %v10559_v17, %v5855_v59 }
 0x77e   :  { %v5711_v23 = vpop.permute.xlu1 %5710 }
 0x77f   :  { %v10696_v2 = vadd.f32 %v5907_v42, %v5743_v49 }
 0x780   :  { %v4817_v12 = vpop.f32.mrb[236].mxu0  ;;  %v5867_v37 = vpop.permute.xlu0 %5866 }
 0x781   :  { %v4818_v28 = vadd.f32 %v4817_v12, %v10364_v51  ;;  %v4819_v18 = vpop.f32.mrb[237].mxu0  ;;  %v5910_v32 = vmul.f32 %v10559_v17, %v5867_v37 }
 0x782   :  { %v4820_v26 = vadd.f32 %v4819_v18, %v10368_v27  ;;  %v4821_v40 = vpop.f32.mrb[238].mxu0  ;;  %v5748_v18 = vmul.f32 %v10553_v43, %v5711_v23  ;;  %v5875_v33 = vpop.permute.xlu1 %5874 }
 0x783   :  { %v4822_v8 = vadd.f32 %v4821_v40, %v10364_v51  ;;  %v4823_v56 = vpop.f32.mrb[239].mxu0  ;;  %v4910_v14 = vmax.f32 %v4818_v28, 0.0  ;;  %v5942_v34 = vadd.f32 %v5910_v32, %v5746_v62  ;;  %v5732_v32 = vmul.f32 %v10553_v43, %v10519_v30 }
 0x784   :  { %v4824_v6 = vadd.f32 %v4823_v56, %v10368_v27  ;;  %v4911_v12 = vmax.f32 %v4820_v26, 0.0  ;;  %v5912_v56 = vmul.f32 %v10559_v17, %v5875_v33  ;;  %v5871_v3 = vpop.permute.xlu0 %5870  ;;  %v5882_v62 = vmul.f32 %v10559_v17, %v10334_v63 }
 0x785   :  { %v4912_v22 = vmax.f32 %v4822_v8, 0.0  ;;  %v5911_v28 = vmul.f32 %v10559_v17, %v5871_v3  ;;  %v6077_v30 = vmul.f32 %v10590_v41, %v10355_v19  ;;  %v6078_v63 = vmul.f32 %v10590_v41, %v10489_v45 }
 0x786   :  { %v4913_v50 = vmax.f32 %v4824_v6, 0.0  ;;  %v10702_v49 = vadd.f32 %v5912_v56, %v5748_v18  ;;  %v6063_v42 = vpop.permute.xlu1 %6062  ;;  %v5896_v6 = vmul.f32 %v10559_v17, %v10532_v39  ;;  %v10736_v18 = vrot.slane %v4994_v20, %v8372_v7 }
 0x787   :  { %v4952_v59 = vpack.c.bf16 %v4912_v22, %v4910_v14  ;;  %v10705_v26 = vadd.f32 %v5911_v28, %v5747_v15  ;;  %v6106_v8 = vmul.f32 %v10590_v41, %v6063_v42  ;;  %v5718_v14 = vmul.f32 %v10553_v43, %v10600_v57 }
 0x788   :  { %v4953_v40 = vpack.c.bf16 %v4913_v50, %v4911_v12  ;;  %v6059_v23 = vpop.permute.xlu0 %6058  ;;  %v5717_v50 = vmul.f32 %v10553_v43, %v10316_v0  ;;  %v5928_v39 = vadd.f32 %v5896_v6, %v5732_v32  ;;  %v10740_v19 = vrot.slane %v4994_v20, %v8365_v5 }
 0x789   :  { %v6105_v33 = vmul.f32 %v10590_v41, %v6059_v23  ;;  %v10717_v15 = vadd.f32 %v6106_v8, %v5942_v34  ;;  %v6092_v34 = vmul.f32 %v10590_v41, %v10547_v36  ;;  %v5914_v12 = vadd.f32 %v5882_v62, %v5718_v14 }
 0x78a   :  { %5308 = vmatprep.mubr.bf16.mxu1 %v4953_v40  ;;  %v5913_v22 = vadd.f32 %v5881_v61, %v5717_v50  ;;  %v5720_v36 = vmul.f32 %v10553_v43, %v10343_v38  ;;  %v5883_v28 = vmul.f32 %v10559_v17, %v10455_v52  ;;  %v5719_v8 = vmul.f32 %v10553_v43, %v10606_v21 }
 0x78b   :  { %5309 = vmatmul.mubr.bf16.gmra.mrb[236].mxu1 %v4952_v59  ;;  %v10723_v0 = vadd.f32 %v6105_v33, %v5941_v4  ;;  %v10750_v23 = vadd.f32 %v6092_v34, %v5928_v39  ;;  %v6110_v33 = vadd.f32 %v6078_v63, %v5914_v12  ;;  %v5884_v32 = vmul.f32 %v10559_v17, %v10347_v47 }
 0x78c   :  { %v6109_v56 = vadd.f32 %v6077_v30, %v5913_v22  ;;  %v6079_v34 = vmul.f32 %v10590_v41, %v10375_v10  ;;  %v5915_v47 = vadd.f32 %v5883_v28, %v5719_v8 }
 0x793   :  { %v4827_v37 = vpop.f32.mrb[240].mxu0 }
 0x794   :  { %v4828_v57 = vadd.f32 %v4827_v37, %v10364_v51  ;;  %v4829_v4 = vpop.f32.mrb[241].mxu0 }
 0x795   :  { %v4830_v59 = vadd.f32 %v4829_v4, %v10368_v27  ;;  %v4831_v40 = vpop.f32.mrb[242].mxu0  ;;  %v6080_v4 = vmul.f32 %v10590_v41, %v10383_v44 }
 0x796   :  { %v4832_v3 = vadd.f32 %v4831_v40, %v10364_v51  ;;  %v4833_v45 = vpop.f32.mrb[243].mxu0  ;;  %v4914_v5 = vmax.f32 %v4828_v57, 0.0  ;;  %v5916_v57 = vadd.f32 %v5884_v32, %v5720_v36  ;;  %v6111_v40 = vadd.f32 %v6079_v34, %v5915_v47 }
 0x797   :  { %v4834_v42 = vadd.f32 %v4833_v45, %v10368_v27  ;;  %v5200_v7 = vpop.f32.mrb[192].mxu1  ;;  %v4915_v6 = vmax.f32 %v4830_v59, 0.0  ;;  %v5721_v34 = vmul.f32 %v10553_v43, %v10612_v24 }
 0x798   :  { %v4916_v50 = vmax.f32 %v4832_v3, 0.0  ;;  %v5201_v61 = vadd.f32 %v5200_v7, %v10736_v18  ;;  %v5202_v38 = vpop.f32.mrb[193].mxu1  ;;  %v6112_v3 = vadd.f32 %v6080_v4, %v5916_v57  ;;  %v5886_v57 = vmul.f32 %v10559_v17, %v10468_v1 }
 0x799   :  { %v4917_v62 = vmax.f32 %v4834_v42, 0.0  ;;  %v5203_v52 = vadd.f32 %v5202_v38, %v10740_v19  ;;  %v5204_v14 = vpop.f32.mrb[194].mxu1  ;;  %v6100_v1 = vmul.f32 %v10590_v41, %v10579_v55 }
 0x79a   :  { %v4954_v20 = vpack.c.bf16 %v4916_v50, %v4914_v5  ;;  %v6141_v22 = vadd.f32 %v6109_v56, %v5201_v61  ;;  %v5205_v21 = vadd.f32 %v5204_v14, %v10736_v18  ;;  %v5206_v30 = vpop.f32.mrb[195].mxu1  ;;  %v6094_v61 = vmul.f32 %v10590_v41, %v10561_v9 }
 0x79b   :  { %v4955_v39 = vpack.c.bf16 %v4917_v62, %v4915_v6  ;;  %v5207_v37 = vadd.f32 %v5206_v30, %v10740_v19  ;;  %5391 = vrot.lane.b32.xlu1 %v5203_v52, %s8088_s10  ;;  %v5885_v30 = vmul.f32 %v10559_v17, %v10394_v48 }
 0x79c   :  { %v6142_v63 = vadd.f32 %v6110_v33, %v5205_v21  ;;  %v6173_v12 = vmax.f32 %v6141_v22, 0.0 }
 0x79d   :  { %5318 = vmatprep.mubr.bf16.mxu1 %v4955_v39  ;;  %5393 = vrot.lane.b32.xlu0 %v5207_v37, %s8088_s10  ;;  %v10781_v39 = vadd.f32 %v6094_v61, %v10635_v60  ;;  %v5917_v24 = vadd.f32 %v5885_v30, %v5721_v34  ;;  %v6082_v60 = vmul.f32 %v10590_v41, %v10424_v35  ;;  %v11689_v34 = vld [vmem:[#allocation6_spill] sm:$0xff] }
 0x79e   :  { %v6174_v59 = vmax.f32 %v6142_v63, 0.0  ;;  %5319 = vmatmul.mubr.bf16.gmra.mrb[240].mxu1 %v4954_v20  ;;  %v5722_v63 = vmul.f32 %v10553_v43, %v10388_v46  ;;  %v6097_v46 = vmul.f32 %v10590_v41, %v10575_v58  ;;  %v6095_v35 = vmul.f32 %v10590_v41, %v10597_v54 }
 0x7a0   :  { %v5210_v10 = vpop.f32.mrb[196].mxu1  ;;  %v6205_v56 = vpack.c.bf16 %v6174_v59, %v6173_v12  ;;  %v6081_v59 = vmul.f32 %v10590_v41, %v10506_v13  ;;  %v10803_v55 = vadd.f32 %v6097_v46, %v10642_v29 }
 0x7a1   :  { %v5211_v45 = vadd.f32 %v5210_v10, %v10736_v18  ;;  %v5212_v42 = vpop.f32.mrb[197].mxu1  ;;  %v5918_v10 = vadd.f32 %v5886_v57, %v5722_v63 }
 0x7a2   :  { %v5213_v28 = vadd.f32 %v5212_v42, %v10740_v19  ;;  %v5214_v7 = vpop.f32.mrb[198].mxu1  ;;  %7338 = vmatprep.mubr.bf16.mxu0 %v6205_v56  ;;  %v6113_v56 = vadd.f32 %v6081_v59, %v5917_v24 }
 0x7a3   :  { %v6143_v36 = vadd.f32 %v6111_v40, %v5211_v45  ;;  %v5215_v44 = vadd.f32 %v5214_v7, %v10736_v18  ;;  %v5216_v8 = vpop.f32.mrb[199].mxu1 }
 0x7a4   :  { %v5217_v5 = vadd.f32 %v5216_v8, %v10740_v19  ;;  %5395 = vrot.lane.b32.xlu1 %v5213_v28, %s8088_s10  ;;  %v6114_v28 = vadd.f32 %v6082_v60, %v5918_v10  ;;  %v11692_v60 = vld [vmem:[#allocation22_spill] sm:$0xff] }
 0x7a5   :  { %v6144_v50 = vadd.f32 %v6112_v3, %v5215_v44  ;;  %v6175_v33 = vmax.f32 %v6143_v36, 0.0  ;;  %v6102_v3 = vmul.f32 %v10590_v41, %v10592_v11  ;;  %v10806_v11 = vadd.f32 %v6100_v1, %v10628_v25 }
 0x7a6   :  { %v4837_v38 = vpop.f32.mrb[244].mxu0  ;;  %5397 = vrot.lane.b32.xlu0 %v5217_v5, %s8088_s10  ;;  %v6084_v10 = vmul.f32 %v10590_v41, %v11692_v60 }
 0x7a7   :  { %v6176_v32 = vmax.f32 %v6144_v50, 0.0  ;;  %v4838_v6 = vadd.f32 %v4837_v38, %v10364_v51  ;;  %v4839_v62 = vpop.f32.mrb[245].mxu0  ;;  %v10811_v50 = vadd.f32 %v6102_v3, %v10651_v31  ;;  %v10815_v38 = vadd.f32 %v6095_v35, %v10677_v53 }
 0x7a8   :  { %v4840_v52 = vadd.f32 %v4839_v62, %v10368_v27  ;;  %v4841_v14 = vpop.f32.mrb[246].mxu0 }
 0x7a9   :  { %v6206_v20 = vpack.c.bf16 %v6176_v32, %v6175_v33  ;;  %v4842_v22 = vadd.f32 %v4841_v14, %v10364_v51  ;;  %v4843_v21 = vpop.f32.mrb[247].mxu0  ;;  %v4918_v37 = vmax.f32 %v4838_v6, 0.0 }
 0x7aa   :  { %v4844_v9 = vadd.f32 %v4843_v21, %v10368_v27  ;;  %v4919_v4 = vmax.f32 %v4840_v52, 0.0 }
 0x7ab   :  { %v4920_v47 = vmax.f32 %v4842_v22, 0.0  ;;  %7339 = vmatmul.mubr.bf16.vlgmr.msra.gmra.mrb[0].mxu0 %v6206_v20  ;;  %v5723_v20 = vmul.f32 %v10553_v43, %v10399_v16  ;;  %v11688_v22 = vld [vmem:[#allocation18_spill] sm:$0xff] }
 0x7ac   :  { %v4921_v12 = vmax.f32 %v4844_v9, 0.0  ;;  %v5887_v21 = vmul.f32 %v10559_v17, %v11688_v22 }
 0x7ad   :  { %v4956_v48 = vpack.c.bf16 %v4920_v47, %v4918_v37  ;;  %v5724_v37 = vmul.f32 %v10553_v43, %v11689_v34  ;;  %v11690_v47 = vld [vmem:[#allocation7_spill] sm:$0xff] }
 0x7ae   :  { %v4957_v40 = vpack.c.bf16 %v4921_v12, %v4919_v4  ;;  %v5888_v63 = vmul.f32 %v10559_v17, %v11690_v47  ;;  %v5919_v59 = vadd.f32 %v5887_v21, %v5723_v20  ;;  %v11695_v20 = vld [vmem:[#allocation15_spill] sm:$0xff] }
 0x7af   :  { %v5889_v22 = vmul.f32 %v10559_v17, %v11695_v20 }
 0x7b0   :  { %5328 = vmatprep.mubr.bf16.mxu1 %v4957_v40  ;;  %v5920_v24 = vadd.f32 %v5888_v63, %v5724_v37  ;;  %v11697_v37 = vld [vmem:[#allocation13_spill] sm:$0xff] }
 0x7b1   :  { %5329 = vmatmul.mubr.bf16.gmra.mrb[244].mxu1 %v4956_v48  ;;  %v11691_v48 = vld [vmem:[#allocation10_spill] sm:$0xff]  ;;  %v5890_v47 = vmul.f32 %v10559_v17, %v11697_v37  ;;  %v11698_v63 = vld [vmem:[#allocation29_spill] sm:$0xff]  ;;  %v11709_v37 = vld [vmem:[#allocation20_spill] sm:$0xff] }
 0x7b2   :  { %v6083_v16 = vmul.f32 %v10590_v41, %v11691_v48 }
 0x7b3   :  { %v5220_v45 = vpop.f32.mrb[200].mxu1 }
 0x7b4   :  { %v5221_v13 = vadd.f32 %v5220_v45, %v10736_v18  ;;  %v5222_v42 = vpop.f32.mrb[201].mxu1  ;;  %v6115_v46 = vadd.f32 %v6083_v16, %v5919_v59  ;;  %v11699_v16 = vld [vmem:[#allocation17_spill] sm:$0xff] }
 0x7b5   :  { %v5223_v7 = vadd.f32 %v5222_v42, %v10740_v19  ;;  %v5224_v36 = vpop.f32.mrb[202].mxu1  ;;  %v6085_v59 = vmul.f32 %v10590_v41, %v11699_v16 }
 0x7b6   :  { %v6145_v44 = vadd.f32 %v6113_v56, %v5221_v13  ;;  %v5225_v58 = vadd.f32 %v5224_v36, %v10736_v18  ;;  %v5226_v8 = vpop.f32.mrb[203].mxu1  ;;  %v6116_v56 = vadd.f32 %v6084_v10, %v5920_v24 }
 0x7b7   :  { %v5227_v5 = vadd.f32 %v5226_v8, %v10740_v19  ;;  %5399 = vrot.lane.b32.xlu1 %v5223_v7, %s8088_s10 }
 0x7b8   :  { %v6146_v54 = vadd.f32 %v6114_v28, %v5225_v58  ;;  %v6177_v33 = vmax.f32 %v6145_v44, 0.0  ;;  %v11693_v58 = vld [vmem:[#allocation28_spill] sm:$0xff] }
 0x7b9   :  { %v4847_v61 = vpop.f32.mrb[248].mxu0  ;;  %5401 = vrot.lane.b32.xlu0 %v5227_v5, %s8088_s10  ;;  %v6098_v8 = vmul.f32 %v10590_v41, %v11693_v58  ;;  %v11702_v58 = vld [vmem:[#allocation37_spill] sm:$0xff] }
 0x7ba   :  { %v6178_v29 = vmax.f32 %v6146_v54, 0.0  ;;  %v4848_v32 = vadd.f32 %v4847_v61, %v10364_v51  ;;  %v4849_v25 = vpop.f32.mrb[249].mxu0 }
 0x7bb   :  { %v4850_v6 = vadd.f32 %v4849_v25, %v10368_v27  ;;  %v4851_v62 = vpop.f32.mrb[250].mxu0 }
 0x7bc   :  { %v4852_v52 = vadd.f32 %v4851_v62, %v10364_v51  ;;  %v4853_v14 = vpop.f32.mrb[251].mxu0  ;;  %v6207_v31 = vpack.c.bf16 %v6178_v29, %v6177_v33  ;;  %v4922_v30 = vmax.f32 %v4848_v32, 0.0 }
 0x7bd   :  { %v4854_v53 = vadd.f32 %v4853_v14, %v10368_v27  ;;  %v4923_v57 = vmax.f32 %v4850_v6, 0.0  ;;  %v11694_v14 = vld [vmem:[#allocation12_spill] sm:$0xff] }
 0x7be   :  { %v4924_v9 = vmax.f32 %v4852_v52, 0.0  ;;  %7342 = vmatprep.mubr.bf16.mxu0 %v6207_v31  ;;  %v5725_v31 = vmul.f32 %v10553_v43, %v11694_v14 }
 0x7bf   :  { %v4925_v4 = vmax.f32 %v4854_v53, 0.0  ;;  %v11696_v53 = vld [vmem:[#allocation40_spill] sm:$0xff] }
 0x7c0   :  { %v4958_v12 = vpack.c.bf16 %v4924_v9, %v4922_v30  ;;  %v10850_v30 = vadd.f32 %v6098_v8, %v11696_v53  ;;  %v5921_v48 = vadd.f32 %v5889_v22, %v5725_v31  ;;  %v6103_v8 = vmul.f32 %v10590_v41, %v11702_v58  ;;  %v11706_v31 = vld [vmem:[#allocation8_spill] sm:$0xff]  ;;  %v11708_v53 = vld [vmem:[#allocation19_spill] sm:$0xff] }
 0x7c1   :  { %v4959_v40 = vpack.c.bf16 %v4925_v4, %v4923_v57  ;;  %v5728_v20 = vmul.f32 %v10553_v43, %v11706_v31  ;;  %v11707_v22 = vld [vmem:[#allocation16_spill] sm:$0xff] }
 0x7c2   :  { %v6117_v10 = vadd.f32 %v6085_v59, %v5921_v48 }
 0x7c3   :  { %5338 = vmatprep.mubr.bf16.mxu1 %v4959_v40  ;;  %v11700_v40 = vld [vmem:[#allocation11_spill] sm:$0xff] }
 0x7c4   :  { %5339 = vmatmul.mubr.bf16.gmra.mrb[248].mxu1 %v4958_v12  ;;  %v6086_v24 = vmul.f32 %v10590_v41, %v11700_v40 }
 0x7c6   :  { %v5230_v1 = vpop.f32.mrb[204].mxu1 }
 0x7c7   :  { %v5231_v3 = vadd.f32 %v5230_v1, %v10736_v18  ;;  %v5232_v45 = vpop.f32.mrb[205].mxu1 }
 0x7c8   :  { %v5233_v13 = vadd.f32 %v5232_v45, %v10740_v19  ;;  %v5234_v42 = vpop.f32.mrb[206].mxu1  ;;  %v11701_v45 = vld [vmem:[#allocation34_spill] sm:$0xff] }
 0x7c9   :  { %v6147_v28 = vadd.f32 %v6115_v46, %v5231_v3  ;;  %v5235_v35 = vadd.f32 %v5234_v42, %v10736_v18  ;;  %v5236_v7 = vpop.f32.mrb[207].mxu1 }
 0x7ca   :  { %v5237_v36 = vadd.f32 %v5236_v7, %v10740_v19  ;;  %5403 = vrot.lane.b32.xlu1 %v5233_v13, %s8088_s10  ;;  %v6099_v13 = vmul.f32 %v10590_v41, %v11701_v45  ;;  %v11710_v45 = vld [vmem:[#allocation9_spill] sm:$0xff] }
 0x7cb   :  { %v6148_v44 = vadd.f32 %v6116_v56, %v5235_v35  ;;  %v6179_v54 = vmax.f32 %v6147_v28, 0.0 }
 0x7cc   :  { %v4857_v5 = vpop.f32.mrb[252].mxu0  ;;  %5405 = vrot.lane.b32.xlu0 %v5237_v36, %s8088_s10 }
 0x7cd   :  { %v6180_v61 = vmax.f32 %v6148_v44, 0.0  ;;  %v4858_v33 = vadd.f32 %v4857_v5, %v10364_v51  ;;  %v4859_v29 = vpop.f32.mrb[253].mxu0 }
 0x7ce   :  { %v4860_v32 = vadd.f32 %v4859_v29, %v10368_v27  ;;  %v4861_v25 = vpop.f32.mrb[254].mxu0 }
 0x7cf   :  { %v6208_v6 = vpack.c.bf16 %v6180_v61, %v6179_v54  ;;  %v4862_v62 = vadd.f32 %v4861_v25, %v10364_v51  ;;  %v4863_v52 = vpop.f32.mrb[255].mxu0  ;;  %v4926_v9 = vmax.f32 %v4858_v33, 0.0  ;;  %v5726_v51 = vmul.f32 %v10553_v43, %v11698_v63  ;;  %v11703_v54 = vld [vmem:[#allocation41_spill] sm:$0xff] }
 0x7d0   :  { %v4864_v21 = vadd.f32 %v4863_v52, %v10368_v27  ;;  %v4927_v57 = vmax.f32 %v4860_v32, 0.0  ;;  %v10871_v61 = vadd.f32 %v6099_v13, %v11703_v54  ;;  %v10874_v32 = vadd.f32 %v6103_v8, %v10696_v2  ;;  %v11705_v52 = vld [vmem:[#allocation35_spill] sm:$0xff]  ;;  %v7919_v63 = vld [vmem:[%s11364_s13] sm:$0xff]   ;;  %v7922_v8 = vld [vmem:[%s11364_s13 + $0x18] sm:$0xff]  }
 0x7d1   :  { %v4928_v34 = vmax.f32 %v4862_v62, 0.0  ;;  %7343 = vmatmul.mubr.bf16.gmra.mrb[4].mxu0 %v6208_v6  ;;  %v5922_v60 = vadd.f32 %v5890_v47, %v5726_v51  ;;  %v11704_v6 = vld [vmem:[#allocation33_spill] sm:$0xff]  ;;  %v5891_v14 = vmul.f32 %v10559_v17, %v11705_v52  ;;  %v6088_v47 = vmul.f32 %v10590_v41, %v11709_v37  ;;  %v7920_v51 = vld [vmem:[%s11364_s13 + $0x8] sm:$0xff]   ;;  %7370 = vmatprep.subr.bf16.mxu1 %v7919_v63 }
 0x7d2   :  { %v4929_v4 = vmax.f32 %v4864_v21, 0.0  ;;  %v5727_v62 = vmul.f32 %v10553_v43, %v11704_v6  ;;  %v5892_v21 = vmul.f32 %v10559_v17, %v11707_v22  ;;  %7371 = vmatpush3.bf16.msra.mxu1 %v7919_v63  ;;  %v5893_v13 = vmul.f32 %v10559_v17, %v11710_v45 }
 0x7d3   :  { %v4960_v12 = vpack.c.bf16 %v4928_v34, %v4926_v9  ;;  %v6118_v3 = vadd.f32 %v6086_v24, %v5922_v60  ;;  %v6087_v9 = vmul.f32 %v10590_v41, %v11708_v53  ;;  %7372 = vmatprep.subr.bf16.mxu1 %v7920_v51 }
 0x7d4   :  { %v4961_v27 = vpack.c.bf16 %v4929_v4, %v4927_v57  ;;  %v5923_v34 = vadd.f32 %v5891_v14, %v5727_v62  ;;  %v5924_v2 = vadd.f32 %v5892_v21, %v5728_v20  ;;  %v7924_v14 = vld [vmem:[%s11364_s13 + $0x28] sm:$0xff]  }
 0x7d6   :  { %5348 = vmatprep.mubr.bf16.mxu1 %v4961_v27  ;;  %v6119_v57 = vadd.f32 %v6087_v9, %v5923_v34  ;;  %7373 = vmatpush3.bf16.msra.mxu1 %v7920_v51 }
 0x7d7   :  { %5349 = vmatmul.mubr.bf16.gmra.mrb[252].mxu1 %v4960_v12  ;;  %v6120_v12 = vadd.f32 %v6088_v47, %v5924_v2 }
 0x7d9   :  { %v5240_v46 = vpop.f32.mrb[208].mxu1 }
 0x7da   :  { %v5241_v1 = vadd.f32 %v5240_v46, %v10736_v18  ;;  %v5242_v56 = vpop.f32.mrb[209].mxu1 }
 0x7db   :  { %v5243_v42 = vadd.f32 %v5242_v56, %v10740_v19  ;;  %v5244_v28 = vpop.f32.mrb[210].mxu1 }
 0x7dc   :  { %v6149_v35 = vadd.f32 %v6117_v10, %v5241_v1  ;;  %v5245_v7 = vadd.f32 %v5244_v28, %v10736_v18  ;;  %v5246_v36 = vpop.f32.mrb[211].mxu1 }
 0x7dd   :  { %v5247_v44 = vadd.f32 %v5246_v36, %v10740_v19  ;;  %5407 = vrot.lane.b32.xlu1 %v5243_v42, %s8088_s10  ;;  %v11711_v42 = vld [vmem:[#allocation31_spill] sm:$0xff] }
 0x7de   :  { %v6150_v5 = vadd.f32 %v6118_v3, %v5245_v7  ;;  %v6181_v33 = vmax.f32 %v6149_v35, 0.0  ;;  %v5729_v28 = vmul.f32 %v10553_v43, %v11711_v42  ;;  %v7921_v35 = vld [vmem:[%s11364_s13 + $0x10] sm:$0xff]   ;;  %v11712_v7 = vld [vmem:[#allocation21_spill] sm:$0xff] }
 0x7df   :  { %5409 = vrot.lane.b32.xlu0 %v5247_v44, %s8088_s10  ;;  %v5730_v36 = vmul.f32 %v10553_v43, %v11712_v7  ;;  %v11713_v44 = vld [vmem:[#allocation36_spill] sm:$0xff]  ;;  %7374 = vmatprep.subr.bf16.mxu1 %v7921_v35 }
 0x7e0   :  { %v6182_v29 = vmax.f32 %v6150_v5, 0.0  ;;  %v5894_v58 = vmul.f32 %v10559_v17, %v11713_v44  ;;  %7375 = vmatpush3.bf16.msra.mxu1 %v7921_v35  ;;  %v11714_v5 = vld [vmem:[#allocation24_spill] sm:$0xff] }
 0x7e1   :  { %v6089_v54 = vmul.f32 %v10590_v41, %v11714_v5  ;;  %7376 = vmatprep.subr.bf16.mxu1 %v7922_v8 }
 0x7e2   :  { %v6209_v25 = vpack.c.bf16 %v6182_v29, %v6181_v33  ;;  %v5925_v33 = vadd.f32 %v5893_v13, %v5729_v28  ;;  %v7923_v29 = vld [vmem:[%s11364_s13 + $0x20] sm:$0xff]   ;;  %v5926_v62 = vadd.f32 %v5894_v58, %v5730_v36 }
 0x7e4   :  { %7346 = vmatprep.mubr.bf16.mxu0 %v6209_v25  ;;  %v11715_v25 = vld [vmem:[#allocation25_spill] sm:$0xff]  ;;  %7377 = vmatpush3.bf16.msra.mxu1 %v7922_v8  ;;  %v6121_v52 = vadd.f32 %v6089_v54, %v5925_v33 }
 0x7e5   :  { %v6090_v6 = vmul.f32 %v10590_v41, %v11715_v25  ;;  %7378 = vmatprep.subr.bf16.mxu1 %v7923_v29 }
 0x7e7   :  { %v6122_v21 = vadd.f32 %v6090_v6, %v5926_v62 }
 0x7e8   :  { %7379 = vmatpush3.bf16.msra.mxu1 %v7923_v29 }
 0x7e9   :  { %7380 = vmatprep.subr.bf16.mxu1 %v7924_v14 }
 0x7ec   :  { %v5250_v4 = vpop.f32.mrb[212].mxu1  ;;  %7381 = vmatpush3.bf16.msra.mxu1 %v7924_v14  ;;  %v11719_v14 = vld [vmem:[#allocation14_spill] sm:$0xff] }
 0x7ed   :  { %v5251_v48 = vadd.f32 %v5250_v4, %v10736_v18  ;;  %v5252_v16 = vpop.f32.mrb[213].mxu1  ;;  %v7925_v4 = vld [vmem:[%s11364_s13 + $0x30] sm:$0xff]  }
 0x7ee   :  { %v5253_v59 = vadd.f32 %v5252_v16, %v10740_v19  ;;  %v5254_v27 = vpop.f32.mrb[214].mxu1  ;;  %7382 = vmatprep.subr.bf16.mxu1 %v7925_v4  ;;  %v10935_v16 = vpop.permute.xlu0 %6070 }
 0x7ef   :  { %v6151_v40 = vadd.f32 %v6119_v57, %v5251_v48  ;;  %v5255_v24 = vadd.f32 %v5254_v27, %v10736_v18  ;;  %v5256_v60 = vpop.f32.mrb[215].mxu1  ;;  %v11716_v27 = vld [vmem:[#allocation23_spill] sm:$0xff] }
 0x7f0   :  { %v5257_v10 = vadd.f32 %v5256_v60, %v10740_v19  ;;  %5411 = vrot.lane.b32.xlu1 %v5253_v59, %s8088_s10  ;;  %7383 = vmatpush3.bf16.msra.mxu1 %v7925_v4  ;;  %v7926_v59 = vld [vmem:[%s11364_s13 + $0x38] sm:$0xff]  }
 0x7f1   :  { %v6152_v46 = vadd.f32 %v6120_v12, %v5255_v24  ;;  %v6183_v1 = vmax.f32 %v6151_v40, 0.0  ;;  %v10933_v12 = vpop.permute.xlu1 %6066  ;;  %v5731_v40 = vmul.f32 %v10553_v43, %v11716_v27  ;;  %v11717_v24 = vld [vmem:[#allocation30_spill] sm:$0xff]  ;;  %7384 = vmatprep.subr.bf16.mxu1 %v7926_v59 }
 0x7f2   :  { %5413 = vrot.lane.b32.xlu0 %v5257_v10, %s8088_s10  ;;  %v5895_v60 = vmul.f32 %v10559_v17, %v11717_v24 }
 0x7f3   :  { %v6184_v56 = vmax.f32 %v6152_v46, 0.0  ;;  %v11718_v46 = vld [vmem:[#allocation26_spill] sm:$0xff] }
 0x7f4   :  { %7385 = vmatpush3.bf16.msra.mxu1 %v7926_v59 }
 0x7f5   :  { %v6210_v3 = vpack.c.bf16 %v6184_v56, %v6183_v1  ;;  %v6091_v1 = vmul.f32 %v10590_v41, %v11718_v46  ;;  %v5927_v56 = vadd.f32 %v5895_v60, %v5731_v40  ;;  %v11720_v60 = vld [vmem:[#allocation27_spill] sm:$0xff] }
 0x7f7   :  { %7347 = vmatmul.mubr.bf16.gmra.mrb[8].mxu0 %v6210_v3  ;;  %v6123_v45 = vadd.f32 %v6091_v1, %v5927_v56 }
 0x7ff   :  { %v5260_v31 = vpop.f32.mrb[216].mxu1 }
 0x800   :  { %v5261_v20 = vadd.f32 %v5260_v31, %v10736_v18  ;;  %v5262_v22 = vpop.f32.mrb[217].mxu1 }
 0x801   :  { %v5263_v53 = vadd.f32 %v5262_v22, %v10740_v19  ;;  %v5264_v9 = vpop.f32.mrb[218].mxu1 }
 0x802   :  { %v6153_v34 = vadd.f32 %v6121_v52, %v5261_v20  ;;  %v5265_v2 = vadd.f32 %v5264_v9, %v10736_v18  ;;  %v5266_v37 = vpop.f32.mrb[219].mxu1 }
 0x803   :  { %v5267_v47 = vadd.f32 %v5266_v37, %v10740_v19  ;;  %5415 = vrot.lane.b32.xlu1 %v5263_v53, %s8088_s10 }
 0x804   :  { %v6154_v63 = vadd.f32 %v6122_v21, %v5265_v2  ;;  %v6185_v51 = vmax.f32 %v6153_v34, 0.0 }
 0x805   :  { %5417 = vrot.lane.b32.xlu0 %v5267_v47, %s8088_s10 }
 0x806   :  { %v6186_v57 = vmax.f32 %v6154_v63, 0.0 }
 0x808   :  { %v6211_v48 = vpack.c.bf16 %v6186_v57, %v6185_v51 }
 0x80a   :  { %7350 = vmatprep.mubr.bf16.mxu0 %v6211_v48 }
 0x80d   :  { %v5392_v10 = vpop.permute.xlu1 %5391 }
 0x80e   :  { %5488 = vst.msk [vmem:[%s11366_s15] sm:$0xff] %vm5487_vm0, %v5392_v10 }
 0x80f   :  { %v5394_v3 = vpop.permute.xlu0 %5393 }
 0x810   :  { %5489 = vst.msk [vmem:[%s11366_s15 + $0x8] sm:$0xff] %vm5487_vm0, %v5394_v3 }
 0x812   :  { %v5270_v43 = vpop.f32.mrb[220].mxu1 }
 0x813   :  { %v5271_v17 = vadd.f32 %v5270_v43, %v10736_v18  ;;  %v5272_v13 = vpop.f32.mrb[221].mxu1 }
 0x814   :  { %v5273_v42 = vadd.f32 %v5272_v13, %v10740_v19  ;;  %v5274_v28 = vpop.f32.mrb[222].mxu1 }
 0x815   :  { %v6155_v35 = vadd.f32 %v6123_v45, %v5271_v17  ;;  %v5275_v7 = vadd.f32 %v5274_v28, %v10736_v18  ;;  %v5276_v36 = vpop.f32.mrb[223].mxu1 }
 0x816   :  { %v5277_v44 = vadd.f32 %v5276_v36, %v10740_v19  ;;  %5419 = vrot.lane.b32.xlu1 %v5273_v42, %s8088_s10  ;;  %v5396_v58 = vpop.permute.xlu1 %5395 }
 0x817   :  { %v6156_v8 = vadd.f32 %v10750_v23, %v5275_v7  ;;  %5490 = vst.msk [vmem:[%s11366_s15 + $0x10] sm:$0xff] %vm5487_vm0, %v5396_v58  ;;  %v6187_v54 = vmax.f32 %v6155_v35, 0.0 }
 0x818   :  { %5421 = vrot.lane.b32.xlu0 %v5277_v44, %s8088_s10  ;;  %v5398_v5 = vpop.permute.xlu0 %5397 }
 0x819   :  { %v6188_v33 = vmax.f32 %v6156_v8, 0.0  ;;  %5491 = vst.msk [vmem:[%s11366_s15 + $0x18] sm:$0xff] %vm5487_vm0, %v5398_v5 }
 0x81b   :  { %v6212_v29 = vpack.c.bf16 %v6188_v33, %v6187_v54 }
 0x81d   :  { %7351 = vmatmul.mubr.bf16.gmra.mrb[12].mxu0 %v6212_v29 }
 0x825   :  { %v5280_v25 = vpop.f32.mrb[224].mxu1 }
 0x826   :  { %v5281_v23 = vadd.f32 %v5280_v25, %v10736_v18  ;;  %v5282_v6 = vpop.f32.mrb[225].mxu1 }
 0x827   :  { %v5283_v62 = vadd.f32 %v5282_v6, %v10740_v19  ;;  %v5284_v52 = vpop.f32.mrb[226].mxu1 }
 0x828   :  { %v6157_v31 = vadd.f32 %v11719_v14, %v5281_v23  ;;  %v5285_v20 = vadd.f32 %v5284_v52, %v10736_v18  ;;  %v5286_v22 = vpop.f32.mrb[227].mxu1 }
 0x829   :  { %v5287_v21 = vadd.f32 %v5286_v22, %v10740_v19  ;;  %5423 = vrot.lane.b32.xlu1 %v5283_v62, %s8088_s10  ;;  %v5400_v53 = vpop.permute.xlu1 %5399 }
 0x82a   :  { %v6158_v9 = vadd.f32 %v10781_v39, %v5285_v20  ;;  %5492 = vst.msk [vmem:[%s11366_s15 + $0x20] sm:$0xff] %vm5487_vm0, %v5400_v53  ;;  %v6189_v2 = vmax.f32 %v6157_v31, 0.0 }
 0x82b   :  { %5425 = vrot.lane.b32.xlu0 %v5287_v21, %s8088_s10  ;;  %v5402_v34 = vpop.permute.xlu0 %5401 }
 0x82c   :  { %v6190_v37 = vmax.f32 %v6158_v9, 0.0  ;;  %5493 = vst.msk [vmem:[%s11366_s15 + $0x28] sm:$0xff] %vm5487_vm0, %v5402_v34 }
 0x82e   :  { %v6213_v47 = vpack.c.bf16 %v6190_v37, %v6189_v2  ;;  %v11721_v37 = vld [vmem:[#allocation38_spill] sm:$0xff] }
 0x830   :  { %7354 = vmatprep.mubr.bf16.mxu0 %v6213_v47 }
 0x838   :  { %v5290_v63 = vpop.f32.mrb[228].mxu1 }
 0x839   :  { %v5291_v39 = vadd.f32 %v5290_v63, %v10736_v18  ;;  %v5292_v51 = vpop.f32.mrb[229].mxu1 }
 0x83a   :  { %v5293_v57 = vadd.f32 %v5292_v51, %v10740_v19  ;;  %v5294_v4 = vpop.f32.mrb[230].mxu1 }
 0x83b   :  { %v6159_v48 = vadd.f32 %v10815_v38, %v5291_v39  ;;  %v5295_v59 = vadd.f32 %v5294_v4, %v10736_v18  ;;  %v5296_v27 = vpop.f32.mrb[231].mxu1 }
 0x83c   :  { %v5297_v40 = vadd.f32 %v5296_v27, %v10740_v19  ;;  %5427 = vrot.lane.b32.xlu1 %v5293_v57, %s8088_s10  ;;  %v5404_v24 = vpop.permute.xlu1 %5403 }
 0x83d   :  { %v6160_v10 = vadd.f32 %v11720_v60, %v5295_v59  ;;  %5494 = vst.msk [vmem:[%s11366_s15 + $0x30] sm:$0xff] %vm5487_vm0, %v5404_v24  ;;  %v6191_v1 = vmax.f32 %v6159_v48, 0.0 }
 0x83e   :  { %5429 = vrot.lane.b32.xlu0 %v5297_v40, %s8088_s10  ;;  %v5406_v46 = vpop.permute.xlu0 %5405 }
 0x83f   :  { %v6192_v38 = vmax.f32 %v6160_v10, 0.0  ;;  %5495 = vst.msk [vmem:[%s11366_s15 + $0x38] sm:$0xff] %vm5487_vm0, %v5406_v46 }
 0x841   :  { %v6214_v56 = vpack.c.bf16 %v6192_v38, %v6191_v1 }
 0x843   :  { %7355 = vmatmul.mubr.bf16.gmra.mrb[16].mxu0 %v6214_v56 }
 0x84b   :  { %v5300_v3 = vpop.f32.mrb[232].mxu1 }
 0x84c   :  { %v5301_v43 = vadd.f32 %v5300_v3, %v10736_v18  ;;  %v5302_v17 = vpop.f32.mrb[233].mxu1 }
 0x84d   :  { %v5303_v45 = vadd.f32 %v5302_v17, %v10740_v19  ;;  %v5304_v13 = vpop.f32.mrb[234].mxu1 }
 0x84e   :  { %v6161_v42 = vadd.f32 %v10803_v55, %v5301_v43  ;;  %v5305_v28 = vadd.f32 %v5304_v13, %v10736_v18  ;;  %v5306_v35 = vpop.f32.mrb[235].mxu1 }
 0x84f   :  { %v5307_v7 = vadd.f32 %v5306_v35, %v10740_v19  ;;  %5431 = vrot.lane.b32.xlu1 %v5303_v45, %s8088_s10  ;;  %v5408_v36 = vpop.permute.xlu1 %5407 }
 0x850   :  { %v6162_v44 = vadd.f32 %v10850_v30, %v5305_v28  ;;  %5496 = vst.msk [vmem:[%s11366_s15 + $0x40] sm:$0xff] %vm5487_vm0, %v5408_v36  ;;  %v6193_v8 = vmax.f32 %v6161_v42, 0.0 }
 0x851   :  { %5433 = vrot.lane.b32.xlu0 %v5307_v7, %s8088_s10  ;;  %v5410_v58 = vpop.permute.xlu0 %5409 }
 0x852   :  { %v6194_v55 = vmax.f32 %v6162_v44, 0.0  ;;  %5497 = vst.msk [vmem:[%s11366_s15 + $0x48] sm:$0xff] %vm5487_vm0, %v5410_v58 }
 0x854   :  { %v6215_v5 = vpack.c.bf16 %v6194_v55, %v6193_v8 }
 0x856   :  { %7358 = vmatprep.mubr.bf16.mxu0 %v6215_v5 }
 0x85e   :  { %v5310_v54 = vpop.f32.mrb[236].mxu1 }
 0x85f   :  { %v5311_v30 = vadd.f32 %v5310_v54, %v10736_v18  ;;  %v5312_v33 = vpop.f32.mrb[237].mxu1 }
 0x860   :  { %v5313_v29 = vadd.f32 %v5312_v33, %v10740_v19  ;;  %v5314_v25 = vpop.f32.mrb[238].mxu1  ;;  %v11722_v33 = vld [vmem:[#allocation39_spill] sm:$0xff] }
 0x861   :  { %v6163_v23 = vadd.f32 %v10871_v61, %v5311_v30  ;;  %v5315_v6 = vadd.f32 %v5314_v25, %v10736_v18  ;;  %v5316_v62 = vpop.f32.mrb[239].mxu1 }
 0x862   :  { %v5317_v52 = vadd.f32 %v5316_v62, %v10740_v19  ;;  %5435 = vrot.lane.b32.xlu1 %v5313_v29, %s8088_s10  ;;  %v5412_v14 = vpop.permute.xlu1 %5411 }
 0x863   :  { %v6164_v31 = vadd.f32 %v10806_v11, %v5315_v6  ;;  %5498 = vst.msk [vmem:[%s11366_s15 + $0x50] sm:$0xff] %vm5487_vm0, %v5412_v14  ;;  %v6195_v22 = vmax.f32 %v6163_v23, 0.0 }
 0x864   :  { %5437 = vrot.lane.b32.xlu0 %v5317_v52, %s8088_s10  ;;  %v5414_v20 = vpop.permute.xlu0 %5413 }
 0x865   :  { %v6196_v61 = vmax.f32 %v6164_v31, 0.0  ;;  %5499 = vst.msk [vmem:[%s11366_s15 + $0x58] sm:$0xff] %vm5487_vm0, %v5414_v20 }
 0x867   :  { %v6216_v21 = vpack.c.bf16 %v6196_v61, %v6195_v22 }
 0x869   :  { %7359 = vmatmul.mubr.bf16.gmra.mrb[20].mxu0 %v6216_v21 }
 0x871   :  { %v5320_v53 = vpop.f32.mrb[240].mxu1 }
 0x872   :  { %v5321_v11 = vadd.f32 %v5320_v53, %v10736_v18  ;;  %v5322_v9 = vpop.f32.mrb[241].mxu1 }
 0x873   :  { %v5323_v34 = vadd.f32 %v5322_v9, %v10740_v19  ;;  %v5324_v2 = vpop.f32.mrb[242].mxu1 }
 0x874   :  { %v6165_v47 = vadd.f32 %v11721_v37, %v5321_v11  ;;  %v5325_v63 = vadd.f32 %v5324_v2, %v10736_v18  ;;  %v5326_v39 = vpop.f32.mrb[243].mxu1 }
 0x875   :  { %v5327_v51 = vadd.f32 %v5326_v39, %v10740_v19  ;;  %5439 = vrot.lane.b32.xlu1 %v5323_v34, %s8088_s10  ;;  %v5416_v57 = vpop.permute.xlu1 %5415 }
 0x876   :  { %v6166_v4 = vadd.f32 %v10811_v50, %v5325_v63  ;;  %5500 = vst.msk [vmem:[%s11366_s15 + $0x60] sm:$0xff] %vm5487_vm0, %v5416_v57  ;;  %v6197_v59 = vmax.f32 %v6165_v47, 0.0  ;;  %v11052_v50 = vld [vmem:[%s11363_s12] ss:$0 sm:$0xff]  ;;  %v6107_v57 = vmul.f32 %v10590_v41, %v10933_v12 }
 0x877   :  { %5441 = vrot.lane.b32.xlu0 %v5327_v51, %s8088_s10  ;;  %v5418_v48 = vpop.permute.xlu0 %5417 }
 0x878   :  { %v6198_v27 = vmax.f32 %v6166_v4, 0.0  ;;  %5501 = vst.msk [vmem:[%s11366_s15 + $0x68] sm:$0xff] %vm5487_vm0, %v5418_v48 }
 0x87a   :  { %v6217_v40 = vpack.c.bf16 %v6198_v27, %v6197_v59  ;;  %v6108_v27 = vmul.f32 %v10590_v41, %v10935_v16 }
 0x87c   :  { %7362 = vmatprep.mubr.bf16.mxu0 %v6217_v40 }
 0x87e   :  { %v7340_v24 = vpop.f32.mrb[0].mxu0 }
 0x87f   :  { %v6335_v60 = vadd.f32 %v7340_v24, %v11052_v50  ;;  %v6326_v10 = vpop.f32.mrb[1].mxu0 }
 0x880   :  { %v6327_v46 = vadd.f32 %v11052_v50, %v6326_v10  ;;  %v7341_v1 = vpop.f32.mrb[2].mxu0 }
 0x881   :  { %v6338_v38 = vadd.f32 %v7341_v1, %v11052_v50  ;;  %v6329_v56 = vpop.f32.mrb[3].mxu0  ;;  %v6455_v43 = vmax.f32 %v6335_v60, 0.0  ;;  %v6139_v1 = vadd.f32 %v6107_v57, %v10705_v26 }
 0x882   :  { %v6330_v3 = vadd.f32 %v11052_v50, %v6329_v56  ;;  %v6453_v45 = vmax.f32 %v6327_v46, 0.0 }
 0x883   :  { %v6456_v17 = vmax.f32 %v6338_v38, 0.0 }
 0x884   :  { %v6454_v13 = vmax.f32 %v6330_v3, 0.0  ;;  %v5330_v42 = vpop.f32.mrb[244].mxu1 }
 0x885   :  { %v6486_v28 = vpack.c.bf16 %v6456_v17, %v6455_v43  ;;  %v5331_v35 = vadd.f32 %v5330_v42, %v10736_v18  ;;  %v5332_v7 = vpop.f32.mrb[245].mxu1 }
 0x886   :  { %v6485_v36 = vpack.c.bf16 %v6454_v13, %v6453_v45  ;;  %v5333_v44 = vadd.f32 %v5332_v7, %v10740_v19  ;;  %v5334_v58 = vpop.f32.mrb[246].mxu1  ;;  %v6140_v45 = vadd.f32 %v6108_v27, %v10702_v49 }
 0x887   :  { %v6167_v8 = vadd.f32 %v10874_v32, %v5331_v35  ;;  %v5335_v55 = vadd.f32 %v5334_v58, %v10736_v18  ;;  %v5336_v5 = vpop.f32.mrb[247].mxu1 }
 0x888   :  { %v5337_v54 = vadd.f32 %v5336_v5, %v10740_v19  ;;  %5443 = vrot.lane.b32.xlu1 %v5333_v44, %s8088_s10  ;;  %v5420_v30 = vpop.permute.xlu1 %5419  ;;  %7386 = vmatprep.mubr.bf16.mxu1 %v6485_v36 }
 0x889   :  { %v6168_v29 = vadd.f32 %v11722_v33, %v5335_v55  ;;  %5502 = vst.msk [vmem:[%s11366_s15 + $0x70] sm:$0xff] %vm5487_vm0, %v5420_v30  ;;  %7387 = vmatmul.mubr.bf16.vlgmr.msra.gmra.mrb[0].mxu1 %v6486_v28  ;;  %v6199_v25 = vmax.f32 %v6167_v8, 0.0 }
 0x88a   :  { %5445 = vrot.lane.b32.xlu0 %v5337_v54, %s8088_s10  ;;  %v5422_v32 = vpop.permute.xlu0 %5421 }
 0x88b   :  { %v6200_v23 = vmax.f32 %v6168_v29, 0.0  ;;  %5503 = vst.msk [vmem:[%s11366_s15 + $0x78] sm:$0xff] %vm5487_vm0, %v5422_v32 }
 0x88d   :  { %v6218_v6 = vpack.c.bf16 %v6200_v23, %v6199_v25 }
 0x88f   :  { %7363 = vmatmul.mubr.bf16.gmra.mrb[24].mxu0 %v6218_v6 }
 0x897   :  { %v5340_v62 = vpop.f32.mrb[248].mxu1 }
 0x898   :  { %v5341_v52 = vadd.f32 %v5340_v62, %v10736_v18  ;;  %v5342_v14 = vpop.f32.mrb[249].mxu1 }
 0x899   :  { %v5343_v31 = vadd.f32 %v5342_v14, %v10740_v19  ;;  %v5344_v20 = vpop.f32.mrb[250].mxu1 }
 0x89a   :  { %v6169_v22 = vadd.f32 %v10723_v0, %v5341_v52  ;;  %v5345_v61 = vadd.f32 %v5344_v20, %v10736_v18  ;;  %v5346_v21 = vpop.f32.mrb[251].mxu1 }
 0x89b   :  { %v5347_v53 = vadd.f32 %v5346_v21, %v10740_v19  ;;  %5447 = vrot.lane.b32.xlu1 %v5343_v31, %s8088_s10  ;;  %v5424_v11 = vpop.permute.xlu1 %5423 }
 0x89c   :  { %v6170_v9 = vadd.f32 %v10717_v15, %v5345_v61  ;;  %5504 = vst.msk [vmem:[%s11366_s15 + $0x80] sm:$0xff] %vm5487_vm0, %v5424_v11  ;;  %v6201_v2 = vmax.f32 %v6169_v22, 0.0 }
 0x89d   :  { %5449 = vrot.lane.b32.xlu0 %v5347_v53, %s8088_s10  ;;  %v5426_v34 = vpop.permute.xlu0 %5425 }
 0x89e   :  { %v6202_v0 = vmax.f32 %v6170_v9, 0.0  ;;  %5505 = vst.msk [vmem:[%s11366_s15 + $0x88] sm:$0xff] %vm5487_vm0, %v5426_v34 }
 0x8a0   :  { %v6219_v37 = vpack.c.bf16 %v6202_v0, %v6201_v2 }
 0x8a2   :  { %7366 = vmatprep.mubr.bf16.mxu0 %v6219_v37 }
 0x8a4   :  { %v7344_v47 = vpop.f32.mrb[4].mxu0 }
 0x8a5   :  { %v6351_v15 = vadd.f32 %v7344_v47, %v11052_v50  ;;  %v6342_v63 = vpop.f32.mrb[5].mxu0 }
 0x8a6   :  { %v6343_v39 = vadd.f32 %v11052_v50, %v6342_v63  ;;  %v7345_v51 = vpop.f32.mrb[6].mxu0 }
 0x8a7   :  { %v6354_v4 = vadd.f32 %v7345_v51, %v11052_v50  ;;  %v6345_v48 = vpop.f32.mrb[7].mxu0  ;;  %v6459_v40 = vmax.f32 %v6351_v15, 0.0 }
 0x8a8   :  { %v6346_v59 = vadd.f32 %v11052_v50, %v6345_v48  ;;  %v6457_v60 = vmax.f32 %v6343_v39, 0.0 }
 0x8a9   :  { %v6460_v24 = vmax.f32 %v6354_v4, 0.0 }
 0x8aa   :  { %v6458_v10 = vmax.f32 %v6346_v59, 0.0  ;;  %v5350_v46 = vpop.f32.mrb[252].mxu1 }
 0x8ab   :  { %v6488_v38 = vpack.c.bf16 %v6460_v24, %v6459_v40  ;;  %v5351_v56 = vadd.f32 %v5350_v46, %v10736_v18  ;;  %v5352_v3 = vpop.f32.mrb[253].mxu1 }
 0x8ac   :  { %v6487_v12 = vpack.c.bf16 %v6458_v10, %v6457_v60  ;;  %v5353_v43 = vadd.f32 %v5352_v3, %v10740_v19  ;;  %v5354_v17 = vpop.f32.mrb[254].mxu1 }
 0x8ad   :  { %v6171_v13 = vadd.f32 %v6139_v1, %v5351_v56  ;;  %v5355_v41 = vadd.f32 %v5354_v17, %v10736_v18  ;;  %v5356_v16 = vpop.f32.mrb[255].mxu1 }
 0x8ae   :  { %v5357_v42 = vadd.f32 %v5356_v16, %v10740_v19  ;;  %5451 = vrot.lane.b32.xlu1 %v5353_v43, %s8088_s10  ;;  %v5428_v28 = vpop.permute.xlu1 %5427  ;;  %7390 = vmatprep.mubr.bf16.mxu1 %v6487_v12 }
 0x8af   :  { %v6172_v26 = vadd.f32 %v6140_v45, %v5355_v41  ;;  %5506 = vst.msk [vmem:[%s11366_s15 + $0x90] sm:$0xff] %vm5487_vm0, %v5428_v28  ;;  %7391 = vmatmul.mubr.bf16.gmra.mrb[4].mxu1 %v6488_v38  ;;  %v6203_v35 = vmax.f32 %v6171_v13, 0.0 }
 0x8b0   :  { %5453 = vrot.lane.b32.xlu0 %v5357_v42, %s8088_s10  ;;  %v5430_v49 = vpop.permute.xlu0 %5429 }
 0x8b1   :  { %v6204_v7 = vmax.f32 %v6172_v26, 0.0  ;;  %5507 = vst.msk [vmem:[%s11366_s15 + $0x98] sm:$0xff] %vm5487_vm0, %v5430_v49 }
 0x8b3   :  { %v6220_v18 = vpack.c.bf16 %v6204_v7, %v6203_v35 }
 0x8b5   :  { %7367 = vmatmul.mubr.bf16.gmra.mrb[28].mxu0 %v6220_v18 }
 0x8c1   :  { %v5432_v19 = vpop.permute.xlu1 %5431 }
 0x8c2   :  { %5508 = vst.msk [vmem:[%s11366_s15 + $0xa0] sm:$0xff] %vm5487_vm0, %v5432_v19 }
 0x8c3   :  { %v5434_v36 = vpop.permute.xlu0 %5433 }
 0x8c4   :  { %5509 = vst.msk [vmem:[%s11366_s15 + $0xa8] sm:$0xff] %vm5487_vm0, %v5434_v36 }
 0x8ca   :  { %v7348_v44 = vpop.f32.mrb[8].mxu0 }
 0x8cb   :  { %v6367_v58 = vadd.f32 %v7348_v44, %v11052_v50  ;;  %v6358_v8 = vpop.f32.mrb[9].mxu0 }
 0x8cc   :  { %v6359_v55 = vadd.f32 %v11052_v50, %v6358_v8  ;;  %v7349_v5 = vpop.f32.mrb[10].mxu0 }
 0x8cd   :  { %v6370_v54 = vadd.f32 %v7349_v5, %v11052_v50  ;;  %v6361_v30 = vpop.f32.mrb[11].mxu0  ;;  %v6463_v29 = vmax.f32 %v6367_v58, 0.0 }
 0x8ce   :  { %v6362_v33 = vadd.f32 %v11052_v50, %v6361_v30  ;;  %v6461_v25 = vmax.f32 %v6359_v55, 0.0  ;;  %v11181_v55 = vld [vmem:[%s11365_s14] ss:$0 sm:$0xff] }
 0x8cf   :  { %v6464_v32 = vmax.f32 %v6370_v54, 0.0 }
 0x8d0   :  { %v6462_v23 = vmax.f32 %v6362_v33, 0.0 }
 0x8d1   :  { %v6490_v6 = vpack.c.bf16 %v6464_v32, %v6463_v29 }
 0x8d2   :  { %v6489_v62 = vpack.c.bf16 %v6462_v23, %v6461_v25 }
 0x8d4   :  { %v5436_v52 = vpop.permute.xlu1 %5435  ;;  %7394 = vmatprep.mubr.bf16.mxu1 %v6489_v62 }
 0x8d5   :  { %5510 = vst.msk [vmem:[%s11366_s15 + $0xb0] sm:$0xff] %vm5487_vm0, %v5436_v52  ;;  %7395 = vmatmul.mubr.bf16.gmra.mrb[8].mxu1 %v6490_v6 }
 0x8d6   :  { %v5438_v14 = vpop.permute.xlu0 %5437 }
 0x8d7   :  { %5511 = vst.msk [vmem:[%s11366_s15 + $0xb8] sm:$0xff] %vm5487_vm0, %v5438_v14 }
 0x8e7   :  { %v5440_v31 = vpop.permute.xlu1 %5439 }
 0x8e8   :  { %5512 = vst.msk [vmem:[%s11366_s15 + $0xc0] sm:$0xff] %vm5487_vm0, %v5440_v31 }
 0x8e9   :  { %v5442_v20 = vpop.permute.xlu0 %5441 }
 0x8ea   :  { %5513 = vst.msk [vmem:[%s11366_s15 + $0xc8] sm:$0xff] %vm5487_vm0, %v5442_v20 }
 0x8f0   :  { %v7352_v22 = vpop.f32.mrb[12].mxu0 }
 0x8f1   :  { %v6383_v61 = vadd.f32 %v7352_v22, %v11052_v50  ;;  %v6374_v21 = vpop.f32.mrb[13].mxu0 }
 0x8f2   :  { %v6375_v53 = vadd.f32 %v11052_v50, %v6374_v21  ;;  %v7353_v11 = vpop.f32.mrb[14].mxu0 }
 0x8f3   :  { %v6386_v9 = vadd.f32 %v7353_v11, %v11052_v50  ;;  %v6377_v34 = vpop.f32.mrb[15].mxu0  ;;  %v6467_v0 = vmax.f32 %v6383_v61, 0.0 }
 0x8f4   :  { %v6378_v2 = vadd.f32 %v11052_v50, %v6377_v34  ;;  %v6465_v47 = vmax.f32 %v6375_v53, 0.0 }
 0x8f5   :  { %v6468_v37 = vmax.f32 %v6386_v9, 0.0 }
 0x8f6   :  { %v6466_v15 = vmax.f32 %v6378_v2, 0.0 }
 0x8f7   :  { %v6492_v63 = vpack.c.bf16 %v6468_v37, %v6467_v0 }
 0x8f8   :  { %v6491_v39 = vpack.c.bf16 %v6466_v15, %v6465_v47 }
 0x8fa   :  { %v5444_v51 = vpop.permute.xlu1 %5443  ;;  %7398 = vmatprep.mubr.bf16.mxu1 %v6491_v39 }
 0x8fb   :  { %5514 = vst.msk [vmem:[%s11366_s15 + $0xd0] sm:$0xff] %vm5487_vm0, %v5444_v51  ;;  %7399 = vmatmul.mubr.bf16.gmra.mrb[12].mxu1 %v6492_v63 }
 0x8fc   :  { %v5446_v57 = vpop.permute.xlu0 %5445 }
 0x8fd   :  { %5515 = vst.msk [vmem:[%s11366_s15 + $0xd8] sm:$0xff] %vm5487_vm0, %v5446_v57 }
 0x90d   :  { %v5448_v4 = vpop.permute.xlu1 %5447 }
 0x90e   :  { %5516 = vst.msk [vmem:[%s11366_s15 + $0xe0] sm:$0xff] %vm5487_vm0, %v5448_v4 }
 0x90f   :  { %v5450_v48 = vpop.permute.xlu0 %5449 }
 0x910   :  { %5517 = vst.msk [vmem:[%s11366_s15 + $0xe8] sm:$0xff] %vm5487_vm0, %v5450_v48 }
 0x916   :  { %v7356_v59 = vpop.f32.mrb[16].mxu0 }
 0x917   :  { %v6399_v27 = vadd.f32 %v7356_v59, %v11052_v50  ;;  %v6390_v40 = vpop.f32.mrb[17].mxu0 }
 0x918   :  { %v6391_v24 = vadd.f32 %v11052_v50, %v6390_v40  ;;  %v7357_v60 = vpop.f32.mrb[18].mxu0 }
 0x919   :  { %v6402_v10 = vadd.f32 %v7357_v60, %v11052_v50  ;;  %v6393_v46 = vpop.f32.mrb[19].mxu0  ;;  %v6471_v38 = vmax.f32 %v6399_v27, 0.0 }
 0x91a   :  { %v6394_v1 = vadd.f32 %v11052_v50, %v6393_v46  ;;  %v6469_v3 = vmax.f32 %v6391_v24, 0.0 }
 0x91b   :  { %v6472_v56 = vmax.f32 %v6402_v10, 0.0 }
 0x91c   :  { %v6470_v12 = vmax.f32 %v6394_v1, 0.0 }
 0x91d   :  { %v6494_v43 = vpack.c.bf16 %v6472_v56, %v6471_v38 }
 0x91e   :  { %v6493_v17 = vpack.c.bf16 %v6470_v12, %v6469_v3 }
 0x920   :  { %v5452_v45 = vpop.permute.xlu1 %5451  ;;  %7402 = vmatprep.mubr.bf16.mxu1 %v6493_v17 }
 0x921   :  { %5518 = vst.msk [vmem:[%s11366_s15 + $0xf0] sm:$0xff] %vm5487_vm0, %v5452_v45  ;;  %7403 = vmatmul.mubr.bf16.gmra.mrb[16].mxu1 %v6494_v43 }
 0x922   :  { %v5454_v13 = vpop.permute.xlu0 %5453 }
 0x923   :  { %5519 = vst.msk [vmem:[%s11366_s15 + $0xf8] sm:$0xff] %vm5487_vm0, %v5454_v13 }
 0x93c   :  { %v7360_v41 = vpop.f32.mrb[20].mxu0 }
 0x93d   :  { %v6415_v16 = vadd.f32 %v7360_v41, %v11052_v50  ;;  %v6406_v42 = vpop.f32.mrb[21].mxu0 }
 0x93e   :  { %v6407_v28 = vadd.f32 %v11052_v50, %v6406_v42  ;;  %v7361_v26 = vpop.f32.mrb[22].mxu0 }
 0x93f   :  { %v6418_v49 = vadd.f32 %v7361_v26, %v11052_v50  ;;  %v6409_v35 = vpop.f32.mrb[23].mxu0  ;;  %v6475_v18 = vmax.f32 %v6415_v16, 0.0 }
 0x940   :  { %v6410_v7 = vadd.f32 %v11052_v50, %v6409_v35  ;;  %v6473_v36 = vmax.f32 %v6407_v28, 0.0 }
 0x941   :  { %v6476_v19 = vmax.f32 %v6418_v49, 0.0 }
 0x942   :  { %v6474_v44 = vmax.f32 %v6410_v7, 0.0 }
 0x943   :  { %v6496_v58 = vpack.c.bf16 %v6476_v19, %v6475_v18 }
 0x944   :  { %v6495_v8 = vpack.c.bf16 %v6474_v44, %v6473_v36 }
 0x946   :  { %7406 = vmatprep.mubr.bf16.mxu1 %v6495_v8 }
 0x947   :  { %7407 = vmatmul.mubr.bf16.gmra.mrb[20].mxu1 %v6496_v58 }
 0x95c   :  { %v7388_v5 = vpop.f32.mrb[0].mxu1 }
 0x95d   :  { %v6615_v54 = vadd.f32 %v7388_v5, %v11181_v55  ;;  %v6606_v30 = vpop.f32.mrb[1].mxu1 }
 0x95e   :  { %v6607_v33 = vadd.f32 %v11181_v55, %v6606_v30  ;;  %v7389_v29 = vpop.f32.mrb[2].mxu1 }
 0x95f   :  { %v7244_v32 = vmul.f32 -1.442695, %v6615_v54  ;;  %v6618_v25 = vadd.f32 %v7389_v29, %v11181_v55  ;;  %v6609_v23 = vpop.f32.mrb[3].mxu1 }
 0x960   :  { %v7242_v6 = vmul.f32 -1.442695, %v6607_v33  ;;  %v6610_v62 = vadd.f32 %v11181_v55, %v6609_v23 }
 0x961   :  { %7927 = vpow2.f32 %v7244_v32  ;;  %v7245_v52 = vmul.f32 -1.442695, %v6618_v25 }
 0x962   :  { %7929 = vpow2.f32 %v7242_v6  ;;  %v7243_v14 = vmul.f32 -1.442695, %v6610_v62  ;;  %v7364_v31 = vpop.f32.mrb[24].mxu0 }
 0x963   :  { %7931 = vpow2.f32 %v7245_v52  ;;  %v6431_v20 = vadd.f32 %v7364_v31, %v11052_v50  ;;  %v6422_v22 = vpop.f32.mrb[25].mxu0 }
 0x964   :  { %7933 = vpow2.f32 %v7243_v14  ;;  %v6423_v61 = vadd.f32 %v11052_v50, %v6422_v22  ;;  %v7365_v21 = vpop.f32.mrb[26].mxu0 }
 0x965   :  { %v6434_v53 = vadd.f32 %v7365_v21, %v11052_v50  ;;  %v6425_v11 = vpop.f32.mrb[27].mxu0  ;;  %v6479_v34 = vmax.f32 %v6431_v20, 0.0 }
 0x966   :  { %v6426_v9 = vadd.f32 %v11052_v50, %v6425_v11  ;;  %v6477_v0 = vmax.f32 %v6423_v61, 0.0 }
 0x967   :  { %v6480_v2 = vmax.f32 %v6434_v53, 0.0 }
 0x968   :  { %v6478_v37 = vmax.f32 %v6426_v9, 0.0 }
 0x969   :  { %v6498_v47 = vpack.c.bf16 %v6480_v2, %v6479_v34 }
 0x96a   :  { %v6497_v15 = vpack.c.bf16 %v6478_v37, %v6477_v0 }
 0x96b   :  { %v7928_v63 = vpop.eup %7927 }
 0x96c   :  { %v7930_v39 = vpop.eup %7929  ;;  %v6831_v51 = vadd.f32 1.0, %v7928_v63  ;;  %7410 = vmatprep.mubr.bf16.mxu1 %v6497_v15 }
 0x96d   :  { %v7932_v57 = vpop.eup %7931  ;;  %v6829_v4 = vadd.f32 1.0, %v7930_v39  ;;  %7411 = vmatmul.mubr.bf16.gmra.mrb[24].mxu1 %v6498_v47 }
 0x96e   :  { %v7934_v48 = vpop.eup %7933  ;;  %7935 = vrcp.f32 %v6831_v51  ;;  %v6832_v59 = vadd.f32 1.0, %v7932_v57 }
 0x96f   :  { %7937 = vrcp.f32 %v6829_v4  ;;  %v6830_v27 = vadd.f32 1.0, %v7934_v48 }
 0x970   :  { %7939 = vrcp.f32 %v6832_v59 }
 0x971   :  { %7941 = vrcp.f32 %v6830_v27 }
 0x978   :  { %v7936_v40 = vpop.eup %7935 }
 0x979   :  { %v7938_v24 = vpop.eup %7937  ;;  %6928 = vst.msk [vmem:[%s11366_s15 + $0x10] sm:$0xff] %vm6925_vm1, %v7936_v40 }
 0x97a   :  { %v7940_v60 = vpop.eup %7939  ;;  %6926 = vst.msk [vmem:[%s11366_s15] sm:$0xff] %vm6925_vm1, %v7938_v24 }
 0x97b   :  { %v7942_v10 = vpop.eup %7941  ;;  %6929 = vst.msk [vmem:[%s11366_s15 + $0x18] sm:$0xff] %vm6925_vm1, %v7940_v60 }
 0x97c   :  { %6927 = vst.msk [vmem:[%s11366_s15 + $0x8] sm:$0xff] %vm6925_vm1, %v7942_v10 }
 0x982   :  { %v7392_v46 = vpop.f32.mrb[4].mxu1 }
 0x983   :  { %v6631_v1 = vadd.f32 %v7392_v46, %v11181_v55  ;;  %v6622_v38 = vpop.f32.mrb[5].mxu1 }
 0x984   :  { %v6623_v56 = vadd.f32 %v11181_v55, %v6622_v38  ;;  %v7393_v3 = vpop.f32.mrb[6].mxu1 }
 0x985   :  { %v7248_v12 = vmul.f32 -1.442695, %v6631_v1  ;;  %v6634_v43 = vadd.f32 %v7393_v3, %v11181_v55  ;;  %v6625_v17 = vpop.f32.mrb[7].mxu1 }
 0x986   :  { %v7246_v45 = vmul.f32 -1.442695, %v6623_v56  ;;  %v6626_v13 = vadd.f32 %v11181_v55, %v6625_v17 }
 0x987   :  { %7943 = vpow2.f32 %v7248_v12  ;;  %v7249_v41 = vmul.f32 -1.442695, %v6634_v43 }
 0x988   :  { %7945 = vpow2.f32 %v7246_v45  ;;  %v7247_v16 = vmul.f32 -1.442695, %v6626_v13  ;;  %v7368_v42 = vpop.f32.mrb[28].mxu0 }
 0x989   :  { %7947 = vpow2.f32 %v7249_v41  ;;  %v6447_v28 = vadd.f32 %v7368_v42, %v11052_v50  ;;  %v6438_v26 = vpop.f32.mrb[29].mxu0 }
 0x98a   :  { %7949 = vpow2.f32 %v7247_v16  ;;  %v6439_v49 = vadd.f32 %v11052_v50, %v6438_v26  ;;  %v7369_v35 = vpop.f32.mrb[30].mxu0 }
 0x98b   :  { %v6450_v7 = vadd.f32 %v7369_v35, %v11052_v50  ;;  %v6441_v18 = vpop.f32.mrb[31].mxu0  ;;  %v6483_v36 = vmax.f32 %v6447_v28, 0.0 }
 0x98c   :  { %v6442_v19 = vadd.f32 %v11052_v50, %v6441_v18  ;;  %v6481_v58 = vmax.f32 %v6439_v49, 0.0 }
 0x98d   :  { %v6484_v44 = vmax.f32 %v6450_v7, 0.0 }
 0x98e   :  { %v6482_v8 = vmax.f32 %v6442_v19, 0.0 }
 0x98f   :  { %v6500_v5 = vpack.c.bf16 %v6484_v44, %v6483_v36 }
 0x990   :  { %v6499_v54 = vpack.c.bf16 %v6482_v8, %v6481_v58 }
 0x991   :  { %v7944_v30 = vpop.eup %7943 }
 0x992   :  { %v7946_v33 = vpop.eup %7945  ;;  %v6835_v29 = vadd.f32 1.0, %v7944_v30  ;;  %7414 = vmatprep.mubr.bf16.mxu1 %v6499_v54 }
 0x993   :  { %v7948_v32 = vpop.eup %7947  ;;  %v6833_v25 = vadd.f32 1.0, %v7946_v33  ;;  %7415 = vmatmul.mubr.bf16.gmra.mrb[28].mxu1 %v6500_v5 }
 0x994   :  { %v7950_v23 = vpop.eup %7949  ;;  %7951 = vrcp.f32 %v6835_v29  ;;  %v6836_v6 = vadd.f32 1.0, %v7948_v32 }
 0x995   :  { %7953 = vrcp.f32 %v6833_v25  ;;  %v6834_v62 = vadd.f32 1.0, %v7950_v23 }
 0x996   :  { %7955 = vrcp.f32 %v6836_v6 }
 0x997   :  { %7957 = vrcp.f32 %v6834_v62 }
 0x99e   :  { %v7952_v50 = vpop.eup %7951 }
 0x99f   :  { %v7954_v52 = vpop.eup %7953  ;;  %6932 = vst.msk [vmem:[%s11366_s15 + $0x30] sm:$0xff] %vm6925_vm1, %v7952_v50 }
 0x9a0   :  { %v7956_v14 = vpop.eup %7955  ;;  %6930 = vst.msk [vmem:[%s11366_s15 + $0x20] sm:$0xff] %vm6925_vm1, %v7954_v52 }
 0x9a1   :  { %v7958_v31 = vpop.eup %7957  ;;  %6933 = vst.msk [vmem:[%s11366_s15 + $0x38] sm:$0xff] %vm6925_vm1, %v7956_v14 }
 0x9a2   :  { %6931 = vst.msk [vmem:[%s11366_s15 + $0x28] sm:$0xff] %vm6925_vm1, %v7958_v31 }
 0x9a8   :  { %v7396_v20 = vpop.f32.mrb[8].mxu1 }
 0x9a9   :  { %v6647_v22 = vadd.f32 %v7396_v20, %v11181_v55  ;;  %v6638_v61 = vpop.f32.mrb[9].mxu1 }
 0x9aa   :  { %v6639_v21 = vadd.f32 %v11181_v55, %v6638_v61  ;;  %v7397_v53 = vpop.f32.mrb[10].mxu1 }
 0x9ab   :  { %v7252_v11 = vmul.f32 -1.442695, %v6647_v22  ;;  %v6650_v9 = vadd.f32 %v7397_v53, %v11181_v55  ;;  %v6641_v34 = vpop.f32.mrb[11].mxu1 }
 0x9ac   :  { %v7250_v2 = vmul.f32 -1.442695, %v6639_v21  ;;  %v6642_v0 = vadd.f32 %v11181_v55, %v6641_v34 }
 0x9ad   :  { %7959 = vpow2.f32 %v7252_v11  ;;  %v7253_v37 = vmul.f32 -1.442695, %v6650_v9 }
 0x9ae   :  { %7961 = vpow2.f32 %v7250_v2  ;;  %v7251_v47 = vmul.f32 -1.442695, %v6642_v0 }
 0x9af   :  { %7963 = vpow2.f32 %v7253_v37 }
 0x9b0   :  { %7965 = vpow2.f32 %v7251_v47 }
 0x9b7   :  { %v7960_v15 = vpop.eup %7959 }
 0x9b8   :  { %v7962_v63 = vpop.eup %7961  ;;  %v6839_v39 = vadd.f32 1.0, %v7960_v15 }
 0x9b9   :  { %v7964_v51 = vpop.eup %7963  ;;  %v6837_v57 = vadd.f32 1.0, %v7962_v63 }
 0x9ba   :  { %v7966_v4 = vpop.eup %7965  ;;  %7967 = vrcp.f32 %v6839_v39  ;;  %v6840_v48 = vadd.f32 1.0, %v7964_v51 }
 0x9bb   :  { %7969 = vrcp.f32 %v6837_v57  ;;  %v6838_v59 = vadd.f32 1.0, %v7966_v4 }
 0x9bc   :  { %7971 = vrcp.f32 %v6840_v48 }
 0x9bd   :  { %7973 = vrcp.f32 %v6838_v59 }
 0x9c4   :  { %v7968_v27 = vpop.eup %7967 }
 0x9c5   :  { %v7970_v40 = vpop.eup %7969  ;;  %6936 = vst.msk [vmem:[%s11366_s15 + $0x50] sm:$0xff] %vm6925_vm1, %v7968_v27 }
 0x9c6   :  { %v7972_v24 = vpop.eup %7971  ;;  %6934 = vst.msk [vmem:[%s11366_s15 + $0x40] sm:$0xff] %vm6925_vm1, %v7970_v40 }
 0x9c7   :  { %v7974_v60 = vpop.eup %7973  ;;  %6937 = vst.msk [vmem:[%s11366_s15 + $0x58] sm:$0xff] %vm6925_vm1, %v7972_v24 }
 0x9c8   :  { %6935 = vst.msk [vmem:[%s11366_s15 + $0x48] sm:$0xff] %vm6925_vm1, %v7974_v60 }
 0x9ce   :  { %v7400_v10 = vpop.f32.mrb[12].mxu1 }
 0x9cf   :  { %v6663_v46 = vadd.f32 %v7400_v10, %v11181_v55  ;;  %v6654_v1 = vpop.f32.mrb[13].mxu1 }
 0x9d0   :  { %v6655_v38 = vadd.f32 %v11181_v55, %v6654_v1  ;;  %v7401_v56 = vpop.f32.mrb[14].mxu1 }
 0x9d1   :  { %v7256_v3 = vmul.f32 -1.442695, %v6663_v46  ;;  %v6666_v12 = vadd.f32 %v7401_v56, %v11181_v55  ;;  %v6657_v43 = vpop.f32.mrb[15].mxu1 }
 0x9d2   :  { %v7254_v17 = vmul.f32 -1.442695, %v6655_v38  ;;  %v6658_v45 = vadd.f32 %v11181_v55, %v6657_v43 }
 0x9d3   :  { %7975 = vpow2.f32 %v7256_v3  ;;  %v7257_v13 = vmul.f32 -1.442695, %v6666_v12 }
 0x9d4   :  { %7977 = vpow2.f32 %v7254_v17  ;;  %v7255_v41 = vmul.f32 -1.442695, %v6658_v45 }
 0x9d5   :  { %7979 = vpow2.f32 %v7257_v13 }
 0x9d6   :  { %7981 = vpow2.f32 %v7255_v41 }
 0x9dd   :  { %v7976_v16 = vpop.eup %7975 }
 0x9de   :  { %v7978_v42 = vpop.eup %7977  ;;  %v6843_v28 = vadd.f32 1.0, %v7976_v16 }
 0x9df   :  { %v7980_v26 = vpop.eup %7979  ;;  %v6841_v49 = vadd.f32 1.0, %v7978_v42 }
 0x9e0   :  { %v7982_v35 = vpop.eup %7981  ;;  %7983 = vrcp.f32 %v6843_v28  ;;  %v6844_v7 = vadd.f32 1.0, %v7980_v26 }
 0x9e1   :  { %7985 = vrcp.f32 %v6841_v49  ;;  %v6842_v18 = vadd.f32 1.0, %v7982_v35 }
 0x9e2   :  { %7987 = vrcp.f32 %v6844_v7 }
 0x9e3   :  { %7989 = vrcp.f32 %v6842_v18 }
 0x9ea   :  { %v7984_v19 = vpop.eup %7983 }
 0x9eb   :  { %v7986_v36 = vpop.eup %7985  ;;  %6940 = vst.msk [vmem:[%s11366_s15 + $0x70] sm:$0xff] %vm6925_vm1, %v7984_v19 }
 0x9ec   :  { %v7988_v44 = vpop.eup %7987  ;;  %6938 = vst.msk [vmem:[%s11366_s15 + $0x60] sm:$0xff] %vm6925_vm1, %v7986_v36 }
 0x9ed   :  { %v7990_v58 = vpop.eup %7989  ;;  %6941 = vst.msk [vmem:[%s11366_s15 + $0x78] sm:$0xff] %vm6925_vm1, %v7988_v44 }
 0x9ee   :  { %6939 = vst.msk [vmem:[%s11366_s15 + $0x68] sm:$0xff] %vm6925_vm1, %v7990_v58 }
 0x9f4   :  { %v7404_v8 = vpop.f32.mrb[16].mxu1 }
 0x9f5   :  { %v6679_v5 = vadd.f32 %v7404_v8, %v11181_v55  ;;  %v6670_v54 = vpop.f32.mrb[17].mxu1 }
 0x9f6   :  { %v6671_v30 = vadd.f32 %v11181_v55, %v6670_v54  ;;  %v7405_v33 = vpop.f32.mrb[18].mxu1 }
 0x9f7   :  { %v7260_v29 = vmul.f32 -1.442695, %v6679_v5  ;;  %v6682_v32 = vadd.f32 %v7405_v33, %v11181_v55  ;;  %v6673_v25 = vpop.f32.mrb[19].mxu1 }
 0x9f8   :  { %v7258_v23 = vmul.f32 -1.442695, %v6671_v30  ;;  %v6674_v6 = vadd.f32 %v11181_v55, %v6673_v25 }
 0x9f9   :  { %7991 = vpow2.f32 %v7260_v29  ;;  %v7261_v62 = vmul.f32 -1.442695, %v6682_v32 }
 0x9fa   :  { %7993 = vpow2.f32 %v7258_v23  ;;  %v7259_v50 = vmul.f32 -1.442695, %v6674_v6 }
 0x9fb   :  { %7995 = vpow2.f32 %v7261_v62 }
 0x9fc   :  { %7997 = vpow2.f32 %v7259_v50 }
 0xa03   :  { %v7992_v52 = vpop.eup %7991 }
 0xa04   :  { %v7994_v14 = vpop.eup %7993  ;;  %v6847_v31 = vadd.f32 1.0, %v7992_v52 }
 0xa05   :  { %v7996_v20 = vpop.eup %7995  ;;  %v6845_v22 = vadd.f32 1.0, %v7994_v14 }
 0xa06   :  { %v7998_v61 = vpop.eup %7997  ;;  %7999 = vrcp.f32 %v6847_v31  ;;  %v6848_v21 = vadd.f32 1.0, %v7996_v20 }
 0xa07   :  { %8001 = vrcp.f32 %v6845_v22  ;;  %v6846_v53 = vadd.f32 1.0, %v7998_v61 }
 0xa08   :  { %8003 = vrcp.f32 %v6848_v21 }
 0xa09   :  { %8005 = vrcp.f32 %v6846_v53 }
 0xa10   :  { %v8000_v11 = vpop.eup %7999 }
 0xa11   :  { %v8002_v9 = vpop.eup %8001  ;;  %6944 = vst.msk [vmem:[%s11366_s15 + $0x90] sm:$0xff] %vm6925_vm1, %v8000_v11 }
 0xa12   :  { %v8004_v34 = vpop.eup %8003  ;;  %6942 = vst.msk [vmem:[%s11366_s15 + $0x80] sm:$0xff] %vm6925_vm1, %v8002_v9 }
 0xa13   :  { %v8006_v2 = vpop.eup %8005  ;;  %6945 = vst.msk [vmem:[%s11366_s15 + $0x98] sm:$0xff] %vm6925_vm1, %v8004_v34 }
 0xa14   :  { %6943 = vst.msk [vmem:[%s11366_s15 + $0x88] sm:$0xff] %vm6925_vm1, %v8006_v2 }
 0xa1a   :  { %v7408_v0 = vpop.f32.mrb[20].mxu1 }
 0xa1b   :  { %v6695_v37 = vadd.f32 %v7408_v0, %v11181_v55  ;;  %v6686_v47 = vpop.f32.mrb[21].mxu1 }
 0xa1c   :  { %v6687_v15 = vadd.f32 %v11181_v55, %v6686_v47  ;;  %v7409_v63 = vpop.f32.mrb[22].mxu1 }
 0xa1d   :  { %v7264_v39 = vmul.f32 -1.442695, %v6695_v37  ;;  %v6698_v51 = vadd.f32 %v7409_v63, %v11181_v55  ;;  %v6689_v57 = vpop.f32.mrb[23].mxu1 }
 0xa1e   :  { %v7262_v4 = vmul.f32 -1.442695, %v6687_v15  ;;  %v6690_v48 = vadd.f32 %v11181_v55, %v6689_v57 }
 0xa1f   :  { %8007 = vpow2.f32 %v7264_v39  ;;  %v7265_v59 = vmul.f32 -1.442695, %v6698_v51 }
 0xa20   :  { %8009 = vpow2.f32 %v7262_v4  ;;  %v7263_v27 = vmul.f32 -1.442695, %v6690_v48 }
 0xa21   :  { %8011 = vpow2.f32 %v7265_v59 }
 0xa22   :  { %8013 = vpow2.f32 %v7263_v27 }
 0xa29   :  { %v8008_v40 = vpop.eup %8007 }
 0xa2a   :  { %v8010_v24 = vpop.eup %8009  ;;  %v6851_v60 = vadd.f32 1.0, %v8008_v40 }
 0xa2b   :  { %v8012_v10 = vpop.eup %8011  ;;  %v6849_v46 = vadd.f32 1.0, %v8010_v24 }
 0xa2c   :  { %v8014_v1 = vpop.eup %8013  ;;  %8015 = vrcp.f32 %v6851_v60  ;;  %v6852_v38 = vadd.f32 1.0, %v8012_v10 }
 0xa2d   :  { %8017 = vrcp.f32 %v6849_v46  ;;  %v6850_v56 = vadd.f32 1.0, %v8014_v1 }
 0xa2e   :  { %8019 = vrcp.f32 %v6852_v38 }
 0xa2f   :  { %8021 = vrcp.f32 %v6850_v56 }
 0xa36   :  { %v8016_v3 = vpop.eup %8015 }
 0xa37   :  { %v8018_v12 = vpop.eup %8017  ;;  %6948 = vst.msk [vmem:[%s11366_s15 + $0xb0] sm:$0xff] %vm6925_vm1, %v8016_v3 }
 0xa38   :  { %v8020_v43 = vpop.eup %8019  ;;  %6946 = vst.msk [vmem:[%s11366_s15 + $0xa0] sm:$0xff] %vm6925_vm1, %v8018_v12 }
 0xa39   :  { %v8022_v17 = vpop.eup %8021  ;;  %6949 = vst.msk [vmem:[%s11366_s15 + $0xb8] sm:$0xff] %vm6925_vm1, %v8020_v43 }
 0xa3a   :  { %6947 = vst.msk [vmem:[%s11366_s15 + $0xa8] sm:$0xff] %vm6925_vm1, %v8022_v17 }
 0xa40   :  { %v7412_v45 = vpop.f32.mrb[24].mxu1 }
 0xa41   :  { %v6711_v13 = vadd.f32 %v7412_v45, %v11181_v55  ;;  %v6702_v41 = vpop.f32.mrb[25].mxu1 }
 0xa42   :  { %v6703_v16 = vadd.f32 %v11181_v55, %v6702_v41  ;;  %v7413_v42 = vpop.f32.mrb[26].mxu1 }
 0xa43   :  { %v7268_v28 = vmul.f32 -1.442695, %v6711_v13  ;;  %v6714_v26 = vadd.f32 %v7413_v42, %v11181_v55  ;;  %v6705_v49 = vpop.f32.mrb[27].mxu1 }
 0xa44   :  { %v7266_v35 = vmul.f32 -1.442695, %v6703_v16  ;;  %v6706_v7 = vadd.f32 %v11181_v55, %v6705_v49 }
 0xa45   :  { %8023 = vpow2.f32 %v7268_v28  ;;  %v7269_v18 = vmul.f32 -1.442695, %v6714_v26 }
 0xa46   :  { %8025 = vpow2.f32 %v7266_v35  ;;  %v7267_v19 = vmul.f32 -1.442695, %v6706_v7 }
 0xa47   :  { %8027 = vpow2.f32 %v7269_v18 }
 0xa48   :  { %8029 = vpow2.f32 %v7267_v19 }
 0xa4f   :  { %v8024_v36 = vpop.eup %8023 }
 0xa50   :  { %v8026_v44 = vpop.eup %8025  ;;  %v6855_v58 = vadd.f32 1.0, %v8024_v36 }
 0xa51   :  { %v8028_v8 = vpop.eup %8027  ;;  %v6853_v5 = vadd.f32 1.0, %v8026_v44 }
 0xa52   :  { %v8030_v54 = vpop.eup %8029  ;;  %8031 = vrcp.f32 %v6855_v58  ;;  %v6856_v30 = vadd.f32 1.0, %v8028_v8 }
 0xa53   :  { %8033 = vrcp.f32 %v6853_v5  ;;  %v6854_v33 = vadd.f32 1.0, %v8030_v54 }
 0xa54   :  { %8035 = vrcp.f32 %v6856_v30 }
 0xa55   :  { %8037 = vrcp.f32 %v6854_v33 }
 0xa5c   :  { %v8032_v29 = vpop.eup %8031 }
 0xa5d   :  { %v8034_v32 = vpop.eup %8033  ;;  %6952 = vst.msk [vmem:[%s11366_s15 + $0xd0] sm:$0xff] %vm6925_vm1, %v8032_v29 }
 0xa5e   :  { %v8036_v25 = vpop.eup %8035  ;;  %6950 = vst.msk [vmem:[%s11366_s15 + $0xc0] sm:$0xff] %vm6925_vm1, %v8034_v32 }
 0xa5f   :  { %v8038_v23 = vpop.eup %8037  ;;  %6953 = vst.msk [vmem:[%s11366_s15 + $0xd8] sm:$0xff] %vm6925_vm1, %v8036_v25 }
 0xa60   :  { %6951 = vst.msk [vmem:[%s11366_s15 + $0xc8] sm:$0xff] %vm6925_vm1, %v8038_v23 }
 0xa66   :  { %v7416_v6 = vpop.f32.mrb[28].mxu1 }
 0xa67   :  { %v6727_v62 = vadd.f32 %v7416_v6, %v11181_v55  ;;  %v6718_v50 = vpop.f32.mrb[29].mxu1 }
 0xa68   :  { %v6719_v52 = vadd.f32 %v11181_v55, %v6718_v50  ;;  %v7417_v14 = vpop.f32.mrb[30].mxu1 }
 0xa69   :  { %v7272_v31 = vmul.f32 -1.442695, %v6727_v62  ;;  %v6730_v20 = vadd.f32 %v7417_v14, %v11181_v55  ;;  %v6721_v22 = vpop.f32.mrb[31].mxu1 }
 0xa6a   :  { %v7270_v61 = vmul.f32 -1.442695, %v6719_v52  ;;  %v6722_v21 = vadd.f32 %v11181_v55, %v6721_v22 }
 0xa6b   :  { %8039 = vpow2.f32 %v7272_v31  ;;  %v7273_v53 = vmul.f32 -1.442695, %v6730_v20 }
 0xa6c   :  { %8041 = vpow2.f32 %v7270_v61  ;;  %v7271_v11 = vmul.f32 -1.442695, %v6722_v21 }
 0xa6d   :  { %8043 = vpow2.f32 %v7273_v53 }
 0xa6e   :  { %8045 = vpow2.f32 %v7271_v11 }
 0xa75   :  { %v8040_v9 = vpop.eup %8039 }
 0xa76   :  { %v8042_v34 = vpop.eup %8041  ;;  %v6859_v2 = vadd.f32 1.0, %v8040_v9 }
 0xa77   :  { %v8044_v0 = vpop.eup %8043  ;;  %v6857_v37 = vadd.f32 1.0, %v8042_v34 }
 0xa78   :  { %v8046_v47 = vpop.eup %8045  ;;  %8047 = vrcp.f32 %v6859_v2  ;;  %v6860_v15 = vadd.f32 1.0, %v8044_v0 }
 0xa79   :  { %8049 = vrcp.f32 %v6857_v37  ;;  %v6858_v63 = vadd.f32 1.0, %v8046_v47 }
 0xa7a   :  { %8051 = vrcp.f32 %v6860_v15 }
 0xa7b   :  { %8053 = vrcp.f32 %v6858_v63 }
 0xa82   :  { %v8048_v39 = vpop.eup %8047 }
 0xa83   :  { %v8050_v55 = vpop.eup %8049  ;;  %6956 = vst.msk [vmem:[%s11366_s15 + $0xf0] sm:$0xff] %vm6925_vm1, %v8048_v39 }
 0xa84   :  { %v8052_v51 = vpop.eup %8051  ;;  %6954 = vst.msk [vmem:[%s11366_s15 + $0xe0] sm:$0xff] %vm6925_vm1, %v8050_v55 }
 0xa85   :  { %v8054_v57 = vpop.eup %8053  ;;  %6957 = vst.msk [vmem:[%s11366_s15 + $0xf8] sm:$0xff] %vm6925_vm1, %v8052_v51 }
 0xa86   :  { %6955 = vst.msk [vmem:[%s11366_s15 + $0xe8] sm:$0xff] %vm6925_vm1, %v8054_v57 }
 0xa87   :  { %6962 = vsyncpa [#allocation3], 1 }

</bundles_post_ra>
